<compile_context>
chip_gen: v6e
topology: v6e:2x2x1
jax: 0.10.0
libtpu: 0.0.40
codegen_flags: <defaults>
</compile_context>

<pallas_src>
import jax
import jax.numpy as jnp
from jax import lax
from jax.experimental import pallas as pl
from jax.experimental.pallas import tpu as pltpu


C_PAD = 128    # conv1/conv2 channel counts (32 / 64) zero-padded to a full lane tile
P1 = 196       # 14*14 pixels after conv1+pool1
P1_PAD = 200   # padded to a multiple of 8 so the 4 pool-position row blocks stay tile aligned
P2 = 49        # 7*7 pixels after conv2+pool2
K1 = 16        # conv1 im2col taps (9) zero-padded to 16


# ----------------------------- Pallas kernels ------------------------------

def fused_conv_kernel(p1_ref, w1_ref, b1_ref, w2_ref, b2_ref, emask_ref, psel_ref,
                      o_ref, h1pad_ref, c2pad_ref):
    """Fused conv1+ReLU+pool1+conv2+ReLU+pool2 for ONE image.

    p1_ref   : (1, 800, 16) bf16   conv1 im2col patches, rows = pool_pos*200 + pixel
    w1_ref   : (16, 128)    bf16   conv1 weights (taps x padded Cout)
    b1_ref   : (1, 128)     f32
    w2_ref   : (9, 128, 128) bf16  conv2 weights per 3x3 tap (padded Cin x padded Cout)
    b2_ref   : (1, 128)     f32
    emask_ref: (196, 2)     f32    column masks for the dx=-1 / dx=+1 row shifts
    psel_ref : (49, 196)    bf16   0/1 selection matrix: pool anchor per pooled pixel
    o_ref    : (1, 49, 128) bf16   relu(conv2)+pool2 output (channels padded to 128)
    h1pad_ref: (232, 128)   f32    VMEM scratch: row-padded conv1+pool1 output
    c2pad_ref: (224, 128)   f32    VMEM scratch: row-padded conv2 output (pre-pool)
    """
    # ---- conv1: one big MXU matmul over all 4 pool positions at once ----
    c1 = jnp.dot(p1_ref[0], w1_ref[...],
                 preferred_element_type=jnp.float32)          # (800, 128) f32
    # 2x2 max-pool = elementwise max of the 4 tile-aligned pool-position row blocks
    h1 = jnp.maximum(jnp.maximum(c1[0:196], c1[200:396]),
                     jnp.maximum(c1[400:596], c1[600:796]))   # (196, 128)
    h1 = jnp.maximum(h1 + b1_ref[...], 0.0)                   # bias + ReLU (f32 on VPU)

    # ---- stage conv1 output in a row-padded VMEM scratch for the conv2 shifts ----
    # flat pixel f = y*14 + x lives at scratch row 16 + f; rows outside are zeros,
    # which supplies the dy = +/-1 spatial zero padding for free.
    h1pad_ref[...] = jnp.zeros_like(h1pad_ref)
    h1pad_ref[16:212, :] = h1

    # ---- conv2: 9 shifted matmuls accumulated in f32 (intermediate stays in VMEM) ----
    acc = None
    for ky in range(3):
        for kx in range(3):
            dy, dx = ky - 1, kx - 1
            start = 16 + dy * 14 + dx
            win = h1pad_ref[start:start + 196, :]             # (196, 128) f32
            if dx == -1:                                      # zero pixels with x == 0
                win = win * emask_ref[:, 0:1]
            elif dx == 1:                                     # zero pixels with x == 13
                win = win * emask_ref[:, 1:2]
            part = jnp.dot(win.astype(jnp.bfloat16), w2_ref[ky * 3 + kx],
                           preferred_element_type=jnp.float32)
            acc = part if acc is None else acc + part
    c2 = jnp.maximum(acc + b2_ref[...], 0.0)                  # (196, 128)

    # ---- 2x2 max-pool: shifted maxima (+1, +14, +15 rows) then a 0/1 selection matmul ----
    c2pad_ref[...] = jnp.zeros_like(c2pad_ref)
    c2pad_ref[0:196, :] = c2
    m = jnp.maximum(jnp.maximum(c2, c2pad_ref[1:197, :]),
                    jnp.maximum(c2pad_ref[14:210, :], c2pad_ref[15:211, :]))
    # pooled[py*7+px, :] = m[28*py + 2*px, :]  (0/1 selector -> exact in bf16, f32 acc).
    # Output is stored directly as bf16: it feeds a bf16 MXU matmul in the MLP, so this
    # is bitwise identical to storing f32 and casting outside, at half the HBM traffic.
    o_ref[0] = jnp.dot(psel_ref[...], m.astype(jnp.bfloat16),
                       preferred_element_type=jnp.float32).astype(o_ref.dtype)  # (49, 128)


def mlp_kernel(x_ref, w1_ref, b1_ref, w2_ref, b2_ref, w3_ref, b3_ref, o_ref):
    """linear1 -> ReLU -> linear2 -> ReLU -> linear3, fused (bf16 MXU, f32 elementwise)."""
    h = jnp.dot(x_ref[...], w1_ref[...], preferred_element_type=jnp.float32) + b1_ref[...]
    h = jnp.maximum(h, 0.0).astype(jnp.bfloat16)
    h = jnp.dot(h, w2_ref[...], preferred_element_type=jnp.float32) + b2_ref[...]
    h = jnp.maximum(h, 0.0).astype(jnp.bfloat16)
    o_ref[...] = jnp.dot(h, w3_ref[...], preferred_element_type=jnp.float32) + b3_ref[...]


# ------------------------------ pallas_call wrappers ------------------------

def fused_convs(p1, pp):
    """p1: (N, 800, 16) bf16 conv1 patches -> (N, 49, 128) bf16 pooled conv2 output."""
    N = p1.shape[0]
    return pl.pallas_call(
        fused_conv_kernel,
        out_shape=jax.ShapeDtypeStruct((N, P2, C_PAD), jnp.bfloat16),
        grid_spec=pltpu.PrefetchScalarGridSpec(
            num_scalar_prefetch=0,
            grid=(N,),                                   # one image per step; "parallel"
            in_specs=[
                pl.BlockSpec((1, 4 * P1_PAD, K1), lambda n: (n, 0, 0)),
                pl.BlockSpec((K1, C_PAD), lambda n: (0, 0)),
                pl.BlockSpec((1, C_PAD), lambda n: (0, 0)),
                pl.BlockSpec((9, C_PAD, C_PAD), lambda n: (0, 0, 0)),
                pl.BlockSpec((1, C_PAD), lambda n: (0, 0)),
                pl.BlockSpec((P1, 2), lambda n: (0, 0)),
                pl.BlockSpec((P2, P1), lambda n: (0, 0)),
            ],
            # lane-dense output: minor dim is a full 128-lane tile (no masked vst)
            out_specs=pl.BlockSpec((1, P2, C_PAD), lambda n: (n, 0, 0)),
            scratch_shapes=[
                pltpu.VMEM((232, C_PAD), jnp.float32),   # row-padded conv1+pool1 output
                pltpu.VMEM((224, C_PAD), jnp.float32),   # row-padded conv2 output
            ],
        ),
        compiler_params=pltpu.CompilerParams(
            dimension_semantics=("parallel",),           # splits across v7x's 2 TCs
        ),
    )(p1, pp["c1w"], pp["c1b"], pp["c2w"], pp["c2b"], pp["emask"], pp["psel"])


def mlp(flat_bf16, pp):
    """flat: (N, 6272) bf16 -> (N, 128) f32 padded logits (first 10 are real)."""
    N, F = flat_bf16.shape
    m_blk = min(N, 256)                                  # batch tile (MXU-width aligned for big N)
    grid = (pl.cdiv(N, m_blk),)
    # NOTE: blocked BlockSpecs default to VMEM; weights use constant index maps so they
    # are DMA'd once and stay resident across batch tiles.
    return pl.pallas_call(
        mlp_kernel,
        out_shape=jax.ShapeDtypeStruct((N, 128), jnp.float32),
        grid_spec=pltpu.PrefetchScalarGridSpec(
            num_scalar_prefetch=0,
            grid=grid,
            in_specs=[
                pl.BlockSpec((m_blk, F), lambda i: (i, 0)),
                pl.BlockSpec((F, 200), lambda i: (0, 0)),
                pl.BlockSpec((1, 200), lambda i: (0, 0)),
                pl.BlockSpec((200, 84), lambda i: (0, 0)),
                pl.BlockSpec((1, 84), lambda i: (0, 0)),
                pl.BlockSpec((84, 128), lambda i: (0, 0)),
                pl.BlockSpec((1, 128), lambda i: (0, 0)),
            ],
            out_specs=pl.BlockSpec((m_blk, 128), lambda i: (i, 0)),
        ),
        compiler_params=pltpu.CompilerParams(dimension_semantics=("parallel",)),
    )(flat_bf16, pp["f1w"], pp["f1b"], pp["f2w"], pp["f2b"], pp["f3w"], pp["f3b"])


# ------------------------------ JAX glue -----------------------------------

def conv1_pool_patches(x_nchw):
    """(N,1,28,28) -> (N, 800, 16) bf16 im2col patches grouped by 2x2 pool position.

    Row index = pool_pos*200 + (p1y*14 + p1x);  column = ky*3 + kx (padded to 16).
    """
    N = x_nchw.shape[0]
    xp = jnp.pad(x_nchw[:, 0], ((0, 0), (1, 1), (1, 1)))                 # (N,30,30)
    taps = jnp.stack([xp[:, ky:ky + 28, kx:kx + 28]
                      for ky in range(3) for kx in range(3)], axis=-1)   # (N,28,28,9)
    t = taps.reshape(N, 14, 2, 14, 2, 9).transpose(0, 2, 4, 1, 3, 5)     # (N,2,2,14,14,9)
    t = t.reshape(N, 4, P1, 9)
    t = jnp.pad(t, ((0, 0), (0, 0), (0, P1_PAD - P1), (0, K1 - 9)))
    return t.reshape(N, 4 * P1_PAD, K1).astype(jnp.bfloat16)


def prepare_params(params):
    """One-time weight prep: reshape/pad/permute + bf16 cast (keeps biases in f32)."""
    f32, bf16 = jnp.float32, jnp.bfloat16

    # conv1: (32,1,3,3) -> (tap, Cout) padded to (16, 128)
    w1 = jnp.transpose(params["conv1_w"], (2, 3, 1, 0)).reshape(9, 32)
    w1 = jnp.pad(w1, ((0, K1 - 9), (0, C_PAD - 32))).astype(bf16)
    b1 = jnp.pad(params["conv1_b"], (0, C_PAD - 32)).reshape(1, C_PAD).astype(f32)

    # conv2: (64,32,3,3) -> (tap, Cin, Cout) padded to (9, 128, 128)
    w2 = jnp.transpose(params["conv2_w"], (2, 3, 1, 0)).reshape(9, 32, 64)
    w2 = jnp.pad(w2, ((0, 0), (0, C_PAD - 32), (0, C_PAD - 64))).astype(bf16)
    b2 = jnp.pad(params["conv2_b"], (0, C_PAD - 64)).reshape(1, C_PAD).astype(f32)

    # fc1: permute rows once so it consumes the kernel's (pixel-major, 128-padded-channel)
    # flatten directly -> removes the runtime NHWC->NCHW activation transpose.
    w_fc1 = params["fc1_w"].T.reshape(64, P2, 200)        # torch rows were c*49 + p
    w_fc1 = jnp.transpose(w_fc1, (1, 0, 2))               # (p, c, 200)
    w_fc1 = jnp.pad(w_fc1, ((0, 0), (0, C_PAD - 64), (0, 0)))
    w_fc1 = w_fc1.reshape(P2 * C_PAD, 200).astype(bf16)   # row = p*128 + c
    b_fc1 = params["fc1_b"].reshape(1, 200).astype(f32)

    w_fc2 = params["fc2_w"].T.astype(bf16)                # (200, 84)
    b_fc2 = params["fc2_b"].reshape(1, 84).astype(f32)

    # fc3: pad the 10 logits out to a full 128-lane store; sliced back in the wrapper.
    w_fc3 = jnp.pad(params["fc3_w"].T, ((0, 0), (0, 128 - 10))).astype(bf16)   # (84,128)
    b_fc3 = jnp.pad(params["fc3_b"], (0, 128 - 10)).reshape(1, 128).astype(f32)

    # conv2 edge masks: zero the pixels whose x coordinate would wrap under dx = -1 / +1.
    xcoord = jnp.arange(P1) % 14
    emask = jnp.stack([(xcoord != 0), (xcoord != 13)], axis=1).astype(f32)     # (196, 2)

    # 0/1 selection matrix: pooled pixel i = py*7+px picks conv2 pixel 28*py + 2*px.
    # bf16: exact for a 0/1 selector with f32 MXU accumulation, avoids a slow f32 matmul.
    rows = jnp.arange(P2)
    anchors = 28 * (rows // 7) + 2 * (rows % 7)
    psel = jnp.zeros((P2, P1), f32).at[rows, anchors].set(1.0).astype(bf16)

    return {"c1w": w1, "c1b": b1, "c2w": w2, "c2b": b2,
            "f1w": w_fc1, "f1b": b_fc1, "f2w": w_fc2, "f2b": b_fc2,
            "f3w": w_fc3, "f3b": b_fc3, "emask": emask, "psel": psel}


@jax.jit
def lenet5_forward(prepped, x_nchw):
    N = x_nchw.shape[0]
    p1 = conv1_pool_patches(x_nchw.astype(jnp.float32))   # (N, 800, 16) bf16
    h2 = fused_convs(p1, prepped)                         # (N, 49, 128) bf16
    flat = h2.reshape(N, P2 * C_PAD)                      # free reshape, matches fc1 prep
    logits = mlp(flat, prepped)                           # (N, 128) f32
    return logits[:, :10]


# ----------------------- reference (pure JAX f32, for check) -----------------

def lenet5_reference(params, x):
    dn = ("NCHW", "OIHW", "NCHW")

    def block(h, w, b):
        h = lax.conv_general_dilated(h, w, (1, 1), ((1, 1), (1, 1)), dimension_numbers=dn)
        h = jnp.maximum(h + b[None, :, None, None], 0.0)
        n, c, hh, ww = h.shape
        return h.reshape(n, c, hh // 2, 2, ww // 2, 2).max(axis=(3, 5))

    h = block(x, params["conv1_w"], params["conv1_b"])
    h = block(h, params["conv2_w"], params["conv2_b"])
    flat = h.reshape(h.shape[0], -1)
    h = jnp.maximum(flat @ params["fc1_w"].T + params["fc1_b"], 0.0)
    h = jnp.maximum(h @ params["fc2_w"].T + params["fc2_b"], 0.0)
    return h @ params["fc3_w"].T + params["fc3_b"]


# ------------------------------ parameters ----------------------------------

def init_params(key):
    ks = jax.random.split(key, 10)

    def n(k, shape, scale):
        return (scale * jax.random.normal(k, shape, jnp.float32)).astype(jnp.float32)

    return {
        "conv1_w": n(ks[0], (32, 1, 3, 3), 0.30),   # nn.Conv2d(1, 32, 3, padding=1)
        "conv1_b": n(ks[1], (32,), 0.10),
        "conv2_w": n(ks[2], (64, 32, 3, 3), 0.06),  # nn.Conv2d(32, 64, 3, padding=1)
        "conv2_b": n(ks[3], (64,), 0.10),
        "fc1_w":   n(ks[4], (200, 3136), 0.02),     # nn.Linear(7*7*64, 200)
        "fc1_b":   n(ks[5], (200,), 0.10),
        "fc2_w":   n(ks[6], (84, 200), 0.07),       # nn.Linear(200, 84)
        "fc2_b":   n(ks[7], (84,), 0.10),
        "fc3_w":   n(ks[8], (10, 84), 0.10),        # nn.Linear(84, 10)
        "fc3_b":   n(ks[9], (10,), 0.10),
    }


# --------------------------------- main --------------------------------------

if __name__ == "__main__":
    key = jax.random.PRNGKey(0)
    pkey, xkey = jax.random.split(key)
    params = init_params(pkey)
    prepped = prepare_params(params)          # one-time weight prep

    # LeNet5's linear1 (7*7*64) fixes the spatial size to 28x28; batch kept small.
    x = jax.random.normal(xkey, (2, 1, 28, 28), jnp.float32)   # NCHW like PyTorch

    out = jax.block_until_ready(lenet5_forward(prepped, x))
    assert out.shape == (2, 10), out.shape

    ref = lenet5_reference(params, x)
    # bf16 matmuls vs f32 reference -> comfortably inside 5e-2
    assert jnp.allclose(out, ref, rtol=5e-2, atol=5e-2), float(jnp.max(jnp.abs(out - ref)))

    print("KERNEL_OK")
</pallas_src>

<mosaic_0001>
module attributes {stable_mosaic.version = 11 : i64} {
  func.func @fused_conv_kernel(%arg0: i32, %arg1: memref<1x800x16xbf16, #tpu.memory_space<vmem>>, %arg2: memref<16x128xbf16, #tpu.memory_space<vmem>>, %arg3: memref<1x128xf32, #tpu.memory_space<vmem>>, %arg4: memref<9x128x128xbf16, #tpu.memory_space<vmem>>, %arg5: memref<1x128xf32, #tpu.memory_space<vmem>>, %arg6: memref<196x2xf32, #tpu.memory_space<vmem>>, %arg7: memref<49x196xbf16, #tpu.memory_space<vmem>>, %arg8: memref<1x49x128xbf16, #tpu.memory_space<vmem>>, %arg9: memref<232x128xf32, #tpu.memory_space<vmem>>, %arg10: memref<224x128xf32, #tpu.memory_space<vmem>>) attributes {dimension_semantics = [#tpu.dimension_semantics<parallel>], iteration_bounds = array<i64: 2>, scalar_prefetch = 0 : i64, scratch_operands = 2 : i64, tpu.core_type = #tpu.core_type<tc>, window_params = [{transform_indices = @transform_0, window_bounds = array<i64: 1, 800, 16>}, {pipeline_mode = #tpu.pipeline_mode<synchronous>, transform_indices = @transform_1, window_bounds = array<i64: 16, 128>}, {pipeline_mode = #tpu.pipeline_mode<synchronous>, transform_indices = @transform_2, window_bounds = array<i64: 1, 128>}, {pipeline_mode = #tpu.pipeline_mode<synchronous>, transform_indices = @transform_3, window_bounds = array<i64: 9, 128, 128>}, {pipeline_mode = #tpu.pipeline_mode<synchronous>, transform_indices = @transform_4, window_bounds = array<i64: 1, 128>}, {pipeline_mode = #tpu.pipeline_mode<synchronous>, transform_indices = @transform_5, window_bounds = array<i64: 196, 2>}, {pipeline_mode = #tpu.pipeline_mode<synchronous>, transform_indices = @transform_6, window_bounds = array<i64: 49, 196>}, {transform_indices = @transform_7, window_bounds = array<i64: 1, 49, 128>}]} {
    %c0 = arith.constant 0 : index
    %c0_0 = arith.constant 0 : index
    %c0_1 = arith.constant 0 : index
    %0 = vector.load %arg1[%c0, %c0_0, %c0_1] : memref<1x800x16xbf16, #tpu.memory_space<vmem>>, vector<1x800x16xbf16>
    %1 = vector.shape_cast %0 : vector<1x800x16xbf16> to vector<800x16xbf16>
    %c0_2 = arith.constant 0 : index
    %c0_3 = arith.constant 0 : index
    %2 = vector.load %arg2[%c0_2, %c0_3] : memref<16x128xbf16, #tpu.memory_space<vmem>>, vector<16x128xbf16>
    %cst = arith.constant dense<0.000000e+00> : vector<800x128xf32>
    %3 = tpu.matmul %1, %2, %cst {dimension_numbers = #tpu.dot_dimension_numbers<[1], [0], [0], [1], [0, 0, 1, 1], [], []>} : vector<800x16xbf16>, vector<16x128xbf16>, vector<800x128xf32> -> vector<800x128xf32>
    %4 = vector.extract_strided_slice %3 {offsets = [0, 0], sizes = [196, 128], strides = [1, 1]} : vector<800x128xf32> to vector<196x128xf32>
    %5 = vector.extract_strided_slice %3 {offsets = [200, 0], sizes = [196, 128], strides = [1, 1]} : vector<800x128xf32> to vector<196x128xf32>
    %6 = arith.maximumf %4, %5 : vector<196x128xf32>
    %7 = vector.extract_strided_slice %3 {offsets = [400, 0], sizes = [196, 128], strides = [1, 1]} : vector<800x128xf32> to vector<196x128xf32>
    %8 = vector.extract_strided_slice %3 {offsets = [600, 0], sizes = [196, 128], strides = [1, 1]} : vector<800x128xf32> to vector<196x128xf32>
    %9 = arith.maximumf %7, %8 : vector<196x128xf32>
    %10 = arith.maximumf %6, %9 : vector<196x128xf32>
    %c0_4 = arith.constant 0 : index
    %c0_5 = arith.constant 0 : index
    %11 = vector.load %arg3[%c0_4, %c0_5] : memref<1x128xf32, #tpu.memory_space<vmem>>, vector<1x128xf32>
    %12 = vector.broadcast %11 : vector<1x128xf32> to vector<196x128xf32>
    %13 = arith.addf %10, %12 : vector<196x128xf32>
    %cst_6 = arith.constant 0.000000e+00 : f32
    %14 = vector.broadcast %cst_6 : f32 to vector<196x128xf32>
    %15 = arith.maximumf %13, %14 : vector<196x128xf32>
    %cst_7 = arith.constant 0.000000e+00 : f32
    %16 = vector.broadcast %cst_7 : f32 to vector<232x128xf32>
    %c0_8 = arith.constant 0 : index
    %c0_9 = arith.constant 0 : index
    %17 = vector.load %arg9[%c0_8, %c0_9] : memref<232x128xf32, #tpu.memory_space<vmem>>, vector<232x128xf32>
    tpu.vector_store %arg9[%c0_8, %c0_9], %16 {strides = array<i32>} : memref<232x128xf32, #tpu.memory_space<vmem>>, vector<232x128xf32>,
    %c16 = arith.constant 16 : index
    %c0_10 = arith.constant 0 : index
    %18 = vector.load %arg9[%c16, %c0_10] : memref<232x128xf32, #tpu.memory_space<vmem>>, vector<196x128xf32>
    tpu.vector_store %arg9[%c16, %c0_10], %15 {strides = array<i32>} : memref<232x128xf32, #tpu.memory_space<vmem>>, vector<196x128xf32>,
    %c1 = arith.constant 1 : index
    %c0_11 = arith.constant 0 : index
    %19 = vector.load %arg9[%c1, %c0_11] : memref<232x128xf32, #tpu.memory_space<vmem>>, vector<196x128xf32>
    %c0_12 = arith.constant 0 : index
    %c0_13 = arith.constant 0 : index
    %20 = vector.load %arg6[%c0_12, %c0_13] : memref<196x2xf32, #tpu.memory_space<vmem>>, vector<196x1xf32>
    %21 = vector.broadcast %20 : vector<196x1xf32> to vector<196x128xf32>
    %22 = arith.mulf %19, %21 : vector<196x128xf32>
    %23 = arith.truncf %22 : vector<196x128xf32> to vector<196x128xbf16>
    %c0_14 = arith.constant 0 : index
    %c0_15 = arith.constant 0 : index
    %c0_16 = arith.constant 0 : index
    %24 = vector.load %arg4[%c0_14, %c0_15, %c0_16] : memref<9x128x128xbf16, #tpu.memory_space<vmem>>, vector<1x128x128xbf16>
    %25 = vector.shape_cast %24 : vector<1x128x128xbf16> to vector<128x128xbf16>
    %cst_17 = arith.constant dense<0.000000e+00> : vector<196x128xf32>
    %26 = tpu.matmul %23, %25, %cst_17 {dimension_numbers = #tpu.dot_dimension_numbers<[1], [0], [0], [1], [0, 0, 1, 1], [], []>} : vector<196x128xbf16>, vector<128x128xbf16>, vector<196x128xf32> -> vector<196x128xf32>
    %c2 = arith.constant 2 : index
    %c0_18 = arith.constant 0 : index
    %27 = vector.load %arg9[%c2, %c0_18] : memref<232x128xf32, #tpu.memory_space<vmem>>, vector<196x128xf32>
    %28 = arith.truncf %27 : vector<196x128xf32> to vector<196x128xbf16>
    %c1_19 = arith.constant 1 : index
    %c0_20 = arith.constant 0 : index
    %c0_21 = arith.constant 0 : index
    %29 = vector.load %arg4[%c1_19, %c0_20, %c0_21] : memref<9x128x128xbf16, #tpu.memory_space<vmem>>, vector<1x128x128xbf16>
    %30 = vector.shape_cast %29 : vector<1x128x128xbf16> to vector<128x128xbf16>
    %cst_22 = arith.constant dense<0.000000e+00> : vector<196x128xf32>
    %31 = tpu.matmul %28, %30, %cst_22 {dimension_numbers = #tpu.dot_dimension_numbers<[1], [0], [0], [1], [0, 0, 1, 1], [], []>} : vector<196x128xbf16>, vector<128x128xbf16>, vector<196x128xf32> -> vector<196x128xf32>
    %32 = arith.addf %26, %31 : vector<196x128xf32>
    %c3 = arith.constant 3 : index
    %c0_23 = arith.constant 0 : index
    %33 = vector.load %arg9[%c3, %c0_23] : memref<232x128xf32, #tpu.memory_space<vmem>>, vector<196x128xf32>
    %c0_24 = arith.constant 0 : index
    %c1_25 = arith.constant 1 : index
    %34 = vector.load %arg6[%c0_24, %c1_25] : memref<196x2xf32, #tpu.memory_space<vmem>>, vector<196x1xf32>
    %35 = vector.broadcast %34 : vector<196x1xf32> to vector<196x128xf32>
    %36 = arith.mulf %33, %35 : vector<196x128xf32>
    %37 = arith.truncf %36 : vector<196x128xf32> to vector<196x128xbf16>
    %c2_26 = arith.constant 2 : index
    %c0_27 = arith.constant 0 : index
    %c0_28 = arith.constant 0 : index
    %38 = vector.load %arg4[%c2_26, %c0_27, %c0_28] : memref<9x128x128xbf16, #tpu.memory_space<vmem>>, vector<1x128x128xbf16>
    %39 = vector.shape_cast %38 : vector<1x128x128xbf16> to vector<128x128xbf16>
    %cst_29 = arith.constant dense<0.000000e+00> : vector<196x128xf32>
    %40 = tpu.matmul %37, %39, %cst_29 {dimension_numbers = #tpu.dot_dimension_numbers<[1], [0], [0], [1], [0, 0, 1, 1], [], []>} : vector<196x128xbf16>, vector<128x128xbf16>, vector<196x128xf32> -> vector<196x128xf32>
    %41 = arith.addf %32, %40 : vector<196x128xf32>
    %c15 = arith.constant 15 : index
    %c0_30 = arith.constant 0 : index
    %42 = vector.load %arg9[%c15, %c0_30] : memref<232x128xf32, #tpu.memory_space<vmem>>, vector<196x128xf32>
    %c0_31 = arith.constant 0 : index
    %c0_32 = arith.constant 0 : index
    %43 = vector.load %arg6[%c0_31, %c0_32] : memref<196x2xf32, #tpu.memory_space<vmem>>, vector<196x1xf32>
    %44 = vector.broadcast %43 : vector<196x1xf32> to vector<196x128xf32>
    %45 = arith.mulf %42, %44 : vector<196x128xf32>
    %46 = arith.truncf %45 : vector<196x128xf32> to vector<196x128xbf16>
    %c3_33 = arith.constant 3 : index
    %c0_34 = arith.constant 0 : index
    %c0_35 = arith.constant 0 : index
    %47 = vector.load %arg4[%c3_33, %c0_34, %c0_35] : memref<9x128x128xbf16, #tpu.memory_space<vmem>>, vector<1x128x128xbf16>
    %48 = vector.shape_cast %47 : vector<1x128x128xbf16> to vector<128x128xbf16>
    %cst_36 = arith.constant dense<0.000000e+00> : vector<196x128xf32>
    %49 = tpu.matmul %46, %48, %cst_36 {dimension_numbers = #tpu.dot_dimension_numbers<[1], [0], [0], [1], [0, 0, 1, 1], [], []>} : vector<196x128xbf16>, vector<128x128xbf16>, vector<196x128xf32> -> vector<196x128xf32>
    %50 = arith.addf %41, %49 : vector<196x128xf32>
    %c16_37 = arith.constant 16 : index
    %c0_38 = arith.constant 0 : index
    %51 = vector.load %arg9[%c16_37, %c0_38] : memref<232x128xf32, #tpu.memory_space<vmem>>, vector<196x128xf32>
    %52 = arith.truncf %51 : vector<196x128xf32> to vector<196x128xbf16>
    %c4 = arith.constant 4 : index
    %c0_39 = arith.constant 0 : index
    %c0_40 = arith.constant 0 : index
    %53 = vector.load %arg4[%c4, %c0_39, %c0_40] : memref<9x128x128xbf16, #tpu.memory_space<vmem>>, vector<1x128x128xbf16>
    %54 = vector.shape_cast %53 : vector<1x128x128xbf16> to vector<128x128xbf16>
    %cst_41 = arith.constant dense<0.000000e+00> : vector<196x128xf32>
    %55 = tpu.matmul %52, %54, %cst_41 {dimension_numbers = #tpu.dot_dimension_numbers<[1], [0], [0], [1], [0, 0, 1, 1], [], []>} : vector<196x128xbf16>, vector<128x128xbf16>, vector<196x128xf32> -> vector<196x128xf32>
    %56 = arith.addf %50, %55 : vector<196x128xf32>
    %c17 = arith.constant 17 : index
    %c0_42 = arith.constant 0 : index
    %57 = vector.load %arg9[%c17, %c0_42] : memref<232x128xf32, #tpu.memory_space<vmem>>, vector<196x128xf32>
    %c0_43 = arith.constant 0 : index
    %c1_44 = arith.constant 1 : index
    %58 = vector.load %arg6[%c0_43, %c1_44] : memref<196x2xf32, #tpu.memory_space<vmem>>, vector<196x1xf32>
    %59 = vector.broadcast %58 : vector<196x1xf32> to vector<196x128xf32>
    %60 = arith.mulf %57, %59 : vector<196x128xf32>
    %61 = arith.truncf %60 : vector<196x128xf32> to vector<196x128xbf16>
    %c5 = arith.constant 5 : index
    %c0_45 = arith.constant 0 : index
    %c0_46 = arith.constant 0 : index
    %62 = vector.load %arg4[%c5, %c0_45, %c0_46] : memref<9x128x128xbf16, #tpu.memory_space<vmem>>, vector<1x128x128xbf16>
    %63 = vector.shape_cast %62 : vector<1x128x128xbf16> to vector<128x128xbf16>
    %cst_47 = arith.constant dense<0.000000e+00> : vector<196x128xf32>
    %64 = tpu.matmul %61, %63, %cst_47 {dimension_numbers = #tpu.dot_dimension_numbers<[1], [0], [0], [1], [0, 0, 1, 1], [], []>} : vector<196x128xbf16>, vector<128x128xbf16>, vector<196x128xf32> -> vector<196x128xf32>
    %65 = arith.addf %56, %64 : vector<196x128xf32>
    %c29 = arith.constant 29 : index
    %c0_48 = arith.constant 0 : index
    %66 = vector.load %arg9[%c29, %c0_48] : memref<232x128xf32, #tpu.memory_space<vmem>>, vector<196x128xf32>
    %c0_49 = arith.constant 0 : index
    %c0_50 = arith.constant 0 : index
    %67 = vector.load %arg6[%c0_49, %c0_50] : memref<196x2xf32, #tpu.memory_space<vmem>>, vector<196x1xf32>
    %68 = vector.broadcast %67 : vector<196x1xf32> to vector<196x128xf32>
    %69 = arith.mulf %66, %68 : vector<196x128xf32>
    %70 = arith.truncf %69 : vector<196x128xf32> to vector<196x128xbf16>
    %c6 = arith.constant 6 : index
    %c0_51 = arith.constant 0 : index
    %c0_52 = arith.constant 0 : index
    %71 = vector.load %arg4[%c6, %c0_51, %c0_52] : memref<9x128x128xbf16, #tpu.memory_space<vmem>>, vector<1x128x128xbf16>
    %72 = vector.shape_cast %71 : vector<1x128x128xbf16> to vector<128x128xbf16>
    %cst_53 = arith.constant dense<0.000000e+00> : vector<196x128xf32>
    %73 = tpu.matmul %70, %72, %cst_53 {dimension_numbers = #tpu.dot_dimension_numbers<[1], [0], [0], [1], [0, 0, 1, 1], [], []>} : vector<196x128xbf16>, vector<128x128xbf16>, vector<196x128xf32> -> vector<196x128xf32>
    %74 = arith.addf %65, %73 : vector<196x128xf32>
    %c30 = arith.constant 30 : index
    %c0_54 = arith.constant 0 : index
    %75 = vector.load %arg9[%c30, %c0_54] : memref<232x128xf32, #tpu.memory_space<vmem>>, vector<196x128xf32>
    %76 = arith.truncf %75 : vector<196x128xf32> to vector<196x128xbf16>
    %c7 = arith.constant 7 : index
    %c0_55 = arith.constant 0 : index
    %c0_56 = arith.constant 0 : index
    %77 = vector.load %arg4[%c7, %c0_55, %c0_56] : memref<9x128x128xbf16, #tpu.memory_space<vmem>>, vector<1x128x128xbf16>
    %78 = vector.shape_cast %77 : vector<1x128x128xbf16> to vector<128x128xbf16>
    %cst_57 = arith.constant dense<0.000000e+00> : vector<196x128xf32>
    %79 = tpu.matmul %76, %78, %cst_57 {dimension_numbers = #tpu.dot_dimension_numbers<[1], [0], [0], [1], [0, 0, 1, 1], [], []>} : vector<196x128xbf16>, vector<128x128xbf16>, vector<196x128xf32> -> vector<196x128xf32>
    %80 = arith.addf %74, %79 : vector<196x128xf32>
    %c31 = arith.constant 31 : index
    %c0_58 = arith.constant 0 : index
    %81 = vector.load %arg9[%c31, %c0_58] : memref<232x128xf32, #tpu.memory_space<vmem>>, vector<196x128xf32>
    %c0_59 = arith.constant 0 : index
    %c1_60 = arith.constant 1 : index
    %82 = vector.load %arg6[%c0_59, %c1_60] : memref<196x2xf32, #tpu.memory_space<vmem>>, vector<196x1xf32>
    %83 = vector.broadcast %82 : vector<196x1xf32> to vector<196x128xf32>
    %84 = arith.mulf %81, %83 : vector<196x128xf32>
    %85 = arith.truncf %84 : vector<196x128xf32> to vector<196x128xbf16>
    %c8 = arith.constant 8 : index
    %c0_61 = arith.constant 0 : index
    %c0_62 = arith.constant 0 : index
    %86 = vector.load %arg4[%c8, %c0_61, %c0_62] : memref<9x128x128xbf16, #tpu.memory_space<vmem>>, vector<1x128x128xbf16>
    %87 = vector.shape_cast %86 : vector<1x128x128xbf16> to vector<128x128xbf16>
    %cst_63 = arith.constant dense<0.000000e+00> : vector<196x128xf32>
    %88 = tpu.matmul %85, %87, %cst_63 {dimension_numbers = #tpu.dot_dimension_numbers<[1], [0], [0], [1], [0, 0, 1, 1], [], []>} : vector<196x128xbf16>, vector<128x128xbf16>, vector<196x128xf32> -> vector<196x128xf32>
    %89 = arith.addf %80, %88 : vector<196x128xf32>
    %c0_64 = arith.constant 0 : index
    %c0_65 = arith.constant 0 : index
    %90 = vector.load %arg5[%c0_64, %c0_65] : memref<1x128xf32, #tpu.memory_space<vmem>>, vector<1x128xf32>
    %91 = vector.broadcast %90 : vector<1x128xf32> to vector<196x128xf32>
    %92 = arith.addf %89, %91 : vector<196x128xf32>
    %cst_66 = arith.constant 0.000000e+00 : f32
    %93 = vector.broadcast %cst_66 : f32 to vector<196x128xf32>
    %94 = arith.maximumf %92, %93 : vector<196x128xf32>
    %cst_67 = arith.constant 0.000000e+00 : f32
    %95 = vector.broadcast %cst_67 : f32 to vector<224x128xf32>
    %c0_68 = arith.constant 0 : index
    %c0_69 = arith.constant 0 : index
    %96 = vector.load %arg10[%c0_68, %c0_69] : memref<224x128xf32, #tpu.memory_space<vmem>>, vector<224x128xf32>
    tpu.vector_store %arg10[%c0_68, %c0_69], %95 {strides = array<i32>} : memref<224x128xf32, #tpu.memory_space<vmem>>, vector<224x128xf32>,
    %c0_70 = arith.constant 0 : index
    %c0_71 = arith.constant 0 : index
    %97 = vector.load %arg10[%c0_70, %c0_71] : memref<224x128xf32, #tpu.memory_space<vmem>>, vector<196x128xf32>
    tpu.vector_store %arg10[%c0_70, %c0_71], %94 {strides = array<i32>} : memref<224x128xf32, #tpu.memory_space<vmem>>, vector<196x128xf32>,
    %c1_72 = arith.constant 1 : index
    %c0_73 = arith.constant 0 : index
    %98 = vector.load %arg10[%c1_72, %c0_73] : memref<224x128xf32, #tpu.memory_space<vmem>>, vector<196x128xf32>
    %99 = arith.maximumf %94, %98 : vector<196x128xf32>
    %c14 = arith.constant 14 : index
    %c0_74 = arith.constant 0 : index
    %100 = vector.load %arg10[%c14, %c0_74] : memref<224x128xf32, #tpu.memory_space<vmem>>, vector<196x128xf32>
    %c15_75 = arith.constant 15 : index
    %c0_76 = arith.constant 0 : index
    %101 = vector.load %arg10[%c15_75, %c0_76] : memref<224x128xf32, #tpu.memory_space<vmem>>, vector<196x128xf32>
    %102 = arith.maximumf %100, %101 : vector<196x128xf32>
    %103 = arith.maximumf %99, %102 : vector<196x128xf32>
    %c0_77 = arith.constant 0 : index
    %c0_78 = arith.constant 0 : index
    %104 = vector.load %arg7[%c0_77, %c0_78] : memref<49x196xbf16, #tpu.memory_space<vmem>>, vector<49x196xbf16>
    %105 = arith.truncf %103 : vector<196x128xf32> to vector<196x128xbf16>
    %cst_79 = arith.constant dense<0.000000e+00> : vector<49x128xf32>
    %106 = tpu.matmul %104, %105, %cst_79 {dimension_numbers = #tpu.dot_dimension_numbers<[1], [0], [0], [1], [0, 0, 1, 1], [], []>} : vector<49x196xbf16>, vector<196x128xbf16>, vector<49x128xf32> -> vector<49x128xf32>
    %107 = arith.truncf %106 : vector<49x128xf32> to vector<49x128xbf16>
    %c0_80 = arith.constant 0 : index
    %c0_81 = arith.constant 0 : index
    %c0_82 = arith.constant 0 : index
    %108 = vector.load %arg8[%c0_80, %c0_81, %c0_82] : memref<1x49x128xbf16, #tpu.memory_space<vmem>>, vector<1x49x128xbf16>
    %109 = vector.shape_cast %108 : vector<1x49x128xbf16> to vector<49x128xbf16>
    %110 = vector.shape_cast %107 : vector<49x128xbf16> to vector<1x49x128xbf16>
    tpu.vector_store %arg8[%c0_80, %c0_81, %c0_82], %110 {strides = array<i32>} : memref<1x49x128xbf16, #tpu.memory_space<vmem>>, vector<1x49x128xbf16>,
    return
  }
  func.func @transform_0(%arg0: i32) -> (i32, i32, i32) {
    %c0_i32 = arith.constant 0 : i32
    %c0_i32_0 = arith.constant 0 : i32
    %c0_i32_1 = arith.constant 0 : i32
    return %arg0, %c0_i32, %c0_i32_0 : i32, i32, i32
  }
  func.func @transform_1(%arg0: i32) -> (i32, i32) {
    %c0_i32 = arith.constant 0 : i32
    %c0_i32_0 = arith.constant 0 : i32
    %c0_i32_1 = arith.constant 0 : i32
    return %c0_i32, %c0_i32_0 : i32, i32
  }
  func.func @transform_2(%arg0: i32) -> (i32, i32) {
    %c0_i32 = arith.constant 0 : i32
    %c0_i32_0 = arith.constant 0 : i32
    %c0_i32_1 = arith.constant 0 : i32
    return %c0_i32, %c0_i32_0 : i32, i32
  }
  func.func @transform_3(%arg0: i32) -> (i32, i32, i32) {
    %c0_i32 = arith.constant 0 : i32
    %c0_i32_0 = arith.constant 0 : i32
    %c0_i32_1 = arith.constant 0 : i32
    %c0_i32_2 = arith.constant 0 : i32
    return %c0_i32, %c0_i32_0, %c0_i32_1 : i32, i32, i32
  }
  func.func @transform_4(%arg0: i32) -> (i32, i32) {
    %c0_i32 = arith.constant 0 : i32
    %c0_i32_0 = arith.constant 0 : i32
    %c0_i32_1 = arith.constant 0 : i32
    return %c0_i32, %c0_i32_0 : i32, i32
  }
  func.func @transform_5(%arg0: i32) -> (i32, i32) {
    %c0_i32 = arith.constant 0 : i32
    %c0_i32_0 = arith.constant 0 : i32
    %c0_i32_1 = arith.constant 0 : i32
    return %c0_i32, %c0_i32_0 : i32, i32
  }
  func.func @transform_6(%arg0: i32) -> (i32, i32) {
    %c0_i32 = arith.constant 0 : i32
    %c0_i32_0 = arith.constant 0 : i32
    %c0_i32_1 = arith.constant 0 : i32
    return %c0_i32, %c0_i32_0 : i32, i32
  }
  func.func @transform_7(%arg0: i32) -> (i32, i32, i32) {
    %c0_i32 = arith.constant 0 : i32
    %c0_i32_0 = arith.constant 0 : i32
    %c0_i32_1 = arith.constant 0 : i32
    return %arg0, %c0_i32, %c0_i32_0 : i32, i32, i32
  }
}

module attributes {stable_mosaic.version = 11 : i64} {
  func.func @mlp_kernel(%arg0: i32, %arg1: memref<2x6272xbf16, #tpu.memory_space<vmem>>, %arg2: memref<6272x200xbf16, #tpu.memory_space<vmem>>, %arg3: memref<1x200xf32, #tpu.memory_space<vmem>>, %arg4: memref<200x84xbf16, #tpu.memory_space<vmem>>, %arg5: memref<1x84xf32, #tpu.memory_space<vmem>>, %arg6: memref<84x128xbf16, #tpu.memory_space<vmem>>, %arg7: memref<1x128xf32, #tpu.memory_space<vmem>>, %arg8: memref<2x128xf32, #tpu.memory_space<vmem>>) attributes {dimension_semantics = [#tpu.dimension_semantics<parallel>], iteration_bounds = array<i64: 1>, scalar_prefetch = 0 : i64, scratch_operands = 0 : i64, tpu.core_type = #tpu.core_type<tc>, window_params = [{transform_indices = @transform_0, window_bounds = array<i64: 2, 6272>}, {pipeline_mode = #tpu.pipeline_mode<synchronous>, transform_indices = @transform_1, window_bounds = array<i64: 6272, 200>}, {pipeline_mode = #tpu.pipeline_mode<synchronous>, transform_indices = @transform_2, window_bounds = array<i64: 1, 200>}, {pipeline_mode = #tpu.pipeline_mode<synchronous>, transform_indices = @transform_3, window_bounds = array<i64: 200, 84>}, {pipeline_mode = #tpu.pipeline_mode<synchronous>, transform_indices = @transform_4, window_bounds = array<i64: 1, 84>}, {pipeline_mode = #tpu.pipeline_mode<synchronous>, transform_indices = @transform_5, window_bounds = array<i64: 84, 128>}, {pipeline_mode = #tpu.pipeline_mode<synchronous>, transform_indices = @transform_6, window_bounds = array<i64: 1, 128>}, {transform_indices = @transform_7, window_bounds = array<i64: 2, 128>}]} {
    %c0 = arith.constant 0 : index
    %c0_0 = arith.constant 0 : index
    %0 = vector.load %arg1[%c0, %c0_0] : memref<2x6272xbf16, #tpu.memory_space<vmem>>, vector<2x6272xbf16>
    %c0_1 = arith.constant 0 : index
    %c0_2 = arith.constant 0 : index
    %1 = vector.load %arg2[%c0_1, %c0_2] : memref<6272x200xbf16, #tpu.memory_space<vmem>>, vector<6272x200xbf16>
    %cst = arith.constant dense<0.000000e+00> : vector<2x200xf32>
    %2 = tpu.matmul %0, %1, %cst {dimension_numbers = #tpu.dot_dimension_numbers<[1], [0], [0], [1], [0, 0, 1, 1], [], []>} : vector<2x6272xbf16>, vector<6272x200xbf16>, vector<2x200xf32> -> vector<2x200xf32>
    %c0_3 = arith.constant 0 : index
    %c0_4 = arith.constant 0 : index
    %3 = vector.load %arg3[%c0_3, %c0_4] : memref<1x200xf32, #tpu.memory_space<vmem>>, vector<1x200xf32>
    %4 = vector.broadcast %3 : vector<1x200xf32> to vector<2x200xf32>
    %5 = arith.addf %2, %4 : vector<2x200xf32>
    %cst_5 = arith.constant 0.000000e+00 : f32
    %6 = vector.broadcast %cst_5 : f32 to vector<2x200xf32>
    %7 = arith.maximumf %5, %6 : vector<2x200xf32>
    %8 = arith.truncf %7 : vector<2x200xf32> to vector<2x200xbf16>
    %c0_6 = arith.constant 0 : index
    %c0_7 = arith.constant 0 : index
    %9 = vector.load %arg4[%c0_6, %c0_7] : memref<200x84xbf16, #tpu.memory_space<vmem>>, vector<200x84xbf16>
    %cst_8 = arith.constant dense<0.000000e+00> : vector<2x84xf32>
    %10 = tpu.matmul %8, %9, %cst_8 {dimension_numbers = #tpu.dot_dimension_numbers<[1], [0], [0], [1], [0, 0, 1, 1], [], []>} : vector<2x200xbf16>, vector<200x84xbf16>, vector<2x84xf32> -> vector<2x84xf32>
    %c0_9 = arith.constant 0 : index
    %c0_10 = arith.constant 0 : index
    %11 = vector.load %arg5[%c0_9, %c0_10] : memref<1x84xf32, #tpu.memory_space<vmem>>, vector<1x84xf32>
    %12 = vector.broadcast %11 : vector<1x84xf32> to vector<2x84xf32>
    %13 = arith.addf %10, %12 : vector<2x84xf32>
    %cst_11 = arith.constant 0.000000e+00 : f32
    %14 = vector.broadcast %cst_11 : f32 to vector<2x84xf32>
    %15 = arith.maximumf %13, %14 : vector<2x84xf32>
    %16 = arith.truncf %15 : vector<2x84xf32> to vector<2x84xbf16>
    %c0_12 = arith.constant 0 : index
    %c0_13 = arith.constant 0 : index
    %17 = vector.load %arg6[%c0_12, %c0_13] : memref<84x128xbf16, #tpu.memory_space<vmem>>, vector<84x128xbf16>
    %cst_14 = arith.constant dense<0.000000e+00> : vector<2x128xf32>
    %18 = tpu.matmul %16, %17, %cst_14 {dimension_numbers = #tpu.dot_dimension_numbers<[1], [0], [0], [1], [0, 0, 1, 1], [], []>} : vector<2x84xbf16>, vector<84x128xbf16>, vector<2x128xf32> -> vector<2x128xf32>
    %c0_15 = arith.constant 0 : index
    %c0_16 = arith.constant 0 : index
    %19 = vector.load %arg7[%c0_15, %c0_16] : memref<1x128xf32, #tpu.memory_space<vmem>>, vector<1x128xf32>
    %20 = vector.broadcast %19 : vector<1x128xf32> to vector<2x128xf32>
    %21 = arith.addf %18, %20 : vector<2x128xf32>
    %c0_17 = arith.constant 0 : index
    %c0_18 = arith.constant 0 : index
    %22 = vector.load %arg8[%c0_17, %c0_18] : memref<2x128xf32, #tpu.memory_space<vmem>>, vector<2x128xf32>
    tpu.vector_store %arg8[%c0_17, %c0_18], %21 {strides = array<i32>} : memref<2x128xf32, #tpu.memory_space<vmem>>, vector<2x128xf32>,
    return
  }
  func.func @transform_0(%arg0: i32) -> (i32, i32) {
    %c0_i32 = arith.constant 0 : i32
    %c0_i32_0 = arith.constant 0 : i32
    return %arg0, %c0_i32 : i32, i32
  }
  func.func @transform_1(%arg0: i32) -> (i32, i32) {
    %c0_i32 = arith.constant 0 : i32
    %c0_i32_0 = arith.constant 0 : i32
    %c0_i32_1 = arith.constant 0 : i32
    return %c0_i32, %c0_i32_0 : i32, i32
  }
  func.func @transform_2(%arg0: i32) -> (i32, i32) {
    %c0_i32 = arith.constant 0 : i32
    %c0_i32_0 = arith.constant 0 : i32
    %c0_i32_1 = arith.constant 0 : i32
    return %c0_i32, %c0_i32_0 : i32, i32
  }
  func.func @transform_3(%arg0: i32) -> (i32, i32) {
    %c0_i32 = arith.constant 0 : i32
    %c0_i32_0 = arith.constant 0 : i32
    %c0_i32_1 = arith.constant 0 : i32
    return %c0_i32, %c0_i32_0 : i32, i32
  }
  func.func @transform_4(%arg0: i32) -> (i32, i32) {
    %c0_i32 = arith.constant 0 : i32
    %c0_i32_0 = arith.constant 0 : i32
    %c0_i32_1 = arith.constant 0 : i32
    return %c0_i32, %c0_i32_0 : i32, i32
  }
  func.func @transform_5(%arg0: i32) -> (i32, i32) {
    %c0_i32 = arith.constant 0 : i32
    %c0_i32_0 = arith.constant 0 : i32
    %c0_i32_1 = arith.constant 0 : i32
    return %c0_i32, %c0_i32_0 : i32, i32
  }
  func.func @transform_6(%arg0: i32) -> (i32, i32) {
    %c0_i32 = arith.constant 0 : i32
    %c0_i32_0 = arith.constant 0 : i32
    %c0_i32_1 = arith.constant 0 : i32
    return %c0_i32, %c0_i32_0 : i32, i32
  }
  func.func @transform_7(%arg0: i32) -> (i32, i32) {
    %c0_i32 = arith.constant 0 : i32
    %c0_i32_0 = arith.constant 0 : i32
    return %arg0, %c0_i32 : i32, i32
  }
}

</mosaic_0001>

<bundles_post_ra>
// kernel: lenet5_forward.2
= control target key start
LH: loop header
LB: loop body
LE: loop exit
PB: predicated region body
PF: predicated region fallthrough
CT: control target
= control target key end

     0   :  { %s6172_s24 = smov 0   ;;  %s8453_s0 = inlined_call_operand.vmem [shape: bf16[2,800,16], index: 0, kind: input, shape index: {}]   ;;  %s8454_s1 = inlined_call_operand.vmem [shape: bf16[16,128], index: 1, kind: input, shape index: {}]   ;;  %s8455_s2 = inlined_call_operand.vmem [shape: f32[1,128], index: 2, kind: input, shape index: {}]   ;;  %s8456_s3 = inlined_call_operand.vmem [shape: bf16[9,128,128], index: 3, kind: input, shape index: {}]   ;;  %s8457_s4 = inlined_call_operand.vmem [shape: f32[1,128], index: 4, kind: input, shape index: {}]   ;;  %s8458_s5 = inlined_call_operand.vmem [shape: f32[196,2], index: 5, kind: input, shape index: {}]   ;;  %s8459_s6 = inlined_call_operand.vmem [shape: bf16[49,196], index: 6, kind: input, shape index: {}]   ;;  %s8460_s7 = inlined_call_operand.vmem [shape: bf16[2,49,128], index: 7, kind: output, shape index: {}]  }
   0x1 LB: > { %s4623_s25 = sadd.s32 4294967295, %s6126_s24   ;;  %p4627_p0 = scmp.ge.s32.totalorder %s6126_s24, 1  ;;  %s6126_s24 = sphi %s6172_s24, %s17_s24  }
   0x2   : > { %p237_p1 = scmp.lt.s32.totalorder %s6126_s24, 3 }
   0x4   : > { %p238_p2 = pnand %p4627_p0, %p237_p1 }
   0x6   : > { %241 = sbr.rel (%p238_p2) target bundleno = 1355 (0x54b), region = 48 }
   0xb   : > { %v5980_v0 = vld [vmem:[%s8454_s1] sm:$0xff]   ;;  %p269_p3 = scmp.lt.s32.totalorder %s4623_s25, 1  ;;  %vm638_vm0 = vcmask 130048   ;;  %v6128_v2 = vmov 1   ;;  %v1434_v3 = vld [vmem:[%s8458_s5 + $0x8] sm:$0xff]  ;;  %v8461_v4 = vmov 0  }
   0xc   : > { %v1433_v1 = vld [vmem:[%s8458_s5] sm:$0xff]  ;;  %5218 = vmatprep.subr.bf16.mxu0 %v5980_v0  ;;  %5949 = vset.pattern.permute.xlu1 %v6128_v2  ;;  %v1436_v6 = vld [vmem:[%s8458_s5 + $0x18] sm:$0xff]  ;;  %v1438_v14 = vld [vmem:[%s8458_s5 + $0x28] sm:$0xff]  ;;  %v8463_v63 = vmov 0.0   ;;  %vm6131_vm1 = vmmov 0   ;;  %vm4446_vm2 = vcmask 556032  }
   0xd   : > { %s8855_s25 = smov (!%p269_p3, %s4623_s25), 1  ;;  %5219 = vmatpush3.bf16.msra.mxu0 %v5980_v0  ;;  %2086 = vperm.xlu1 %5949, %v1433_v1   ;;  %v1437_v11 = vld [vmem:[%s8458_s5 + $0x20] sm:$0xff]  ;;  %v1440_v17 = vld [vmem:[%s8458_s5 + $0x38] sm:$0xff]  ;;  %v1442_v31 = vld [vmem:[%s8458_s5 + $0x48] sm:$0xff]  ;;  %1354 = vst [vmem:[#allocation2] sm:$0xff] %v8463_v63  ;;  %vm4459_vm3 = vcmask 1041408  }
   0xe   : > { %s5934_s9 = smul.u32 400, %s8855_s25  ;;  %5932 = vmatprep.subr.bf16.mxu1 %v5980_v0  ;;  %5948 = vset.pattern.permute.xlu0 %v8461_v4  ;;  %v1441_v27 = vld [vmem:[%s8458_s5 + $0x40] sm:$0xff]  ;;  %v1435_v33 = vld [vmem:[%s8458_s5 + $0x10] sm:$0xff]  ;;  %v1444_v34 = vld [vmem:[%s8458_s5 + $0x58] sm:$0xff]  ;;  %1355 = vst [vmem:[#allocation2 + $0x8] sm:$0xff] %v8463_v63  ;;  %vm4562_vm4 = vcmask 1040384  }
   0xf   : > { %5933 = vmatpush3.bf16.msra.mxu1 %v5980_v0  ;;  %1460 = vperm.xlu0 %5948, %v1433_v1   ;;  %v1445_v38 = vld [vmem:[%s8458_s5 + $0x60] sm:$0xff]  ;;  %v1439_v40 = vld [vmem:[%s8458_s5 + $0x30] sm:$0xff]  ;;  %v1446_v44 = vld [vmem:[%s8458_s5 + $0x68] sm:$0xff]  ;;  %1380 = vst [vmem:[#allocation2 + $0xd0] sm:$0xff] %v8463_v63  ;;  %s5935_s13 = smul.u32 28, %s8855_s25 }
  0x10   : > { %s6197_s12 = scalar_lea.vmem %s8453_s0, %s5934_s9  ;;  %v1448_v45 = vld [vmem:[%s8458_s5 + $0x78] sm:$0xff]  ;;  %v1443_v46 = vld [vmem:[%s8458_s5 + $0x50] sm:$0xff]  ;;  %v1449_v49 = vld [vmem:[%s8458_s5 + $0x80] sm:$0xff]  ;;  %1381 = vst [vmem:[#allocation2 + $0xd8] sm:$0xff] %v8463_v63  ;;  %5320 = vmatprep.subr.bf16.mxu1 %v8463_v63  ;;  %5456 = vmatprep.subr.bf16.mxu0 %v8463_v63  ;;  %vm4563_vm5 = vsmask.f32 256 }
  0x11   : > { %v5981_v5 = vld [vmem:[%s6197_s12] sm:$0xff]   ;;  %2090 = vperm.xlu1 %5949, %v1434_v3   ;;  %v5982_v7 = vld [vmem:[%s6197_s12 + $0x8] sm:$0xff]   ;;  %v5983_v8 = vld [vmem:[%s6197_s12 + $0x10] sm:$0xff]   ;;  %1382 = vst [vmem:[#allocation2 + $0xe0] sm:$0xff] %v8463_v63  ;;  %s278_s16 = scalar_lea.vmem %s8460_s7, %s5935_s13 }
  0x12   : > { %5220 = vmatprep.mubr.msk.bf16.mxu0 %vm638_vm0, %v5981_v5  ;;  %v5984_v9 = vld [vmem:[%s6197_s12 + $0x18] sm:$0xff]   ;;  %v5985_v10 = vld [vmem:[%s6197_s12 + $0x20] sm:$0xff]   ;;  %v5986_v12 = vld [vmem:[%s6197_s12 + $0x28] sm:$0xff]   ;;  %4214 = vst [vmem:[#allocation3 + $0xc0] sm:$0xff] %v8463_v63 }
  0x13   : > { %1465 = vperm.xlu0 %5948, %v1434_v3   ;;  %5221 = vmatmul.mubr.msk.bf16.vlgmr.msra.gmra.mxu0 %vm638_vm0, %v5982_v7  ;;  %v5987_v13 = vld [vmem:[%s6197_s12 + $0x30] sm:$0xff]   ;;  %v5988_v15 = vld [vmem:[%s6197_s12 + $0x38] sm:$0xff]   ;;  %v5989_v16 = vld [vmem:[%s6197_s12 + $0x40] sm:$0xff]   ;;  %4215 = vst [vmem:[#allocation3 + $0xc8] sm:$0xff] %v8463_v63 }
  0x14   : > { %5224 = vmatprep.mubr.msk.bf16.mxu0 %vm638_vm0, %v5983_v8  ;;  %v5990_v18 = vld [vmem:[%s6197_s12 + $0x48] sm:$0xff]   ;;  %v6011_v19 = vld [vmem:[%s6197_s12 + $0x150] sm:$0xff]   ;;  %v6012_v20 = vld [vmem:[%s6197_s12 + $0x158] sm:$0xff]   ;;  %4216 = vst [vmem:[#allocation3 + $0xd0] sm:$0xff] %v8463_v63 }
  0x15   : > { %5950 = vset.pattern.permute.xlu1 %v8461_v4  ;;  %v5991_v21 = vld [vmem:[%s6197_s12 + $0x50] sm:$0xff]   ;;  %5304 = vmatprep.mubr.msk.bf16.mxu1 %vm638_vm0, %v6011_v19  ;;  %v6015_v22 = vld [vmem:[%s6197_s12 + $0x160] sm:$0xff]   ;;  %v5992_v23 = vld [vmem:[%s6197_s12 + $0x58] sm:$0xff]  }
  0x16   : > { %1475 = vperm.xlu1 %5950, %v1436_v6   ;;  %5305 = vmatmul.mubr.msk.bf16.vlgmr.msra.gmra.mxu1 %vm638_vm0, %v6012_v20  ;;  %v6016_v24 = vld [vmem:[%s6197_s12 + $0x168] sm:$0xff]   ;;  %v6019_v25 = vld [vmem:[%s6197_s12 + $0x170] sm:$0xff]   ;;  %v5993_v26 = vld [vmem:[%s6197_s12 + $0x60] sm:$0xff]  }
  0x17   : > { %5308 = vmatprep.mubr.msk.bf16.mxu1 %vm638_vm0, %v6015_v22  ;;  %v6020_v28 = vld [vmem:[%s6197_s12 + $0x178] sm:$0xff]   ;;  %v5994_v29 = vld [vmem:[%s6197_s12 + $0x68] sm:$0xff]   ;;  %v6023_v30 = vld [vmem:[%s6197_s12 + $0x180] sm:$0xff]   ;;  %1470 = vperm.xlu0 %5948, %v1435_v33  }
  0x18   : > { %v5995_v32 = vld [vmem:[%s6197_s12 + $0x70] sm:$0xff]   ;;  %v5996_v35 = vld [vmem:[%s6197_s12 + $0x78] sm:$0xff]   ;;  %v6024_v36 = vld [vmem:[%s6197_s12 + $0x188] sm:$0xff]  }
  0x19   : > { %v5997_v37 = vld [vmem:[%s6197_s12 + $0x80] sm:$0xff]   ;;  %v5998_v39 = vld [vmem:[%s6197_s12 + $0x88] sm:$0xff]   ;;  %v5999_v41 = vld [vmem:[%s6197_s12 + $0x90] sm:$0xff]  }
  0x1a   : > { %5951 = vset.pattern.permute.xlu1 %v6128_v2  ;;  %v6000_v42 = vld [vmem:[%s6197_s12 + $0x98] sm:$0xff]   ;;  %v6001_v43 = vld [vmem:[%s6197_s12 + $0xa0] sm:$0xff]   ;;  %v6002_v47 = vld [vmem:[%s6197_s12 + $0xa8] sm:$0xff]  }
  0x1b   : > { %2098 = vperm.xlu1 %5951, %v1436_v6   ;;  %5225 = vmatmul.mubr.msk.bf16.gmra.mxu0 %vm638_vm0, %v5984_v9  ;;  %v6003_v48 = vld [vmem:[%s6197_s12 + $0xb0] sm:$0xff]   ;;  %v6004_v50 = vld [vmem:[%s6197_s12 + $0xb8] sm:$0xff]   ;;  %v6005_v51 = vld [vmem:[%s6197_s12 + $0xc0] sm:$0xff]  }
  0x1c   : > { %5228 = vmatprep.mubr.msk.bf16.mxu0 %vm638_vm0, %v5985_v10  ;;  %1485 = vperm.xlu0 %5948, %v1438_v14   ;;  %v1447_v52 = vld [vmem:[%s8458_s5 + $0x70] sm:$0xff]  ;;  %v6006_v53 = vld [vmem:[%s6197_s12 + $0xc8] sm:$0xff]   ;;  %v1452_v56 = vld [vmem:[%s8458_s5 + $0x98] sm:$0xff] }
  0x1d   : > { %v6007_v54 = vld [vmem:[%s6197_s12 + $0xd0] sm:$0xff]   ;;  %v1450_v55 = vld [vmem:[%s8458_s5 + $0x88] sm:$0xff]  ;;  %v6008_v57 = vld [vmem:[%s6197_s12 + $0xd8] sm:$0xff]  }
  0x1e   : > { %5309 = vmatmul.mubr.msk.bf16.gmra.mxu1 %vm638_vm0, %v6016_v24  ;;  %v6009_v58 = vld [vmem:[%s6197_s12 + $0xe0] sm:$0xff]   ;;  %v1451_v59 = vld [vmem:[%s8458_s5 + $0x90] sm:$0xff]  ;;  %v6010_v61 = vld [vmem:[%s6197_s12 + $0xe8] sm:$0xff]  }
  0x1f   : > { %5952 = vset.pattern.permute.xlu1 %v8461_v4  ;;  %5312 = vmatprep.mubr.msk.bf16.mxu1 %vm638_vm0, %v6019_v25  ;;  %v1453_v60 = vld [vmem:[%s8458_s5 + $0xa0] sm:$0xff]  ;;  %v6013_v62 = vld [vmem:[%s6197_s12 + $0xf0] sm:$0xff]   ;;  %v1454_v0 = vld [vmem:[%s8458_s5 + $0xa8] sm:$0xff] }
  0x20   : > { %1480 = vperm.xlu1 %5952, %v1437_v11   ;;  %5953 = vset.pattern.permute.xlu0 %v6128_v2  ;;  %v6014_v1 = vld [vmem:[%s6197_s12 + $0xf8] sm:$0xff]   ;;  %v6017_v3 = vld [vmem:[%s6197_s12 + $0x100] sm:$0xff]   ;;  %v1455_v5 = vld [vmem:[%s8458_s5 + $0xb0] sm:$0xff] }
  0x21   : > { %2094 = vperm.xlu0 %5953, %v1435_v33   ;;  %v1456_v6 = vld [vmem:[%s8458_s5 + $0xb8] sm:$0xff]  ;;  %v6018_v7 = vld [vmem:[%s6197_s12 + $0x108] sm:$0xff]   ;;  %v6021_v8 = vld [vmem:[%s6197_s12 + $0x110] sm:$0xff]  }
  0x22   : > { %v1457_v9 = vld [vmem:[%s8458_s5 + $0xc0] sm:$0xf]  ;;  %v6022_v10 = vld [vmem:[%s6197_s12 + $0x118] sm:$0xff]   ;;  %v6033_v25 = vld [vmem:[%s8456_s3 + $0x70] sm:$0xff]  }
  0x23   : > { %5229 = vmatmul.mubr.msk.bf16.gmra.mxu0 %vm638_vm0, %v5986_v12  ;;  %v6026_v12 = vld [vmem:[%s6197_s12 + $0x128] sm:$0xff]   ;;  %v6031_v20 = vld [vmem:[%s8456_s3 + $0x78] sm:$0xff]   ;;  %vm4564_vm6 = vmand %vm4562_vm4, %vm4563_vm5 }
  0x24   : > { %5954 = vset.pattern.permute.xlu1 %v6128_v2  ;;  %5232 = vmatprep.mubr.msk.bf16.mxu0 %vm638_vm0, %v5987_v13  ;;  %v6027_v13 = vld [vmem:[%s6197_s12 + $0x130] sm:$0xff]  }
  0x25   : > { %2102 = vperm.xlu1 %5954, %v1437_v11   ;;  %2110 = vperm.xlu0 %5953, %v1439_v40   ;;  %v6025_v11 = vld [vmem:[%s6197_s12 + $0x120] sm:$0xff]  }
  0x26   : > { %5313 = vmatmul.mubr.msk.bf16.gmra.mxu1 %vm638_vm0, %v6020_v28  ;;  %v6034_v28 = vld [vmem:[%s8456_s3 + $0xb0] sm:$0xff]  }
  0x27   : > { %5316 = vmatprep.mubr.msk.bf16.mxu1 %vm638_vm0, %v6023_v30  ;;  %5321 = vmatpush3.bf16.msra.mxu1 %v6031_v20  ;;  %v6035_v30 = vld [vmem:[%s8456_s3 + $0x68] sm:$0xff]  }
  0x28   : > { %5322 = vmatprep.subr.bf16.mxu1 %v8463_v63 }
  0x29   : > { %2106 = vperm.xlu1 %5954, %v1438_v14   ;;  %5956 = vset.pattern.permute.xlu0 %v8461_v4  ;;  %v6029_v14 = vld [vmem:[%s6197_s12 + $0x140] sm:$0xff]  }
  0x2a   : > { %1490 = vperm.xlu0 %5956, %v1439_v40  }
  0x2b   : > { %5233 = vmatmul.mubr.msk.bf16.gmra.mxu0 %vm638_vm0, %v5988_v15  ;;  %v6030_v15 = vld [vmem:[%s6197_s12 + $0x148] sm:$0xff]   ;;  %5323 = vmatpush3.bf16.msra.mxu1 %v6033_v25 }
  0x2c   : > { %5236 = vmatprep.mubr.msk.bf16.mxu0 %vm638_vm0, %v5989_v16  ;;  %5324 = vmatprep.subr.bf16.mxu1 %v8463_v63 }
  0x2d   : > { %5955 = vset.pattern.permute.xlu1 %v8461_v4 }
  0x2e   : > { %1495 = vperm.xlu1 %5955, %v1440_v17   ;;  %5317 = vmatmul.mubr.msk.bf16.gmra.mxu1 %vm638_vm0, %v6024_v36 }
  0x2f   : > { %1505 = vperm.xlu0 %5956, %v1442_v31   ;;  %5325 = vmatpush3.bf16.msra.mxu1 %v6035_v30 }
  0x30   : > { %5326 = vmatprep.subr.bf16.mxu1 %v8463_v63  ;;  %5336 = vmatprep.mubr.msk.bf16.mxu1 %vm6131_vm1, %v8463_v63 }
  0x32   : > { %5957 = vset.pattern.permute.xlu1 %v6128_v2 }
  0x33   : > { %2114 = vperm.xlu1 %5957, %v1440_v17   ;;  %5237 = vmatmul.mubr.msk.bf16.gmra.mxu0 %vm638_vm0, %v5990_v18 }
  0x34   : > { %5240 = vmatprep.mubr.msk.bf16.mxu0 %vm638_vm0, %v5991_v21  ;;  %1510 = vperm.xlu0 %5956, %v1443_v46  }
  0x37   : > { %5958 = vset.pattern.permute.xlu1 %v8461_v4 }
  0x38   : > { %1500 = vperm.xlu1 %5958, %v1441_v27   ;;  %1525 = vperm.xlu0 %5956, %v1446_v44  }
  0x3b   : > { %5241 = vmatmul.mubr.msk.bf16.gmra.mxu0 %vm638_vm0, %v5992_v23  ;;  %v6032_v23 = vld [vmem:[%s8456_s3 + $0xb8] sm:$0xff]  }
  0x3c   : > { %5244 = vmatprep.mubr.msk.bf16.mxu0 %vm638_vm0, %v5993_v26  ;;  %5959 = vset.pattern.permute.xlu1 %v6128_v2 }
  0x3d   : > { %2118 = vperm.xlu1 %5959, %v1441_v27   ;;  %5963 = vset.pattern.permute.xlu0 %v6128_v2 }
  0x3e   : > { %2126 = vperm.xlu0 %5963, %v1443_v46   ;;  %5457 = vmatpush3.bf16.msra.mxu0 %v6032_v23 }
  0x3f   : > { %5458 = vmatprep.subr.bf16.mxu0 %v8463_v63 }
  0x41   : > { %2122 = vperm.xlu1 %5959, %v1442_v31  }
  0x42   : > { %2142 = vperm.xlu0 %5963, %v1447_v52   ;;  %5459 = vmatpush3.bf16.msra.mxu0 %v6034_v28 }
  0x43   : > { %5245 = vmatmul.mubr.msk.bf16.gmra.mxu0 %vm638_vm0, %v5994_v29  ;;  %5460 = vmatprep.subr.bf16.mxu0 %v8463_v63 }
  0x44   : > { %5248 = vmatprep.mubr.msk.bf16.mxu0 %vm638_vm0, %v5995_v32  ;;  %v6036_v32 = vld [vmem:[%s8456_s3 + $0xa8] sm:$0xff]  }
  0x45   : > { %5960 = vset.pattern.permute.xlu1 %v8461_v4 }
  0x46   : > { %1515 = vperm.xlu1 %5960, %v1444_v34   ;;  %5966 = vset.pattern.permute.xlu0 %v8461_v4 }
  0x47   : > { %1530 = vperm.xlu0 %5966, %v1447_v52   ;;  %5461 = vmatpush3.bf16.msra.mxu0 %v6036_v32 }
  0x48   : > { %5462 = vmatprep.subr.bf16.mxu0 %v8463_v63 }
  0x4a   : > { %5961 = vset.pattern.permute.xlu1 %v6128_v2 }
  0x4b   : > { %5249 = vmatmul.mubr.msk.bf16.gmra.mxu0 %vm638_vm0, %v5996_v35  ;;  %2130 = vperm.xlu1 %5961, %v1444_v34   ;;  %v6037_v35 = vld [vmem:[%s8456_s3 + $0x60] sm:$0xff]  }
  0x4c   : > { %5252 = vmatprep.mubr.msk.bf16.mxu0 %vm638_vm0, %v5997_v37  ;;  %1545 = vperm.xlu0 %5966, %v1450_v55   ;;  %v6038_v37 = vld [vmem:[%s8456_s3 + $0xa0] sm:$0xff]  }
  0x4d   : > { %5327 = vmatpush3.bf16.msra.mxu1 %v6037_v35  ;;  %5463 = vmatpush3.bf16.msra.mxu0 %v6038_v37 }
  0x4e   : > { %5328 = vmatprep.subr.bf16.mxu1 %v8463_v63  ;;  %5464 = vmatprep.subr.bf16.mxu0 %v8463_v63 }
  0x4f   : > { %5962 = vset.pattern.permute.xlu1 %v8461_v4 }
  0x50   : > { %1520 = vperm.xlu1 %5962, %v1445_v38   ;;  %1550 = vperm.xlu0 %5966, %v1451_v59  }
  0x53   : > { %5253 = vmatmul.mubr.msk.bf16.gmra.mxu0 %vm638_vm0, %v5998_v39 }
  0x54   : > { %5256 = vmatprep.mubr.msk.bf16.mxu0 %vm638_vm0, %v5999_v41  ;;  %5964 = vset.pattern.permute.xlu1 %v6128_v2  ;;  %v6039_v41 = vld [vmem:[%s8456_s3 + $0x58] sm:$0xff]  }
  0x55   : > { %2134 = vperm.xlu1 %5964, %v1445_v38   ;;  %5971 = vset.pattern.permute.xlu0 %v6128_v2 }
  0x56   : > { %2158 = vperm.xlu0 %5971, %v1451_v59   ;;  %5329 = vmatpush3.bf16.msra.mxu1 %v6039_v41 }
  0x57   : > { %5330 = vmatprep.subr.bf16.mxu1 %v8463_v63 }
  0x59   : > { %2138 = vperm.xlu1 %5964, %v1446_v44  }
  0x5a   : > { %5974 = vset.pattern.permute.xlu0 %v8461_v4 }
  0x5b   : > { %5257 = vmatmul.mubr.msk.bf16.gmra.mxu0 %vm638_vm0, %v6000_v42  ;;  %1565 = vperm.xlu0 %5974, %v1454_v0  }
  0x5c   : > { %5260 = vmatprep.mubr.msk.bf16.mxu0 %vm638_vm0, %v6001_v43  ;;  %v6040_v43 = vld [vmem:[%s8456_s3 + $0x98] sm:$0xff]  }
  0x5d   : > { %5965 = vset.pattern.permute.xlu1 %v8461_v4  ;;  %5465 = vmatpush3.bf16.msra.mxu0 %v6040_v43 }
  0x5e   : > { %1535 = vperm.xlu1 %5965, %v1448_v45   ;;  %5466 = vmatprep.subr.bf16.mxu0 %v8463_v63 }
  0x5f   : > { %1570 = vperm.xlu0 %5974, %v1455_v5  }
  0x62   : > { %5967 = vset.pattern.permute.xlu1 %v6128_v2 }
  0x63   : > { %5261 = vmatmul.mubr.msk.bf16.gmra.mxu0 %vm638_vm0, %v6002_v47  ;;  %2146 = vperm.xlu1 %5967, %v1448_v45   ;;  %v6041_v47 = vld [vmem:[%s8456_s3 + $0x50] sm:$0xff]  }
  0x64   : > { %5264 = vmatprep.mubr.msk.bf16.mxu0 %vm638_vm0, %v6003_v48  ;;  %5977 = vset.pattern.permute.xlu0 %v6128_v2 }
  0x65   : > { %2174 = vperm.xlu0 %5977, %v1455_v5   ;;  %5331 = vmatpush3.bf16.msra.mxu1 %v6041_v47 }
  0x66   : > { %5332 = vmatprep.subr.bf16.mxu1 %v8463_v63 }
  0x67   : > { %5968 = vset.pattern.permute.xlu1 %v8461_v4 }
  0x68   : > { %1540 = vperm.xlu1 %5968, %v1449_v49  }
  0x69   : > { %2182 = vperm.xlu0 %5977, %v1457_v9  }
  0x6b   : > { %5265 = vmatmul.mubr.msk.bf16.gmra.mxu0 %vm638_vm0, %v6004_v50 }
  0x6c   : > { %5268 = vmatprep.mubr.msk.bf16.mxu0 %vm638_vm0, %v6005_v51  ;;  %5969 = vset.pattern.permute.xlu1 %v6128_v2  ;;  %v6043_v51 = vld [vmem:[%s8456_s3 + $0x48] sm:$0xff]  }
  0x6d   : > { %2150 = vperm.xlu1 %5969, %v1449_v49   ;;  %v6042_v49 = vld [vmem:[%s8456_s3 + $0x90] sm:$0xff]   ;;  %5333 = vmatpush3.bf16.msra.mxu1 %v6043_v51 }
  0x6e   : > { %5467 = vmatpush3.bf16.msra.mxu0 %v6042_v49  ;;  %5334 = vmatprep.subr.bf16.mxu1 %v8463_v63 }
  0x6f   : > { %5468 = vmatprep.subr.bf16.mxu0 %v8463_v63 }
  0x71   : > { %2154 = vperm.xlu1 %5969, %v1450_v55  }
  0x73   : > { %5269 = vmatmul.mubr.msk.bf16.gmra.mxu0 %vm638_vm0, %v6006_v53 }
  0x74   : > { %5272 = vmatprep.mubr.msk.bf16.mxu0 %vm638_vm0, %v6007_v54 }
  0x75   : > { %5970 = vset.pattern.permute.xlu1 %v8461_v4 }
  0x76   : > { %1555 = vperm.xlu1 %5970, %v1452_v56  }
  0x7a   : > { %5972 = vset.pattern.permute.xlu1 %v6128_v2 }
  0x7b   : > { %5273 = vmatmul.mubr.msk.bf16.gmra.mxu0 %vm638_vm0, %v6008_v57  ;;  %2162 = vperm.xlu1 %5972, %v1452_v56   ;;  %v6044_v56 = vld [vmem:[%s8456_s3 + $0x88] sm:$0xff]  }
  0x7c   : > { %5276 = vmatprep.mubr.msk.bf16.mxu0 %vm638_vm0, %v6009_v58  ;;  %5469 = vmatpush3.bf16.msra.mxu0 %v6044_v56  ;;  %v6045_v58 = vld [vmem:[%s8456_s3 + $0x40] sm:$0xff]  }
  0x7d   : > { %5470 = vmatprep.subr.bf16.mxu0 %v8463_v63  ;;  %5335 = vmatpush3.bf16.msra.mxu1 %v6045_v58 }
  0x7e   : > { %5388 = vmatprep.subr.bf16.mxu1 %v8463_v63 }
  0x7f   : > { %5973 = vset.pattern.permute.xlu1 %v8461_v4 }
  0x80   : > { %1560 = vperm.xlu1 %5973, %v1453_v60  }
  0x83   : > { %5277 = vmatmul.mubr.msk.bf16.gmra.mxu0 %vm638_vm0, %v6010_v61  ;;  %v6046_v61 = vld [vmem:[%s8456_s3 + $0x80] sm:$0xff]  }
  0x84   : > { %5280 = vmatprep.mubr.msk.bf16.mxu0 %vm638_vm0, %v6013_v62  ;;  %5975 = vset.pattern.permute.xlu1 %v6128_v2 }
  0x85   : > { %2166 = vperm.xlu1 %5975, %v1453_v60   ;;  %5471 = vmatpush3.bf16.msra.mxu0 %v6046_v61 }
  0x86   : > { %5592 = vmatprep.subr.bf16.mxu0 %v8463_v63 }
  0x88   : > { %v6419_v21 = vpop.permute.xlu1 %2086 }
  0x89   : > { %2170 = vperm.xlu1 %5975, %v1454_v0   ;;  %8531 = vst [vmem:[#allocation5_spill] sm:$0xff] %v6419_v21 }
  0x8a   : > { %v6570_v25 = vpop.permute.xlu0 %1460 }
  0x8b   : > { %5281 = vmatmul.mubr.msk.bf16.gmra.mxu0 %vm638_vm0, %v6014_v1  ;;  %8551 = vst [vmem:[#allocation25_spill] sm:$0xff] %v6570_v25 }
  0x8c   : > { %5284 = vmatprep.mubr.msk.bf16.mxu0 %vm638_vm0, %v6017_v3  ;;  %v6435_v27 = vpop.permute.xlu1 %2090 }
  0x8d   : > { %5976 = vset.pattern.permute.xlu1 %v8461_v4  ;;  %8535 = vst [vmem:[#allocation9_spill] sm:$0xff] %v6435_v27 }
  0x8e   : > { %1575 = vperm.xlu1 %5976, %v1456_v6   ;;  %v6580_v37 = vpop.permute.xlu0 %1465 }
  0x8f   : > { %8554 = vst [vmem:[#allocation28_spill] sm:$0xff] %v6580_v37 }
  0x91   : > { %v6455_v34 = vpop.permute.xlu1 %1475 }
  0x92   : > { %5978 = vset.pattern.permute.xlu1 %v6128_v2  ;;  %v6028_v2 = vld [vmem:[%s6197_s12 + $0x138] sm:$0xff]   ;;  %8538 = vst [vmem:[#allocation12_spill] sm:$0xff] %v6455_v34  ;;  %v6588_v51 = vpop.permute.xlu0 %1470 }
  0x93   : > { %5285 = vmatmul.mubr.msk.bf16.gmra.mxu0 %vm638_vm0, %v6018_v7  ;;  %2178 = vperm.xlu1 %5978, %v1456_v6   ;;  %8556 = vst [vmem:[#allocation30_spill] sm:$0xff] %v6588_v51 }
  0x94   : > { %5288 = vmatprep.mubr.msk.bf16.mxu0 %vm638_vm0, %v6021_v8 }
  0x96   : > { %v6472_v40 = vpop.permute.xlu1 %2098 }
  0x97   : > { %5979 = vset.pattern.permute.xlu1 %v8461_v4  ;;  %8539 = vst [vmem:[#allocation13_spill] sm:$0xff] %v6472_v40 }
  0x98   : > { %1580 = vperm.xlu1 %5979, %v1457_v9  }
  0x9b   : > { %5289 = vmatmul.mubr.msk.bf16.gmra.mxu0 %vm638_vm0, %v6022_v10  ;;  %v6488_v46 = vpop.permute.xlu1 %1480 }
  0x9c   : > { %5292 = vmatprep.mubr.msk.bf16.mxu0 %vm638_vm0, %v6025_v11  ;;  %8540 = vst [vmem:[#allocation14_spill] sm:$0xff] %v6488_v46 }
  0xa0   : > { %v6507_v53 = vpop.permute.xlu1 %2102 }
  0xa1   : > { %8541 = vst [vmem:[#allocation15_spill] sm:$0xff] %v6507_v53 }
  0xa3   : > { %5293 = vmatmul.mubr.msk.bf16.gmra.mxu0 %vm638_vm0, %v6026_v12 }
  0xa4   : > { %5296 = vmatprep.mubr.msk.bf16.mxu0 %vm638_vm0, %v6027_v13  ;;  %v6522_v59 = vpop.permute.xlu1 %2106 }
  0xa5   : > { %8542 = vst [vmem:[#allocation16_spill] sm:$0xff] %v6522_v59 }
  0xa9   : > { %v6540_v1 = vpop.permute.xlu1 %1495 }
  0xaa   : > { %8543 = vst [vmem:[#allocation17_spill] sm:$0xff] %v6540_v1 }
  0xab   : > { %5297 = vmatmul.mubr.msk.bf16.gmra.mxu0 %vm638_vm0, %v6028_v2 }
  0xac   : > { %5300 = vmatprep.mubr.msk.bf16.mxu0 %vm638_vm0, %v6029_v14 }
  0xae   : > { %v6550_v8 = vpop.permute.xlu1 %2114 }
  0xaf   : > { %8545 = vst [vmem:[#allocation19_spill] sm:$0xff] %v6550_v8 }
  0xb3   : > { %5301 = vmatmul.mubr.msk.bf16.gmra.mxu0 %vm638_vm0, %v6030_v15  ;;  %v6562_v2 = vpop.permute.xlu1 %1500 }
  0xb4   : > { %5472 = vmatprep.mubr.msk.bf16.mxu0 %vm6131_vm1, %v8463_v63  ;;  %8548 = vst [vmem:[#allocation22_spill] sm:$0xff] %v6562_v2  ;;  %v6598_v63 = vpop.permute.xlu0 %1485 }
  0xb5   : > { %8558 = vst [vmem:[#allocation32_spill] sm:$0xff] %v6598_v63 }
  0xb8   : > { %v6572_v28 = vpop.permute.xlu1 %2118 }
  0xb9   : > { %8552 = vst [vmem:[#allocation26_spill] sm:$0xff] %v6572_v28 }
  0xbc   : > { %v6582_v41 = vpop.permute.xlu1 %2122 }
  0xbd   : > { %8555 = vst [vmem:[#allocation29_spill] sm:$0xff] %v6582_v41 }
  0xc1   : > { %v6590_v56 = vpop.permute.xlu1 %1515 }
  0xc2   : > { %8557 = vst [vmem:[#allocation31_spill] sm:$0xff] %v6590_v56  ;;  %v6610_v56 = vpop.permute.xlu0 %2094 }
  0xc3   : > { %8560 = vst [vmem:[#allocation34_spill] sm:$0xff] %v6610_v56 }
  0xc6   : > { %v6600_v13 = vpop.permute.xlu1 %2130  ;;  %v6620_v25 = vpop.permute.xlu0 %2110 }
  0xc7   : > { %8559 = vst [vmem:[#allocation33_spill] sm:$0xff] %v6600_v13  ;;  %8562 = vst [vmem:[#allocation36_spill] sm:$0xff] %v6620_v25 }
  0xcb   : > { %v6612_v46 = vpop.permute.xlu1 %1520 }
  0xcc   : > { %8561 = vst [vmem:[#allocation35_spill] sm:$0xff] %v6612_v46  ;;  %v6632_v46 = vpop.permute.xlu0 %1490 }
  0xcd   : > { %8564 = vst [vmem:[#allocation38_spill] sm:$0xff] %v6632_v46 }
  0xd0   : > { %v6622_v13 = vpop.permute.xlu1 %2134 }
  0xd1   : > { %8563 = vst [vmem:[#allocation37_spill] sm:$0xff] %v6622_v13  ;;  %v6642_v13 = vpop.permute.xlu0 %1505 }
  0xd2   : > { %8569 = vst [vmem:[#allocation43_spill] sm:$0xff] %v6642_v13 }
  0xd3   : > { %v6408_v16 = vpop.f32.mrf.mxu0 }
  0xd4   : > { %8530 = vst [vmem:[#allocation4_spill] sm:$0xff] %v6408_v16  ;;  %v6634_v40 = vpop.permute.xlu1 %2138 }
  0xd5   : > { %v6410_v17 = vpop.f32.mrf.mxu0  ;;  %8565 = vst [vmem:[#allocation39_spill] sm:$0xff] %v6634_v40  ;;  %v6652_v40 = vpop.permute.xlu0 %1510 }
  0xd6   : > { %v6604_v6 = vpop.f32.mrf.mxu1  ;;  %8573 = vst [vmem:[#allocation47_spill] sm:$0xff] %v6652_v40 }
  0xd7   : > { %v6412_v18 = vpop.f32.mrf.mxu0 }
  0xd8   : > { %v1159_v1 = vpop.f32.mrf.mxu1 }
  0xd9   : > { %v6414_v19 = vpop.f32.mrf.mxu0  ;;  %v6644_v27 = vpop.permute.xlu1 %1535 }
  0xda   : > { %v5307_v63 = vpop.f32.mrf.mxu1  ;;  %8570 = vst [vmem:[#allocation44_spill] sm:$0xff] %v6644_v27  ;;  %v6660_v27 = vld [vmem:[%s8455_s2] ss:$0 sm:$0xff] }
  0xdb   : > { %v6421_v22 = vpop.f32.mrf.mxu0 }
  0xdc   : > { %8532 = vst [vmem:[#allocation6_spill] sm:$0xff] %v6421_v22  ;;  %v1162_v28 = vpop.f32.mrf.mxu1 }
  0xdd   : > { %v6427_v24 = vpop.f32.mrf.mxu0 }
  0xde   : > { %8533 = vst [vmem:[#allocation7_spill] sm:$0xff] %v6427_v24  ;;  %v6630_v53 = vpop.f32.mrf.mxu1  ;;  %v6654_v21 = vpop.permute.xlu1 %2146 }
  0xdf   : > { %v6432_v26 = vpop.f32.mrf.mxu0  ;;  %8574 = vst [vmem:[#allocation48_spill] sm:$0xff] %v6654_v21  ;;  %v6668_v21 = vpop.permute.xlu0 %1525 }
  0xe0   : > { %8534 = vst [vmem:[#allocation8_spill] sm:$0xff] %v6432_v26  ;;  %v1175_v25 = vpop.f32.mrf.mxu1 }
  0xe1   : > { %v6440_v29 = vpop.f32.mrf.mxu0 }
  0xe2   : > { %8536 = vst [vmem:[#allocation10_spill] sm:$0xff] %v6440_v29 }
  0xe3   : > { %v6446_v31 = vpop.f32.mrf.mxu0 }
  0xe5   : > { %v6452_v33 = vpop.f32.mrf.mxu0 }
  0xe6   : > { %8537 = vst [vmem:[#allocation11_spill] sm:$0xff] %v6452_v33 }
  0xe7   : > { %v6460_v36 = vpop.f32.mrf.mxu0 }
  0xe9   : > { %v6466_v38 = vpop.f32.mrf.mxu0 }
  0xeb   : > { %v6469_v39 = vpop.f32.mrf.mxu0 }
  0xed   : > { %v6477_v42 = vpop.f32.mrf.mxu0 }
  0xef   : > { %v6482_v44 = vpop.f32.mrf.mxu0 }
  0xf1   : > { %v6485_v45 = vpop.f32.mrf.mxu0 }
  0xf3   : > { %v6493_v48 = vpop.f32.mrf.mxu0 }
  0xf5   : > { %v6498_v50 = vpop.f32.mrf.mxu0 }
  0xf7   : > { %v6504_v52 = vpop.f32.mrf.mxu0 }
  0xf9   : > { %v6509_v54 = vpop.f32.mrf.mxu0 }
  0xfb   : > { %v6512_v55 = vpop.f32.mrf.mxu0 }
  0xfd   : > { %v6517_v57 = vpop.f32.mrf.mxu0 }
  0xff   : > { %v6525_v60 = vpop.f32.mrf.mxu0 }
 0x101   : > { %v6531_v62 = vpop.f32.mrf.mxu0 }
 0x103   : > { %v6538_v0 = vpop.f32.mrf.mxu0 }
 0x105   : > { %v6542_v3 = vpop.f32.mrf.mxu0 }
 0x107   : > { %v6544_v5 = vpop.f32.mrf.mxu0 }
 0x108   : > { %8544 = vst [vmem:[#allocation18_spill] sm:$0xff] %v6544_v5 }
 0x109   : > { %v6548_v7 = vpop.f32.mrf.mxu0 }
 0x10b   : > { %v6552_v9 = vpop.f32.mrf.mxu0 }
 0x10c   : > { %8546 = vst [vmem:[#allocation20_spill] sm:$0xff] %v6552_v9 }
 0x10d   : > { %v6554_v10 = vpop.f32.mrf.mxu0 }
 0x10f   : > { %v6558_v12 = vpop.f32.mrf.mxu0 }
 0x110   : > { %8547 = vst [vmem:[#allocation21_spill] sm:$0xff] %v6558_v12 }
 0x111   : > { %v6564_v14 = vpop.f32.mrf.mxu0 }
 0x112   : > { %8549 = vst [vmem:[#allocation23_spill] sm:$0xff] %v6564_v14 }
 0x113   : > { %v5254_v15 = vpop.f32.mrf.mxu0 }
 0x114   : > { %v1231_v26 = vmax.f32 %v6466_v38, %v5254_v15  ;;  %v6670_v38 = vpop.permute.xlu1 %1540 }
 0x115   : > { %v6566_v20 = vpop.f32.mrf.mxu0  ;;  %8576 = vst [vmem:[#allocation50_spill] sm:$0xff] %v6670_v38 }
 0x116   : > { %8550 = vst [vmem:[#allocation24_spill] sm:$0xff] %v6566_v20 }
 0x117   : > { %v6574_v30 = vpop.f32.mrf.mxu0 }
 0x119   : > { %v6576_v32 = vpop.f32.mrf.mxu0 }
 0x11a   : > { %8553 = vst [vmem:[#allocation27_spill] sm:$0xff] %v6576_v32  ;;  %v5311_v32 = vpop.f32.mrf.mxu1 }
 0x11b   : > { %v6578_v35 = vpop.f32.mrf.mxu0 }
 0x11c   : > { %v1178_v46 = vpop.f32.mrf.mxu1 }
 0x11d   : > { %v6584_v43 = vpop.f32.mrf.mxu0 }
 0x11e   : > { %v6664_v5 = vpop.f32.mrf.mxu1 }
 0x11f   : > { %v6586_v47 = vpop.f32.mrf.mxu0 }
 0x120   : > { %v1191_v15 = vpop.f32.mrf.mxu1 }
 0x121   : > { %v970_v49 = vpop.f32.mrf.mxu0 }
 0x122   : > { %v1234_v16 = vmax.f32 %v6477_v42, %v970_v49  ;;  %v5315_v49 = vpop.f32.mrf.mxu1 }
 0x123   : > { %v6592_v58 = vpop.f32.mrf.mxu0 }
 0x125   : > { %v6594_v61 = vpop.f32.mrf.mxu0 }
 0x127   : > { %v6596_v4 = vpop.f32.mrf.mxu0 }
 0x129   : > { %v6602_v23 = vpop.f32.mrf.mxu0 }
 0x12b   : > { %v6606_v11 = vpop.f32.mrf.mxu0 }
 0x12d   : > { %v6608_v2 = vpop.f32.mrf.mxu0 }
 0x12f   : > { %v6614_v51 = vpop.f32.mrf.mxu0 }
 0x131   : > { %v6616_v34 = vpop.f32.mrf.mxu0 }
 0x133   : > { %v6618_v37 = vpop.f32.mrf.mxu0 }
 0x135   : > { %v6624_v41 = vpop.f32.mrf.mxu0 }
 0x137   : > { %v6626_v8 = vpop.f32.mrf.mxu0 }
 0x139   : > { %v6628_v59 = vpop.f32.mrf.mxu0 }
 0x13b   : > { %v6636_v56 = vpop.f32.mrf.mxu0 }
 0x13c   : > { %8566 = vst [vmem:[#allocation40_spill] sm:$0xff] %v6636_v56 }
 0x13d   : > { %v6638_v12 = vpop.f32.mrf.mxu0 }
 0x13e   : > { %8567 = vst [vmem:[#allocation41_spill] sm:$0xff] %v6638_v12 }
 0x13f   : > { %v6640_v22 = vpop.f32.mrf.mxu0 }
 0x140   : > { %8568 = vst [vmem:[#allocation42_spill] sm:$0xff] %v6640_v22 }
 0x141   : > { %v6646_v33 = vpop.f32.mrf.mxu0 }
 0x143   : > { %v6648_v29 = vpop.f32.mrf.mxu0 }
 0x144   : > { %8571 = vst [vmem:[#allocation45_spill] sm:$0xff] %v6648_v29 }
 0x145   : > { %v6650_v9 = vpop.f32.mrf.mxu0 }
 0x146   : > { %8572 = vst [vmem:[#allocation46_spill] sm:$0xff] %v6650_v9 }
 0x147   : > { %v5279_v20 = vpop.f32.mrf.mxu0 }
 0x148   : > { %v1256_v22 = vmax.f32 %v5279_v20, %v1159_v1  ;;  %v1232_v20 = vmax.f32 %v6446_v31, %v6574_v30  ;;  %v1236_v30 = vmax.f32 %v6469_v39, %v6586_v47 }
 0x149   : > { %v6662_v13 = vpop.f32.mrf.mxu0 }
 0x14a   : > { %8575 = vst [vmem:[#allocation49_spill] sm:$0xff] %v6662_v13  ;;  %v1281_v29 = vmax.f32 %v1231_v26, %v1256_v22  ;;  %v1235_v22 = vmax.f32 %v6485_v45, %v6578_v35 }
 0x14b   : > { %v5282_v9 = vpop.f32.mrf.mxu0 }
 0x14c   : > { %v1313_v40 = vadd.f32 %v6660_v27, %v1281_v29  ;;  %v1259_v12 = vmax.f32 %v5282_v9, %v5307_v63  ;;  %v1233_v63 = vmax.f32 %v6460_v36, %v6584_v43  ;;  %v1194_v43 = vpop.f32.mrf.mxu1 }
 0x14d   : > { %v1063_v1 = vpop.f32.mrf.mxu0 }
 0x14e   : > { %v1338_v24 = vmax.f32 %v1313_v40, 0.0  ;;  %v1284_v13 = vmax.f32 %v1234_v16, %v1259_v12  ;;  %v1257_v14 = vmax.f32 %v1063_v1, %v1162_v28  ;;  %v6680_v40 = vpop.permute.xlu0 %2126  ;;  %v6682_v12 = vpop.permute.xlu1 %2150 }
 0x14f   : > { %v5283_v56 = vpop.f32.mrf.mxu0  ;;  %8577 = vst [vmem:[#allocation51_spill] sm:$0xff] %v6680_v40  ;;  %8578 = vst [vmem:[#allocation52_spill] sm:$0xff] %v6682_v12 }
 0x150   : > { %1392 = vst [vmem:[#allocation2 + $0x58] sm:$0xff] %v1338_v24  ;;  %v1316_v26 = vadd.f32 %v6660_v27, %v1284_v13  ;;  %v1282_v29 = vmax.f32 %v1232_v20, %v1257_v14  ;;  %v1260_v42 = vmax.f32 %v5283_v56, %v1175_v25  ;;  %v1238_v24 = vmax.f32 %v6498_v50, %v6602_v23 }
 0x151   : > { %v1066_v9 = vpop.f32.mrf.mxu0  ;;  %v1239_v50 = vmax.f32 %v6509_v54, %v6592_v58 }
 0x152   : > { %v1341_v38 = vmax.f32 %v1316_v26, 0.0  ;;  %v1314_v31 = vadd.f32 %v6660_v27, %v1282_v29  ;;  %v1285_v16 = vmax.f32 %v1235_v22, %v1260_v42  ;;  %v1258_v45 = vmax.f32 %v1066_v9, %v6604_v6  ;;  %v6693_v22 = vpop.permute.xlu0 %2142  ;;  %v6696_v26 = vpop.permute.xlu1 %2154 }
 0x153   : > { %v5286_v13 = vpop.f32.mrf.mxu0  ;;  %8579 = vst [vmem:[#allocation53_spill] sm:$0xff] %v6693_v22  ;;  %8580 = vst [vmem:[#allocation54_spill] sm:$0xff] %v6696_v26  ;;  %v1237_v29 = vmax.f32 %v6482_v44, %v6594_v61 }
 0x154   : > { %1395 = vst [vmem:[#allocation2 + $0x70] sm:$0xff] %v1341_v38  ;;  %v1339_v14 = vmax.f32 %v1314_v31, 0.0  ;;  %v1317_v36 = vadd.f32 %v6660_v27, %v1285_v16  ;;  %v1283_v25 = vmax.f32 %v1233_v63, %v1258_v45  ;;  %v1263_v28 = vmax.f32 %v5286_v13, %v5311_v32  ;;  %v6700_v63 = vpop.f32.mrf.mxu1 }
 0x155   : > { %v1079_v35 = vpop.f32.mrf.mxu0  ;;  %v1242_v31 = vmax.f32 %v6517_v57, %v6616_v34  ;;  %v1240_v34 = vmax.f32 %v6493_v48, %v6596_v4 }
 0x156   : > { %1393 = vst [vmem:[#allocation2 + $0x60] sm:$0xff] %v1339_v14  ;;  %v1342_v56 = vmax.f32 %v1317_v36, 0.0  ;;  %v1315_v1 = vadd.f32 %v6660_v27, %v1283_v25  ;;  %v1288_v6 = vmax.f32 %v1238_v24, %v1263_v28  ;;  %v1261_v20 = vmax.f32 %v1079_v35, %v1178_v46  ;;  %v1207_v13 = vpop.f32.mrf.mxu1  ;;  %v6707_v14 = vpop.permute.xlu0 %1530 }
 0x157   : > { %v5287_v23 = vpop.f32.mrf.mxu0  ;;  %v6709_v25 = vpop.permute.xlu1 %1555 }
 0x158   : > { %1396 = vst [vmem:[#allocation2 + $0x78] sm:$0xff] %v1342_v56  ;;  %v1340_v38 = vmax.f32 %v1315_v1, 0.0  ;;  %v1320_v32 = vadd.f32 %v6660_v27, %v1288_v6  ;;  %v1286_v39 = vmax.f32 %v1236_v30, %v1261_v20  ;;  %v1264_v47 = vmax.f32 %v5287_v23, %v1191_v15  ;;  %v5319_v35 = vpop.f32.mrf.mxu1 }
 0x159   : > { %v1082_v42 = vpop.f32.mrf.mxu0  ;;  %v1243_v1 = vmax.f32 %v6531_v62, %v6606_v11  ;;  %v1241_v23 = vmax.f32 %v6504_v52, %v6608_v2 }
 0x15a   : > { %1394 = vst [vmem:[#allocation2 + $0x68] sm:$0xff] %v1340_v38  ;;  %v1345_v46 = vmax.f32 %v1320_v32, 0.0  ;;  %v1318_v54 = vadd.f32 %v6660_v27, %v1286_v39  ;;  %v1289_v58 = vmax.f32 %v1239_v50, %v1264_v47  ;;  %v1262_v9 = vmax.f32 %v1082_v42, %v6630_v53  ;;  %v1210_v39 = vpop.f32.mrf.mxu1  ;;  %v6725_v42 = vpop.permute.xlu0 %1545 }
 0x15b   : > { %v5290_v16 = vpop.f32.mrf.mxu0  ;;  %v1246_v47 = vmax.f32 %v6542_v3, %v6628_v59  ;;  %v6723_v62 = vpop.permute.xlu1 %2162 }
 0x15c   : > { %1399 = vst [vmem:[#allocation2 + $0x90] sm:$0xff] %v1345_v46  ;;  %v1343_v45 = vmax.f32 %v1318_v54, 0.0  ;;  %v1321_v15 = vadd.f32 %v6660_v27, %v1289_v58  ;;  %v1287_v24 = vmax.f32 %v1237_v29, %v1262_v9  ;;  %v1267_v44 = vmax.f32 %v5290_v16, %v5315_v49  ;;  %8581 = vst [vmem:[#allocation55_spill] sm:$0xff] %v6723_v62 }
 0x15d   : > { %v1095_v61 = vpop.f32.mrf.mxu0  ;;  %v1244_v9 = vmax.f32 %v6512_v55, %v6614_v51  ;;  %v1222_v16 = vmax.f32 %v6410_v17, %v6548_v7 }
 0x15e   : > { %1397 = vst [vmem:[#allocation2 + $0x80] sm:$0xff] %v1343_v45  ;;  %v1346_v36 = vmax.f32 %v1321_v15, 0.0  ;;  %v1319_v53 = vadd.f32 %v6660_v27, %v1287_v24  ;;  %v1292_v28 = vmax.f32 %v1242_v31, %v1267_v44  ;;  %v1265_v30 = vmax.f32 %v1095_v61, %v1194_v43  ;;  %v6740_v51 = vpop.permute.xlu0 %1550 }
 0x15f   : > { %v5291_v57 = vpop.f32.mrf.mxu0  ;;  %v1245_v61 = vmax.f32 %v6525_v60, %v6624_v41  ;;  %v1223_v41 = vmax.f32 %v6414_v19, %v6538_v0 }
 0x160   : > { %1400 = vst [vmem:[#allocation2 + $0x98] sm:$0xff] %v1346_v36  ;;  %v1344_v56 = vmax.f32 %v1319_v53, 0.0  ;;  %v1324_v49 = vadd.f32 %v6660_v27, %v1292_v28  ;;  %v1290_v6 = vmax.f32 %v1240_v34, %v1265_v30  ;;  %v1268_v20 = vmax.f32 %v5291_v57, %v1207_v13  ;;  %v6737_v13 = vpop.permute.xlu1 %1560 }
 0x161   : > { %v1098_v50 = vpop.f32.mrf.mxu0  ;;  %v8582_v57 = vmax.f32 %v6412_v18, %v6554_v10  ;;  %v8585_v18 = vld [vmem:[#allocation40_spill] sm:$0xff] }
 0x162   : > { %1398 = vst [vmem:[#allocation2 + $0x88] sm:$0xff] %v1344_v56  ;;  %v1349_v43 = vmax.f32 %v1324_v49, 0.0  ;;  %v1266_v38 = vmax.f32 %v1098_v50, %v6664_v5  ;;  %v1322_v4 = vadd.f32 %v6660_v27, %v1290_v6  ;;  %v1293_v48 = vmax.f32 %v1243_v1, %v1268_v20  ;;  %v6760_v0 = vpop.permute.xlu0 %2158 }
 0x163   : > { %v5294_v32 = vpop.f32.mrf.mxu0  ;;  %8584 = vst [vmem:[#allocation57_spill] sm:$0xff] %v6760_v0 }
 0x164   : > { %1403 = vst [vmem:[#allocation2 + $0xb0] sm:$0xff] %v1349_v43  ;;  %v1291_v11 = vmax.f32 %v1241_v23, %v1266_v38  ;;  %v1271_v29 = vmax.f32 %v5294_v32, %v5319_v35  ;;  %v1347_v52 = vmax.f32 %v1322_v4, 0.0  ;;  %v1325_v2 = vadd.f32 %v6660_v27, %v1293_v48  ;;  %v6755_v6 = vpop.permute.xlu1 %2166  ;;  %v8588_v4 = vld [vmem:[#allocation23_spill] sm:$0xff] }
 0x165   : > { %v1111_v46 = vpop.f32.mrf.mxu0  ;;  %8583 = vst [vmem:[#allocation56_spill] sm:$0xff] %v6755_v6  ;;  %v8589_v48 = vld [vmem:[#allocation7_spill] sm:$0xff] }
 0x166   : > { %v1323_v5 = vadd.f32 %v6660_v27, %v1291_v11  ;;  %v1296_v54 = vmax.f32 %v1246_v47, %v1271_v29  ;;  %v1269_v58 = vmax.f32 %v1111_v46, %v1210_v39  ;;  %1401 = vst [vmem:[#allocation2 + $0xa0] sm:$0xff] %v1347_v52  ;;  %v1350_v59 = vmax.f32 %v1325_v2, 0.0 }
 0x167   : > { %v5295_v3 = vpop.f32.mrf.mxu0  ;;  %v1226_v32 = vmax.f32 %v8589_v48, %v8588_v4  ;;  %v8605_v4 = vld [vmem:[#allocation11_spill] sm:$0xff] }
 0x168   : > { %v1348_v31 = vmax.f32 %v1323_v5, 0.0  ;;  %1404 = vst [vmem:[#allocation2 + $0xb8] sm:$0xff] %v1350_v59  ;;  %v1328_v45 = vadd.f32 %v6660_v27, %v1296_v54  ;;  %v1294_v15 = vmax.f32 %v1244_v9, %v1269_v58  ;;  %v1247_v24 = vmax.f32 %v6618_v37, %v5295_v3  ;;  %v6779_v5 = vpop.permute.xlu1 %2170  ;;  %v8591_v9 = vld [vmem:[#allocation41_spill] sm:$0xff] }
 0x169   : > { %v1114_v44 = vpop.f32.mrf.mxu0  ;;  %8590 = vst [vmem:[#allocation23_spill] sm:$0xff] %v6779_v5  ;;  %v8592_v3 = vld [vmem:[#allocation49_spill] sm:$0xff] }
 0x16a   : > { %1402 = vst [vmem:[#allocation2 + $0xa8] sm:$0xff] %v1348_v31  ;;  %v1270_v55 = vmax.f32 %v1114_v44, %v6700_v63  ;;  %v1353_v36 = vmax.f32 %v1328_v45, 0.0  ;;  %v1326_v17 = vadd.f32 %v6660_v27, %v1294_v15  ;;  %v1272_v7 = vmax.f32 %v1222_v16, %v1247_v24  ;;  %v8595_v24 = vld [vmem:[#allocation4_spill] sm:$0xff]  ;;  %v8596_v44 = vld [vmem:[#allocation18_spill] sm:$0xff] }
 0x16b   : > { %v5298_v53 = vpop.f32.mrf.mxu0 }
 0x16c   : > { %v1295_v28 = vmax.f32 %v1245_v61, %v1270_v55  ;;  %v1250_v30 = vmax.f32 %v6646_v33, %v5298_v53  ;;  %1407 = vst [vmem:[#allocation2 + $0xd0] sm:$0xf] %v1353_v36  ;;  %v1351_v37 = vmax.f32 %v1326_v17, 0.0  ;;  %v6745_v34 = vadd.f32 %v6660_v27, %v1272_v7  ;;  %v8598_v53 = vld [vmem:[#allocation8_spill] sm:$0xff] }
 0x16d   : > { %v1127_v60 = vpop.f32.mrf.mxu0  ;;  %v8597_v61 = vmax.f32 %v8595_v24, %v8596_v44  ;;  %v8609_v24 = vld [vmem:[#allocation9_spill] sm:$0xff] }
 0x16e   : > { %v1327_v63 = vadd.f32 %v6660_v27, %v1295_v28  ;;  %v1275_v35 = vmax.f32 %v8582_v57, %v1250_v30  ;;  %v1248_v56 = vmax.f32 %v6626_v8, %v1127_v60  ;;  %1405 = vst [vmem:[#allocation2 + $0xc0] sm:$0xff] %v1351_v37  ;;  %v1329_v33 = vmax.f32 %v6745_v34, 0.0  ;;  %v8599_v28 = vld [vmem:[#allocation24_spill] sm:$0xff] }
 0x16f   : > { %v5299_v49 = vpop.f32.mrf.mxu0  ;;  %v3863_v1 = vld [vmem:[#allocation2 + $0xb7] sm:$0xff]  ;;  %v8600_v30 = vmax.f32 %v8598_v53, %v8599_v28  ;;  %v2060_v60 = vld [vmem:[#allocation2 + $0x3] sm:$0xff] }
 0x170   : > { %v1352_v20 = vmax.f32 %v1327_v63, 0.0  ;;  %v6758_v50 = vadd.f32 %v6660_v27, %v1275_v35  ;;  %v1273_v19 = vmax.f32 %v1223_v41, %v1248_v56  ;;  %1383 = vst [vmem:[#allocation2 + $0x10] sm:$0xff] %v1329_v33  ;;  %v1251_v8 = vmax.f32 %v8585_v18, %v5299_v49  ;;  %v6775_v11 = vld [vmem:[#allocation2 + $0xb1] sm:$0xff]  ;;  %v1637_v35 = vld [vmem:[#allocation2 + $0x2] sm:$0xff] }
 0x171   : > { %v3862_v23 = vld [vmem:[#allocation2 + $0xaf] sm:$0xff]  ;;  %v1130_v10 = vpop.f32.mrf.mxu0  ;;  %v6769_v38 = vmul.f32 %v3863_v1, %v6723_v62  ;;  %v6789_v16 = vmul.f32 %v6775_v11, %v6755_v6  ;;  %v6049_v53 = vld [vmem:[%s8456_s3 + $0x138] sm:$0xff]  }
 0x172   : > { %v6766_v43 = vmul.f32 %v3862_v23, %v6760_v0  ;;  %1406 = vst [vmem:[#allocation2 + $0xc8] sm:$0xff] %v1352_v20  ;;  %v1332_v29 = vmax.f32 %v6758_v50, 0.0  ;;  %v1305_v52 = vadd.f32 %v6660_v27, %v1273_v19  ;;  %v1276_v2 = vmax.f32 %v1226_v32, %v1251_v8  ;;  %v8601_v1 = vld [vmem:[#allocation5_spill] sm:$0xff]  ;;  %v8602_v19 = vld [vmem:[#allocation20_spill] sm:$0xff]  ;;  %v8603_v23 = vld [vmem:[#allocation10_spill] sm:$0xff] }
 0x173   : > { %8587 = vst [vmem:[#allocation58_spill] sm:$0xff] %v6769_v38  ;;  %v5302_v39 = vpop.f32.mrf.mxu0  ;;  %v1249_v59 = vmax.f32 %v8591_v9, %v1130_v10  ;;  %8593 = vst [vmem:[#allocation7_spill] sm:$0xff] %v6789_v16  ;;  %v2185_v20 = vmul.f32 %v8601_v1, %v2060_v60  ;;  %v1227_v18 = vmax.f32 %v8603_v23, %v8602_v19  ;;  %v8604_v10 = vld [vmem:[#allocation27_spill] sm:$0xff]  ;;  %v8611_v28 = vld [vmem:[#allocation21_spill] sm:$0xff] }
 0x174   : > { %8586 = vst [vmem:[#allocation40_spill] sm:$0xff] %v6766_v43  ;;  %1386 = vst [vmem:[#allocation2 + $0x28] sm:$0xff] %v1332_v29  ;;  %v1330_v58 = vmax.f32 %v1305_v52, 0.0  ;;  %v1254_v31 = vmax.f32 %v8592_v3, %v5302_v39  ;;  %v1308_v15 = vadd.f32 %v6660_v27, %v1276_v2  ;;  %v1230_v48 = vmax.f32 %v8605_v4, %v8604_v10  ;;  %v8606_v39 = vld [vmem:[#allocation42_spill] sm:$0xff]  ;;  %v8607_v2 = vld [vmem:[#allocation45_spill] sm:$0xff] }
 0x175   : > { %v1143_v46 = vpop.f32.mrf.mxu0  ;;  %v6781_v54 = vld [vmem:[#allocation2 + $0xb9] sm:$0xff]  ;;  %v1274_v55 = vmax.f32 %v8597_v61, %v1249_v59  ;;  %v6051_v19 = vld [vmem:[%s8456_s3 + $0x130] sm:$0xff]  }
 0x176   : > { %v6793_v45 = vmul.f32 %v6781_v54, %v6779_v5  ;;  %1384 = vst [vmem:[#allocation2 + $0x18] sm:$0xff] %v1330_v58  ;;  %v1333_v7 = vmax.f32 %v1308_v15, 0.0  ;;  %v1279_v37 = vmax.f32 %v8600_v30, %v1254_v31  ;;  %v1252_v52 = vmax.f32 %v8606_v39, %v1143_v46  ;;  %v6047_v59 = vld [vmem:[%s8456_s3 + $0x38] sm:$0xff]   ;;  %v1650_v43 = vld [vmem:[#allocation2 + $0x6a] sm:$0xff] }
 0x177   : > { %v5303_v36 = vpop.f32.mrf.mxu0  ;;  %v1306_v41 = vadd.f32 %v6660_v27, %v1274_v55  ;;  %v1638_v56 = vld [vmem:[#allocation2 + $0xa] sm:$0xff]  ;;  %v8608_v3 = vld [vmem:[#allocation46_spill] sm:$0xff]  ;;  %v6843_v23 = vpack.c.bf16 %v1330_v58, %v1329_v33 }
 0x178   : > { %8594 = vst [vmem:[#allocation41_spill] sm:$0xff] %v6793_v45  ;;  %1387 = vst [vmem:[#allocation2 + $0x30] sm:$0xff] %v1333_v7  ;;  %v1311_v63 = vadd.f32 %v6660_v27, %v1279_v37  ;;  %v2061_v49 = vld [vmem:[#allocation2 + $0xb] sm:$0xff]  ;;  %v1255_v9 = vmax.f32 %v8607_v2, %v5303_v36  ;;  %v1662_v15 = vpack.c.bf16 %v1638_v56, %v1637_v35  ;;  %v8610_v46 = vld [vmem:[#allocation6_spill] sm:$0xff] }
 0x179   : > { %v1146_v57 = vpop.f32.mrf.mxu0  ;;  %v1331_v8 = vmax.f32 %v1306_v41, 0.0  ;;  %v2186_v44 = vmul.f32 %v8609_v24, %v2061_v49  ;;  %v1277_v61 = vmax.f32 %v1227_v18, %v1252_v52  ;;  %v8612_v36 = vmax.f32 %v8610_v46, %v8611_v28  ;;  %v6050_v18 = vld [vmem:[%s8456_s3 + $0x28] sm:$0xff]   ;;  %v8614_v39 = vld [vmem:[#allocation34_spill] sm:$0xff]  ;;  %v8615_v2 = vld [vmem:[#allocation13_spill] sm:$0xff] }
 0x17a   : > { %v1336_v32 = vmax.f32 %v1311_v63, 0.0  ;;  %v1253_v31 = vmax.f32 %v8608_v3, %v1146_v57  ;;  %v1280_v55 = vmax.f32 %v1230_v48, %v1255_v9  ;;  %5337 = vmatmul.mubr.bf16.vlgmr.msra.gmra.mxu1 %v1662_v15  ;;  %v8613_v63 = vmov 0.0   ;;  %v6048_v57 = vld [vmem:[%s8456_s3 + $0x30] sm:$0xff]   ;;  %v8616_v15 = vld [vmem:[#allocation15_spill] sm:$0xff]  ;;  %v8617_v46 = vld [vmem:[#allocation16_spill] sm:$0xff] }
 0x17b   : > { %1385 = vst [vmem:[#allocation2 + $0x20] sm:$0xff] %v1331_v8  ;;  %v2210_v37 = vpack.c.bf16 %v2186_v44, %v2185_v20  ;;  %v1309_v60 = vadd.f32 %v6660_v27, %v1277_v61  ;;  %5340 = vmatprep.mubr.msk.bf16.mxu1 %vm6131_vm1, %v8613_v63  ;;  %5389 = vmatpush3.bf16.msra.mxu1 %v6047_v59  ;;  %v6053_v59 = vld [vmem:[%s8456_s3 + $0x20] sm:$0xff]   ;;  %v8627_v38 = vld [vmem:[#allocation37_spill] sm:$0xff] }
 0x17c   : > { %1390 = vst [vmem:[#allocation2 + $0x48] sm:$0xff] %v1336_v32  ;;  %v1278_v30 = vmax.f32 %v8612_v36, %v1253_v31  ;;  %v6826_v41 = vadd.f32 %v6660_v27, %v1280_v55  ;;  %5390 = vmatprep.subr.bf16.mxu1 %v8613_v63  ;;  %v6851_v10 = vpack.c.bf16 %v1332_v29, %v1331_v8  ;;  %v6052_v29 = vld [vmem:[%s8456_s3 + $0x128] sm:$0xff]   ;;  %v6054_v31 = vld [vmem:[%s8456_s3 + $0x120] sm:$0xff]   ;;  %v6055_v55 = vld [vmem:[%s8456_s3 + $0x18] sm:$0xff]  }
 0x17d   : > { %5473 = vmatmul.mubr.bf16.vlgmr.msra.gmra.mxu0 %v2210_v37  ;;  %v1334_v56 = vmax.f32 %v1309_v60, 0.0  ;;  %v2062_v20 = vld [vmem:[#allocation2 + $0x13] sm:$0xff] }
 0x17e   : > { %v1310_v35 = vadd.f32 %v6660_v27, %v1278_v30  ;;  %v8500_v49 = vmax.f32 %v6826_v41, 0.0  ;;  %5476 = vmatprep.mubr.msk.bf16.mxu0 %vm6131_vm1, %v8613_v63  ;;  %5593 = vmatpush3.bf16.msra.mxu0 %v6049_v53  ;;  %v1639_v4 = vld [vmem:[#allocation2 + $0x12] sm:$0xff]  ;;  %v2187_v52 = vmul.f32 %v8614_v39, %v2062_v20  ;;  %v8618_v20 = vld [vmem:[#allocation19_spill] sm:$0xff] }
 0x17f   : > { %5594 = vmatprep.subr.bf16.mxu0 %v8613_v63  ;;  %1388 = vst [vmem:[#allocation2 + $0x38] sm:$0xff] %v1334_v56  ;;  %5391 = vmatpush3.bf16.msra.mxu1 %v6048_v57  ;;  %v6855_v33 = vpack.c.bf16 %v1334_v56, %v1333_v7  ;;  %v2065_v3 = vld [vmem:[#allocation2 + $0x2b] sm:$0xff]  ;;  %v6056_v36 = vld [vmem:[%s8456_s3 + $0x118] sm:$0xff]  }
 0x180   : > { %v1335_v27 = vmax.f32 %v1310_v35, 0.0  ;;  %1391 = vst [vmem:[#allocation2 + $0x50] sm:$0xff] %v8500_v49  ;;  %5392 = vmatprep.subr.bf16.mxu1 %v8613_v63  ;;  %v1642_v61 = vld [vmem:[#allocation2 + $0x2a] sm:$0xff]  ;;  %v2190_v28 = vmul.f32 %v8617_v46, %v2065_v3  ;;  %v2074_v45 = vld [vmem:[#allocation2 + $0x73] sm:$0xff] }
 0x181   : > { %v6057_v60 = vld [vmem:[%s8456_s3 + $0x10] sm:$0xff]  }
 0x182   : > { %v1640_v48 = vld [vmem:[#allocation2 + $0x1a] sm:$0xff]  ;;  %1389 = vst [vmem:[#allocation2 + $0x40] sm:$0xff] %v1335_v27  ;;  %v6860_v50 = vpack.c.bf16 %v1336_v32, %v1335_v27  ;;  %5595 = vmatpush3.bf16.msra.mxu0 %v6051_v19  ;;  %v2064_v7 = vld [vmem:[#allocation2 + $0x23] sm:$0xff]  ;;  %v6058_v56 = vld [vmem:[%s8456_s3 + $0x110] sm:$0xff]  }
 0x183   : > { %v2063_v34 = vld [vmem:[#allocation2 + $0x1b] sm:$0xff]  ;;  %v1663_v58 = vpack.c.bf16 %v1640_v48, %v1639_v4  ;;  %5596 = vmatprep.subr.bf16.mxu0 %v8613_v63  ;;  %5393 = vmatpush3.bf16.msra.mxu1 %v6050_v18  ;;  %v2189_v44 = vmul.f32 %v8616_v15, %v2064_v7  ;;  %v6059_v18 = vld [vmem:[%s8456_s3 + $0x8] sm:$0xff]  }
 0x184   : > { %v2188_v9 = vmul.f32 %v8615_v2, %v2063_v34  ;;  %5394 = vmatprep.subr.bf16.mxu1 %v8613_v63  ;;  %v1641_v32 = vld [vmem:[#allocation2 + $0x22] sm:$0xff] }
 0x185   : > { %5341 = vmatmul.mubr.bf16.gmra.mxu1 %v1663_v58  ;;  %v1664_v53 = vpack.c.bf16 %v1642_v61, %v1641_v32  ;;  %v2212_v30 = vpack.c.bf16 %v2190_v28, %v2189_v44  ;;  %v8619_v48 = vld [vmem:[#allocation36_spill] sm:$0xff]  ;;  %v8620_v32 = vld [vmem:[#allocation26_spill] sm:$0xff]  ;;  %v8621_v61 = vld [vmem:[#allocation29_spill] sm:$0xff] }
 0x186   : > { %v2211_v8 = vpack.c.bf16 %v2188_v9, %v2187_v52  ;;  %5344 = vmatprep.mubr.msk.bf16.mxu1 %vm6131_vm1, %v8613_v63  ;;  %5597 = vmatpush3.bf16.msra.mxu0 %v6052_v29  ;;  %v2066_v35 = vld [vmem:[#allocation2 + $0x33] sm:$0xff]  ;;  %v6060_v58 = vld [vmem:[%s8456_s3 + $0x108] sm:$0xff]   ;;  %v6061_v29 = vld [vmem:[%s8456_s3] sm:$0xff]  }
 0x187   : > { %5598 = vmatprep.subr.bf16.mxu0 %v8613_v63  ;;  %5395 = vmatpush3.bf16.msra.mxu1 %v6053_v59  ;;  %v1643_v27 = vld [vmem:[#allocation2 + $0x32] sm:$0xff]  ;;  %v2191_v34 = vmul.f32 %v8619_v48, %v2066_v35  ;;  %v6062_v59 = vld [vmem:[%s8456_s3 + $0x100] sm:$0xff]  }
 0x188   : > { %5477 = vmatmul.mubr.bf16.gmra.mxu0 %v2211_v8  ;;  %5396 = vmatprep.subr.bf16.mxu1 %v8613_v63  ;;  %v2069_v7 = vld [vmem:[#allocation2 + $0x4b] sm:$0xff]  ;;  %v6927_v28 = vld [vmem:[#allocation2 + $0x1f] sm:$0xff] }
 0x189   : > { %5480 = vmatprep.mubr.msk.bf16.mxu0 %vm6131_vm1, %v8613_v63  ;;  %v2067_v37 = vld [vmem:[#allocation2 + $0x3b] sm:$0xff]  ;;  %v2068_v9 = vld [vmem:[#allocation2 + $0x43] sm:$0xff] }
 0x18a   : > { %5599 = vmatpush3.bf16.msra.mxu0 %v6054_v31  ;;  %v1644_v57 = vld [vmem:[#allocation2 + $0x3a] sm:$0xff]  ;;  %v2192_v19 = vmul.f32 %v8618_v20, %v2067_v37  ;;  %v1645_v8 = vld [vmem:[#allocation2 + $0x42] sm:$0xff]  ;;  %v2193_v3 = vmul.f32 %v8620_v32, %v2068_v9  ;;  %v1646_v31 = vld [vmem:[#allocation2 + $0x4a] sm:$0xff] }
 0x18b   : > { %5600 = vmatprep.subr.bf16.mxu0 %v8613_v63  ;;  %5397 = vmatpush3.bf16.msra.mxu1 %v6055_v55  ;;  %v1665_v4 = vpack.c.bf16 %v1644_v57, %v1643_v27  ;;  %v1666_v44 = vpack.c.bf16 %v1646_v31, %v1645_v8  ;;  %v2194_v55 = vmul.f32 %v8621_v61, %v2069_v7  ;;  %v6933_v37 = vld [vmem:[#allocation2 + $0x37] sm:$0xff]  ;;  %v6940_v35 = vld [vmem:[#allocation2 + $0x47] sm:$0xff]  ;;  %v6964_v9 = vld [vmem:[#allocation2 + $0x5f] sm:$0xff] }
 0x18c   : > { %5398 = vmatprep.subr.bf16.mxu1 %v8613_v63  ;;  %v2213_v52 = vpack.c.bf16 %v2192_v19, %v2191_v34  ;;  %v2070_v57 = vld [vmem:[#allocation2 + $0x53] sm:$0xff]  ;;  %v2071_v27 = vld [vmem:[#allocation2 + $0x5b] sm:$0xff]  ;;  %v6979_v31 = vmul.f32 %v6940_v35, %v8617_v46 }
 0x18d   : > { %5345 = vmatmul.mubr.bf16.gmra.mxu1 %v1664_v53  ;;  %v6924_v53 = vld [vmem:[#allocation2] sm:$0xff] }
 0x18e   : > { %5348 = vmatprep.mubr.msk.bf16.mxu1 %vm6131_vm1, %v8613_v63  ;;  %5601 = vmatpush3.bf16.msra.mxu0 %v6056_v36  ;;  %v6929_v36 = vld [vmem:[#allocation2 + $0x27] sm:$0xff] }
 0x18f   : > { %5602 = vmatprep.subr.bf16.mxu0 %v8613_v63  ;;  %5399 = vmatpush3.bf16.msra.mxu1 %v6057_v60  ;;  %v6936_v60 = vld [vmem:[#allocation2 + $0x3f] sm:$0xff]  ;;  %v6948_v19 = vmul.f32 %v6929_v36, %v8609_v24 }
 0x190   : > { %5481 = vmatmul.mubr.bf16.gmra.mxu0 %v2212_v30  ;;  %5400 = vmatprep.subr.bf16.mxu1 %v8613_v63  ;;  %v6931_v30 = vld [vmem:[#allocation2 + $0x2f] sm:$0xff]  ;;  %v6972_v7 = vmul.f32 %v6936_v60, %v8616_v15 }
 0x191   : > { %5484 = vmatprep.mubr.msk.bf16.mxu0 %vm6131_vm1, %v8613_v63  ;;  %v6956_v34 = vmul.f32 %v6931_v30, %v8614_v39 }
 0x192   : > { %5603 = vmatpush3.bf16.msra.mxu0 %v6058_v56  ;;  %v6944_v56 = vmul.f32 %v6927_v28, %v8601_v1 }
 0x193   : > { %5604 = vmatprep.subr.bf16.mxu0 %v8613_v63  ;;  %5401 = vmatpush3.bf16.msra.mxu1 %v6059_v18  ;;  %v6950_v18 = vld [vmem:[#allocation2 + $0x4f] sm:$0xff] }
 0x194   : > { %5402 = vmatprep.subr.bf16.mxu1 %v8613_v63  ;;  %v6984_v17 = vmul.f32 %v6950_v18, %v8619_v48 }
 0x195   : > { %5349 = vmatmul.mubr.bf16.gmra.mxu1 %v1665_v4  ;;  %v6952_v4 = vld [vmem:[#allocation2 + $0x57] sm:$0xff] }
 0x196   : > { %5352 = vmatprep.mubr.msk.bf16.mxu1 %vm6131_vm1, %v8613_v63  ;;  %5605 = vmatpush3.bf16.msra.mxu0 %v6060_v58  ;;  %v6960_v58 = vmul.f32 %v6933_v37, %v8615_v2  ;;  %8623 = vst [vmem:[#allocation49_spill] sm:$0xff] %v6984_v17  ;;  %v6988_v47 = vmul.f32 %v6952_v4, %v8618_v20  ;;  %v1422_v17 = vld [vmem:[#allocation2 + $0x71] sm:$0xff] }
 0x197   : > { %5606 = vmatprep.subr.bf16.mxu0 %v8613_v63  ;;  %5403 = vmatpush3.bf16.msra.mxu1 %v6061_v29  ;;  %v6966_v29 = vld [vmem:[#allocation2 + $0x67] sm:$0xff]  ;;  %v1426_v20 = vld [vmem:[#allocation2 + $0x91] sm:$0xff] }
 0x198   : > { %5485 = vmatmul.mubr.bf16.gmra.mxu0 %v2213_v52  ;;  %5524 = vmatprep.subr.bf16.mxu1 %v6924_v53  ;;  %v1647_v52 = vld [vmem:[#allocation2 + $0x52] sm:$0xff]  ;;  %8624 = vst [vmem:[#allocation4_spill] sm:$0xff] %v6988_v47  ;;  %v6998_v49 = vmul.f32 %v6966_v29, %v8621_v61 }
 0x199   : > { %5488 = vmatprep.mubr.msk.bf16.mxu0 %vm6131_vm1, %v8613_v63  ;;  %v2214_v63 = vpack.c.bf16 %v2194_v55, %v2193_v3  ;;  %v8622_v55 = vld [vmem:[#allocation33_spill] sm:$0xff]  ;;  %v6994_v3 = vmul.f32 %v6964_v9, %v8620_v32 }
 0x19a   : > { %5607 = vmatpush3.bf16.msra.mxu0 %v6062_v59  ;;  %v2195_v59 = vmul.f32 %v6680_v40, %v2070_v57  ;;  %8626 = vst [vmem:[#allocation8_spill] sm:$0xff] %v6998_v49  ;;  %v1649_v57 = vld [vmem:[#allocation2 + $0x62] sm:$0xff]  ;;  %v1651_v61 = vld [vmem:[#allocation2 + $0x72] sm:$0xff] }
 0x19b   : > { %5728 = vmatprep.subr.bf16.mxu0 %v6924_v53  ;;  %8625 = vst [vmem:[#allocation18_spill] sm:$0xff] %v6994_v3  ;;  %v8628_v40 = vld [vmem:[#allocation39_spill] sm:$0xff]  ;;  %v2750_v32 = vld [vmem:[#allocation2 + $0x70] sm:$0xff] }
 0x19c   : > { %v1652_v3 = vld [vmem:[#allocation2 + $0x7a] sm:$0xff]  ;;  %v2754_v47 = vld [vmem:[#allocation2 + $0x90] sm:$0xff] }
 0x19d   : > { %5353 = vmatmul.mubr.bf16.gmra.mxu1 %v1666_v44  ;;  %v1648_v44 = vld [vmem:[#allocation2 + $0x5a] sm:$0xff] }
 0x19e   : > { %5356 = vmatprep.mubr.msk.bf16.mxu1 %vm6131_vm1, %v6924_v53  ;;  %v1667_v8 = vpack.c.bf16 %v1648_v44, %v1647_v52  ;;  %v2072_v52 = vld [vmem:[#allocation2 + $0x63] sm:$0xff]  ;;  %v2073_v44 = vld [vmem:[#allocation2 + $0x6b] sm:$0xff] }
 0x1a0   : > { %5489 = vmatmul.mubr.bf16.gmra.mxu0 %v2214_v63  ;;  %v2196_v63 = vmul.f32 %v8622_v55, %v2071_v27  ;;  %v2197_v55 = vmul.f32 %v8627_v38, %v2072_v52  ;;  %v2198_v27 = vmul.f32 %v8628_v40, %v2073_v44  ;;  %v2199_v52 = vmul.f32 %v6693_v22, %v2074_v45  ;;  %v1654_v44 = vld [vmem:[#allocation2 + $0x8a] sm:$0xff]  ;;  %v1420_v22 = vld [vmem:[#allocation2 + $0x61] sm:$0xff]  ;;  %v2751_v40 = vld [vmem:[#allocation2 + $0x78] sm:$0xff] }
 0x1a1   : > { %5492 = vmatprep.mubr.msk.bf16.mxu0 %vm6131_vm1, %v6924_v53  ;;  %v1669_v38 = vpack.c.bf16 %v1652_v3, %v1651_v61  ;;  %v1656_v61 = vld [vmem:[#allocation2 + $0x9a] sm:$0xff] }
 0x1a2   : > { %v2215_v16 = vpack.c.bf16 %v2196_v63, %v2195_v59  ;;  %v2216_v59 = vpack.c.bf16 %v2198_v27, %v2197_v55  ;;  %v2075_v63 = vld [vmem:[#allocation2 + $0x7b] sm:$0xff]  ;;  %v2076_v55 = vld [vmem:[#allocation2 + $0x83] sm:$0xff] }
 0x1a3   : > { %v1653_v27 = vld [vmem:[#allocation2 + $0x82] sm:$0xff] }
 0x1a5   : > { %5357 = vmatmul.mubr.bf16.gmra.mxu1 %v1667_v8  ;;  %v1668_v8 = vpack.c.bf16 %v1650_v43, %v1649_v57  ;;  %v2077_v57 = vld [vmem:[#allocation2 + $0x8b] sm:$0xff] }
 0x1a6   : > { %5360 = vmatprep.mubr.msk.bf16.mxu1 %vm6131_vm1, %v6924_v53 }
 0x1a8   : > { %5493 = vmatmul.mubr.bf16.gmra.mxu0 %v2215_v16  ;;  %v8629_v16 = vld [vmem:[#allocation48_spill] sm:$0xff] }
 0x1a9   : > { %5496 = vmatprep.mubr.msk.bf16.mxu0 %vm6131_vm1, %v6924_v53  ;;  %v2200_v49 = vmul.f32 %v8629_v16, %v2075_v63  ;;  %v1670_v63 = vpack.c.bf16 %v1654_v44, %v1653_v27  ;;  %v2080_v44 = vld [vmem:[#allocation2 + $0xa3] sm:$0xff] }
 0x1ab   : > { %v2217_v43 = vpack.c.bf16 %v2200_v49, %v2199_v52  ;;  %v2078_v49 = vld [vmem:[#allocation2 + $0x93] sm:$0xff] }
 0x1ac   : > { %v1655_v52 = vld [vmem:[#allocation2 + $0x92] sm:$0xff] }
 0x1ad   : > { %5361 = vmatmul.mubr.bf16.gmra.mxu1 %v1668_v8  ;;  %v2201_v8 = vmul.f32 %v6682_v12, %v2076_v55  ;;  %v1671_v55 = vpack.c.bf16 %v1656_v61, %v1655_v52  ;;  %v7038_v61 = vpop.permute.xlu1 %1575  ;;  %v8643_v12 = vmax.f32 %v6826_v41, 0.0  ;;  %v1421_v41 = vld [vmem:[#allocation2 + $0x69] sm:$0xff] }
 0x1ae   : > { %5364 = vmatprep.mubr.msk.bf16.mxu1 %vm6131_vm1, %v6924_v53 }
 0x1b0   : > { %5497 = vmatmul.mubr.bf16.gmra.mxu0 %v2216_v59  ;;  %v2202_v59 = vmul.f32 %v6696_v26, %v2077_v57  ;;  %v7028_v57 = vpop.permute.xlu0 %1565 }
 0x1b1   : > { %5500 = vmatprep.mubr.msk.bf16.mxu0 %vm6131_vm1, %v6924_v53 }
 0x1b2   : > { %v2218_v45 = vpack.c.bf16 %v2202_v59, %v2201_v8  ;;  %v2081_v8 = vld [vmem:[#allocation2 + $0xab] sm:$0xff]  ;;  %v1657_v59 = vld [vmem:[#allocation2 + $0xa2] sm:$0xff] }
 0x1b5   : > { %5365 = vmatmul.mubr.bf16.gmra.mxu1 %v1669_v38  ;;  %v2079_v38 = vld [vmem:[#allocation2 + $0x9b] sm:$0xff] }
 0x1b6   : > { %5368 = vmatprep.mubr.msk.bf16.mxu1 %vm6131_vm1, %v6924_v53  ;;  %v2204_v3 = vmul.f32 %v6723_v62, %v2079_v38  ;;  %v2206_v38 = vmul.f32 %v6779_v5, %v2081_v8  ;;  %v7044_v62 = vpop.permute.xlu1 %2178 }
 0x1b7   : > { %8631 = vst [vmem:[#allocation5_spill] sm:$0xff] %v7044_v62 }
 0x1b8   : > { %5501 = vmatmul.mubr.bf16.gmra.mxu0 %v2217_v43  ;;  %v2203_v43 = vmul.f32 %v6760_v0, %v2078_v49  ;;  %v7036_v49 = vpop.permute.xlu0 %1570  ;;  %v1409_v0 = vld [vmem:[#allocation2 + $0x9] sm:$0xff] }
 0x1b9   : > { %5504 = vmatprep.mubr.msk.bf16.mxu0 %vm6131_vm1, %v6924_v53 }
 0x1ba   : > { %v2219_v27 = vpack.c.bf16 %v2204_v3, %v2203_v43  ;;  %v2083_v43 = vld [vmem:[#allocation2 + $0xbb] sm:$0xff] }
 0x1bb   : > { %v2208_v8 = vmul.f32 %v7044_v62, %v2083_v43  ;;  %v1408_v62 = vld [vmem:[#allocation2 + $0x1] sm:$0xff] }
 0x1bd   : > { %5369 = vmatmul.mubr.bf16.gmra.mxu1 %v1670_v63  ;;  %v1658_v63 = vld [vmem:[#allocation2 + $0xaa] sm:$0xff] }
 0x1be   : > { %5372 = vmatprep.mubr.msk.bf16.mxu1 %vm6131_vm1, %v6924_v53  ;;  %v1672_v3 = vpack.c.bf16 %v1658_v63, %v1657_v59 }
 0x1c0   : > { %5505 = vmatmul.mubr.bf16.gmra.mxu0 %v2218_v45  ;;  %v2205_v45 = vmul.f32 %v6755_v6, %v2080_v44  ;;  %v1660_v44 = vld [vmem:[#allocation2 + $0xba] sm:$0xff]  ;;  %v1659_v6 = vld [vmem:[#allocation2 + $0xb2] sm:$0xff] }
 0x1c1   : > { %5508 = vmatprep.mubr.msk.bf16.mxu0 %vm6131_vm1, %v6924_v53  ;;  %v1673_v63 = vpack.c.bf16 %v1660_v44, %v1659_v6  ;;  %v8633_v6 = vld [vmem:[#allocation25_spill] sm:$0xff] }
 0x1c2   : > { %v2220_v52 = vpack.c.bf16 %v2206_v38, %v2205_v45  ;;  %v2084_v38 = vld [vmem:[#allocation2 + $0xc3] sm:$0xf]  ;;  %v1583_v44 = vmul.f32 %v8633_v6, %v1408_v62  ;;  %v1410_v62 = vld [vmem:[#allocation2 + $0x11] sm:$0xff] }
 0x1c5   : > { %5373 = vmatmul.mubr.bf16.gmra.mxu1 %v1671_v55  ;;  %v7042_v55 = vpop.permute.xlu0 %2174 }
 0x1c6   : > { %5376 = vmatprep.mubr.msk.bf16.mxu1 %vm6131_vm1, %v6924_v53  ;;  %8630 = vst [vmem:[#allocation24_spill] sm:$0xff] %v7042_v55 }
 0x1c8   : > { %5509 = vmatmul.mubr.bf16.gmra.mxu0 %v2219_v27  ;;  %v2082_v27 = vld [vmem:[#allocation2 + $0xb3] sm:$0xff] }
 0x1c9   : > { %5512 = vmatprep.mubr.msk.bf16.mxu0 %vm6131_vm1, %v6924_v53  ;;  %v2207_v59 = vmul.f32 %v7042_v55, %v2082_v27 }
 0x1cb   : > { %v2221_v45 = vpack.c.bf16 %v2208_v8, %v2207_v59  ;;  %v8634_v8 = vld [vmem:[#allocation28_spill] sm:$0xff] }
 0x1cc   : > { %v1584_v59 = vmul.f32 %v8634_v8, %v1409_v0  ;;  %v6064_v0 = vld [vmem:[%s8456_s3 + $0xf0] sm:$0xff]  }
 0x1cd   : > { %5377 = vmatmul.mubr.bf16.gmra.mxu1 %v1672_v3  ;;  %v7052_v3 = vpop.permute.xlu0 %2182 }
 0x1ce   : > { %5380 = vmatprep.mubr.msk.bf16.mxu1 %vm6131_vm1, %v6924_v53  ;;  %8632 = vst [vmem:[#allocation20_spill] sm:$0xff] %v7052_v3  ;;  %v2209_v5 = vmul.f32 %v7052_v3, %v2084_v38  ;;  %v1411_v38 = vld [vmem:[#allocation2 + $0x19] sm:$0xff]  ;;  %v1416_v3 = vld [vmem:[#allocation2 + $0x41] sm:$0xff] }
 0x1d0   : > { %5513 = vmatmul.mubr.bf16.gmra.mxu0 %v2220_v52  ;;  %v1661_v52 = vld [vmem:[#allocation2 + $0xc2] sm:$0xf]  ;;  %v2222_v27 = vpack.c.bf16 %v2209_v5, %v2209_v5  ;;  %v6065_v5 = vld [vmem:[%s8456_s3 + $0x1b8] sm:$0xff]  }
 0x1d1   : > { %5516 = vmatprep.mubr.msk.bf16.mxu0 %vm6131_vm1, %v6924_v53  ;;  %v1674_v43 = vpack.c.bf16 %v1661_v52, %v1661_v52  ;;  %v8635_v52 = vld [vmem:[#allocation12_spill] sm:$0xff] }
 0x1d5   : > { %5381 = vmatmul.mubr.bf16.gmra.mxu1 %v1673_v63  ;;  %v6063_v63 = vld [vmem:[%s8456_s3 + $0xf8] sm:$0xff]  }
 0x1d6   : > { %5384 = vmatprep.mubr.msk.bf16.mxu1 %vm6131_vm1, %v6924_v53 }
 0x1d8   : > { %5517 = vmatmul.mubr.bf16.gmra.mxu0 %v2221_v45  ;;  %v1608_v45 = vpack.c.bf16 %v1584_v59, %v1583_v44  ;;  %v8636_v44 = vld [vmem:[#allocation30_spill] sm:$0xff] }
 0x1d9   : > { %5520 = vmatprep.mubr.msk.bf16.mxu0 %vm6131_vm1, %v6924_v53  ;;  %v1585_v59 = vmul.f32 %v8636_v44, %v1410_v62  ;;  %v6069_v62 = vld [vmem:[%s8456_s3 + $0xe0] sm:$0xff]  }
 0x1dd   : > { %5385 = vmatmul.mubr.bf16.gmra.mxu1 %v1674_v43  ;;  %v1586_v43 = vmul.f32 %v8635_v52, %v1411_v38  ;;  %v6068_v38 = vld [vmem:[%s8456_s3 + $0x1a8] sm:$0xff]  }
 0x1de   : > { %5404 = vmatprep.mubr.msk.bf16.mxu1 %vm6131_vm1, %v6924_v53 }
 0x1e0   : > { %5521 = vmatmul.mubr.bf16.gmra.mxu0 %v2222_v27  ;;  %v6067_v27 = vld [vmem:[%s8456_s3 + $0x1b0] sm:$0xff]  }
 0x1e1   : > { %5608 = vmatprep.mubr.msk.bf16.mxu0 %vm6131_vm1, %v6924_v53 }
 0x1e5   : > { %5405 = vmatmul.mubr.bf16.vlgmr.msra.gmra.mxu1 %v1608_v45  ;;  %v1412_v45 = vld [vmem:[#allocation2 + $0x21] sm:$0xff] }
 0x1e6   : > { %5408 = vmatprep.mubr.msk.bf16.mxu1 %vm6131_vm1, %v6924_v53  ;;  %5525 = vmatpush3.bf16.msra.mxu1 %v6063_v63  ;;  %v1609_v63 = vpack.c.bf16 %v1586_v43, %v1585_v59  ;;  %v8638_v59 = vld [vmem:[#allocation32_spill] sm:$0xff] }
 0x1e7   : > { %5526 = vmatprep.subr.bf16.mxu1 %v6924_v53 }
 0x1e8   : > { %5609 = vmatmul.mubr.bf16.vlgmr.msra.gmra.mxu0 %v6843_v23  ;;  %v6066_v23 = vld [vmem:[%s8456_s3 + $0xe8] sm:$0xff]  }
 0x1e9   : > { %5612 = vmatprep.mubr.msk.bf16.mxu0 %vm6131_vm1, %v6924_v53  ;;  %5729 = vmatpush3.bf16.msra.mxu0 %v6065_v5  ;;  %v1413_v5 = vld [vmem:[#allocation2 + $0x29] sm:$0xff] }
 0x1ea   : > { %5730 = vmatprep.subr.bf16.mxu0 %v6924_v53  ;;  %5527 = vmatpush3.bf16.msra.mxu1 %v6064_v0  ;;  %v8637_v0 = vld [vmem:[#allocation14_spill] sm:$0xff] }
 0x1eb   : > { %5528 = vmatprep.subr.bf16.mxu1 %v6924_v53  ;;  %v1587_v43 = vmul.f32 %v8637_v0, %v1412_v45  ;;  %v1415_v45 = vld [vmem:[#allocation2 + $0x39] sm:$0xff] }
 0x1ed   : > { %5731 = vmatpush3.bf16.msra.mxu0 %v6067_v27  ;;  %5409 = vmatmul.mubr.bf16.gmra.mxu1 %v1609_v63  ;;  %v6070_v27 = vld [vmem:[%s8456_s3 + $0x1a0] sm:$0xff]  }
 0x1ee   : > { %5732 = vmatprep.subr.bf16.mxu0 %v6924_v53  ;;  %5412 = vmatprep.mubr.msk.bf16.mxu1 %vm6131_vm1, %v6924_v53 }
 0x1ef   : > { %5529 = vmatpush3.bf16.msra.mxu1 %v6066_v23  ;;  %v1588_v23 = vmul.f32 %v8638_v59, %v1413_v5  ;;  %v1414_v5 = vld [vmem:[#allocation2 + $0x31] sm:$0xff] }
 0x1f0   : > { %5613 = vmatmul.mubr.bf16.gmra.mxu0 %v6851_v10  ;;  %5530 = vmatprep.subr.bf16.mxu1 %v6924_v53  ;;  %v6071_v10 = vld [vmem:[%s8456_s3 + $0xd8] sm:$0xff]  }
 0x1f1   : > { %5616 = vmatprep.mubr.msk.bf16.mxu0 %vm6131_vm1, %v6924_v53  ;;  %5733 = vmatpush3.bf16.msra.mxu0 %v6068_v38  ;;  %v1610_v63 = vpack.c.bf16 %v1588_v23, %v1587_v43  ;;  %v6072_v38 = vld [vmem:[%s8456_s3 + $0x198] sm:$0xff]   ;;  %v8639_v43 = vld [vmem:[#allocation17_spill] sm:$0xff] }
 0x1f2   : > { %5734 = vmatprep.subr.bf16.mxu0 %v6924_v53  ;;  %v6074_v23 = vld [vmem:[%s8456_s3 + $0x190] sm:$0xff]  }
 0x1f3   : > { %5531 = vmatpush3.bf16.msra.mxu1 %v6069_v62  ;;  %v6073_v62 = vld [vmem:[%s8456_s3 + $0xd0] sm:$0xff]  }
 0x1f4   : > { %5532 = vmatprep.subr.bf16.mxu1 %v6924_v53 }
 0x1f5   : > { %5735 = vmatpush3.bf16.msra.mxu0 %v6070_v27  ;;  %5413 = vmatmul.mubr.bf16.gmra.mxu1 %v1610_v63  ;;  %v1590_v27 = vmul.f32 %v8639_v43, %v1415_v45  ;;  %v8640_v63 = vld [vmem:[#allocation38_spill] sm:$0xff] }
 0x1f6   : > { %5736 = vmatprep.subr.bf16.mxu0 %v6924_v53  ;;  %5416 = vmatprep.mubr.msk.bf16.mxu1 %vm6131_vm1, %v6924_v53 }
 0x1f7   : > { %5533 = vmatpush3.bf16.msra.mxu1 %v6071_v10  ;;  %v1589_v10 = vmul.f32 %v8640_v63, %v1414_v5  ;;  %v1417_v5 = vld [vmem:[#allocation2 + $0x49] sm:$0xff] }
 0x1f8   : > { %5617 = vmatmul.mubr.bf16.gmra.mxu0 %v6855_v33  ;;  %5534 = vmatprep.subr.bf16.mxu1 %v6924_v53  ;;  %v6075_v33 = vld [vmem:[%s8456_s3 + $0xc8] sm:$0xff]  }
 0x1f9   : > { %5620 = vmatprep.mubr.msk.bf16.mxu0 %vm6131_vm1, %v6924_v53  ;;  %5737 = vmatpush3.bf16.msra.mxu0 %v6072_v38  ;;  %v1611_v45 = vpack.c.bf16 %v1590_v27, %v1589_v10  ;;  %v6076_v38 = vld [vmem:[%s8456_s3 + $0x188] sm:$0xff]   ;;  %v8641_v27 = vld [vmem:[#allocation22_spill] sm:$0xff]  ;;  %v6078_v10 = vld [vmem:[%s8456_s3 + $0x180] sm:$0xff]  }
 0x1fa   : > { %5738 = vmatprep.subr.bf16.mxu0 %v6924_v53 }
 0x1fb   : > { %5535 = vmatpush3.bf16.msra.mxu1 %v6073_v62  ;;  %v6077_v62 = vld [vmem:[%s8456_s3 + $0xc0] sm:$0xff]  }
 0x1fc   : > { %5536 = vmatprep.subr.bf16.mxu1 %v6924_v53 }
 0x1fd   : > { %5739 = vmatpush3.bf16.msra.mxu0 %v6074_v23  ;;  %5417 = vmatmul.mubr.bf16.gmra.mxu1 %v1611_v45  ;;  %v1591_v23 = vmul.f32 %v8641_v27, %v1416_v3  ;;  %v8642_v45 = vld [vmem:[#allocation43_spill] sm:$0xff]  ;;  %v1418_v3 = vld [vmem:[#allocation2 + $0x51] sm:$0xff] }
 0x1fe   : > { %5740 = vmatprep.subr.bf16.mxu0 %v6924_v53  ;;  %5420 = vmatprep.mubr.msk.bf16.mxu1 %vm6131_vm1, %v6924_v53 }
 0x1ff   : > { %5537 = vmatpush3.bf16.msra.mxu1 %v6075_v33  ;;  %v1592_v33 = vmul.f32 %v8642_v45, %v1417_v5  ;;  %v8644_v5 = vld [vmem:[#allocation47_spill] sm:$0xff] }
 0x200   : > { %5621 = vmatmul.mubr.bf16.gmra.mxu0 %v6860_v50  ;;  %5538 = vmatprep.subr.bf16.mxu1 %v6924_v53  ;;  %v2747_v50 = vld [vmem:[#allocation2 + $0x58] sm:$0xff]  ;;  %v1593_v16 = vmul.f32 %v8644_v5, %v1418_v3  ;;  %v1596_v3 = vmul.f32 %v6668_v21, %v1421_v41 }
 0x201   : > { %5624 = vmatprep.mubr.msk.bf16.mxu0 %vm6131_vm1, %v6924_v53  ;;  %5741 = vmatpush3.bf16.msra.mxu0 %v6076_v38  ;;  %v1612_v55 = vpack.c.bf16 %v1592_v33, %v1591_v23  ;;  %v2767_v26 = vpack.c.bf16 %v2747_v50, %v8643_v12  ;;  %v1419_v38 = vld [vmem:[#allocation2 + $0x59] sm:$0xff]  ;;  %v2749_v33 = vld [vmem:[#allocation2 + $0x68] sm:$0xff] }
 0x202   : > { %5742 = vmatprep.subr.bf16.mxu0 %v6924_v53  ;;  %v8646_v50 = vld [vmem:[#allocation35_spill] sm:$0xff] }
 0x203   : > { %5539 = vmatpush3.bf16.msra.mxu1 %v6077_v62  ;;  %v8645_v62 = vld [vmem:[#allocation31_spill] sm:$0xff] }
 0x204   : > { %5660 = vmatprep.subr.bf16.mxu1 %v6924_v53  ;;  %v1594_v23 = vmul.f32 %v8645_v62, %v1419_v38 }
 0x205   : > { %5743 = vmatpush3.bf16.msra.mxu0 %v6078_v10  ;;  %5421 = vmatmul.mubr.bf16.gmra.mxu1 %v1612_v55  ;;  %v2748_v55 = vld [vmem:[#allocation2 + $0x60] sm:$0xff] }
 0x206   : > { %5864 = vmatprep.subr.bf16.mxu0 %v6924_v53  ;;  %5424 = vmatprep.mubr.msk.bf16.mxu1 %vm6131_vm1, %v6924_v53  ;;  %v1613_v10 = vpack.c.bf16 %v1594_v23, %v1593_v16  ;;  %v2768_v12 = vpack.c.bf16 %v2749_v33, %v2748_v55  ;;  %v1423_v16 = vld [vmem:[#allocation2 + $0x79] sm:$0xff]  ;;  %v2769_v23 = vpack.c.bf16 %v2751_v40, %v2750_v32  ;;  %v8647_v33 = vld [vmem:[#allocation44_spill] sm:$0xff] }
 0x207   : > { %v2753_v55 = vld [vmem:[#allocation2 + $0x88] sm:$0xff]  ;;  %v8648_v32 = vld [vmem:[#allocation50_spill] sm:$0xff] }
 0x208   : > { %5625 = vmatmul.mubr.bf16.gmra.mxu0 %v2767_v26  ;;  %v1595_v26 = vmul.f32 %v8646_v50, %v1420_v22  ;;  %v1597_v22 = vmul.f32 %v6707_v14, %v1422_v17 }
 0x209   : > { %5628 = vmatprep.mubr.msk.bf16.mxu0 %vm6131_vm1, %v6924_v53 }
 0x20a   : > { %v1614_v38 = vpack.c.bf16 %v1596_v3, %v1595_v26  ;;  %v2752_v26 = vld [vmem:[#allocation2 + $0x80] sm:$0xff] }
 0x20b   : > { %v1424_v3 = vld [vmem:[#allocation2 + $0x81] sm:$0xff] }
 0x20d   : > { %5425 = vmatmul.mubr.bf16.gmra.mxu1 %v1613_v10  ;;  %v1598_v10 = vmul.f32 %v8647_v33, %v1423_v16  ;;  %v1599_v16 = vmul.f32 %v8648_v32, %v1424_v3  ;;  %v3021_v3 = vld [vmem:[#allocation2 + $0xa9] sm:$0xff] }
 0x20e   : > { %5428 = vmatprep.mubr.msk.bf16.mxu1 %vm6131_vm1, %v6924_v53 }
 0x20f   : > { %v1615_v41 = vpack.c.bf16 %v1598_v10, %v1597_v22  ;;  %v1427_v10 = vld [vmem:[#allocation2 + $0x99] sm:$0xff] }
 0x210   : > { %5629 = vmatmul.mubr.bf16.gmra.mxu0 %v2768_v12  ;;  %v1425_v12 = vld [vmem:[#allocation2 + $0x89] sm:$0xff] }
 0x211   : > { %5632 = vmatprep.mubr.msk.bf16.mxu0 %vm6131_vm1, %v6924_v53  ;;  %v1600_v40 = vmul.f32 %v6725_v42, %v1425_v12  ;;  %v2757_v12 = vld [vmem:[#allocation2 + $0xa8] sm:$0xff] }
 0x213   : > { %v1616_v17 = vpack.c.bf16 %v1600_v40, %v1599_v16  ;;  %v1428_v40 = vld [vmem:[#allocation2 + $0xa1] sm:$0xff] }
 0x215   : > { %5429 = vmatmul.mubr.bf16.gmra.mxu1 %v1614_v38  ;;  %v2770_v38 = vpack.c.bf16 %v2753_v55, %v2752_v26  ;;  %v1602_v55 = vmul.f32 %v6709_v25, %v1427_v10  ;;  %v2758_v10 = vld [vmem:[#allocation2 + $0xb0] sm:$0xff] }
 0x216   : > { %5432 = vmatprep.mubr.msk.bf16.mxu1 %vm6131_vm1, %v6924_v53 }
 0x218   : > { %5633 = vmatmul.mubr.bf16.gmra.mxu0 %v2769_v23  ;;  %v2755_v23 = vld [vmem:[#allocation2 + $0x98] sm:$0xff] }
 0x219   : > { %5636 = vmatprep.mubr.msk.bf16.mxu0 %vm6131_vm1, %v6924_v53  ;;  %v2771_v22 = vpack.c.bf16 %v2755_v23, %v2754_v47  ;;  %v1604_v47 = vmul.f32 %v3021_v3, %v7028_v57  ;;  %v1603_v23 = vmul.f32 %v6737_v13, %v1428_v40  ;;  %v7201_v3 = vpop.permute.xlu1 %1580  ;;  %v2760_v40 = vld [vmem:[#allocation2 + $0xc0] sm:$0xff] }
 0x21d   : > { %5433 = vmatmul.mubr.bf16.gmra.mxu1 %v1615_v41  ;;  %v1601_v41 = vmul.f32 %v6740_v51, %v1426_v20  ;;  %v1618_v20 = vpack.c.bf16 %v1604_v47, %v1603_v23 }
 0x21e   : > { %5436 = vmatprep.mubr.msk.bf16.mxu1 %vm6131_vm1, %v6924_v53 }
 0x21f   : > { %v1617_v26 = vpack.c.bf16 %v1602_v55, %v1601_v41  ;;  %v1606_v55 = vmul.f32 %v6781_v54, %v7038_v61  ;;  %v1605_v41 = vmul.f32 %v6775_v11, %v7036_v49 }
 0x220   : > { %5637 = vmatmul.mubr.bf16.gmra.mxu0 %v2770_v38  ;;  %v2756_v38 = vld [vmem:[#allocation2 + $0xa0] sm:$0xff] }
 0x221   : > { %5640 = vmatprep.mubr.msk.bf16.mxu0 %vm6131_vm1, %v6924_v53  ;;  %v2772_v16 = vpack.c.bf16 %v2757_v12, %v2756_v38  ;;  %v2761_v12 = vld [vmem:[#allocation2 + $0xc8] sm:$0xff]  ;;  %v1432_v38 = vld [vmem:[#allocation2 + $0xc1] sm:$0xf] }
 0x222   : > { %v2774_v47 = vpack.c.bf16 %v2761_v12, %v2760_v40  ;;  %v1607_v54 = vmul.f32 %v7201_v3, %v1432_v38  ;;  %v2450_v12 = vld [vmem:[#allocation2 + $0x17] sm:$0xff] }
 0x225   : > { %5437 = vmatmul.mubr.bf16.gmra.mxu1 %v1616_v17  ;;  %v2759_v17 = vld [vmem:[#allocation2 + $0xb8] sm:$0xff] }
 0x226   : > { %5440 = vmatprep.mubr.msk.bf16.mxu1 %vm6131_vm1, %v6924_v53 }
 0x228   : > { %5641 = vmatmul.mubr.bf16.gmra.mxu0 %v2771_v22  ;;  %v2773_v22 = vpack.c.bf16 %v2759_v17, %v2758_v10  ;;  %v2762_v10 = vld [vmem:[#allocation2 + $0xd0] sm:$0xf] }
 0x229   : > { %5644 = vmatprep.mubr.msk.bf16.mxu0 %vm6131_vm1, %v6924_v53  ;;  %v2775_v38 = vpack.c.bf16 %v2762_v10, %v2762_v10 }
 0x22d   : > { %5441 = vmatmul.mubr.bf16.gmra.mxu1 %v1617_v26  ;;  %v1619_v26 = vpack.c.bf16 %v1606_v55, %v1605_v41 }
 0x22e   : > { %5444 = vmatprep.mubr.msk.bf16.mxu1 %vm6131_vm1, %v6924_v53 }
 0x230   : > { %5645 = vmatmul.mubr.bf16.gmra.mxu0 %v2772_v16 }
 0x231   : > { %5648 = vmatprep.mubr.msk.bf16.mxu0 %vm6131_vm1, %v6924_v53 }
 0x235   : > { %5445 = vmatmul.mubr.bf16.gmra.mxu1 %v1618_v20 }
 0x236   : > { %5448 = vmatprep.mubr.msk.bf16.mxu1 %vm6131_vm1, %v6924_v53 }
 0x238   : > { %5649 = vmatmul.mubr.bf16.gmra.mxu0 %v2773_v22  ;;  %v1620_v22 = vpack.c.bf16 %v1607_v54, %v1607_v54  ;;  %v2475_v54 = vmul.f32 %v2450_v12, %v8634_v8 }
 0x239   : > { %5652 = vmatprep.mubr.msk.bf16.mxu0 %vm6131_vm1, %v6924_v53 }
 0x23a   : > { %v7203_v16 = vpop.f32.mrf.mxu1 }
 0x23b   : > { %8649 = vst [vmem:[#allocation10_spill] sm:$0xff] %v7203_v16 }
 0x23c   : > { %v5338_v23 = vpop.f32.mrf.mxu1 }
 0x23d   : > { %5449 = vmatmul.mubr.bf16.gmra.mxu1 %v1619_v26  ;;  %v7208_v17 = vpop.f32.mrf.mxu0  ;;  %v3291_v23 = vld [vmem:[#allocation2 + $0x1d] sm:$0xff] }
 0x23e   : > { %5452 = vmatprep.mubr.msk.bf16.mxu1 %vm6131_vm1, %v6924_v53  ;;  %8650 = vst [vmem:[#allocation27_spill] sm:$0xff] %v7208_v17  ;;  %v7212_v11 = vpop.f32.mrf.mxu1  ;;  %v3292_v17 = vld [vmem:[#allocation2 + $0x25] sm:$0xff] }
 0x23f   : > { %8651 = vst [vmem:[#allocation11_spill] sm:$0xff] %v7212_v11  ;;  %v5474_v20 = vpop.f32.mrf.mxu0 }
 0x240   : > { %5653 = vmatmul.mubr.bf16.gmra.mxu0 %v2774_v47  ;;  %v5339_v55 = vpop.f32.mrf.mxu1  ;;  %v2449_v47 = vld [vmem:[#allocation2 + $0xf] sm:$0xff] }
 0x241   : > { %5656 = vmatprep.mubr.msk.bf16.mxu0 %vm6131_vm1, %v6924_v53  ;;  %v7214_v41 = vpop.f32.mrf.mxu0  ;;  %v2474_v10 = vmul.f32 %v2449_v47, %v8633_v6 }
 0x242   : > { %8652 = vst [vmem:[#allocation42_spill] sm:$0xff] %v7214_v41  ;;  %v6081_v41 = vld [vmem:[%s8456_s3 + $0x238] sm:$0xff]  }
 0x243   : > { %v5475_v26 = vpop.f32.mrf.mxu0  ;;  %v2499_v12 = vpack.c.bf16 %v2475_v54, %v2474_v10  ;;  %v2477_v54 = vmul.f32 %v6929_v36, %v8635_v52  ;;  %v3293_v10 = vld [vmem:[#allocation2 + $0x2d] sm:$0xff] }
 0x244   : > { %v3317_v26 = vmul.f32 %v3292_v17, %v8634_v8  ;;  %v6080_v8 = vld [vmem:[%s8456_s3 + $0x170] sm:$0xff]  }
 0x245   : > { %v7216_v40 = vpop.f32.mrf.mxu1  ;;  %5453 = vmatmul.mubr.bf16.gmra.mxu1 %v1620_v22  ;;  %v3316_v22 = vmul.f32 %v3291_v23, %v8633_v6  ;;  %v3294_v6 = vld [vmem:[#allocation2 + $0x35] sm:$0xff]  ;;  %v2476_v23 = vmul.f32 %v6927_v28, %v8636_v44  ;;  %v6082_v28 = vld [vmem:[%s8456_s3 + $0x168] sm:$0xff]  }
 0x246   : > { %5540 = vmatprep.mubr.msk.bf16.mxu1 %vm6131_vm1, %v6924_v53 }
 0x247   : > { %v5342_v16 = vpop.f32.mrf.mxu1  ;;  %v3341_v47 = vpack.c.bf16 %v3317_v26, %v3316_v22  ;;  %v6083_v22 = vld [vmem:[%s8456_s3 + $0x230] sm:$0xff]  }
 0x248   : > { %v7220_v11 = vpop.f32.mrf.mxu0  ;;  %5657 = vmatmul.mubr.bf16.gmra.mxu0 %v2775_v38  ;;  %v6079_v16 = vld [vmem:[%s8456_s3 + $0x178] sm:$0xff]  }
 0x249   : > { %8653 = vst [vmem:[#allocation45_spill] sm:$0xff] %v7220_v11  ;;  %5744 = vmatprep.mubr.msk.bf16.mxu0 %vm6131_vm1, %v6924_v53  ;;  %v7225_v20 = vpop.f32.mrf.mxu1 }
 0x24a   : > { %8654 = vst [vmem:[#allocation46_spill] sm:$0xff] %v7225_v20  ;;  %v5478_v55 = vpop.f32.mrf.mxu0 }
 0x24b   : > { %v5343_v11 = vpop.f32.mrf.mxu1 }
 0x24c   : > { %v7233_v38 = vpop.f32.mrf.mxu0 }
 0x24d   : > { %v7238_v20 = vpop.f32.mrf.mxu1  ;;  %5541 = vmatmul.mubr.bf16.vlgmr.msra.gmra.mxu1 %v2499_v12  ;;  %v3319_v12 = vmul.f32 %v3294_v6, %v8635_v52  ;;  %v6084_v52 = vld [vmem:[%s8456_s3 + $0x228] sm:$0xff]  }
 0x24e   : > { %v5479_v55 = vpop.f32.mrf.mxu0  ;;  %5544 = vmatprep.mubr.msk.bf16.mxu1 %vm6131_vm1, %v6924_v53  ;;  %5661 = vmatpush3.bf16.msra.mxu1 %v6079_v16 }
 0x24f   : > { %v5346_v17 = vpop.f32.mrf.mxu1  ;;  %5662 = vmatprep.subr.bf16.mxu1 %v6924_v53 }
 0x250   : > { %v7245_v11 = vpop.f32.mrf.mxu0  ;;  %5745 = vmatmul.mubr.bf16.vlgmr.msra.gmra.mxu0 %v3341_v47  ;;  %v3318_v47 = vmul.f32 %v3293_v10, %v8636_v44  ;;  %v6085_v44 = vld [vmem:[%s8456_s3 + $0x160] sm:$0xff]  }
 0x251   : > { %5748 = vmatprep.mubr.msk.bf16.mxu0 %vm6131_vm1, %v6924_v53  ;;  %5865 = vmatpush3.bf16.msra.mxu0 %v6081_v41  ;;  %v7257_v26 = vpop.f32.mrf.mxu1  ;;  %v2500_v41 = vpack.c.bf16 %v2477_v54, %v2476_v23  ;;  %v3295_v23 = vld [vmem:[#allocation2 + $0x3d] sm:$0xff]  ;;  %v3296_v54 = vld [vmem:[#allocation2 + $0x45] sm:$0xff] }
 0x252   : > { %v5482_v16 = vpop.f32.mrf.mxu0  ;;  %5866 = vmatprep.subr.bf16.mxu0 %v6924_v53  ;;  %5663 = vmatpush3.bf16.msra.mxu1 %v6080_v8  ;;  %v3342_v17 = vpack.c.bf16 %v3319_v12, %v3318_v47  ;;  %v6086_v12 = vld [vmem:[%s8456_s3 + $0x220] sm:$0xff]   ;;  %v3320_v47 = vmul.f32 %v3295_v23, %v8637_v0 }
 0x253   : > { %v5347_v36 = vpop.f32.mrf.mxu1  ;;  %5664 = vmatprep.subr.bf16.mxu1 %v6924_v53  ;;  %v2479_v16 = vmul.f32 %v6933_v37, %v8638_v59  ;;  %v3321_v37 = vmul.f32 %v3296_v54, %v8638_v59  ;;  %v3297_v54 = vld [vmem:[#allocation2 + $0x4d] sm:$0xff] }
 0x254   : > { %v7264_v55 = vpop.f32.mrf.mxu0 }
 0x255   : > { %5867 = vmatpush3.bf16.msra.mxu0 %v6083_v22  ;;  %v7271_v6 = vpop.f32.mrf.mxu1  ;;  %5545 = vmatmul.mubr.bf16.gmra.mxu1 %v2500_v41  ;;  %v2478_v41 = vmul.f32 %v6931_v30, %v8637_v0  ;;  %v6088_v30 = vld [vmem:[%s8456_s3 + $0x218] sm:$0xff]   ;;  %v3343_v23 = vpack.c.bf16 %v3321_v37, %v3320_v47  ;;  %v2481_v47 = vmul.f32 %v6940_v35, %v8639_v43  ;;  %v6090_v37 = vld [vmem:[%s8456_s3 + $0x210] sm:$0xff]   ;;  %v6091_v35 = vld [vmem:[%s8456_s3 + $0x148] sm:$0xff]  }
 0x256   : > { %v5483_v8 = vpop.f32.mrf.mxu0  ;;  %5868 = vmatprep.subr.bf16.mxu0 %v6924_v53  ;;  %5548 = vmatprep.mubr.msk.bf16.mxu1 %vm6131_vm1, %v6924_v53 }
 0x257   : > { %5665 = vmatpush3.bf16.msra.mxu1 %v6082_v28  ;;  %v5350_v10 = vpop.f32.mrf.mxu1 }
 0x258   : > { %v7279_v22 = vpop.f32.mrf.mxu0  ;;  %5749 = vmatmul.mubr.bf16.gmra.mxu0 %v3342_v17  ;;  %5666 = vmatprep.subr.bf16.mxu1 %v6924_v53  ;;  %v2501_v10 = vpack.c.bf16 %v2479_v16, %v2478_v41  ;;  %v6089_v16 = vld [vmem:[%s8456_s3 + $0x150] sm:$0xff]   ;;  %v2480_v41 = vmul.f32 %v6936_v60, %v8640_v63 }
 0x259   : > { %5752 = vmatprep.mubr.msk.bf16.mxu0 %vm6131_vm1, %v6924_v53  ;;  %5869 = vmatpush3.bf16.msra.mxu0 %v6084_v52  ;;  %v7289_v28 = vpop.f32.mrf.mxu1  ;;  %v6087_v52 = vld [vmem:[%s8456_s3 + $0x158] sm:$0xff]  }
 0x25a   : > { %v5486_v36 = vpop.f32.mrf.mxu0  ;;  %5870 = vmatprep.subr.bf16.mxu0 %v6924_v53 }
 0x25b   : > { %5667 = vmatpush3.bf16.msra.mxu1 %v6085_v44  ;;  %v5351_v8 = vpop.f32.mrf.mxu1  ;;  %v3298_v44 = vld [vmem:[#allocation2 + $0x55] sm:$0xff] }
 0x25c   : > { %v7299_v17 = vpop.f32.mrf.mxu0  ;;  %5668 = vmatprep.subr.bf16.mxu1 %v6924_v53  ;;  %v3323_v60 = vmul.f32 %v3298_v44, %v8639_v43 }
 0x25d   : > { %5871 = vmatpush3.bf16.msra.mxu0 %v6086_v12  ;;  %v7305_v0 = vpop.f32.mrf.mxu1  ;;  %5549 = vmatmul.mubr.bf16.gmra.mxu1 %v2501_v10  ;;  %v3322_v10 = vmul.f32 %v3297_v54, %v8640_v63  ;;  %v6092_v63 = vld [vmem:[%s8456_s3 + $0x208] sm:$0xff]  }
 0x25e   : > { %v5487_v59 = vpop.f32.mrf.mxu0  ;;  %5872 = vmatprep.subr.bf16.mxu0 %v6924_v53  ;;  %5552 = vmatprep.mubr.msk.bf16.mxu1 %vm6131_vm1, %v6924_v53 }
 0x25f   : > { %5669 = vmatpush3.bf16.msra.mxu1 %v6087_v52  ;;  %v5354_v12 = vpop.f32.mrf.mxu1  ;;  %v3344_v44 = vpack.c.bf16 %v3323_v60, %v3322_v10  ;;  %v3299_v10 = vld [vmem:[#allocation2 + $0x5d] sm:$0xff] }
 0x260   : > { %v7313_v36 = vpop.f32.mrf.mxu0  ;;  %5753 = vmatmul.mubr.bf16.gmra.mxu0 %v3343_v23  ;;  %5670 = vmatprep.subr.bf16.mxu1 %v6924_v53  ;;  %v2502_v23 = vpack.c.bf16 %v2481_v47, %v2480_v41  ;;  %v6093_v12 = vld [vmem:[%s8456_s3 + $0x140] sm:$0xff]  }
 0x261   : > { %5756 = vmatprep.mubr.msk.bf16.mxu0 %vm6131_vm1, %v6924_v53  ;;  %5873 = vmatpush3.bf16.msra.mxu0 %v6088_v30  ;;  %v7325_v52 = vpop.f32.mrf.mxu1  ;;  %v6094_v60 = vld [vmem:[%s8456_s3 + $0x200] sm:$0xff]  }
 0x262   : > { %v5490_v8 = vpop.f32.mrf.mxu0  ;;  %5874 = vmatprep.subr.bf16.mxu0 %v6924_v53 }
 0x263   : > { %5671 = vmatpush3.bf16.msra.mxu1 %v6089_v16  ;;  %v5355_v59 = vpop.f32.mrf.mxu1  ;;  %v3300_v16 = vld [vmem:[#allocation2 + $0x65] sm:$0xff]  ;;  %v2483_v8 = vmul.f32 %v6952_v4, %v8642_v45 }
 0x264   : > { %v7333_v30 = vpop.f32.mrf.mxu0  ;;  %5672 = vmatprep.subr.bf16.mxu1 %v6924_v53 }
 0x265   : > { %5875 = vmatpush3.bf16.msra.mxu0 %v6090_v37  ;;  %v7339_v54 = vpop.f32.mrf.mxu1  ;;  %5553 = vmatmul.mubr.bf16.gmra.mxu1 %v2502_v23  ;;  %v2482_v37 = vmul.f32 %v6950_v18, %v8641_v27  ;;  %v3325_v23 = vmul.f32 %v3300_v16, %v8642_v45  ;;  %v3301_v45 = vld [vmem:[#allocation2 + $0x6d] sm:$0xff] }
 0x266   : > { %v5491_v43 = vpop.f32.mrf.mxu0  ;;  %5876 = vmatprep.subr.bf16.mxu0 %v6924_v53  ;;  %5556 = vmatprep.mubr.msk.bf16.mxu1 %vm6131_vm1, %v6924_v53 }
 0x267   : > { %5673 = vmatpush3.bf16.msra.mxu1 %v6091_v35  ;;  %v5358_v41 = vpop.f32.mrf.mxu1  ;;  %v2503_v43 = vpack.c.bf16 %v2483_v8, %v2482_v37  ;;  %v2485_v37 = vmul.f32 %v6966_v29, %v8645_v62 }
 0x268   : > { %v7347_v47 = vpop.f32.mrf.mxu0  ;;  %5757 = vmatmul.mubr.bf16.gmra.mxu0 %v3344_v44  ;;  %5674 = vmatprep.subr.bf16.mxu1 %v6924_v53  ;;  %v3324_v44 = vmul.f32 %v3299_v10, %v8641_v27  ;;  %v3302_v27 = vld [vmem:[#allocation2 + $0x75] sm:$0xff] }
 0x269   : > { %8655 = vst [vmem:[#allocation9_spill] sm:$0xff] %v7347_v47  ;;  %5760 = vmatprep.mubr.msk.bf16.mxu0 %vm6131_vm1, %v6924_v53  ;;  %5877 = vmatpush3.bf16.msra.mxu0 %v6092_v63  ;;  %v7359_v35 = vpop.f32.mrf.mxu1 }
 0x26a   : > { %v5494_v59 = vpop.f32.mrf.mxu0  ;;  %5878 = vmatprep.subr.bf16.mxu0 %v6924_v53  ;;  %v3345_v47 = vpack.c.bf16 %v3325_v23, %v3324_v44  ;;  %v7385_v44 = vld [vmem:[#allocation2 + $0x6f] sm:$0xff] }
 0x26b   : > { %5675 = vmatpush3.bf16.msra.mxu1 %v6093_v12  ;;  %v5359_v18 = vpop.f32.mrf.mxu1  ;;  %v3326_v59 = vmul.f32 %v3301_v45, %v8644_v5 }
 0x26c   : > { %v7363_v4 = vpop.f32.mrf.mxu0  ;;  %5796 = vmatprep.subr.bf16.mxu1 %v6924_v53 }
 0x26d   : > { %5879 = vmatpush3.bf16.msra.mxu0 %v6094_v60  ;;  %v7367_v63 = vpop.f32.mrf.mxu1  ;;  %5557 = vmatmul.mubr.bf16.gmra.mxu1 %v2503_v43  ;;  %v2484_v60 = vmul.f32 %v6964_v9, %v8644_v5  ;;  %v3304_v9 = vld [vmem:[#allocation2 + $0x85] sm:$0xff] }
 0x26e   : > { %v5495_v41 = vpop.f32.mrf.mxu0  ;;  %5560 = vmatprep.mubr.msk.bf16.mxu1 %vm6131_vm1, %v6924_v53 }
 0x26f   : > { %v5362_v16 = vpop.f32.mrf.mxu1  ;;  %v2504_v43 = vpack.c.bf16 %v2485_v37, %v2484_v60  ;;  %v3303_v37 = vld [vmem:[#allocation2 + $0x7d] sm:$0xff] }
 0x270   : > { %v7371_v12 = vpop.f32.mrf.mxu0  ;;  %5761 = vmatmul.mubr.bf16.gmra.mxu0 %v3345_v47  ;;  %v3327_v47 = vmul.f32 %v3302_v27, %v8645_v62  ;;  %v2486_v62 = vmul.f32 %v7385_v44, %v8646_v50 }
 0x271   : > { %8656 = vst [vmem:[#allocation6_spill] sm:$0xff] %v7371_v12  ;;  %5764 = vmatprep.mubr.msk.bf16.mxu0 %vm6131_vm1, %v6924_v53  ;;  %v7377_v8 = vpop.f32.mrf.mxu1  ;;  %v2466_v12 = vld [vmem:[#allocation2 + $0x97] sm:$0xff] }
 0x272   : > { %v5498_v10 = vpop.f32.mrf.mxu0  ;;  %v3346_v16 = vpack.c.bf16 %v3327_v47, %v3326_v59 }
 0x273   : > { %v5363_v23 = vpop.f32.mrf.mxu1  ;;  %v7391_v10 = vld [vmem:[#allocation2 + $0x77] sm:$0xff] }
 0x274   : > { %v7382_v18 = vpop.f32.mrf.mxu0  ;;  %v2487_v59 = vmul.f32 %v7391_v10, %v6668_v21  ;;  %v3329_v23 = vmul.f32 %v3304_v9, %v6668_v21  ;;  %v3305_v21 = vld [vmem:[#allocation2 + $0x8d] sm:$0xff] }
 0x275   : > { %8657 = vst [vmem:[#allocation21_spill] sm:$0xff] %v7382_v18  ;;  %v7387_v29 = vpop.f32.mrf.mxu1  ;;  %5561 = vmatmul.mubr.bf16.gmra.mxu1 %v2504_v43 }
 0x276   : > { %8658 = vst [vmem:[#allocation34_spill] sm:$0xff] %v7387_v29  ;;  %v5499_v41 = vpop.f32.mrf.mxu0  ;;  %5564 = vmatprep.mubr.msk.bf16.mxu1 %vm6131_vm1, %v6924_v53 }
 0x277   : > { %v5366_v5 = vpop.f32.mrf.mxu1  ;;  %v2505_v41 = vpack.c.bf16 %v2487_v59, %v2486_v62  ;;  %v3306_v62 = vld [vmem:[#allocation2 + $0x95] sm:$0xff] }
 0x278   : > { %v7393_v45 = vpop.f32.mrf.mxu0  ;;  %5765 = vmatmul.mubr.bf16.gmra.mxu0 %v3346_v16  ;;  %v3328_v16 = vmul.f32 %v3303_v37, %v8646_v50  ;;  %v7407_v5 = vld [vmem:[#allocation2 + $0x87] sm:$0xff] }
 0x279   : > { %8659 = vst [vmem:[#allocation13_spill] sm:$0xff] %v7393_v45  ;;  %5768 = vmatprep.mubr.msk.bf16.mxu0 %vm6131_vm1, %v6924_v53  ;;  %v7399_v27 = vpop.f32.mrf.mxu1  ;;  %v2489_v50 = vmul.f32 %v7407_v5, %v8647_v33 }
 0x27a   : > { %8660 = vst [vmem:[#allocation15_spill] sm:$0xff] %v7399_v27  ;;  %v5502_v60 = vpop.f32.mrf.mxu0  ;;  %v3347_v18 = vpack.c.bf16 %v3329_v23, %v3328_v16  ;;  %v2463_v27 = vld [vmem:[#allocation2 + $0x7f] sm:$0xff] }
 0x27b   : > { %v5367_v43 = vpop.f32.mrf.mxu1  ;;  %v7411_v60 = vld [vmem:[#allocation2] sm:$0xff]  ;;  %v2488_v37 = vmul.f32 %v2463_v27, %v6707_v14 }
 0x27c   : > { %v7404_v47 = vpop.f32.mrf.mxu0  ;;  %v3308_v27 = vld [vmem:[#allocation2 + $0xa5] sm:$0xff] }
 0x27d   : > { %8661 = vst [vmem:[#allocation16_spill] sm:$0xff] %v7404_v47  ;;  %v7409_v45 = vpop.f32.mrf.mxu1  ;;  %5565 = vmatmul.mubr.bf16.gmra.mxu1 %v2505_v41  ;;  %v3330_v41 = vmul.f32 %v3305_v21, %v6707_v14 }
 0x27e   : > { %8662 = vst [vmem:[#allocation36_spill] sm:$0xff] %v7409_v45  ;;  %v5503_v53 = vpop.f32.mrf.mxu0  ;;  %5568 = vmatprep.mubr.msk.bf16.mxu1 %vm6131_vm1, %v7411_v60 }
 0x27f   : > { %v5370_v9 = vpop.f32.mrf.mxu1 }
 0x280   : > { %v7415_v43 = vpop.f32.mrf.mxu0  ;;  %5769 = vmatmul.mubr.bf16.gmra.mxu0 %v3347_v18  ;;  %v2506_v9 = vpack.c.bf16 %v2489_v50, %v2488_v37  ;;  %v3331_v18 = vmul.f32 %v3306_v62, %v8647_v33  ;;  %v3307_v33 = vld [vmem:[#allocation2 + $0x9d] sm:$0xff]  ;;  %v2491_v50 = vmul.f32 %v2466_v12, %v6725_v42  ;;  %v3333_v37 = vmul.f32 %v3308_v27, %v6725_v42  ;;  %v3309_v12 = vld [vmem:[#allocation2 + $0xad] sm:$0xff] }
 0x281   : > { %8663 = vst [vmem:[#allocation25_spill] sm:$0xff] %v7415_v43  ;;  %5772 = vmatprep.mubr.msk.bf16.mxu0 %vm6131_vm1, %v7411_v60  ;;  %v7422_v59 = vpop.f32.mrf.mxu1  ;;  %v2465_v43 = vld [vmem:[#allocation2 + $0x8f] sm:$0xff] }
 0x282   : > { %v5506_v23 = vpop.f32.mrf.mxu0  ;;  %v3348_v29 = vpack.c.bf16 %v3331_v18, %v3330_v41  ;;  %v7444_v18 = vld [vmem:[#allocation2 + $0xa7] sm:$0xff] }
 0x283   : > { %v5371_v16 = vpop.f32.mrf.mxu1  ;;  %v2490_v23 = vmul.f32 %v2465_v43, %v8648_v32  ;;  %v3332_v43 = vmul.f32 %v3307_v33, %v8648_v32  ;;  %v2493_v27 = vmul.f32 %v7444_v18, %v6709_v25  ;;  %v3310_v32 = vld [vmem:[#allocation2 + $0xb5] sm:$0xff] }
 0x284   : > { %v7425_v53 = vpop.f32.mrf.mxu0 }
 0x285   : > { %8664 = vst [vmem:[#allocation28_spill] sm:$0xff] %v7425_v53  ;;  %v7428_v47 = vpop.f32.mrf.mxu1  ;;  %5569 = vmatmul.mubr.bf16.gmra.mxu1 %v2506_v9  ;;  %v2507_v41 = vpack.c.bf16 %v2491_v50, %v2490_v23  ;;  %v2467_v53 = vld [vmem:[#allocation2 + $0x9f] sm:$0xff] }
 0x286   : > { %v5507_v45 = vpop.f32.mrf.mxu0  ;;  %5572 = vmatprep.mubr.msk.bf16.mxu1 %vm6131_vm1, %v7411_v60  ;;  %v2492_v23 = vmul.f32 %v2467_v53, %v6740_v51  ;;  %v3312_v53 = vld [vmem:[#allocation2 + $0xc5] sm:$0xff] }
 0x287   : > { %v5374_v14 = vpop.f32.mrf.mxu1 }
 0x288   : > { %v7433_v21 = vpop.f32.mrf.mxu0  ;;  %5773 = vmatmul.mubr.bf16.gmra.mxu0 %v3348_v29 }
 0x289   : > { %8665 = vst [vmem:[#allocation12_spill] sm:$0xff] %v7433_v21  ;;  %5776 = vmatprep.mubr.msk.bf16.mxu0 %vm6131_vm1, %v7411_v60  ;;  %v7438_v45 = vpop.f32.mrf.mxu1  ;;  %v3349_v21 = vpack.c.bf16 %v3333_v37, %v3332_v43  ;;  %v3334_v37 = vmul.f32 %v3309_v12, %v6740_v51  ;;  %v2508_v43 = vpack.c.bf16 %v2493_v27, %v2492_v23  ;;  %v6117_v12 = vld [vmem:[#allocation2 + $0xb7] sm:$0xff] }
 0x28a   : > { %8666 = vst [vmem:[#allocation30_spill] sm:$0xff] %v7438_v45  ;;  %v5510_v62 = vpop.f32.mrf.mxu0  ;;  %v2495_v27 = vmul.f32 %v6117_v12, %v7028_v57  ;;  %v3314_v12 = vld [vmem:[#allocation2 + $0xd5] sm:$0xff] }
 0x28b   : > { %v5375_v16 = vpop.f32.mrf.mxu1 }
 0x28c   : > { %v7441_v9 = vpop.f32.mrf.mxu0 }
 0x28d   : > { %8667 = vst [vmem:[#allocation14_spill] sm:$0xff] %v7441_v9  ;;  %v7446_v29 = vpop.f32.mrf.mxu1  ;;  %5573 = vmatmul.mubr.bf16.gmra.mxu1 %v2507_v41  ;;  %v6116_v9 = vld [vmem:[#allocation2 + $0xaf] sm:$0xff] }
 0x28e   : > { %8668 = vst [vmem:[#allocation32_spill] sm:$0xff] %v7446_v29  ;;  %v5511_v14 = vpop.f32.mrf.mxu0  ;;  %5576 = vmatprep.mubr.msk.bf16.mxu1 %vm6131_vm1, %v7411_v60 }
 0x28f   : > { %v5378_v62 = vpop.f32.mrf.mxu1 }
 0x290   : > { %v7450_v42 = vpop.f32.mrf.mxu0  ;;  %5777 = vmatmul.mubr.bf16.gmra.mxu0 %v3349_v21  ;;  %v3335_v21 = vmul.f32 %v3310_v32, %v6709_v25  ;;  %v3311_v25 = vld [vmem:[#allocation2 + $0xbd] sm:$0xff] }
 0x291   : > { %8669 = vst [vmem:[#allocation17_spill] sm:$0xff] %v7450_v42  ;;  %5780 = vmatprep.mubr.msk.bf16.mxu0 %vm6131_vm1, %v7411_v60  ;;  %v7457_v33 = vpop.f32.mrf.mxu1 }
 0x292   : > { %8670 = vst [vmem:[#allocation38_spill] sm:$0xff] %v7457_v33  ;;  %v5514_v50 = vpop.f32.mrf.mxu0  ;;  %v3350_v42 = vpack.c.bf16 %v3335_v21, %v3334_v37  ;;  %v3337_v37 = vmul.f32 %v3312_v53, %v7028_v57 }
 0x293   : > { %v5379_v41 = vpop.f32.mrf.mxu1  ;;  %v2494_v50 = vmul.f32 %v6116_v9, %v6737_v13  ;;  %v3336_v9 = vmul.f32 %v3311_v25, %v6737_v13 }
 0x294   : > { %v7460_v16 = vpop.f32.mrf.mxu0 }
 0x295   : > { %8671 = vst [vmem:[#allocation22_spill] sm:$0xff] %v7460_v16  ;;  %v7463_v14 = vpop.f32.mrf.mxu1  ;;  %5577 = vmatmul.mubr.bf16.gmra.mxu1 %v2508_v43  ;;  %v2509_v41 = vpack.c.bf16 %v2495_v27, %v2494_v50  ;;  %v2471_v16 = vld [vmem:[#allocation2 + $0xbf] sm:$0xff]  ;;  %v3339_v27 = vmul.f32 %v3314_v12, %v7038_v61 }
 0x296   : > { %8672 = vst [vmem:[#allocation43_spill] sm:$0xff] %v7463_v14  ;;  %v5515_v62 = vpop.f32.mrf.mxu0  ;;  %5580 = vmatprep.mubr.msk.bf16.mxu1 %vm6131_vm1, %v7411_v60  ;;  %v3313_v14 = vld [vmem:[#allocation2 + $0xcd] sm:$0xff]  ;;  %v2496_v13 = vmul.f32 %v2471_v16, %v7036_v49 }
 0x297   : > { %v5382_v33 = vpop.f32.mrf.mxu1  ;;  %v3338_v25 = vmul.f32 %v3313_v14, %v7036_v49 }
 0x298   : > { %v7468_v51 = vpop.f32.mrf.mxu0  ;;  %5781 = vmatmul.mubr.bf16.gmra.mxu0 %v3350_v42  ;;  %v2472_v33 = vld [vmem:[#allocation2 + $0xc7] sm:$0xff] }
 0x299   : > { %8673 = vst [vmem:[#allocation47_spill] sm:$0xff] %v7468_v51  ;;  %5784 = vmatprep.mubr.msk.bf16.mxu0 %vm6131_vm1, %v7411_v60  ;;  %v7473_v32 = vpop.f32.mrf.mxu1  ;;  %v3351_v51 = vpack.c.bf16 %v3337_v37, %v3336_v9  ;;  %v2497_v57 = vmul.f32 %v2472_v33, %v7038_v61  ;;  %v3352_v33 = vpack.c.bf16 %v3339_v27, %v3338_v25  ;;  %v3003_v27 = vld [vmem:[#allocation2 + $0x19] sm:$0xff] }
 0x29a   : > { %8674 = vst [vmem:[#allocation31_spill] sm:$0xff] %v7473_v32  ;;  %v5518_v23 = vpop.f32.mrf.mxu0 }
 0x29b   : > { %v5383_v43 = vpop.f32.mrf.mxu1 }
 0x29c   : > { %v7476_v21 = vpop.f32.mrf.mxu0 }
 0x29d   : > { %8675 = vst [vmem:[#allocation35_spill] sm:$0xff] %v7476_v21  ;;  %v7479_v42 = vpop.f32.mrf.mxu1  ;;  %5581 = vmatmul.mubr.bf16.gmra.mxu1 %v2509_v41  ;;  %v2510_v41 = vpack.c.bf16 %v2497_v57, %v2496_v13  ;;  %v6118_v21 = vld [vmem:[#allocation2 + $0xa9] sm:$0xff] }
 0x29e   : > { %8676 = vst [vmem:[#allocation44_spill] sm:$0xff] %v7479_v42  ;;  %v5519_v62 = vpop.f32.mrf.mxu0  ;;  %5584 = vmatprep.mubr.msk.bf16.mxu1 %vm6131_vm1, %v7411_v60  ;;  %v8722_v42 = vld [vmem:[#allocation55_spill] sm:$0xff] }
 0x29f   : > { %v5386_v53 = vpop.f32.mrf.mxu1  ;;  %v2473_v62 = vld [vmem:[#allocation2 + $0xcf] sm:$0xf] }
 0x2a0   : > { %v7484_v50 = vpop.f32.mrf.mxu0  ;;  %5785 = vmatmul.mubr.bf16.gmra.mxu0 %v3351_v51  ;;  %v3315_v51 = vld [vmem:[#allocation2 + $0xdd] sm:$0xf]  ;;  %v2498_v16 = vmul.f32 %v2473_v62, %v7201_v3 }
 0x2a1   : > { %8677 = vst [vmem:[#allocation50_spill] sm:$0xff] %v7484_v50  ;;  %5788 = vmatprep.mubr.msk.bf16.mxu0 %vm6131_vm1, %v7411_v60  ;;  %v1873_v23 = vpop.f32.mrf.mxu1  ;;  %v3340_v61 = vmul.f32 %v3315_v51, %v7201_v3  ;;  %v3028_v3 = vmul.f32 %v3003_v27, %v8609_v24  ;;  %v3005_v27 = vld [vmem:[#allocation2 + $0x29] sm:$0xff] }
 0x2a2   : > { %v5522_v37 = vpop.f32.mrf.mxu0 }
 0x2a3   : > { %v5387_v43 = vpop.f32.mrf.mxu1  ;;  %v3353_v23 = vpack.c.bf16 %v3340_v61, %v3340_v61 }
 0x2a4   : > { %v2421_v9 = vpop.f32.mrf.mxu0  ;;  %v3002_v43 = vld [vmem:[#allocation2 + $0x11] sm:$0xff] }
 0x2a5   : > { %v7491_v53 = vpop.f32.mrf.mxu1  ;;  %5585 = vmatmul.mubr.bf16.gmra.mxu1 %v2510_v41 }
 0x2a6   : > { %v5523_v50 = vpop.f32.mrf.mxu0  ;;  %5588 = vmatprep.mubr.msk.bf16.mxu1 %vm6131_vm1, %v7411_v60 }
 0x2a7   : > { %v5406_v49 = vpop.f32.mrf.mxu1  ;;  %v2511_v50 = vpack.c.bf16 %v2498_v16, %v2498_v16  ;;  %v3027_v16 = vmul.f32 %v3002_v43, %v8601_v1  ;;  %v6096_v1 = vld [vmem:[%s8456_s3 + $0x1f0] sm:$0xff]  }
 0x2a8   : > { %v7496_v14 = vpop.f32.mrf.mxu0  ;;  %5789 = vmatmul.mubr.bf16.gmra.mxu0 %v3352_v33  ;;  %v6095_v49 = vld [vmem:[%s8456_s3 + $0x1f8] sm:$0xff]  }
 0x2a9   : > { %8678 = vst [vmem:[#allocation59_spill] sm:$0xff] %v7496_v14  ;;  %5792 = vmatprep.mubr.msk.bf16.mxu0 %vm6131_vm1, %v7411_v60  ;;  %v7501_v12 = vpop.f32.mrf.mxu1 }
 0x2aa   : > { %v5610_v57 = vpop.f32.mrf.mxu0 }
 0x2ab   : > { %v5407_v13 = vpop.f32.mrf.mxu1 }
 0x2ac   : > { %v7503_v25 = vpop.f32.mrf.mxu0  ;;  %v3004_v13 = vld [vmem:[#allocation2 + $0x21] sm:$0xff] }
 0x2ad   : > { %8679 = vst [vmem:[#allocation60_spill] sm:$0xff] %v7503_v25  ;;  %v7505_v37 = vpop.f32.mrf.mxu1  ;;  %5589 = vmatmul.mubr.bf16.gmra.mxu1 %v2511_v50  ;;  %v3052_v50 = vpack.c.bf16 %v3028_v3, %v3027_v16  ;;  %v3029_v3 = vmul.f32 %v3004_v13, %v8614_v39  ;;  %v3007_v39 = vld [vmem:[#allocation2 + $0x39] sm:$0xff] }
 0x2ae   : > { %v5611_v41 = vpop.f32.mrf.mxu0  ;;  %5676 = vmatprep.mubr.msk.bf16.mxu1 %vm6131_vm1, %v7411_v60 }
 0x2af   : > { %v5410_v9 = vpop.f32.mrf.mxu1 }
 0x2b0   : > { %v7509_v62 = vpop.f32.mrf.mxu0  ;;  %5793 = vmatmul.mubr.bf16.gmra.mxu0 %v3353_v23  ;;  %v8683_v9 = vpack.c.bf16 %v6948_v19, %v6944_v56 }
 0x2b1   : > { %8680 = vst [vmem:[#allocation61_spill] sm:$0xff] %v7509_v62  ;;  %5880 = vmatprep.mubr.msk.bf16.mxu0 %vm6131_vm1, %v7411_v60  ;;  %v7514_v33 = vpop.f32.mrf.mxu1 }
 0x2b2   : > { %v5614_v51 = vpop.f32.mrf.mxu0 }
 0x2b3   : > { %v5411_v61 = vpop.f32.mrf.mxu1 }
 0x2b4   : > { %v7520_v57 = vpop.f32.mrf.mxu0  ;;  %v6097_v61 = vld [vmem:[%s8456_s3 + $0x1e8] sm:$0xff]  }
 0x2b5   : > { %8681 = vst [vmem:[#allocation62_spill] sm:$0xff] %v7520_v57  ;;  %v7522_v23 = vpop.f32.mrf.mxu1  ;;  %5677 = vmatmul.mubr.bf16.vlgmr.msra.gmra.mxu1 %v3052_v50 }
 0x2b6   : > { %v5615_v24 = vpop.f32.mrf.mxu0  ;;  %5680 = vmatprep.mubr.msk.bf16.mxu1 %vm6131_vm1, %v7411_v60  ;;  %5797 = vmatpush3.bf16.msra.mxu1 %v6095_v49  ;;  %v3030_v49 = vmul.f32 %v3005_v27, %v8615_v2  ;;  %v3006_v2 = vld [vmem:[#allocation2 + $0x31] sm:$0xff]  ;;  %v6098_v27 = vld [vmem:[%s8456_s3 + $0x1e0] sm:$0xff]  }
 0x2b7   : > { %v5414_v41 = vpop.f32.mrf.mxu1  ;;  %5798 = vmatprep.subr.bf16.mxu1 %v7411_v60 }
 0x2b8   : > { %v7529_v43 = vpop.f32.mrf.mxu0  ;;  %5881 = vmatmul.mubr.bf16.vlgmr.msra.gmra.mxu0 %v8683_v9  ;;  %v3053_v19 = vpack.c.bf16 %v3030_v49, %v3029_v3  ;;  %v8686_v9 = vpack.c.bf16 %v6960_v58, %v6956_v34  ;;  %v3032_v3 = vmul.f32 %v3007_v39, %v8617_v46  ;;  %v3008_v46 = vld [vmem:[#allocation2 + $0x41] sm:$0xff] }
 0x2b9   : > { %8682 = vst [vmem:[#allocation63_spill] sm:$0xff] %v7529_v43  ;;  %5884 = vmatprep.mubr.msk.bf16.mxu0 %vm6131_vm1, %v7411_v60  ;;  %v7538_v51 = vpop.f32.mrf.mxu1 }
 0x2ba   : > { %v5618_v16 = vpop.f32.mrf.mxu0  ;;  %5799 = vmatpush3.bf16.msra.mxu1 %v6096_v1 }
 0x2bb   : > { %v5415_v50 = vpop.f32.mrf.mxu1  ;;  %5800 = vmatprep.subr.bf16.mxu1 %v7411_v60 }
 0x2bc   : > { %v7544_v56 = vpop.f32.mrf.mxu0  ;;  %v6099_v50 = vld [vmem:[%s8456_s3 + $0x1d8] sm:$0xff]  }
 0x2bd   : > { %8684 = vst [vmem:[#allocation64_spill] sm:$0xff] %v7544_v56  ;;  %v7547_v13 = vpop.f32.mrf.mxu1  ;;  %5681 = vmatmul.mubr.bf16.gmra.mxu1 %v3053_v19 }
 0x2be   : > { %v5619_v24 = vpop.f32.mrf.mxu0  ;;  %5684 = vmatprep.mubr.msk.bf16.mxu1 %vm6131_vm1, %v7411_v60  ;;  %5801 = vmatpush3.bf16.msra.mxu1 %v6097_v61  ;;  %v3031_v61 = vmul.f32 %v3006_v2, %v8616_v15  ;;  %v3009_v15 = vld [vmem:[#allocation2 + $0x49] sm:$0xff] }
 0x2bf   : > { %v5418_v1 = vpop.f32.mrf.mxu1  ;;  %5802 = vmatprep.subr.bf16.mxu1 %v7411_v60  ;;  %v6100_v2 = vld [vmem:[%s8456_s3 + $0x1d0] sm:$0xff]  }
 0x2c0   : > { %v7554_v41 = vpop.f32.mrf.mxu0  ;;  %5885 = vmatmul.mubr.bf16.gmra.mxu0 %v8686_v9  ;;  %v3054_v58 = vpack.c.bf16 %v3032_v3, %v3031_v61  ;;  %v8689_v9 = vpack.c.bf16 %v6979_v31, %v6972_v7  ;;  %v3033_v3 = vmul.f32 %v3008_v46, %v8619_v48  ;;  %v3010_v48 = vld [vmem:[#allocation2 + $0x51] sm:$0xff] }
 0x2c1   : > { %8685 = vst [vmem:[#allocation65_spill] sm:$0xff] %v7554_v41  ;;  %5888 = vmatprep.mubr.msk.bf16.mxu0 %vm6131_vm1, %v7411_v60  ;;  %v7563_v16 = vpop.f32.mrf.mxu1  ;;  %v8699_v41 = vmov 0  }
 0x2c2   : > { %v5622_v49 = vpop.f32.mrf.mxu0  ;;  %5803 = vmatpush3.bf16.msra.mxu1 %v6098_v27 }
 0x2c3   : > { %v5419_v19 = vpop.f32.mrf.mxu1  ;;  %5804 = vmatprep.subr.bf16.mxu1 %v7411_v60 }
 0x2c4   : > { %v7569_v34 = vpop.f32.mrf.mxu0 }
 0x2c5   : > { %8687 = vst [vmem:[#allocation66_spill] sm:$0xff] %v7569_v34  ;;  %v7572_v39 = vpop.f32.mrf.mxu1  ;;  %5685 = vmatmul.mubr.bf16.gmra.mxu1 %v3054_v58  ;;  %v6101_v58 = vld [vmem:[%s8456_s3 + $0x1c8] sm:$0xff]  }
 0x2c6   : > { %v5623_v24 = vpop.f32.mrf.mxu0  ;;  %5688 = vmatprep.mubr.msk.bf16.mxu1 %vm6131_vm1, %v7411_v60  ;;  %5805 = vmatpush3.bf16.msra.mxu1 %v6099_v50  ;;  %v8690_v50 = vld [vmem:[#allocation19_spill] sm:$0xff] }
 0x2c7   : > { %v5422_v27 = vpop.f32.mrf.mxu1  ;;  %5806 = vmatprep.subr.bf16.mxu1 %v7411_v60  ;;  %v3034_v19 = vmul.f32 %v3009_v15, %v8690_v50  ;;  %v3011_v15 = vld [vmem:[#allocation2 + $0x59] sm:$0xff]  ;;  %v8694_v50 = vld [vmem:[#allocation49_spill] sm:$0xff] }
 0x2c8   : > { %v7579_v1 = vpop.f32.mrf.mxu0  ;;  %5889 = vmatmul.mubr.bf16.gmra.mxu0 %v8689_v9 }
 0x2c9   : > { %8688 = vst [vmem:[#allocation67_spill] sm:$0xff] %v7579_v1  ;;  %5892 = vmatprep.mubr.msk.bf16.mxu0 %vm6131_vm1, %v7411_v60  ;;  %v7588_v49 = vpop.f32.mrf.mxu1  ;;  %v3055_v31 = vpack.c.bf16 %v3034_v19, %v3033_v3  ;;  %v8693_v3 = vld [vmem:[#allocation4_spill] sm:$0xff] }
 0x2ca   : > { %v5626_v61 = vpop.f32.mrf.mxu0  ;;  %5807 = vmatpush3.bf16.msra.mxu1 %v6100_v2  ;;  %v6102_v2 = vld [vmem:[%s8456_s3 + $0x1c0] sm:$0xff]   ;;  %v8695_v19 = vpack.c.bf16 %v8693_v3, %v8694_v50  ;;  %v3013_v50 = vld [vmem:[#allocation2 + $0x69] sm:$0xff] }
 0x2cb   : > { %v5423_v24 = vpop.f32.mrf.mxu1  ;;  %5808 = vmatprep.subr.bf16.mxu1 %v7411_v60  ;;  %v3012_v3 = vld [vmem:[#allocation2 + $0x61] sm:$0xff] }
 0x2cc   : > { %v7594_v7 = vpop.f32.mrf.mxu0  ;;  %v8696_v24 = vld [vmem:[#allocation26_spill] sm:$0xff] }
 0x2cd   : > { %8691 = vst [vmem:[#allocation19_spill] sm:$0xff] %v7594_v7  ;;  %v7597_v46 = vpop.f32.mrf.mxu1  ;;  %5689 = vmatmul.mubr.bf16.gmra.mxu1 %v3055_v31  ;;  %v3035_v7 = vmul.f32 %v3010_v48, %v8696_v24 }
 0x2ce   : > { %v5627_v27 = vpop.f32.mrf.mxu0  ;;  %5692 = vmatprep.mubr.msk.bf16.mxu1 %vm6131_vm1, %v7411_v60  ;;  %5809 = vmatpush3.bf16.msra.mxu1 %v6101_v58 }
 0x2cf   : > { %v5426_v9 = vpop.f32.mrf.mxu1  ;;  %5810 = vmatprep.subr.bf16.mxu1 %v7411_v60  ;;  %v8697_v27 = vld [vmem:[#allocation29_spill] sm:$0xff] }
 0x2d0   : > { %v7604_v61 = vpop.f32.mrf.mxu0  ;;  %5893 = vmatmul.mubr.bf16.gmra.mxu0 %v8695_v19  ;;  %v3036_v1 = vmul.f32 %v3011_v15, %v8697_v27  ;;  %v8701_v15 = vld [vmem:[#allocation8_spill] sm:$0xff] }
 0x2d1   : > { %8692 = vst [vmem:[#allocation68_spill] sm:$0xff] %v7604_v61  ;;  %5896 = vmatprep.mubr.msk.bf16.mxu0 %vm6131_vm1, %v7411_v60  ;;  %v7613_v31 = vpop.f32.mrf.mxu1 }
 0x2d2   : > { %v5630_v58 = vpop.f32.mrf.mxu0  ;;  %5811 = vmatpush3.bf16.msra.mxu1 %v6102_v2  ;;  %v3056_v61 = vpack.c.bf16 %v3036_v1, %v3035_v7  ;;  %v8702_v2 = vld [vmem:[#allocation18_spill] sm:$0xff]  ;;  %v8705_v7 = vld [vmem:[#allocation33_spill] sm:$0xff] }
 0x2d3   : > { %v5427_v9 = vpop.f32.mrf.mxu1  ;;  %4463 = vmatprep.subr.bf16.mxu1 %v8699_v41  ;;  %v8703_v27 = vpack.c.bf16 %v8701_v15, %v8702_v2  ;;  %v3038_v41 = vmul.f32 %v3013_v50, %v8705_v7  ;;  %v3880_v15 = vmul.f32 %v7391_v10, %v8705_v7  ;;  %v3015_v2 = vld [vmem:[#allocation2 + $0x79] sm:$0xff]  ;;  %v8709_v7 = vld [vmem:[#allocation37_spill] sm:$0xff] }
 0x2d4   : > { %v7616_v34 = vpop.f32.mrf.mxu0  ;;  %v8704_v9 = vld [vmem:[#allocation51_spill] sm:$0xff] }
 0x2d5   : > { %8698 = vst [vmem:[#allocation4_spill] sm:$0xff] %v7616_v34  ;;  %v7619_v48 = vpop.f32.mrf.mxu1  ;;  %5693 = vmatmul.mubr.bf16.gmra.mxu1 %v3056_v61  ;;  %v3037_v1 = vmul.f32 %v3012_v3, %v8704_v9  ;;  %v3856_v10 = vld [vmem:[#allocation2 + $0x7f] sm:$0xff] }
 0x2d6   : > { %v5631_v19 = vpop.f32.mrf.mxu0  ;;  %5696 = vmatprep.mubr.msk.bf16.mxu1 %vm6131_vm1, %v7411_v60 }
 0x2d7   : > { %v5430_v24 = vpop.f32.mrf.mxu1  ;;  %v3879_v19 = vmul.f32 %v7385_v44, %v8704_v9  ;;  %v8708_v44 = vld [vmem:[#allocation39_spill] sm:$0xff] }
 0x2d8   : > { %v7623_v58 = vpop.f32.mrf.mxu0  ;;  %5897 = vmatmul.mubr.bf16.gmra.mxu0 %v8703_v27  ;;  %v3040_v9 = vmul.f32 %v3015_v2, %v8708_v44  ;;  %v3017_v2 = vld [vmem:[#allocation2 + $0x89] sm:$0xff] }
 0x2d9   : > { %8700 = vst [vmem:[#allocation49_spill] sm:$0xff] %v7623_v58  ;;  %5900 = vmatprep.mubr.msk.bf16.mxu0 %vm6131_vm1, %v7411_v60  ;;  %v7632_v34 = vpop.f32.mrf.mxu1  ;;  %v3057_v58 = vpack.c.bf16 %v3038_v41, %v3037_v1  ;;  %v3899_v27 = vpack.c.bf16 %v3880_v15, %v3879_v19  ;;  %v3882_v19 = vmul.f32 %v7407_v5, %v8708_v44  ;;  %v8712_v5 = vld [vmem:[#allocation53_spill] sm:$0xff] }
 0x2da   : > { %v5634_v61 = vpop.f32.mrf.mxu0 }
 0x2db   : > { %v5431_v24 = vpop.f32.mrf.mxu1  ;;  %v3014_v61 = vld [vmem:[#allocation2 + $0x71] sm:$0xff] }
 0x2dc   : > { %v7636_v56 = vpop.f32.mrf.mxu0 }
 0x2dd   : > { %8706 = vst [vmem:[#allocation26_spill] sm:$0xff] %v7636_v56  ;;  %v7640_v3 = vpop.f32.mrf.mxu1  ;;  %5697 = vmatmul.mubr.bf16.gmra.mxu1 %v3057_v58  ;;  %v3039_v58 = vmul.f32 %v3014_v61, %v8709_v7  ;;  %v3858_v61 = vld [vmem:[#allocation2 + $0x8f] sm:$0xff] }
 0x2de   : > { %v5635_v50 = vpop.f32.mrf.mxu0  ;;  %5700 = vmatprep.mubr.msk.bf16.mxu1 %vm6131_vm1, %v7411_v60 }
 0x2df   : > { %v5434_v43 = vpop.f32.mrf.mxu1  ;;  %v3881_v50 = vmul.f32 %v3856_v10, %v8709_v7  ;;  %v3859_v10 = vld [vmem:[#allocation2 + $0x97] sm:$0xff] }
 0x2e0   : > { %v7644_v57 = vpop.f32.mrf.mxu0  ;;  %5901 = vmatmul.mubr.bf16.gmra.mxu0 %v3899_v27  ;;  %v3058_v43 = vpack.c.bf16 %v3040_v9, %v3039_v58  ;;  %v3016_v27 = vld [vmem:[#allocation2 + $0x81] sm:$0xff] }
 0x2e1   : > { %8707 = vst [vmem:[#allocation29_spill] sm:$0xff] %v7644_v57  ;;  %5904 = vmatprep.mubr.msk.bf16.mxu0 %vm6131_vm1, %v7411_v60  ;;  %v7649_v41 = vpop.f32.mrf.mxu1  ;;  %v3900_v62 = vpack.c.bf16 %v3882_v19, %v3881_v50  ;;  %v3041_v44 = vmul.f32 %v3016_v27, %v8712_v5  ;;  %v8713_v9 = vld [vmem:[#allocation48_spill] sm:$0xff]  ;;  %v3883_v19 = vmul.f32 %v3858_v61, %v8712_v5  ;;  %v8716_v61 = vld [vmem:[#allocation54_spill] sm:$0xff] }
 0x2e2   : > { %v5638_v1 = vpop.f32.mrf.mxu0  ;;  %v3042_v58 = vmul.f32 %v3017_v2, %v8713_v9 }
 0x2e3   : > { %v5435_v24 = vpop.f32.mrf.mxu1 }
 0x2e4   : > { %v7654_v15 = vpop.f32.mrf.mxu0  ;;  %v3059_v50 = vpack.c.bf16 %v3042_v58, %v3041_v44  ;;  %v3860_v44 = vld [vmem:[#allocation2 + $0x9f] sm:$0xff] }
 0x2e5   : > { %8710 = vst [vmem:[#allocation8_spill] sm:$0xff] %v7654_v15  ;;  %v7657_v57 = vpop.f32.mrf.mxu1  ;;  %5701 = vmatmul.mubr.bf16.gmra.mxu1 %v3058_v43  ;;  %v3018_v15 = vld [vmem:[#allocation2 + $0x91] sm:$0xff] }
 0x2e6   : > { %v5639_v56 = vpop.f32.mrf.mxu0  ;;  %5704 = vmatprep.mubr.msk.bf16.mxu1 %vm6131_vm1, %v7411_v60 }
 0x2e7   : > { %v5438_v1 = vpop.f32.mrf.mxu1 }
 0x2e8   : > { %v7661_v25 = vpop.f32.mrf.mxu0  ;;  %5905 = vmatmul.mubr.bf16.gmra.mxu0 %v3900_v62  ;;  %v3884_v1 = vmul.f32 %v3859_v10, %v8713_v9  ;;  %v3019_v62 = vld [vmem:[#allocation2 + $0x99] sm:$0xff]  ;;  %v8718_v10 = vld [vmem:[#allocation52_spill] sm:$0xff] }
 0x2e9   : > { %8711 = vst [vmem:[#allocation18_spill] sm:$0xff] %v7661_v25  ;;  %5908 = vmatprep.mubr.msk.bf16.mxu0 %vm6131_vm1, %v7411_v60  ;;  %v7667_v7 = vpop.f32.mrf.mxu1  ;;  %v3044_v5 = vmul.f32 %v3019_v62, %v8716_v61 }
 0x2ea   : > { %v5642_v56 = vpop.f32.mrf.mxu0  ;;  %v3901_v2 = vpack.c.bf16 %v3884_v1, %v3883_v19  ;;  %v3886_v19 = vmul.f32 %v7444_v18, %v8716_v61  ;;  %v3046_v18 = vmul.f32 %v6118_v21, %v8722_v42  ;;  %v3865_v21 = vld [vmem:[#allocation2 + $0xc7] sm:$0xff] }
 0x2eb   : > { %v5439_v24 = vpop.f32.mrf.mxu1 }
 0x2ec   : > { %v7670_v43 = vpop.f32.mrf.mxu0  ;;  %v3043_v24 = vmul.f32 %v3018_v15, %v8718_v10 }
 0x2ed   : > { %8714 = vst [vmem:[#allocation51_spill] sm:$0xff] %v7670_v43  ;;  %v7673_v25 = vpop.f32.mrf.mxu1  ;;  %5705 = vmatmul.mubr.bf16.gmra.mxu1 %v3059_v50 }
 0x2ee   : > { %v5643_v27 = vpop.f32.mrf.mxu0  ;;  %5708 = vmatprep.mubr.msk.bf16.mxu1 %vm6131_vm1, %v7411_v60 }
 0x2ef   : > { %v5442_v14 = vpop.f32.mrf.mxu1  ;;  %v3885_v27 = vmul.f32 %v3860_v44, %v8718_v10 }
 0x2f0   : > { %v7677_v56 = vpop.f32.mrf.mxu0  ;;  %5909 = vmatmul.mubr.bf16.gmra.mxu0 %v3901_v2  ;;  %v3060_v14 = vpack.c.bf16 %v3044_v5, %v3043_v24  ;;  %v3020_v2 = vld [vmem:[#allocation2 + $0xa1] sm:$0xff] }
 0x2f1   : > { %8715 = vst [vmem:[#allocation33_spill] sm:$0xff] %v7677_v56  ;;  %5912 = vmatprep.mubr.msk.bf16.mxu0 %vm6131_vm1, %v7411_v60  ;;  %v7682_v9 = vpop.f32.mrf.mxu1  ;;  %v3902_v43 = vpack.c.bf16 %v3886_v19, %v3885_v27  ;;  %v8728_v27 = vld [vmem:[#allocation58_spill] sm:$0xff] }
 0x2f2   : > { %8717 = vst [vmem:[#allocation39_spill] sm:$0xff] %v7682_v9  ;;  %v5646_v58 = vpop.f32.mrf.mxu0  ;;  %v3868_v9 = vld [vmem:[#allocation2 + $0xdf] sm:$0xf] }
 0x2f3   : > { %v5443_v50 = vpop.f32.mrf.mxu1  ;;  %v8721_v58 = vld [vmem:[#allocation57_spill] sm:$0xff] }
 0x2f4   : > { %v7687_v1 = vpop.f32.mrf.mxu0  ;;  %v3045_v15 = vmul.f32 %v3020_v2, %v8721_v58  ;;  %v8729_v2 = vld [vmem:[#allocation40_spill] sm:$0xff] }
 0x2f5   : > { %8719 = vst [vmem:[#allocation37_spill] sm:$0xff] %v7687_v1  ;;  %v7690_v62 = vpop.f32.mrf.mxu1  ;;  %5709 = vmatmul.mubr.bf16.gmra.mxu1 %v3060_v14  ;;  %v8730_v58 = vpack.c.bf16 %v8728_v27, %v8729_v2  ;;  %v8736_v2 = vld [vmem:[#allocation41_spill] sm:$0xff] }
 0x2f6   : > { %8720 = vst [vmem:[#allocation53_spill] sm:$0xff] %v7690_v62  ;;  %v5647_v56 = vpop.f32.mrf.mxu0  ;;  %5712 = vmatprep.mubr.msk.bf16.mxu1 %vm6131_vm1, %v7411_v60  ;;  %v3061_v44 = vpack.c.bf16 %v3046_v18, %v3045_v15  ;;  %v3864_v15 = vld [vmem:[#allocation2 + $0xbf] sm:$0xff] }
 0x2f7   : > { %v5446_v61 = vpop.f32.mrf.mxu1 }
 0x2f8   : > { %v7696_v50 = vpop.f32.mrf.mxu0  ;;  %5913 = vmatmul.mubr.bf16.gmra.mxu0 %v3902_v43 }
 0x2f9   : > { %8723 = vst [vmem:[#allocation48_spill] sm:$0xff] %v7696_v50  ;;  %5916 = vmatprep.mubr.msk.bf16.mxu0 %vm6131_vm1, %v7411_v60  ;;  %v7700_v5 = vpop.f32.mrf.mxu1  ;;  %v3024_v50 = vld [vmem:[#allocation2 + $0xc1] sm:$0xff] }
 0x2fa   : > { %8724 = vst [vmem:[#allocation54_spill] sm:$0xff] %v7700_v5  ;;  %v5650_v56 = vpop.f32.mrf.mxu0  ;;  %v3866_v5 = vld [vmem:[#allocation2 + $0xcf] sm:$0xff] }
 0x2fb   : > { %v5447_v10 = vpop.f32.mrf.mxu1  ;;  %v8732_v56 = vld [vmem:[#allocation23_spill] sm:$0xff] }
 0x2fc   : > { %v7702_v24 = vpop.f32.mrf.mxu0 }
 0x2fd   : > { %8725 = vst [vmem:[#allocation52_spill] sm:$0xff] %v7702_v24  ;;  %v7704_v19 = vpop.f32.mrf.mxu1  ;;  %5713 = vmatmul.mubr.bf16.gmra.mxu1 %v3061_v44  ;;  %v3890_v44 = vmul.f32 %v3865_v21, %v8732_v56  ;;  %v8734_v24 = vld [vmem:[#allocation56_spill] sm:$0xff]  ;;  %v8740_v56 = vld [vmem:[#allocation5_spill] sm:$0xff] }
 0x2fe   : > { %8726 = vst [vmem:[#allocation57_spill] sm:$0xff] %v7704_v19  ;;  %v5651_v14 = vpop.f32.mrf.mxu0  ;;  %5716 = vmatprep.mubr.msk.bf16.mxu1 %vm6131_vm1, %v7411_v60  ;;  %v8739_v21 = vld [vmem:[#allocation24_spill] sm:$0xff] }
 0x2ff   : > { %v5450_v42 = vpop.f32.mrf.mxu1 }
 0x300   : > { %v7708_v43 = vpop.f32.mrf.mxu0  ;;  %5917 = vmatmul.mubr.bf16.gmra.mxu0 %v8730_v58  ;;  %v3889_v42 = vmul.f32 %v3864_v15, %v8734_v24  ;;  %v8737_v58 = vld [vmem:[#allocation7_spill] sm:$0xff] }
 0x301   : > { %8727 = vst [vmem:[#allocation55_spill] sm:$0xff] %v7708_v43  ;;  %5920 = vmatprep.mubr.msk.bf16.mxu0 %vm6131_vm1, %v7411_v60  ;;  %v7715_v18 = vpop.f32.mrf.mxu1  ;;  %v3025_v43 = vld [vmem:[#allocation2 + $0xc9] sm:$0xff]  ;;  %v8738_v32 = vpack.c.bf16 %v8736_v2, %v8737_v58 }
 0x302   : > { %8731 = vst [vmem:[#allocation58_spill] sm:$0xff] %v7715_v18  ;;  %v5654_v61 = vpop.f32.mrf.mxu0  ;;  %v3904_v19 = vpack.c.bf16 %v3890_v44, %v3889_v42  ;;  %v3867_v18 = vld [vmem:[#allocation2 + $0xd7] sm:$0xff] }
 0x303   : > { %v5451_v10 = vpop.f32.mrf.mxu1  ;;  %v3049_v61 = vmul.f32 %v3024_v50, %v8739_v21  ;;  %v3892_v44 = vmul.f32 %v3867_v18, %v8740_v56 }
 0x304   : > { %v7718_v14 = vpop.f32.mrf.mxu0  ;;  %v3050_v10 = vmul.f32 %v3025_v43, %v8740_v56  ;;  %v3026_v43 = vld [vmem:[#allocation2 + $0xd1] sm:$0xf] }
 0x305   : > { %8733 = vst [vmem:[#allocation40_spill] sm:$0xff] %v7718_v14  ;;  %v7721_v1 = vpop.f32.mrf.mxu1  ;;  %5717 = vmatmul.mubr.bf16.gmra.mxu1 %v8738_v32  ;;  %v8742_v14 = vld [vmem:[#allocation10_spill] sm:$0xff]  ;;  %v3891_v32 = vmul.f32 %v3866_v5, %v8739_v21  ;;  %v8745_v5 = vld [vmem:[#allocation20_spill] sm:$0xff] }
 0x306   : > { %8735 = vst [vmem:[#allocation23_spill] sm:$0xff] %v7721_v1  ;;  %v5655_v27 = vpop.f32.mrf.mxu0  ;;  %5720 = vmatprep.mubr.msk.bf16.mxu1 %vm6131_vm1, %v7411_v60  ;;  %v3063_v58 = vpack.c.bf16 %v3050_v10, %v3049_v61  ;;  %v3051_v18 = vmul.f32 %v3026_v43, %v8745_v5  ;;  %v8746_v61 = vld [vmem:[#allocation42_spill] sm:$0xff] }
 0x307   : > { %v5454_v24 = vpop.f32.mrf.mxu1  ;;  %v1959_v27 = vadd.f32 %v7491_v53, %v8742_v14  ;;  %v3905_v29 = vpack.c.bf16 %v3892_v44, %v3891_v32 }
 0x308   : > { %v7730_v15 = vpop.f32.mrf.mxu0  ;;  %5921 = vmatmul.mubr.bf16.gmra.mxu0 %v3904_v19  ;;  %v8743_v24 = vld [vmem:[#allocation11_spill] sm:$0xff]  ;;  %v3064_v44 = vpack.c.bf16 %v3051_v18, %v3051_v18 }
 0x309   : > { %8741 = vst [vmem:[#allocation56_spill] sm:$0xff] %v7730_v15  ;;  %5924 = vmatprep.mubr.msk.bf16.mxu0 %vm6131_vm1, %v7411_v60  ;;  %v2057_v42 = vpop.f32.mrf.mxu1  ;;  %v1962_v15 = vadd.f32 %v7501_v12, %v8743_v24  ;;  %v8744_v19 = vld [vmem:[#allocation27_spill] sm:$0xff]  ;;  %v1967_v12 = vadd.f32 %v7505_v37, %v7216_v40 }
 0x30a   : > { %v5658_v2 = vpop.f32.mrf.mxu0  ;;  %v2424_v62 = vadd.f32 %v8744_v19, %v1959_v27 }
 0x30b   : > { %v5455_v50 = vpop.f32.mrf.mxu1  ;;  %v2425_v56 = vadd.f32 %v8746_v61, %v1962_v15 }
 0x30c   : > { %v2974_v1 = vpop.f32.mrf.mxu0  ;;  %v8748_v50 = vld [vmem:[#allocation45_spill] sm:$0xff] }
 0x30d   : > { %v2611_v53 = vpop.f32.mrf.mxu1  ;;  %5721 = vmatmul.mubr.bf16.gmra.mxu1 %v3063_v58  ;;  %v8747_v58 = vld [vmem:[#allocation46_spill] sm:$0xff]  ;;  %v2426_v40 = vadd.f32 %v8748_v50, %v1967_v12 }
 0x30e   : > { %v5659_v14 = vpop.f32.mrf.mxu0  ;;  %v7741_v45 = vadd.f32 %v2611_v53, %v2424_v62  ;;  %5724 = vmatprep.mubr.msk.bf16.mxu1 %vm6131_vm1, %v7411_v60  ;;  %v3893_v62 = vmul.f32 %v3868_v9, %v8745_v5  ;;  %v1975_v53 = vadd.f32 %v7522_v23, %v7238_v20  ;;  %v3581_v5 = vld [vmem:[#allocation2 + $0x26] sm:$0xff]  ;;  %v3583_v50 = vld [vmem:[#allocation2 + $0x36] sm:$0xff] }
 0x30f   : > { %v5542_v21 = vpop.f32.mrf.mxu1  ;;  %v3580_v14 = vld [vmem:[#allocation2 + $0x1e] sm:$0xff] }
 0x310   : > { %v7746_v1 = vpop.f32.mrf.mxu0  ;;  %5925 = vmatmul.mubr.bf16.gmra.mxu0 %v3905_v29  ;;  %v1970_v29 = vadd.f32 %v7514_v33, %v8747_v58  ;;  %v3906_v37 = vpack.c.bf16 %v3893_v62, %v3893_v62  ;;  %v3605_v62 = vpack.c.bf16 %v3581_v5, %v3580_v14  ;;  %v1983_v58 = vadd.f32 %v7547_v13, %v7271_v6 }
 0x311   : > { %5928 = vmatprep.mubr.msk.bf16.mxu0 %vm6131_vm1, %v7411_v60  ;;  %v2614_v10 = vpop.f32.mrf.mxu1  ;;  %v1991_v5 = vadd.f32 %v7572_v39, %v7305_v0 }
 0x312   : > { %v5746_v27 = vpop.f32.mrf.mxu0  ;;  %v7754_v32 = vadd.f32 %v2614_v10, %v2425_v56  ;;  %v2427_v33 = vadd.f32 %v7233_v38, %v1970_v29  ;;  %v1978_v10 = vadd.f32 %v7538_v51, %v7257_v26 }
 0x313   : > { %v5543_v42 = vpop.f32.mrf.mxu1  ;;  %v2428_v27 = vadd.f32 %v7245_v11, %v1975_v53  ;;  %v2430_v53 = vadd.f32 %v7279_v22, %v1983_v58 }
 0x314   : > { %v7756_v2 = vpop.f32.mrf.mxu0  ;;  %v2429_v29 = vadd.f32 %v7264_v55, %v1978_v10 }
 0x315   : > { %v2619_v15 = vpop.f32.mrf.mxu1  ;;  %5725 = vmatmul.mubr.bf16.gmra.mxu1 %v3064_v44 }
 0x316   : > { %v5747_v43 = vpop.f32.mrf.mxu0  ;;  %v7761_v24 = vadd.f32 %v2619_v15, %v2426_v40  ;;  %5812 = vmatprep.mubr.msk.bf16.mxu1 %vm6131_vm1, %v7411_v60  ;;  %v3582_v40 = vld [vmem:[#allocation2 + $0x2e] sm:$0xff] }
 0x317   : > { %v5546_v9 = vpop.f32.mrf.mxu1  ;;  %v3606_v43 = vpack.c.bf16 %v3583_v50, %v3582_v40 }
 0x318   : > { %v7765_v19 = vpop.f32.mrf.mxu0  ;;  %5929 = vmatmul.mubr.bf16.gmra.mxu0 %v3906_v37  ;;  %v1986_v9 = vadd.f32 %v7563_v16, %v7289_v28  ;;  %v3585_v28 = vld [vmem:[#allocation2 + $0x46] sm:$0xff] }
 0x319   : > { %v2622_v18 = vpop.f32.mrf.mxu1 }
 0x31a   : > { %v5750_v21 = vpop.f32.mrf.mxu0  ;;  %v7770_v12 = vadd.f32 %v2622_v18, %v2427_v33  ;;  %v2431_v18 = vadd.f32 %v7299_v17, %v1986_v9  ;;  %v2002_v9 = vadd.f32 %v7613_v31, %v7359_v35 }
 0x31b   : > { %v5547_v61 = vpop.f32.mrf.mxu1  ;;  %v3584_v21 = vld [vmem:[#allocation2 + $0x3e] sm:$0xff] }
 0x31c   : > { %v7772_v56 = vpop.f32.mrf.mxu0 }
 0x31d   : > { %v2627_v44 = vpop.f32.mrf.mxu1  ;;  %5813 = vmatmul.mubr.bf16.vlgmr.msra.gmra.mxu1 %v3605_v62 }
 0x31e   : > { %v5751_v42 = vpop.f32.mrf.mxu0  ;;  %v7777_v20 = vadd.f32 %v2627_v44, %v2428_v27  ;;  %5816 = vmatprep.mubr.msk.bf16.mxu1 %vm6131_vm1, %v7411_v60  ;;  %v3607_v27 = vpack.c.bf16 %v3585_v28, %v3584_v21  ;;  %v1994_v44 = vadd.f32 %v7588_v49, %v7325_v52  ;;  %v3587_v52 = vld [vmem:[#allocation2 + $0x56] sm:$0xff]  ;;  %v3589_v21 = vld [vmem:[#allocation2 + $0x66] sm:$0xff] }
 0x31f   : > { %v5550_v38 = vpop.f32.mrf.mxu1  ;;  %v2432_v42 = vadd.f32 %v7313_v36, %v1991_v5  ;;  %v2007_v5 = vadd.f32 %v7619_v48, %v7367_v63 }
 0x320   : > { %v7781_v23 = vpop.f32.mrf.mxu0  ;;  %v2433_v50 = vadd.f32 %v7333_v30, %v1994_v44  ;;  %v2010_v44 = vadd.f32 %v7632_v34, %v7377_v8 }
 0x321   : > { %v2630_v26 = vpop.f32.mrf.mxu1 }
 0x322   : > { %v5754_v51 = vpop.f32.mrf.mxu0  ;;  %v7786_v11 = vadd.f32 %v2630_v26, %v2429_v29  ;;  %v1999_v29 = vadd.f32 %v7597_v46, %v7339_v54  ;;  %v3586_v26 = vld [vmem:[#allocation2 + $0x4e] sm:$0xff] }
 0x323   : > { %v5551_v37 = vpop.f32.mrf.mxu1 }
 0x324   : > { %v7788_v15 = vpop.f32.mrf.mxu0 }
 0x325   : > { %v2635_v33 = vpop.f32.mrf.mxu1  ;;  %5817 = vmatmul.mubr.bf16.gmra.mxu1 %v3606_v43  ;;  %v3608_v43 = vpack.c.bf16 %v3587_v52, %v3586_v26  ;;  %v8753_v26 = vld [vmem:[#allocation21_spill] sm:$0xff] }
 0x326   : > { %v5755_v14 = vpop.f32.mrf.mxu0  ;;  %v7793_v6 = vadd.f32 %v2635_v33, %v2430_v53  ;;  %5820 = vmatprep.mubr.msk.bf16.mxu1 %vm6131_vm1, %v7411_v60  ;;  %v8749_v53 = vld [vmem:[#allocation9_spill] sm:$0xff]  ;;  %v2437_v52 = vadd.f32 %v8753_v26, %v2010_v44 }
 0x327   : > { %v5554_v55 = vpop.f32.mrf.mxu1  ;;  %v2434_v33 = vadd.f32 %v8749_v53, %v1999_v29  ;;  %v8752_v29 = vld [vmem:[#allocation34_spill] sm:$0xff]  ;;  %v8761_v26 = vld [vmem:[#allocation25_spill] sm:$0xff] }
 0x328   : > { %v7797_v13 = vpop.f32.mrf.mxu0 }
 0x329   : > { %v2638_v16 = vpop.f32.mrf.mxu1 }
 0x32a   : > { %v5758_v22 = vpop.f32.mrf.mxu0  ;;  %v7802_v61 = vadd.f32 %v2638_v16, %v2431_v18  ;;  %v2435_v18 = vadd.f32 %v7363_v4, %v2002_v9  ;;  %v3588_v16 = vld [vmem:[#allocation2 + $0x5e] sm:$0xff] }
 0x32b   : > { %v5555_v62 = vpop.f32.mrf.mxu1 }
 0x32c   : > { %v7804_v10 = vpop.f32.mrf.mxu0 }
 0x32d   : > { %v2643_v38 = vpop.f32.mrf.mxu1  ;;  %5821 = vmatmul.mubr.bf16.gmra.mxu1 %v3607_v27  ;;  %v3609_v27 = vpack.c.bf16 %v3589_v21, %v3588_v16 }
 0x32e   : > { %v5759_v58 = vpop.f32.mrf.mxu0  ;;  %v7809_v0 = vadd.f32 %v2643_v38, %v2432_v42  ;;  %5824 = vmatprep.mubr.msk.bf16.mxu1 %vm6131_vm1, %v7411_v60  ;;  %v8750_v42 = vld [vmem:[#allocation6_spill] sm:$0xff] }
 0x32f   : > { %v5558_v17 = vpop.f32.mrf.mxu1  ;;  %v2436_v38 = vadd.f32 %v8750_v42, %v2007_v5 }
 0x330   : > { %v7813_v39 = vpop.f32.mrf.mxu0 }
 0x331   : > { %v2646_v49 = vpop.f32.mrf.mxu1 }
 0x332   : > { %v5762_v36 = vpop.f32.mrf.mxu0  ;;  %v7818_v51 = vadd.f32 %v2646_v49, %v2433_v50  ;;  %v2015_v50 = vadd.f32 %v7640_v3, %v8752_v29  ;;  %v3590_v49 = vld [vmem:[#allocation2 + $0x6e] sm:$0xff] }
 0x333   : > { %v5559_v40 = vpop.f32.mrf.mxu1 }
 0x334   : > { %v7820_v37 = vpop.f32.mrf.mxu0  ;;  %v3591_v40 = vld [vmem:[#allocation2 + $0x76] sm:$0xff] }
 0x335   : > { %v2651_v14 = vpop.f32.mrf.mxu1  ;;  %5825 = vmatmul.mubr.bf16.gmra.mxu1 %v3608_v43  ;;  %v3610_v53 = vpack.c.bf16 %v3591_v40, %v3590_v49 }
 0x336   : > { %v5763_v55 = vpop.f32.mrf.mxu0  ;;  %v7825_v54 = vadd.f32 %v2651_v14, %v2434_v33  ;;  %5828 = vmatprep.mubr.msk.bf16.mxu1 %vm6131_vm1, %v7411_v60  ;;  %v8755_v33 = vld [vmem:[#allocation15_spill] sm:$0xff]  ;;  %v8756_v14 = vld [vmem:[#allocation13_spill] sm:$0xff] }
 0x337   : > { %v5562_v30 = vpop.f32.mrf.mxu1  ;;  %v2438_v55 = vadd.f32 %v8756_v14, %v2015_v50  ;;  %v2026_v50 = vadd.f32 %v7667_v7, %v7422_v59 }
 0x338   : > { %v7829_v46 = vpop.f32.mrf.mxu0 }
 0x339   : > { %v2654_v35 = vpop.f32.mrf.mxu1 }
 0x33a   : > { %v5766_v31 = vpop.f32.mrf.mxu0  ;;  %v7834_v28 = vadd.f32 %v2654_v35, %v2435_v18  ;;  %v7859_v18 = vld [vmem:[#allocation2] sm:$0xff] }
 0x33b   : > { %v5563_v22 = vpop.f32.mrf.mxu1  ;;  %v8758_v31 = vld [vmem:[#allocation36_spill] sm:$0xff] }
 0x33c   : > { %v7836_v62 = vpop.f32.mrf.mxu0  ;;  %v2023_v16 = vadd.f32 %v7657_v57, %v8758_v31  ;;  %v8759_v22 = vld [vmem:[#allocation16_spill] sm:$0xff]  ;;  %v8765_v31 = vld [vmem:[#allocation30_spill] sm:$0xff] }
 0x33d   : > { %v2659_v58 = vpop.f32.mrf.mxu1  ;;  %5829 = vmatmul.mubr.bf16.gmra.mxu1 %v3609_v27  ;;  %v3593_v27 = vld [vmem:[#allocation2 + $0x86] sm:$0xff] }
 0x33e   : > { %v5767_v17 = vpop.f32.mrf.mxu0  ;;  %v7841_v63 = vadd.f32 %v2659_v58, %v2436_v38  ;;  %5832 = vmatprep.mubr.msk.bf16.mxu1 %vm6131_vm1, %v7411_v60  ;;  %v2018_v60 = vadd.f32 %v7649_v41, %v8755_v33  ;;  %v3592_v58 = vld [vmem:[#allocation2 + $0x7e] sm:$0xff] }
 0x33f   : > { %v5566_v4 = vpop.f32.mrf.mxu1  ;;  %v3611_v29 = vpack.c.bf16 %v3593_v27, %v3592_v58 }
 0x340   : > { %v7845_v48 = vpop.f32.mrf.mxu0  ;;  %v2439_v41 = vadd.f32 %v8759_v22, %v2018_v60  ;;  %v3594_v60 = vld [vmem:[#allocation2 + $0x8e] sm:$0xff] }
 0x341   : > { %8751 = vst [vmem:[#allocation41_spill] sm:$0xff] %v7845_v48  ;;  %v2662_v8 = vpop.f32.mrf.mxu1  ;;  %v8807_v48 = vld [vmem:[#allocation29_spill] sm:$0xff] }
 0x342   : > { %v5770_v34 = vpop.f32.mrf.mxu0  ;;  %v7850_v36 = vadd.f32 %v2662_v8, %v2437_v52  ;;  %v2440_v52 = vadd.f32 %v8761_v26, %v2023_v16  ;;  %v8766_v16 = vld [vmem:[#allocation39_spill] sm:$0xff]  ;;  %v8771_v26 = vld [vmem:[#allocation14_spill] sm:$0xff] }
 0x343   : > { %v5567_v43 = vpop.f32.mrf.mxu1  ;;  %v2034_v22 = vadd.f32 %v8766_v16, %v8765_v31 }
 0x344   : > { %v7852_v9 = vpop.f32.mrf.mxu0  ;;  %v2031_v43 = vadd.f32 %v7673_v25, %v7428_v47 }
 0x345   : > { %8754 = vst [vmem:[#allocation7_spill] sm:$0xff] %v7852_v9  ;;  %v2667_v30 = vpop.f32.mrf.mxu1  ;;  %5833 = vmatmul.mubr.bf16.gmra.mxu1 %v3610_v53  ;;  %v8763_v53 = vld [vmem:[#allocation28_spill] sm:$0xff]  ;;  %v8805_v9 = vld [vmem:[#allocation26_spill] sm:$0xff] }
 0x346   : > { %v5771_v5 = vpop.f32.mrf.mxu0  ;;  %v7857_v3 = vadd.f32 %v2667_v30, %v2438_v55  ;;  %5836 = vmatprep.mubr.msk.bf16.mxu1 %vm6131_vm1, %v7859_v18  ;;  %v2441_v33 = vadd.f32 %v8763_v53, %v2026_v50  ;;  %v3595_v55 = vld [vmem:[#allocation2 + $0x96] sm:$0xff]  ;;  %v3596_v53 = vld [vmem:[#allocation2 + $0x9e] sm:$0xff] }
 0x347   : > { %v5570_v21 = vpop.f32.mrf.mxu1 }
 0x348   : > { %v7863_v35 = vpop.f32.mrf.mxu0  ;;  %v3612_v21 = vpack.c.bf16 %v3595_v55, %v3594_v60  ;;  %v8774_v55 = vld [vmem:[#allocation54_spill] sm:$0xff] }
 0x349   : > { %8757 = vst [vmem:[#allocation24_spill] sm:$0xff] %v7863_v35  ;;  %v2670_v44 = vpop.f32.mrf.mxu1  ;;  %v8803_v35 = vld [vmem:[#allocation49_spill] sm:$0xff] }
 0x34a   : > { %v5774_v42 = vpop.f32.mrf.mxu0  ;;  %v7868_v38 = vadd.f32 %v2670_v44, %v2439_v41  ;;  %v8767_v41 = vld [vmem:[#allocation12_spill] sm:$0xff] }
 0x34b   : > { %v5571_v17 = vpop.f32.mrf.mxu1  ;;  %v2442_v27 = vadd.f32 %v8767_v41, %v2031_v43 }
 0x34c   : > { %v7870_v4 = vpop.f32.mrf.mxu0  ;;  %v8769_v17 = vld [vmem:[#allocation32_spill] sm:$0xff] }
 0x34d   : > { %8760 = vst [vmem:[#allocation5_spill] sm:$0xff] %v7870_v4  ;;  %v2675_v49 = vpop.f32.mrf.mxu1  ;;  %5837 = vmatmul.mubr.bf16.gmra.mxu1 %v3611_v29  ;;  %v8770_v29 = vld [vmem:[#allocation53_spill] sm:$0xff]  ;;  %v8802_v4 = vld [vmem:[#allocation4_spill] sm:$0xff] }
 0x34e   : > { %v5775_v8 = vpop.f32.mrf.mxu0  ;;  %v7875_v57 = vadd.f32 %v2675_v49, %v2440_v52  ;;  %5840 = vmatprep.mubr.msk.bf16.mxu1 %vm6131_vm1, %v7859_v18  ;;  %v2039_v50 = vadd.f32 %v8770_v29, %v8769_v17  ;;  %v2443_v52 = vadd.f32 %v8771_v26, %v2034_v22  ;;  %v3597_v49 = vld [vmem:[#allocation2 + $0xa6] sm:$0xff]  ;;  %v8779_v29 = vld [vmem:[#allocation22_spill] sm:$0xff] }
 0x34f   : > { %v5574_v34 = vpop.f32.mrf.mxu1 }
 0x350   : > { %v7879_v40 = vpop.f32.mrf.mxu0 }
 0x351   : > { %8762 = vst [vmem:[#allocation10_spill] sm:$0xff] %v7879_v40  ;;  %v2678_v59 = vpop.f32.mrf.mxu1  ;;  %v8801_v40 = vld [vmem:[#allocation68_spill] sm:$0xff] }
 0x352   : > { %v5778_v7 = vpop.f32.mrf.mxu0  ;;  %v7884_v14 = vadd.f32 %v2678_v59, %v2441_v33  ;;  %v3613_v59 = vpack.c.bf16 %v3597_v49, %v3596_v53 }
 0x353   : > { %v5575_v30 = vpop.f32.mrf.mxu1  ;;  %v8773_v7 = vld [vmem:[#allocation38_spill] sm:$0xff] }
 0x354   : > { %v7886_v5 = vpop.f32.mrf.mxu0  ;;  %v2042_v30 = vadd.f32 %v8774_v55, %v8773_v7  ;;  %v8781_v7 = vld [vmem:[#allocation31_spill] sm:$0xff]  ;;  %v8782_v55 = vld [vmem:[#allocation58_spill] sm:$0xff] }
 0x355   : > { %8764 = vst [vmem:[#allocation11_spill] sm:$0xff] %v7886_v5  ;;  %v2683_v44 = vpop.f32.mrf.mxu1  ;;  %5841 = vmatmul.mubr.bf16.gmra.mxu1 %v3612_v21  ;;  %v8775_v21 = vld [vmem:[#allocation17_spill] sm:$0xff]  ;;  %v8800_v5 = vld [vmem:[#allocation19_spill] sm:$0xff] }
 0x356   : > { %v5779_v42 = vpop.f32.mrf.mxu0  ;;  %v7891_v47 = vadd.f32 %v2683_v44, %v2442_v27  ;;  %5844 = vmatprep.mubr.msk.bf16.mxu1 %vm6131_vm1, %v7859_v18  ;;  %v2444_v31 = vadd.f32 %v8775_v21, %v2039_v50  ;;  %v2445_v26 = vadd.f32 %v8779_v29, %v2042_v30  ;;  %v2050_v21 = vadd.f32 %v8782_v55, %v8781_v7  ;;  %v8785_v29 = vld [vmem:[#allocation44_spill] sm:$0xff]  ;;  %v3600_v55 = vld [vmem:[#allocation2 + $0xbe] sm:$0xff] }
 0x357   : > { %v5578_v25 = vpop.f32.mrf.mxu1  ;;  %v8777_v42 = vld [vmem:[#allocation43_spill] sm:$0xff] }
 0x358   : > { %v7895_v58 = vpop.f32.mrf.mxu0  ;;  %v8778_v25 = vld [vmem:[#allocation57_spill] sm:$0xff] }
 0x359   : > { %8768 = vst [vmem:[#allocation27_spill] sm:$0xff] %v7895_v58  ;;  %v2686_v8 = vpop.f32.mrf.mxu1  ;;  %v2047_v17 = vadd.f32 %v8778_v25, %v8777_v42  ;;  %v8799_v58 = vld [vmem:[#allocation67_spill] sm:$0xff] }
 0x35a   : > { %v5782_v34 = vpop.f32.mrf.mxu0  ;;  %v7900_v43 = vadd.f32 %v2686_v8, %v2443_v52  ;;  %v3598_v52 = vld [vmem:[#allocation2 + $0xae] sm:$0xff] }
 0x35b   : > { %v5579_v33 = vpop.f32.mrf.mxu1  ;;  %v3599_v34 = vld [vmem:[#allocation2 + $0xb6] sm:$0xff] }
 0x35c   : > { %v7902_v60 = vpop.f32.mrf.mxu0 }
 0x35d   : > { %8772 = vst [vmem:[#allocation20_spill] sm:$0xff] %v7902_v60  ;;  %v2691_v16 = vpop.f32.mrf.mxu1  ;;  %5845 = vmatmul.mubr.bf16.gmra.mxu1 %v3613_v59  ;;  %v3614_v59 = vpack.c.bf16 %v3599_v34, %v3598_v52  ;;  %v8787_v52 = vld [vmem:[#allocation35_spill] sm:$0xff]  ;;  %v8798_v60 = vld [vmem:[#allocation66_spill] sm:$0xff] }
 0x35e   : > { %v5783_v41 = vpop.f32.mrf.mxu0  ;;  %v7907_v27 = vadd.f32 %v2691_v16, %v2444_v31  ;;  %5848 = vmatprep.mubr.msk.bf16.mxu1 %vm6131_vm1, %v7859_v18  ;;  %v8783_v31 = vld [vmem:[#allocation47_spill] sm:$0xff] }
 0x35f   : > { %v5582_v22 = vpop.f32.mrf.mxu1  ;;  %v2446_v16 = vadd.f32 %v8783_v31, %v2047_v17  ;;  %v3601_v34 = vld [vmem:[#allocation2 + $0xc6] sm:$0xff] }
 0x360   : > { %v7911_v44 = vpop.f32.mrf.mxu0 }
 0x361   : > { %8776 = vst [vmem:[#allocation42_spill] sm:$0xff] %v7911_v44  ;;  %v2694_v49 = vpop.f32.mrf.mxu1  ;;  %v8797_v44 = vld [vmem:[#allocation65_spill] sm:$0xff] }
 0x362   : > { %v5786_v8 = vpop.f32.mrf.mxu0  ;;  %v7916_v50 = vadd.f32 %v2694_v49, %v2445_v26  ;;  %v8786_v26 = vld [vmem:[#allocation23_spill] sm:$0xff] }
 0x363   : > { %v5583_v53 = vpop.f32.mrf.mxu1  ;;  %v2055_v49 = vadd.f32 %v8786_v26, %v8785_v29  ;;  %v2447_v8 = vadd.f32 %v8787_v52, %v2050_v21  ;;  %v3602_v26 = vld [vmem:[#allocation2 + $0xce] sm:$0xff]  ;;  %v3603_v52 = vld [vmem:[#allocation2 + $0xd6] sm:$0xff] }
 0x364   : > { %v7918_v33 = vpop.f32.mrf.mxu0 }
 0x365   : > { %8780 = vst [vmem:[#allocation46_spill] sm:$0xff] %v7918_v33  ;;  %v2699_v41 = vpop.f32.mrf.mxu1  ;;  %5849 = vmatmul.mubr.bf16.gmra.mxu1 %v3614_v59 }
 0x366   : > { %v5787_v22 = vpop.f32.mrf.mxu0  ;;  %v7923_v42 = vadd.f32 %v2699_v41, %v2446_v16  ;;  %5852 = vmatprep.mubr.msk.bf16.mxu1 %vm6131_vm1, %v7859_v18  ;;  %v3615_v16 = vpack.c.bf16 %v3601_v34, %v3600_v55  ;;  %v8789_v41 = vld [vmem:[#allocation50_spill] sm:$0xff]  ;;  %v3616_v34 = vpack.c.bf16 %v3603_v52, %v3602_v26 }
 0x367   : > { %v5586_v30 = vpop.f32.mrf.mxu1  ;;  %v2448_v22 = vadd.f32 %v8789_v41, %v2055_v49  ;;  %v8791_v49 = vld [vmem:[#allocation59_spill] sm:$0xff] }
 0x368   : > { %v7927_v25 = vpop.f32.mrf.mxu0  ;;  %v2977_v55 = vadd.f32 %v8791_v49, %v7741_v45 }
 0x369   : > { %8784 = vst [vmem:[#allocation45_spill] sm:$0xff] %v7927_v25  ;;  %v2702_v53 = vpop.f32.mrf.mxu1 }
 0x36a   : > { %v5790_v7 = vpop.f32.mrf.mxu0  ;;  %v7932_v17 = vadd.f32 %v2702_v53, %v2447_v8 }
 0x36b   : > { %v5587_v59 = vpop.f32.mrf.mxu1 }
 0x36c   : > { %v7934_v31 = vpop.f32.mrf.mxu0 }
 0x36d   : > { %8788 = vst [vmem:[#allocation9_spill] sm:$0xff] %v7934_v31  ;;  %v2707_v30 = vpop.f32.mrf.mxu1  ;;  %5853 = vmatmul.mubr.bf16.gmra.mxu1 %v3615_v16  ;;  %v8796_v31 = vld [vmem:[#allocation64_spill] sm:$0xff] }
 0x36e   : > { %v5791_v33 = vpop.f32.mrf.mxu0  ;;  %v7937_v25 = vadd.f32 %v2707_v30, %v2448_v22  ;;  %5856 = vmatprep.mubr.msk.bf16.mxu1 %vm6131_vm1, %v7859_v18  ;;  %v3604_v22 = vld [vmem:[#allocation2 + $0xde] sm:$0xf] }
 0x36f   : > { %v5590_v21 = vpop.f32.mrf.mxu1  ;;  %v3617_v52 = vpack.c.bf16 %v3604_v22, %v3604_v22 }
 0x370   : > { %v7941_v29 = vpop.f32.mrf.mxu0 }
 0x371   : > { %8790 = vst [vmem:[#allocation6_spill] sm:$0xff] %v7941_v29  ;;  %v2710_v8 = vpop.f32.mrf.mxu1 }
 0x372   : > { %v5794_v53 = vpop.f32.mrf.mxu0  ;;  %v8792_v8 = vld [vmem:[#allocation60_spill] sm:$0xff] }
 0x373   : > { %v5591_v7 = vpop.f32.mrf.mxu1  ;;  %v2978_v53 = vadd.f32 %v8792_v8, %v7754_v32  ;;  %v8794_v32 = vld [vmem:[#allocation62_spill] sm:$0xff] }
 0x374   : > { %v3552_v59 = vpop.f32.mrf.mxu0  ;;  %v2980_v8 = vadd.f32 %v8794_v32, %v7770_v12  ;;  %v2982_v12 = vadd.f32 %v8796_v31, %v7786_v11  ;;  %v2984_v11 = vadd.f32 %v8798_v60, %v7802_v61  ;;  %v2986_v61 = vadd.f32 %v8800_v5, %v7818_v51 }
 0x375   : > { %v3164_v33 = vpop.f32.mrf.mxu1  ;;  %5857 = vmatmul.mubr.bf16.gmra.mxu1 %v3616_v34  ;;  %v8793_v34 = vld [vmem:[#allocation61_spill] sm:$0xff]  ;;  %v2988_v51 = vadd.f32 %v8802_v4, %v7834_v28  ;;  %v2990_v28 = vadd.f32 %v8805_v9, %v7850_v36 }
 0x376   : > { %v5795_v16 = vpop.f32.mrf.mxu0  ;;  %v7945_v41 = vadd.f32 %v3164_v33, %v2977_v55  ;;  %5860 = vmatprep.mubr.msk.bf16.mxu1 %vm6131_vm1, %v7859_v18  ;;  %v2979_v55 = vadd.f32 %v8793_v34, %v7761_v24  ;;  %v8795_v24 = vld [vmem:[#allocation63_spill] sm:$0xff] }
 0x377   : > { %v5678_v30 = vpop.f32.mrf.mxu1  ;;  %v2981_v34 = vadd.f32 %v8795_v24, %v7777_v20  ;;  %v2983_v20 = vadd.f32 %v8797_v44, %v7793_v6  ;;  %v2985_v6 = vadd.f32 %v8799_v58, %v7809_v0  ;;  %v2987_v0 = vadd.f32 %v8801_v40, %v7825_v54 }
 0x378   : > { %v7949_v21 = vpop.f32.mrf.mxu0  ;;  %v2989_v54 = vadd.f32 %v8803_v35, %v7841_v63  ;;  %v2991_v63 = vadd.f32 %v8807_v48, %v7857_v3 }
 0x379   : > { %v3167_v7 = vpop.f32.mrf.mxu1 }
 0x37a   : > { %v5882_v26 = vpop.f32.mrf.mxu0  ;;  %v7953_v59 = vadd.f32 %v3167_v7, %v2978_v53 }
 0x37b   : > { %v5679_v45 = vpop.f32.mrf.mxu1 }
 0x37c   : > { %v7955_v49 = vpop.f32.mrf.mxu0 }
 0x37d   : > { %v3172_v33 = vpop.f32.mrf.mxu1  ;;  %5861 = vmatmul.mubr.bf16.gmra.mxu1 %v3617_v52 }
 0x37e   : > { %v5883_v18 = vpop.f32.mrf.mxu0  ;;  %v7959_v16 = vadd.f32 %v3172_v33, %v2979_v55 }
 0x37f   : > { %v5682_v30 = vpop.f32.mrf.mxu1 }
 0x380   : > { %v7961_v29 = vpop.f32.mrf.mxu0 }
 0x381   : > { %v3175_v22 = vpop.f32.mrf.mxu1 }
 0x382   : > { %v5886_v53 = vpop.f32.mrf.mxu0  ;;  %v7965_v7 = vadd.f32 %v3175_v22, %v2980_v8 }
 0x383   : > { %v5683_v26 = vpop.f32.mrf.mxu1 }
 0x384   : > { %v7967_v45 = vpop.f32.mrf.mxu0 }
 0x385   : > { %v3180_v52 = vpop.f32.mrf.mxu1 }
 0x386   : > { %v5887_v18 = vpop.f32.mrf.mxu0  ;;  %v7971_v55 = vadd.f32 %v3180_v52, %v2981_v34 }
 0x387   : > { %v5686_v33 = vpop.f32.mrf.mxu1 }
 0x388   : > { %v7973_v30 = vpop.f32.mrf.mxu0 }
 0x389   : > { %v3183_v32 = vpop.f32.mrf.mxu1 }
 0x38a   : > { %v5890_v53 = vpop.f32.mrf.mxu0  ;;  %v7977_v8 = vadd.f32 %v3183_v32, %v2982_v12 }
 0x38b   : > { %v5687_v22 = vpop.f32.mrf.mxu1 }
 0x38c   : > { %v7979_v26 = vpop.f32.mrf.mxu0 }
 0x38d   : > { %v3188_v24 = vpop.f32.mrf.mxu1 }
 0x38e   : > { %v5891_v18 = vpop.f32.mrf.mxu0  ;;  %v7983_v34 = vadd.f32 %v3188_v24, %v2983_v20 }
 0x38f   : > { %v5690_v52 = vpop.f32.mrf.mxu1 }
 0x390   : > { %v7985_v33 = vpop.f32.mrf.mxu0 }
 0x391   : > { %v3191_v31 = vpop.f32.mrf.mxu1 }
 0x392   : > { %v5894_v53 = vpop.f32.mrf.mxu0  ;;  %v7989_v12 = vadd.f32 %v3191_v31, %v2984_v11 }
 0x393   : > { %v5691_v32 = vpop.f32.mrf.mxu1 }
 0x394   : > { %v7991_v22 = vpop.f32.mrf.mxu0 }
 0x395   : > { %v3196_v44 = vpop.f32.mrf.mxu1 }
 0x396   : > { %v5895_v18 = vpop.f32.mrf.mxu0  ;;  %v7995_v20 = vadd.f32 %v3196_v44, %v2985_v6 }
 0x397   : > { %v5694_v24 = vpop.f32.mrf.mxu1 }
 0x398   : > { %v7997_v52 = vpop.f32.mrf.mxu0 }
 0x399   : > { %v3199_v60 = vpop.f32.mrf.mxu1 }
 0x39a   : > { %v5898_v53 = vpop.f32.mrf.mxu0  ;;  %v8001_v11 = vadd.f32 %v3199_v60, %v2986_v61 }
 0x39b   : > { %v5695_v31 = vpop.f32.mrf.mxu1 }
 0x39c   : > { %v8003_v32 = vpop.f32.mrf.mxu0 }
 0x39d   : > { %v3204_v58 = vpop.f32.mrf.mxu1 }
 0x39e   : > { %v5899_v18 = vpop.f32.mrf.mxu0  ;;  %v8007_v6 = vadd.f32 %v3204_v58, %v2987_v0 }
 0x39f   : > { %v5698_v44 = vpop.f32.mrf.mxu1 }
 0x3a0   : > { %v8009_v24 = vpop.f32.mrf.mxu0 }
 0x3a1   : > { %v3207_v5 = vpop.f32.mrf.mxu1 }
 0x3a2   : > { %v5902_v53 = vpop.f32.mrf.mxu0  ;;  %v8013_v61 = vadd.f32 %v3207_v5, %v2988_v51 }
 0x3a3   : > { %v5699_v60 = vpop.f32.mrf.mxu1 }
 0x3a4   : > { %v8015_v31 = vpop.f32.mrf.mxu0 }
 0x3a5   : > { %v3212_v40 = vpop.f32.mrf.mxu1 }
 0x3a6   : > { %v5903_v18 = vpop.f32.mrf.mxu0  ;;  %v8019_v0 = vadd.f32 %v3212_v40, %v2989_v54 }
 0x3a7   : > { %v5702_v58 = vpop.f32.mrf.mxu1 }
 0x3a8   : > { %v8021_v44 = vpop.f32.mrf.mxu0 }
 0x3a9   : > { %8804 = vst [vmem:[#allocation34_spill] sm:$0xff] %v8021_v44  ;;  %v3215_v4 = vpop.f32.mrf.mxu1  ;;  %v8809_v44 = vld [vmem:[#allocation8_spill] sm:$0xff] }
 0x3aa   : > { %v5906_v53 = vpop.f32.mrf.mxu0  ;;  %v8025_v51 = vadd.f32 %v3215_v4, %v2990_v28  ;;  %v2992_v36 = vadd.f32 %v8809_v44, %v7868_v38 }
 0x3ab   : > { %v5703_v5 = vpop.f32.mrf.mxu1 }
 0x3ac   : > { %v8027_v60 = vpop.f32.mrf.mxu0 }
 0x3ad   : > { %8806 = vst [vmem:[#allocation21_spill] sm:$0xff] %v8027_v60  ;;  %v3220_v35 = vpop.f32.mrf.mxu1  ;;  %v8811_v60 = vld [vmem:[#allocation18_spill] sm:$0xff] }
 0x3ae   : > { %v5907_v18 = vpop.f32.mrf.mxu0  ;;  %v8031_v54 = vadd.f32 %v3220_v35, %v2991_v63  ;;  %v2993_v48 = vadd.f32 %v8811_v60, %v7875_v57 }
 0x3af   : > { %v5706_v40 = vpop.f32.mrf.mxu1 }
 0x3b0   : > { %v8033_v58 = vpop.f32.mrf.mxu0 }
 0x3b1   : > { %8808 = vst [vmem:[#allocation15_spill] sm:$0xff] %v8033_v58  ;;  %v3223_v9 = vpop.f32.mrf.mxu1  ;;  %v8813_v58 = vld [vmem:[#allocation51_spill] sm:$0xff] }
 0x3b2   : > { %v5910_v53 = vpop.f32.mrf.mxu0  ;;  %v8037_v28 = vadd.f32 %v3223_v9, %v2992_v36  ;;  %v2994_v38 = vadd.f32 %v8813_v58, %v7884_v14 }
 0x3b3   : > { %v5707_v4 = vpop.f32.mrf.mxu1 }
 0x3b4   : > { %v8039_v5 = vpop.f32.mrf.mxu0 }
 0x3b5   : > { %8810 = vst [vmem:[#allocation13_spill] sm:$0xff] %v8039_v5  ;;  %v3228_v3 = vpop.f32.mrf.mxu1  ;;  %v8815_v5 = vld [vmem:[#allocation33_spill] sm:$0xff] }
 0x3b6   : > { %v5911_v18 = vpop.f32.mrf.mxu0  ;;  %v8043_v63 = vadd.f32 %v3228_v3, %v2993_v48  ;;  %v2995_v57 = vadd.f32 %v8815_v5, %v7891_v47 }
 0x3b7   : > { %v5710_v35 = vpop.f32.mrf.mxu1 }
 0x3b8   : > { %v8045_v40 = vpop.f32.mrf.mxu0 }
 0x3b9   : > { %8812 = vst [vmem:[#allocation36_spill] sm:$0xff] %v8045_v40  ;;  %v3231_v44 = vpop.f32.mrf.mxu1  ;;  %v8817_v40 = vld [vmem:[#allocation37_spill] sm:$0xff] }
 0x3ba   : > { %v5914_v53 = vpop.f32.mrf.mxu0  ;;  %v8049_v36 = vadd.f32 %v3231_v44, %v2994_v38  ;;  %v2996_v14 = vadd.f32 %v8817_v40, %v7900_v43 }
 0x3bb   : > { %v5711_v9 = vpop.f32.mrf.mxu1 }
 0x3bc   : > { %v8051_v4 = vpop.f32.mrf.mxu0 }
 0x3bd   : > { %8814 = vst [vmem:[#allocation16_spill] sm:$0xff] %v8051_v4  ;;  %v3236_v60 = vpop.f32.mrf.mxu1  ;;  %v8819_v4 = vld [vmem:[#allocation48_spill] sm:$0xff] }
 0x3be   : > { %v5915_v18 = vpop.f32.mrf.mxu0  ;;  %v8055_v48 = vadd.f32 %v3236_v60, %v2995_v57  ;;  %v2997_v47 = vadd.f32 %v8819_v4, %v7907_v27 }
 0x3bf   : > { %v5714_v3 = vpop.f32.mrf.mxu1 }
 0x3c0   : > { %v8057_v35 = vpop.f32.mrf.mxu0 }
 0x3c1   : > { %8816 = vst [vmem:[#allocation25_spill] sm:$0xff] %v8057_v35  ;;  %v3239_v58 = vpop.f32.mrf.mxu1  ;;  %v8821_v35 = vld [vmem:[#allocation52_spill] sm:$0xff] }
 0x3c2   : > { %v5918_v53 = vpop.f32.mrf.mxu0  ;;  %v8061_v38 = vadd.f32 %v3239_v58, %v2996_v14  ;;  %v2998_v43 = vadd.f32 %v8821_v35, %v7916_v50 }
 0x3c3   : > { %v5715_v44 = vpop.f32.mrf.mxu1 }
 0x3c4   : > { %v8063_v9 = vpop.f32.mrf.mxu0 }
 0x3c5   : > { %8818 = vst [vmem:[#allocation28_spill] sm:$0xff] %v8063_v9  ;;  %v3244_v5 = vpop.f32.mrf.mxu1  ;;  %v8823_v9 = vld [vmem:[#allocation55_spill] sm:$0xff] }
 0x3c6   : > { %v5919_v18 = vpop.f32.mrf.mxu0  ;;  %v8067_v57 = vadd.f32 %v3244_v5, %v2997_v47  ;;  %v2999_v27 = vadd.f32 %v8823_v9, %v7923_v42 }
 0x3c7   : > { %v5718_v60 = vpop.f32.mrf.mxu1 }
 0x3c8   : > { %v8069_v3 = vpop.f32.mrf.mxu0 }
 0x3c9   : > { %8820 = vst [vmem:[#allocation30_spill] sm:$0xff] %v8069_v3  ;;  %v3247_v40 = vpop.f32.mrf.mxu1  ;;  %v8826_v3 = vld [vmem:[#allocation40_spill] sm:$0xff] }
 0x3ca   : > { %v5922_v53 = vpop.f32.mrf.mxu0  ;;  %v8073_v14 = vadd.f32 %v3247_v40, %v2998_v43  ;;  %v3000_v50 = vadd.f32 %v8826_v3, %v7932_v17 }
 0x3cb   : > { %v5719_v58 = vpop.f32.mrf.mxu1 }
 0x3cc   : > { %v8075_v44 = vpop.f32.mrf.mxu0 }
 0x3cd   : > { %8822 = vst [vmem:[#allocation39_spill] sm:$0xff] %v8075_v44  ;;  %v3252_v4 = vpop.f32.mrf.mxu1  ;;  %v8827_v44 = vld [vmem:[#allocation56_spill] sm:$0xff] }
 0x3ce   : > { %v5923_v18 = vpop.f32.mrf.mxu0  ;;  %v8079_v47 = vadd.f32 %v3252_v4, %v2999_v27  ;;  %v3001_v42 = vadd.f32 %v8827_v44, %v7937_v25  ;;  %v8100_v25 = vld [vmem:[%s8457_s4] ss:$0 sm:$0xff] }
 0x3cf   : > { %v5722_v5 = vpop.f32.mrf.mxu1 }
 0x3d0   : > { %8824 = vst [vmem:[#allocation12_spill] sm:$0xff] %v8079_v47  ;;  %v8081_v60 = vpop.f32.mrf.mxu0 }
 0x3d1   : > { %8825 = vst [vmem:[#allocation32_spill] sm:$0xff] %v8081_v60  ;;  %v3255_v35 = vpop.f32.mrf.mxu1 }
 0x3d2   : > { %v5926_v53 = vpop.f32.mrf.mxu0  ;;  %v8085_v43 = vadd.f32 %v3255_v35, %v3000_v50  ;;  %v3555_v50 = vadd.f32 %v7746_v1, %v7945_v41 }
 0x3d3   : > { %v5723_v40 = vpop.f32.mrf.mxu1 }
 0x3d4   : > { %v8087_v58 = vpop.f32.mrf.mxu0 }
 0x3d5   : > { %v3260_v9 = vpop.f32.mrf.mxu1 }
 0x3d6   : > { %v5927_v18 = vpop.f32.mrf.mxu0  ;;  %v8091_v27 = vadd.f32 %v3260_v9, %v3001_v42 }
 0x3d7   : > { %v5726_v4 = vpop.f32.mrf.mxu1 }
 0x3d8   : > { %v8093_v5 = vpop.f32.mrf.mxu0 }
 0x3d9   : > { %v3263_v60 = vpop.f32.mrf.mxu1 }
 0x3da   : > { %v5930_v47 = vpop.f32.mrf.mxu0  ;;  %v3556_v60 = vadd.f32 %v7756_v2, %v7953_v59 }
 0x3db   : > { %v5727_v17 = vpop.f32.mrf.mxu1 }
 0x3dc   : > { %v4105_v3 = vpop.f32.mrf.mxu0  ;;  %v3557_v17 = vadd.f32 %v7765_v19, %v7959_v16 }
 0x3dd   : > { %v3717_v35 = vpop.f32.mrf.mxu1 }
 0x3de   : > { %v5931_v53 = vpop.f32.mrf.mxu0  ;;  %v3819_v40 = vadd.f32 %v3717_v35, %v3555_v50 }
 0x3df   : > { %v5814_v44 = vpop.f32.mrf.mxu1  ;;  %v3558_v53 = vadd.f32 %v7772_v56, %v7965_v7  ;;  %v3559_v56 = vadd.f32 %v7781_v23, %v7971_v55 }
 0x3e0   : > { %v4108_v42 = vadd.f32 %v7949_v21, %v3819_v40  ;;  %v6105_v40 = vld [vmem:[%s8459_s6 + $0x4] ss:$8 sps:$4 sm:$0xff]  }
 0x3e1   : > { %v3720_v47 = vpop.f32.mrf.mxu1  ;;  %4941 = vmatprep.mubr.msk.bf16.mxu1 %vm4446_vm2, %v6105_v40 }
 0x3e2   : > { %v8106_v9 = vadd.f32 %v8100_v25, %v4108_v42  ;;  %v3820_v18 = vadd.f32 %v3720_v47, %v3556_v60 }
 0x3e3   : > { %v5815_v1 = vpop.f32.mrf.mxu1 }
 0x3e4   : > { %v4165_v41 = vmax.f32 %v8106_v9, 0.0  ;;  %v4109_v4 = vadd.f32 %v7955_v49, %v3820_v18 }
 0x3e5   : > { %v3725_v3 = vpop.f32.mrf.mxu1 }
 0x3e6   : > { %4218 = vst [vmem:[#allocation3] sm:$0xff] %v4165_v41  ;;  %v4141_v21 = vadd.f32 %v8100_v25, %v4109_v4  ;;  %v3821_v50 = vadd.f32 %v3725_v3, %v3557_v17  ;;  %v3560_v4 = vadd.f32 %v7788_v15, %v7977_v8 }
 0x3e7   : > { %v5818_v35 = vpop.f32.mrf.mxu1 }
 0x3e8   : > { %v4166_v2 = vmax.f32 %v4141_v21, 0.0  ;;  %v4110_v59 = vadd.f32 %v7961_v29, %v3821_v50  ;;  %v3561_v50 = vadd.f32 %v7797_v13, %v7983_v34 }
 0x3e9   : > { %v3728_v49 = vpop.f32.mrf.mxu1 }
 0x3ea   : > { %4219 = vst [vmem:[#allocation3 + $0x8] sm:$0xff] %v4166_v2  ;;  %v8120_v19 = vadd.f32 %v8100_v25, %v4110_v59  ;;  %v3822_v16 = vadd.f32 %v3728_v49, %v3558_v53 }
 0x3eb   : > { %v5819_v44 = vpop.f32.mrf.mxu1 }
 0x3ec   : > { %v4167_v42 = vmax.f32 %v8120_v19, 0.0  ;;  %v4111_v29 = vadd.f32 %v7967_v45, %v3822_v16 }
 0x3ed   : > { %v3733_v7 = vpop.f32.mrf.mxu1 }
 0x3ee   : > { %4220 = vst [vmem:[#allocation3 + $0x10] sm:$0xff] %v4167_v42  ;;  %v8130_v60 = vadd.f32 %v8100_v25, %v4111_v29  ;;  %v3823_v47 = vadd.f32 %v3733_v7, %v3559_v56 }
 0x3ef   : > { %v5822_v9 = vpop.f32.mrf.mxu1 }
 0x3f0   : > { %v4168_v18 = vmax.f32 %v8130_v60, 0.0  ;;  %v4112_v1 = vadd.f32 %v7973_v30, %v3823_v47 }
 0x3f1   : > { %v3736_v45 = vpop.f32.mrf.mxu1  ;;  %v4243_v13 = vld [vmem:[#allocation3 + $0x1] sm:$0xff] }
 0x3f2   : > { %4221 = vst [vmem:[#allocation3 + $0x18] sm:$0xff] %v4168_v18  ;;  %v8137_v23 = vadd.f32 %v8100_v25, %v4112_v1  ;;  %v3824_v55 = vadd.f32 %v3736_v45, %v3560_v4  ;;  %v4268_v4 = vmax.f32 %v4165_v41, %v4243_v13 }
 0x3f3   : > { %v5823_v17 = vpop.f32.mrf.mxu1 }
 0x3f4   : > { %v4169_v3 = vmax.f32 %v8137_v23, 0.0  ;;  %v4113_v21 = vadd.f32 %v7979_v26, %v3824_v55  ;;  %v3562_v26 = vadd.f32 %v7804_v10, %v7989_v12  ;;  %v3563_v12 = vadd.f32 %v7813_v39, %v7995_v20 }
 0x3f5   : > { %v3741_v35 = vpop.f32.mrf.mxu1  ;;  %v4293_v8 = vld [vmem:[#allocation3 + $0xe] sm:$0xff] }
 0x3f6   : > { %4222 = vst [vmem:[#allocation3 + $0x20] sm:$0xff] %v4169_v3  ;;  %v8146_v15 = vadd.f32 %v8100_v25, %v4113_v21  ;;  %v3825_v30 = vadd.f32 %v3741_v35, %v3561_v50  ;;  %v4318_v59 = vld [vmem:[#allocation3 + $0xf] sm:$0xff] }
 0x3f7   : > { %v5826_v53 = vpop.f32.mrf.mxu1  ;;  %v4244_v40 = vld [vmem:[#allocation3 + $0x9] sm:$0xff]  ;;  %v4343_v56 = vmax.f32 %v4293_v8, %v4318_v59  ;;  %v3564_v8 = vadd.f32 %v7820_v37, %v8001_v11 }
 0x3f8   : > { %v4170_v49 = vmax.f32 %v8146_v15, 0.0  ;;  %v4114_v16 = vadd.f32 %v7985_v33, %v3825_v30  ;;  %v4269_v47 = vmax.f32 %v4166_v2, %v4244_v40 }
 0x3f9   : > { %v3744_v34 = vpop.f32.mrf.mxu1  ;;  %v4294_v44 = vld [vmem:[#allocation3 + $0x16] sm:$0xff]  ;;  %v8163_v17 = vmax.f32 %v4268_v4, %v4343_v56 }
 0x3fa   : > { %v4319_v29 = vld [vmem:[#allocation3 + $0x17] sm:$0xff]  ;;  %4223 = vst [vmem:[#allocation3 + $0x28] sm:$0xff] %v4170_v49  ;;  %v8155_v7 = vadd.f32 %v8100_v25, %v4114_v16  ;;  %v3826_v60 = vadd.f32 %v3744_v34, %v3562_v26 }
 0x3fb   : > { %v4344_v9 = vmax.f32 %v4294_v44, %v4319_v29  ;;  %v5827_v1 = vpop.f32.mrf.mxu1  ;;  %v4245_v59 = vld [vmem:[#allocation3 + $0x11] sm:$0xff] }
 0x3fc   : > { %v4171_v33 = vmax.f32 %v8155_v7, 0.0  ;;  %v4115_v10 = vadd.f32 %v7991_v22, %v3826_v60  ;;  %v3565_v60 = vadd.f32 %v7829_v46, %v8007_v6 }
 0x3fd   : > { %v8161_v45 = vmax.f32 %v4269_v47, %v4344_v9  ;;  %v3749_v55 = vpop.f32.mrf.mxu1  ;;  %v4295_v41 = vld [vmem:[#allocation3 + $0x1e] sm:$0xff] }
 0x3fe   : > { %4224 = vst [vmem:[#allocation3 + $0x30] sm:$0xff] %v4171_v33  ;;  %v8168_v2 = vadd.f32 %v8100_v25, %v4115_v10  ;;  %v3827_v21 = vadd.f32 %v3749_v55, %v3563_v12  ;;  %v4320_v50 = vld [vmem:[#allocation3 + $0x1f] sm:$0xff]  ;;  %v3566_v55 = vadd.f32 %v7836_v62, %v8013_v61 }
 0x3ff   : > { %v5830_v35 = vpop.f32.mrf.mxu1  ;;  %v4246_v30 = vld [vmem:[#allocation3 + $0x19] sm:$0xff]  ;;  %v4400_v22 = vpack.c.bf16 %v8161_v45, %v8163_v17  ;;  %v4345_v26 = vmax.f32 %v4295_v41, %v4320_v50  ;;  %v6106_v17 = vld [vmem:[%s8459_s6 + $0x14] ss:$8 sps:$4 sm:$0xff]  }
 0x400   : > { %v4172_v39 = vmax.f32 %v8168_v2, 0.0  ;;  %v4116_v20 = vadd.f32 %v7997_v52, %v3827_v21  ;;  %v4271_v44 = vmax.f32 %v4168_v18, %v4246_v30  ;;  %v4270_v52 = vmax.f32 %v4167_v42, %v4245_v59  ;;  %v6103_v45 = vld [vmem:[%s8459_s6] ss:$8 sps:$4 sm:$0xff]  }
 0x401   : > { %v3752_v53 = vpop.f32.mrf.mxu1  ;;  %v4296_v40 = vld [vmem:[#allocation3 + $0x26] sm:$0xff] }
 0x402   : > { %v4321_v16 = vld [vmem:[#allocation3 + $0x27] sm:$0xff]  ;;  %4225 = vst [vmem:[#allocation3 + $0x38] sm:$0xff] %v4172_v39  ;;  %v8179_v13 = vadd.f32 %v8100_v25, %v4116_v20  ;;  %v3828_v34 = vadd.f32 %v3752_v53, %v3564_v8  ;;  %v8189_v1 = vmax.f32 %v4270_v52, %v4345_v26 }
 0x403   : > { %v4346_v29 = vmax.f32 %v4296_v40, %v4321_v16  ;;  %v5831_v56 = vpop.f32.mrf.mxu1  ;;  %v4247_v21 = vld [vmem:[#allocation3 + $0x21] sm:$0xff] }
 0x404   : > { %v4173_v37 = vmax.f32 %v8179_v13, 0.0  ;;  %v4117_v11 = vadd.f32 %v8003_v32, %v3828_v34  ;;  %v4272_v62 = vmax.f32 %v4169_v3, %v4247_v21  ;;  %v8828_v16 = vld [vmem:[#allocation41_spill] sm:$0xff] }
 0x405   : > { %v8187_v47 = vmax.f32 %v4271_v44, %v4346_v29  ;;  %v3757_v9 = vpop.f32.mrf.mxu1  ;;  %v4297_v42 = vld [vmem:[#allocation3 + $0x2e] sm:$0xff]  ;;  %v3567_v26 = vadd.f32 %v8828_v16, %v8019_v0 }
 0x406   : > { %4226 = vst [vmem:[#allocation3 + $0x40] sm:$0xff] %v4173_v37  ;;  %v8194_v18 = vadd.f32 %v8100_v25, %v4117_v11  ;;  %v3829_v19 = vadd.f32 %v3757_v9, %v3565_v60  ;;  %v4322_v4 = vld [vmem:[#allocation3 + $0x2f] sm:$0xff]  ;;  %v8830_v9 = vld [vmem:[#allocation7_spill] sm:$0xff] }
 0x407   : > { %v5834_v10 = vpop.f32.mrf.mxu1  ;;  %v4248_v12 = vld [vmem:[#allocation3 + $0x29] sm:$0xff]  ;;  %v4401_v32 = vpack.c.bf16 %v8187_v47, %v8189_v1  ;;  %v4347_v30 = vmax.f32 %v4297_v42, %v4322_v4  ;;  %v6109_v47 = vld [vmem:[%s8459_s6 + $0x24] ss:$8 sps:$4 sm:$0xff]  }
 0x408   : > { %v4174_v46 = vmax.f32 %v8194_v18, 0.0  ;;  %v4118_v6 = vadd.f32 %v8009_v24, %v3829_v19  ;;  %v4273_v59 = vmax.f32 %v4170_v49, %v4248_v12  ;;  %v8829_v11 = vld [vmem:[#allocation34_spill] sm:$0xff]  ;;  %v3568_v19 = vadd.f32 %v8830_v9, %v8025_v51  ;;  %v4399_v1 = vld [vmem:[%s8459_s6 + $0x30] sm:$0x11] }
 0x409   : > { %v3760_v41 = vpop.f32.mrf.mxu1  ;;  %v4298_v50 = vld [vmem:[#allocation3 + $0x36] sm:$0xff]  ;;  %v8217_v29 = vmax.f32 %v4272_v62, %v4347_v30 }
 0x40a   : > { %v4323_v35 = vld [vmem:[#allocation3 + $0x37] sm:$0xff]  ;;  %4227 = vst [vmem:[#allocation3 + $0x48] sm:$0xff] %v4174_v46  ;;  %v8205_v20 = vadd.f32 %v8100_v25, %v4118_v6  ;;  %v3830_v8 = vadd.f32 %v3760_v41, %v3566_v55 }
 0x40b   : > { %v4348_v53 = vmax.f32 %v4298_v50, %v4323_v35  ;;  %v5835_v24 = vpop.f32.mrf.mxu1  ;;  %v4249_v42 = vld [vmem:[#allocation3 + $0x31] sm:$0xff] }
 0x40c   : > { %v4175_v61 = vmax.f32 %v8205_v20, 0.0  ;;  %v4119_v40 = vadd.f32 %v8015_v31, %v3830_v8  ;;  %v4274_v51 = vmax.f32 %v4171_v33, %v4249_v42  ;;  %v8831_v8 = vld [vmem:[#allocation21_spill] sm:$0xff] }
 0x40d   : > { %v8215_v34 = vmax.f32 %v4273_v59, %v4348_v53  ;;  %v3765_v44 = vpop.f32.mrf.mxu1  ;;  %v4299_v3 = vld [vmem:[#allocation3 + $0x3e] sm:$0xff] }
 0x40e   : > { %4228 = vst [vmem:[#allocation3 + $0x50] sm:$0xff] %v4175_v61  ;;  %v8222_v15 = vadd.f32 %v8100_v25, %v4119_v40  ;;  %v3831_v23 = vadd.f32 %v3765_v44, %v3567_v26  ;;  %v4324_v49 = vld [vmem:[#allocation3 + $0x3f] sm:$0xff] }
 0x40f   : > { %v5838_v56 = vpop.f32.mrf.mxu1  ;;  %v4250_v52 = vld [vmem:[#allocation3 + $0x39] sm:$0xff]  ;;  %v4402_v31 = vpack.c.bf16 %v8215_v34, %v8217_v29  ;;  %v4349_v6 = vmax.f32 %v4299_v3, %v4324_v49 }
 0x410   : > { %v4176_v0 = vmax.f32 %v8222_v15, 0.0  ;;  %v4120_v60 = vadd.f32 %v8829_v11, %v3831_v23  ;;  %v4275_v41 = vmax.f32 %v4172_v39, %v4250_v52  ;;  %v8832_v53 = vld [vmem:[#allocation24_spill] sm:$0xff]  ;;  %v8833_v3 = vld [vmem:[#allocation15_spill] sm:$0xff]  ;;  %v8834_v56 = vld [vmem:[#allocation5_spill] sm:$0xff] }
 0x411   : > { %v3768_v4 = vpop.f32.mrf.mxu1  ;;  %v4300_v10 = vld [vmem:[#allocation3 + $0x46] sm:$0xff]  ;;  %v3569_v24 = vadd.f32 %v8832_v53, %v8031_v54  ;;  %v8245_v16 = vmax.f32 %v4274_v51, %v4349_v6  ;;  %v3570_v52 = vadd.f32 %v8834_v56, %v8037_v28  ;;  %v8836_v51 = vld [vmem:[#allocation10_spill] sm:$0xff] }
 0x412   : > { %v4325_v12 = vld [vmem:[#allocation3 + $0x47] sm:$0xff]  ;;  %4229 = vst [vmem:[#allocation3 + $0x58] sm:$0xff] %v4176_v0  ;;  %v8233_v55 = vadd.f32 %v8100_v25, %v4120_v60  ;;  %v3832_v21 = vadd.f32 %v3768_v4, %v3568_v19 }
 0x413   : > { %v4350_v50 = vmax.f32 %v4300_v10, %v4325_v12  ;;  %v5839_v35 = vpop.f32.mrf.mxu1  ;;  %v4251_v11 = vld [vmem:[#allocation3 + $0x41] sm:$0xff] }
 0x414   : > { %v4177_v30 = vmax.f32 %v8233_v55, 0.0  ;;  %v4121_v59 = vadd.f32 %v8831_v8, %v3832_v21  ;;  %v4276_v28 = vmax.f32 %v4173_v37, %v4251_v11  ;;  %v3571_v8 = vadd.f32 %v8836_v51, %v8043_v63 }
 0x415   : > { %v8243_v62 = vmax.f32 %v4275_v41, %v4350_v50  ;;  %v3773_v40 = vpop.f32.mrf.mxu1  ;;  %v4301_v33 = vld [vmem:[#allocation3 + $0x4e] sm:$0xff] }
 0x416   : > { %4230 = vst [vmem:[#allocation3 + $0x60] sm:$0xff] %v4177_v30  ;;  %v8250_v2 = vadd.f32 %v8100_v25, %v4121_v59  ;;  %v3833_v7 = vadd.f32 %v3773_v40, %v3569_v24  ;;  %v4326_v39 = vld [vmem:[#allocation3 + $0x4f] sm:$0xff] }
 0x417   : > { %v5842_v26 = vpop.f32.mrf.mxu1  ;;  %v4252_v44 = vld [vmem:[#allocation3 + $0x49] sm:$0xff]  ;;  %v4403_v23 = vpack.c.bf16 %v8243_v62, %v8245_v16  ;;  %v4351_v42 = vmax.f32 %v4301_v33, %v4326_v39  ;;  %v8837_v39 = vld [vmem:[#allocation36_spill] sm:$0xff] }
 0x418   : > { %v4178_v54 = vmax.f32 %v8250_v2, 0.0  ;;  %v4122_v49 = vadd.f32 %v8833_v3, %v3833_v7  ;;  %v4277_v12 = vmax.f32 %v4174_v46, %v4252_v44  ;;  %v8835_v50 = vld [vmem:[#allocation13_spill] sm:$0xff]  ;;  %v8838_v44 = vld [vmem:[#allocation11_spill] sm:$0xff] }
 0x419   : > { %v3776_v60 = vpop.f32.mrf.mxu1  ;;  %v4302_v9 = vld [vmem:[#allocation3 + $0x56] sm:$0xff]  ;;  %v8273_v24 = vmax.f32 %v4276_v28, %v4351_v42  ;;  %v3572_v3 = vadd.f32 %v8838_v44, %v8049_v36 }
 0x41a   : > { %v4327_v19 = vld [vmem:[#allocation3 + $0x57] sm:$0xff]  ;;  %4231 = vst [vmem:[#allocation3 + $0x68] sm:$0xff] %v4178_v54  ;;  %v8261_v4 = vadd.f32 %v8100_v25, %v4122_v49  ;;  %v3834_v10 = vadd.f32 %v3776_v60, %v3570_v52 }
 0x41b   : > { %v4352_v6 = vmax.f32 %v4302_v9, %v4327_v19  ;;  %v5843_v21 = vpop.f32.mrf.mxu1  ;;  %v4253_v49 = vld [vmem:[#allocation3 + $0x51] sm:$0xff] }
 0x41c   : > { %v4179_v41 = vmax.f32 %v8261_v4, 0.0  ;;  %v4123_v35 = vadd.f32 %v8835_v50, %v3834_v10  ;;  %v4278_v36 = vmax.f32 %v4175_v61, %v4253_v49  ;;  %v8839_v21 = vld [vmem:[#allocation16_spill] sm:$0xff]  ;;  %v8840_v50 = vld [vmem:[#allocation27_spill] sm:$0xff] }
 0x41d   : > { %v8271_v59 = vmax.f32 %v4277_v12, %v4352_v6  ;;  %v3781_v53 = vpop.f32.mrf.mxu1  ;;  %v4303_v37 = vld [vmem:[#allocation3 + $0x5e] sm:$0xff] }
 0x41e   : > { %4232 = vst [vmem:[#allocation3 + $0x70] sm:$0xff] %v4179_v41  ;;  %v8278_v18 = vadd.f32 %v8100_v25, %v4123_v35  ;;  %v3835_v13 = vadd.f32 %v3781_v53, %v3571_v8  ;;  %v4328_v46 = vld [vmem:[#allocation3 + $0x5f] sm:$0xff]  ;;  %v3573_v35 = vadd.f32 %v8840_v50, %v8055_v48 }
 0x41f   : > { %v5846_v40 = vpop.f32.mrf.mxu1  ;;  %v4254_v7 = vld [vmem:[#allocation3 + $0x59] sm:$0xff]  ;;  %v4404_v33 = vpack.c.bf16 %v8271_v59, %v8273_v24  ;;  %v4353_v60 = vmax.f32 %v4303_v37, %v4328_v46  ;;  %v4341_v59 = vld [vmem:[#allocation3 + $0xc7] sm:$0xff] }
 0x420   : > { %v4180_v63 = vmax.f32 %v8278_v18, 0.0  ;;  %v4124_v26 = vadd.f32 %v8837_v39, %v3835_v13  ;;  %v4279_v42 = vmax.f32 %v4176_v0, %v4254_v7  ;;  %v8841_v40 = vld [vmem:[#allocation25_spill] sm:$0xff]  ;;  %v8842_v39 = vld [vmem:[#allocation20_spill] sm:$0xff] }
 0x421   : > { %v3784_v56 = vpop.f32.mrf.mxu1  ;;  %v4304_v52 = vld [vmem:[#allocation3 + $0x66] sm:$0xff]  ;;  %v8301_v53 = vmax.f32 %v4278_v36, %v4353_v60 }
 0x422   : > { %v4329_v11 = vld [vmem:[#allocation3 + $0x67] sm:$0xff]  ;;  %4233 = vst [vmem:[#allocation3 + $0x78] sm:$0xff] %v4180_v63  ;;  %v8289_v9 = vadd.f32 %v8100_v25, %v4124_v26  ;;  %v3836_v19 = vadd.f32 %v3784_v56, %v3572_v3  ;;  %v3574_v26 = vadd.f32 %v8842_v39, %v8061_v38  ;;  %v8846_v39 = vld [vmem:[#allocation46_spill] sm:$0xff] }
 0x423   : > { %v4354_v10 = vmax.f32 %v4304_v52, %v4329_v11  ;;  %v5847_v12 = vpop.f32.mrf.mxu1  ;;  %v4255_v44 = vld [vmem:[#allocation3 + $0x61] sm:$0xff] }
 0x424   : > { %v4181_v6 = vmax.f32 %v8289_v9, 0.0  ;;  %v4125_v28 = vadd.f32 %v8839_v21, %v3836_v19  ;;  %v4280_v38 = vmax.f32 %v4177_v30, %v4255_v44  ;;  %v8843_v36 = vld [vmem:[#allocation28_spill] sm:$0xff] }
 0x425   : > { %v8299_v51 = vmax.f32 %v4279_v42, %v4354_v10  ;;  %v3789_v8 = vpop.f32.mrf.mxu1  ;;  %v4305_v61 = vld [vmem:[#allocation3 + $0x6e] sm:$0xff] }
 0x426   : > { %4234 = vst [vmem:[#allocation3 + $0x80] sm:$0xff] %v4181_v6  ;;  %v8306_v15 = vadd.f32 %v8100_v25, %v4125_v28  ;;  %v3837_v20 = vadd.f32 %v3789_v8, %v3573_v35  ;;  %v4330_v0 = vld [vmem:[#allocation3 + $0x6f] sm:$0xff] }
 0x427   : > { %v5850_v13 = vpop.f32.mrf.mxu1  ;;  %v4256_v37 = vld [vmem:[#allocation3 + $0x69] sm:$0xff]  ;;  %v4405_v46 = vpack.c.bf16 %v8299_v51, %v8301_v53  ;;  %v4355_v52 = vmax.f32 %v4305_v61, %v4330_v0 }
 0x428   : > { %v4182_v48 = vmax.f32 %v8306_v15, 0.0  ;;  %v4126_v7 = vadd.f32 %v8841_v40, %v3837_v20  ;;  %v4281_v19 = vmax.f32 %v4178_v54, %v4256_v37  ;;  %v8844_v28 = vld [vmem:[#allocation42_spill] sm:$0xff] }
 0x429   : > { %v3792_v3 = vpop.f32.mrf.mxu1  ;;  %v4306_v49 = vld [vmem:[#allocation3 + $0x76] sm:$0xff]  ;;  %v3575_v50 = vadd.f32 %v8844_v28, %v8067_v57  ;;  %v4380_v0 = vmax.f32 %v4280_v38, %v4355_v52 }
 0x42a   : > { %v4331_v56 = vld [vmem:[#allocation3 + $0x77] sm:$0xff]  ;;  %4235 = vst [vmem:[#allocation3 + $0x88] sm:$0xff] %v4182_v48  ;;  %v8317_v11 = vadd.f32 %v8100_v25, %v4126_v7  ;;  %v3838_v60 = vadd.f32 %v3792_v3, %v3574_v26  ;;  %v3576_v26 = vadd.f32 %v8846_v39, %v8073_v14  ;;  %v8847_v14 = vld [vmem:[#allocation12_spill] sm:$0xff] }
 0x42b   : > { %v4356_v42 = vmax.f32 %v4306_v49, %v4331_v56  ;;  %v5851_v10 = vpop.f32.mrf.mxu1  ;;  %v4257_v30 = vld [vmem:[#allocation3 + $0x71] sm:$0xff] }
 0x42c   : > { %v4183_v12 = vmax.f32 %v8317_v11, 0.0  ;;  %v4127_v21 = vadd.f32 %v8843_v36, %v3838_v60  ;;  %v8845_v7 = vld [vmem:[#allocation30_spill] sm:$0xff]  ;;  %v4282_v49 = vmax.f32 %v4179_v41, %v4257_v30  ;;  %v8848_v36 = vld [vmem:[#allocation45_spill] sm:$0xff]  ;;  %v8849_v41 = vld [vmem:[#allocation39_spill] sm:$0xff] }
 0x42d   : > { %v4381_v35 = vmax.f32 %v4281_v19, %v4356_v42  ;;  %v3797_v8 = vpop.f32.mrf.mxu1  ;;  %v4307_v20 = vld [vmem:[#allocation3 + $0x7e] sm:$0xff] }
 0x42e   : > { %v4332_v61 = vld [vmem:[#allocation3 + $0x7f] sm:$0xff]  ;;  %4236 = vst [vmem:[#allocation3 + $0x90] sm:$0xff] %v4183_v12  ;;  %v8330_v2 = vadd.f32 %v8100_v25, %v4127_v21  ;;  %v3839_v55 = vadd.f32 %v3797_v8, %v3575_v50  ;;  %v3577_v21 = vadd.f32 %v8848_v36, %v8847_v14 }
 0x42f   : > { %v5854_v54 = vpop.f32.mrf.mxu1  ;;  %v4258_v13 = vld [vmem:[#allocation3 + $0x79] sm:$0xff]  ;;  %v4406_v37 = vpack.c.bf16 %v4381_v35, %v4380_v0  ;;  %v4357_v44 = vmax.f32 %v4307_v20, %v4332_v61 }
 0x430   : > { %v4184_v40 = vmax.f32 %v8330_v2, 0.0  ;;  %v4128_v57 = vadd.f32 %v8845_v7, %v3839_v55  ;;  %v4283_v42 = vmax.f32 %v4180_v63, %v4258_v13  ;;  %v8850_v13 = vld [vmem:[#allocation32_spill] sm:$0xff]  ;;  %v4317_v2 = vld [vmem:[#allocation3 + $0xce] sm:$0xf] }
 0x431   : > { %v3800_v3 = vpop.f32.mrf.mxu1  ;;  %v4308_v56 = vld [vmem:[#allocation3 + $0x86] sm:$0xff]  ;;  %v4382_v50 = vmax.f32 %v4282_v49, %v4357_v44 }
 0x432   : > { %v4333_v52 = vld [vmem:[#allocation3 + $0x87] sm:$0xff]  ;;  %4237 = vst [vmem:[#allocation3 + $0x98] sm:$0xff] %v4184_v40  ;;  %v8341_v60 = vadd.f32 %v8100_v25, %v4128_v57  ;;  %v3840_v19 = vadd.f32 %v3800_v3, %v3576_v26  ;;  %v8852_v3 = vmov 0  }
 0x433   : > { %v4358_v10 = vmax.f32 %v4308_v56, %v4333_v52  ;;  %v5855_v38 = vpop.f32.mrf.mxu1  ;;  %v8851_v57 = vld [vmem:[#allocation9_spill] sm:$0xff] }
 0x434   : > { %v4185_v4 = vmax.f32 %v8341_v60, 0.0  ;;  %v4129_v28 = vadd.f32 %v8849_v41, %v3840_v19  ;;  %v3578_v39 = vadd.f32 %v8851_v57, %v8085_v43  ;;  %v4259_v26 = vld [vmem:[#allocation3 + $0x81] sm:$0xff]  ;;  %v8853_v41 = vld [vmem:[#allocation6_spill] sm:$0xff] }
 0x435   : > { %v4383_v35 = vmax.f32 %v4283_v42, %v4358_v10  ;;  %v3805_v8 = vpop.f32.mrf.mxu1  ;;  %v4309_v61 = vld [vmem:[#allocation3 + $0x8e] sm:$0xff]  ;;  %v4284_v43 = vmax.f32 %v4181_v6, %v4259_v26 }
 0x436   : > { %4238 = vst [vmem:[#allocation3 + $0xa0] sm:$0xff] %v4185_v4  ;;  %v8352_v20 = vadd.f32 %v8100_v25, %v4129_v28  ;;  %v3841_v18 = vadd.f32 %v3805_v8, %v3577_v21  ;;  %v4334_v0 = vld [vmem:[#allocation3 + $0x8f] sm:$0xff]  ;;  %v3579_v28 = vadd.f32 %v8853_v41, %v8091_v27 }
 0x437   : > { %v4407_v63 = vpack.c.bf16 %v4383_v35, %v4382_v50  ;;  %v5858_v55 = vpop.f32.mrf.mxu1  ;;  %v4260_v30 = vld [vmem:[#allocation3 + $0x89] sm:$0xff]  ;;  %v4359_v52 = vmax.f32 %v4309_v61, %v4334_v0 }
 0x438   : > { %v4186_v54 = vmax.f32 %v8352_v20, 0.0  ;;  %v4130_v7 = vadd.f32 %v8850_v13, %v3841_v18  ;;  %v4285_v10 = vmax.f32 %v4182_v48, %v4260_v30 }
 0x439   : > { %4464 = vmatpush1.bf16.msra.mxu1 %v4407_v63  ;;  %v3808_v44 = vpop.f32.mrf.mxu1  ;;  %v4310_v49 = vld [vmem:[#allocation3 + $0x96] sm:$0xff]  ;;  %v8375_v8 = vmax.f32 %v4284_v43, %v4359_v52 }
 0x43a   : > { %4465 = vmatprep.subr.bf16.mxu1 %v8852_v3  ;;  %v4335_v56 = vld [vmem:[#allocation3 + $0x97] sm:$0xff]  ;;  %4239 = vst [vmem:[#allocation3 + $0xa8] sm:$0xff] %v4186_v54  ;;  %v8362_v19 = vadd.f32 %v8100_v25, %v4130_v7  ;;  %v3842_v42 = vadd.f32 %v3808_v44, %v3578_v39 }
 0x43b   : > { %v4360_v38 = vmax.f32 %v4310_v49, %v4335_v56  ;;  %v5859_v14 = vpop.f32.mrf.mxu1  ;;  %v4316_v56 = vld [vmem:[#allocation3 + $0xc6] sm:$0xff] }
 0x43c   : > { %v4187_v36 = vmax.f32 %v8362_v19, 0.0  ;;  %v4131_v21 = vadd.f32 %v8087_v58, %v3842_v42 }
 0x43d   : > { %4466 = vmatpush1.bf16.msra.mxu1 %v4406_v37  ;;  %v8372_v50 = vmax.f32 %v4285_v10, %v4360_v38  ;;  %v3813_v35 = vpop.f32.mrf.mxu1  ;;  %v4311_v15 = vld [vmem:[#allocation3 + $0x9e] sm:$0xff]  ;;  %v4261_v37 = vld [vmem:[#allocation3 + $0x91] sm:$0xff] }
 0x43e   : > { %4467 = vmatprep.subr.bf16.mxu1 %v8852_v3  ;;  %v4336_v48 = vld [vmem:[#allocation3 + $0x9f] sm:$0xff]  ;;  %4240 = vst [vmem:[#allocation3 + $0xb0] sm:$0xff] %v4187_v36  ;;  %v4163_v9 = vadd.f32 %v8100_v25, %v4131_v21  ;;  %v3843_v6 = vadd.f32 %v3813_v35, %v3579_v28  ;;  %v4286_v57 = vmax.f32 %v4183_v12, %v4261_v37 }
 0x43f   : > { %v5862_v58 = vpop.f32.mrf.mxu1  ;;  %v4262_v18 = vld [vmem:[#allocation3 + $0x99] sm:$0xff]  ;;  %v4408_v27 = vpack.c.bf16 %v8372_v50, %v8375_v8  ;;  %v4361_v0 = vmax.f32 %v4311_v15, %v4336_v48 }
 0x440   : > { %v4188_v63 = vmax.f32 %v4163_v9, 0.0  ;;  %v4132_v61 = vadd.f32 %v8093_v5, %v3843_v6  ;;  %v4287_v39 = vmax.f32 %v4184_v40, %v4262_v18  ;;  %v4342_v40 = vld [vmem:[#allocation3 + $0xcf] sm:$0xf] }
 0x441   : > { %4468 = vmatpush1.bf16.msra.mxu1 %v4405_v46  ;;  %v3816_v55 = vpop.f32.mrf.mxu1  ;;  %v4312_v30 = vld [vmem:[#allocation3 + $0xa6] sm:$0xff]  ;;  %v4386_v51 = vmax.f32 %v4286_v57, %v4361_v0  ;;  %v4367_v62 = vmax.f32 %v4317_v2, %v4342_v40 }
 0x442   : > { %4469 = vmatprep.subr.bf16.mxu1 %v8852_v3  ;;  %v4337_v13 = vld [vmem:[#allocation3 + $0xa7] sm:$0xff]  ;;  %4241 = vst [vmem:[#allocation3 + $0xb8] sm:$0xff] %v4188_v63  ;;  %v4164_v7 = vadd.f32 %v8100_v25, %v4132_v61 }
 0x443   : > { %v4362_v5 = vmax.f32 %v4312_v30, %v4337_v13  ;;  %v5863_v26 = vpop.f32.mrf.mxu1  ;;  %v4263_v11 = vld [vmem:[#allocation3 + $0xa1] sm:$0xff] }
 0x444   : > { %v4189_v44 = vmax.f32 %v4164_v7, 0.0  ;;  %v4288_v42 = vmax.f32 %v4185_v4, %v4263_v11 }
 0x445   : > { %4470 = vmatpush1.bf16.msra.mxu1 %v4404_v33  ;;  %v4387_v53 = vmax.f32 %v4287_v39, %v4362_v5  ;;  %v4313_v46 = vld [vmem:[#allocation3 + $0xae] sm:$0xff] }
 0x446   : > { %4471 = vmatprep.subr.bf16.mxu1 %v8852_v3  ;;  %v4338_v49 = vld [vmem:[#allocation3 + $0xaf] sm:$0xff]  ;;  %4242 = vst [vmem:[#allocation3 + $0xc0] sm:$0xf] %v4189_v44 }
 0x447   : > { %v4409_v25 = vpack.c.bf16 %v4387_v53, %v4386_v51  ;;  %v4264_v12 = vld [vmem:[#allocation3 + $0xa9] sm:$0xff]  ;;  %v4363_v52 = vmax.f32 %v4313_v46, %v4338_v49 }
 0x448   : > { %v4289_v10 = vmax.f32 %v4186_v54, %v4264_v12  ;;  %v4565_v5 = vld [vmem:[%s278_s16 + $0x18] sm:$0x1] }
 0x449   : > { %4472 = vmatpush1.bf16.msra.mxu1 %v4403_v23  ;;  %v4314_v24 = vld [vmem:[#allocation3 + $0xb6] sm:$0xff]  ;;  %v4366_v23 = vmax.f32 %v4316_v56, %v4341_v59  ;;  %v4388_v14 = vmax.f32 %v4288_v42, %v4363_v52 }
 0x44a   : > { %4473 = vmatprep.subr.bf16.mxu1 %v8852_v3  ;;  %v4339_v33 = vld [vmem:[#allocation3 + $0xb7] sm:$0xff] }
 0x44b   : > { %v4364_v38 = vmax.f32 %v4314_v24, %v4339_v33  ;;  %v4265_v16 = vld [vmem:[#allocation3 + $0xb1] sm:$0xff] }
 0x44c   : > { %v4290_v54 = vmax.f32 %v4187_v36, %v4265_v16  ;;  %v4939_v36 = vcombine.low %v4399_v1, %v4399_v1 }
 0x44d   : > { %4474 = vmatpush1.bf16.msra.mxu1 %v4402_v31  ;;  %v4389_v43 = vmax.f32 %v4289_v10, %v4364_v38  ;;  %v4267_v21 = vld [vmem:[#allocation3 + $0xc1] sm:$0xf]  ;;  %v4266_v41 = vld [vmem:[#allocation3 + $0xb9] sm:$0xff] }
 0x44e   : > { %4475 = vmatprep.subr.bf16.mxu1 %v8852_v3  ;;  %v4315_v28 = vld [vmem:[#allocation3 + $0xbe] sm:$0xff]  ;;  %v4292_v60 = vmax.f32 %v4189_v44, %v4267_v21  ;;  %v4291_v4 = vmax.f32 %v4188_v63, %v4266_v41 }
 0x44f   : > { %v4340_v35 = vld [vmem:[#allocation3 + $0xbf] sm:$0xff]  ;;  %v4410_v20 = vpack.c.bf16 %v4389_v43, %v4388_v14 }
 0x450   : > { %v4365_v15 = vmax.f32 %v4315_v28, %v4340_v35  ;;  %v4392_v34 = vmax.f32 %v4292_v60, %v4367_v62  ;;  %v4391_v29 = vmax.f32 %v4291_v4, %v4366_v23 }
 0x451   : > { %4476 = vmatpush1.bf16.msra.mxu1 %v4401_v32  ;;  %v6111_v32 = vld [vmem:[%s8459_s6 + $0x20] ss:$8 sps:$4 sm:$0xff]  }
 0x452   : > { %4477 = vmatprep.subr.bf16.mxu1 %v8852_v3  ;;  %v4390_v31 = vmax.f32 %v4290_v54, %v4365_v15  ;;  %v4412_v48 = vpack.c.bf16 %v4392_v34, %v4392_v34 }
 0x454   : > { %v4411_v9 = vpack.c.bf16 %v4391_v29, %v4390_v31  ;;  %v4461_v19 = vsel %vm4459_vm3, %v4412_v48, 0 }
 0x455   : > { %4478 = vmatpush1.bf16.msra.mxu1 %v4400_v22  ;;  %v6108_v22 = vld [vmem:[%s8459_s6 + $0x10] ss:$8 sps:$4 sm:$0xff]  }
 0x456   : > { %4485 = vmatprep.subr.bf16.mxu1 %v8852_v3 }
 0x459   : > { %4486 = vmatpush2.bf16.msra.mxu1 %v4461_v19 }
 0x45a   : > { %4487 = vmatprep.subr.bf16.mxu1 %v8852_v3 }
 0x45d   : > { %4488 = vmatpush2.bf16.msra.mxu1 %v4411_v9 }
 0x45e   : > { %4489 = vmatprep.subr.bf16.mxu1 %v8852_v3 }
 0x461   : > { %4490 = vmatpush2.bf16.msra.mxu1 %v4410_v20 }
 0x462   : > { %4491 = vmatprep.subr.bf16.mxu1 %v8852_v3 }
 0x465   : > { %4492 = vmatpush2.bf16.msra.mxu1 %v4409_v25 }
 0x466   : > { %4493 = vmatprep.subr.bf16.mxu1 %v8852_v3  ;;  %v4940_v3 = vcombine.high %v4399_v1, %v4399_v1 }
 0x469   : > { %4494 = vmatpush2.bf16.msra.mxu1 %v4408_v27 }
 0x46c   : > { %4496 = vmatmul.mubr.bf16.vlgmr.msra.gmra.mxu1 %v6103_v45 }
 0x46d   : > { %4942 = vmatprep.mubr.msk.bf16.mxu1 %vm4446_vm2, %v6106_v17 }
 0x474   : > { %4504 = vmatmul.mubr.bf16.gmra.mxu1 %v6108_v22 }
 0x475   : > { %4943 = vmatprep.mubr.msk.bf16.mxu1 %vm4446_vm2, %v6109_v47 }
 0x47c   : > { %4512 = vmatmul.mubr.bf16.gmra.mxu1 %v6111_v32 }
 0x47d   : > { %4944 = vmatprep.mubr.msk.bf16.mxu1 %vm4446_vm2, %v4940_v3 }
 0x484   : > { %4520 = vmatmul.mubr.bf16.gmra.mxu1 %v4939_v36 }
 0x52c   : > { %v4497_v50 = vpop.f32.mrf.mxu1 }
 0x52e   : > { %v4499_v8 = vpop.f32.mrf.mxu1 }
 0x530   : > { %v4500_v6 = vpop.f32.mrf.mxu1 }
 0x531   : > { %v4964_v58 = vpack.c.bf16 %v4500_v6, %v4497_v50 }
 0x532   : > { %v4502_v37 = vpop.f32.mrf.mxu1 }
 0x533   : > { %4965 = vst [vmem:[%s278_s16] sm:$0xff] %v4964_v58  }
 0x534   : > { %v4505_v18 = vpop.f32.mrf.mxu1 }
 0x536   : > { %v4507_v27 = vpop.f32.mrf.mxu1 }
 0x538   : > { %v4508_v63 = vpop.f32.mrf.mxu1 }
 0x539   : > { %v4969_v61 = vpack.c.bf16 %v4508_v63, %v4505_v18 }
 0x53a   : > { %v4510_v0 = vpop.f32.mrf.mxu1 }
 0x53b   : > { %4976 = vst [vmem:[%s278_s16 + $0x8] sm:$0xff] %v4969_v61  }
 0x53c   : > { %v4513_v55 = vpop.f32.mrf.mxu1 }
 0x53e   : > { %v4515_v30 = vpop.f32.mrf.mxu1 }
 0x540   : > { %v4516_v13 = vpop.f32.mrf.mxu1 }
 0x541   : > { %v4974_v7 = vpack.c.bf16 %v4516_v13, %v4513_v55 }
 0x542   : > { %v4518_v57 = vpop.f32.mrf.mxu1 }
 0x543   : > { %4977 = vst [vmem:[%s278_s16 + $0x10] sm:$0xff] %v4974_v7  }
 0x544   : > { %v4521_v39 = vpop.f32.mrf.mxu1 }
 0x545   : > { %v4960_v26 = vpack.c.bf16 %v4521_v39, %v4521_v39 }
 0x546   : > { %v4523_v44 = vpop.f32.mrf.mxu1 }
 0x547   : > { %v4566_v51 = vsel %vm4564_vm6, %v4960_v26, %v4565_v5 }
 0x548   : > { %4567 = vst [vmem:[%s278_s16 + $0x18] sm:$0x1] %v4566_v51  ;;  %v4524_v53 = vpop.f32.mrf.mxu1 }
 0x54a   : > { %v4525_v46 = vpop.f32.mrf.mxu1 }
 0x54b PF: > { %s17_s24 = sadd.s32 1, %s6126_s24  }
 0x54c   : > { %p14_p4 = scmp.ge.s32.totalorder %s17_s24, 4  }
 0x54e   :  { %16 = sbr.rel (!%p14_p4) target bundleno = 1 (0x1), region = 86 }

// kernel: lenet5_forward.3
= control target key start
LH: loop header
LB: loop body
LE: loop exit
PB: predicated region body
PF: predicated region fallthrough
CT: control target
= control target key end

     0   :  { %v821_v35 = vlaneseq  ;;  %v8474_v36 = vmov 1966171168   ;;  %s11147_s0 = inlined_call_operand.vmem [shape: bf16[2,6272], index: 0, kind: input, shape index: {}]   ;;  %s11148_s1 = inlined_call_operand.vmem [shape: bf16[6272,200], index: 1, kind: input, shape index: {}]   ;;  %s11149_s2 = inlined_call_operand.vmem [shape: f32[1,200], index: 2, kind: input, shape index: {}]   ;;  %s11150_s3 = inlined_call_operand.vmem [shape: bf16[200,84], index: 3, kind: input, shape index: {}]   ;;  %s11151_s4 = inlined_call_operand.vmem [shape: f32[1,84], index: 4, kind: input, shape index: {}]   ;;  %s11152_s5 = inlined_call_operand.vmem [shape: bf16[84,128], index: 5, kind: input, shape index: {}]   ;;  %s11153_s6 = inlined_call_operand.vmem [shape: f32[1,128], index: 6, kind: input, shape index: {}]   ;;  %s11154_s7 = inlined_call_operand.hbm [shape: f32[2,128], index: 7, kind: output, shape index: {}]  }
   0x1   :  { %v7251_v0 = vld [vmem:[%s11148_s1 + $0x74] ss:$8 sps:$4 sm:$0xff]   ;;  %v7253_v1 = vld [vmem:[%s11148_s1 + $0x70] ss:$8 sps:$4 sm:$0xff]   ;;  %v7257_v4 = vld [vmem:[%s11148_s1 + $0x64] ss:$8 sps:$4 sm:$0xff]   ;;  %v840_v37 = vunpack.c.l.s4 %v8474_v36 }
   0x2   :  { %5115 = vmatprep.subr.bf16.mxu0 %v7251_v0  ;;  %v7254_v2 = vld [vmem:[%s11148_s1 + $0x174] ss:$8 sps:$4 sm:$0xff]   ;;  %v7256_v3 = vld [vmem:[%s11148_s1 + $0x170] ss:$8 sps:$4 sm:$0xff]   ;;  %v7259_v5 = vld [vmem:[%s11148_s1 + $0x60] ss:$8 sps:$4 sm:$0xff]  }
   0x3   :  { %5116 = vmatpush1.bf16.msra.mxu0 %v7253_v1  ;;  %5156 = vmatprep.subr.bf16.mxu1 %v7254_v2  ;;  %v7260_v6 = vld [vmem:[%s11148_s1 + $0x164] ss:$8 sps:$4 sm:$0xff]   ;;  %v7262_v7 = vld [vmem:[%s11148_s1 + $0x160] ss:$8 sps:$4 sm:$0xff]   ;;  %v7263_v8 = vld [vmem:[%s11148_s1 + $0x54] ss:$8 sps:$4 sm:$0xff]   ;;  %v841_v43 = vunpack.c.0.s8 %v840_v37 }
   0x4   :  { %5157 = vmatpush1.bf16.msra.mxu1 %v7256_v3  ;;  %5117 = vmatprep.subr.bf16.mxu0 %v7257_v4  ;;  %v7265_v9 = vld [vmem:[%s11148_s1 + $0x50] ss:$8 sps:$4 sm:$0xff]   ;;  %v7266_v10 = vld [vmem:[%s11148_s1 + $0x154] ss:$8 sps:$4 sm:$0xff]   ;;  %v7269_v11 = vld [vmem:[%s11148_s1 + $0x44] ss:$8 sps:$4 sm:$0xff]  }
   0x5   :  { %5158 = vmatprep.subr.bf16.mxu1 %v7260_v6  ;;  %v7268_v12 = vld [vmem:[%s11148_s1 + $0x150] ss:$8 sps:$4 sm:$0xff]   ;;  %v7272_v13 = vld [vmem:[%s11148_s1 + $0x144] ss:$8 sps:$4 sm:$0xff]   ;;  %v7271_v14 = vld [vmem:[%s11148_s1 + $0x40] ss:$8 sps:$4 sm:$0xff]  }
   0x6   :  { %v7275_v15 = vld [vmem:[%s11148_s1 + $0x34] ss:$8 sps:$4 sm:$0xff]   ;;  %v7274_v16 = vld [vmem:[%s11148_s1 + $0x140] ss:$8 sps:$4 sm:$0xff]   ;;  %v7277_v18 = vld [vmem:[%s11148_s1 + $0x30] ss:$8 sps:$4 sm:$0xff]  }
   0x7   :  { %5118 = vmatpush1.bf16.msra.mxu0 %v7259_v5  ;;  %v7278_v17 = vld [vmem:[%s11148_s1 + $0x134] ss:$8 sps:$4 sm:$0xff]   ;;  %v7281_v19 = vld [vmem:[%s11148_s1 + $0x24] ss:$8 sps:$4 sm:$0xff]   ;;  %v7280_v20 = vld [vmem:[%s11148_s1 + $0x130] ss:$8 sps:$4 sm:$0xff]  }
   0x8   :  { %5119 = vmatprep.subr.bf16.mxu0 %v7263_v8  ;;  %5159 = vmatpush1.bf16.msra.mxu1 %v7262_v7  ;;  %v7284_v21 = vld [vmem:[%s11148_s1 + $0x124] ss:$8 sps:$4 sm:$0xff]   ;;  %v7283_v22 = vld [vmem:[%s11148_s1 + $0x20] ss:$8 sps:$4 sm:$0xff]   ;;  %v7287_v23 = vld [vmem:[%s11148_s1 + $0x14] ss:$8 sps:$4 sm:$0xff]  }
   0x9   :  { %5160 = vmatprep.subr.bf16.mxu1 %v7266_v10  ;;  %v7286_v24 = vld [vmem:[%s11148_s1 + $0x120] ss:$8 sps:$4 sm:$0xff]   ;;  %v7290_v25 = vld [vmem:[%s11148_s1 + $0x114] ss:$8 sps:$4 sm:$0xff]   ;;  %v7289_v26 = vld [vmem:[%s11148_s1 + $0x10] ss:$8 sps:$4 sm:$0xff]  }
   0xa   :  { %v7293_v27 = vld [vmem:[%s11148_s1 + $0x4] ss:$8 sps:$4 sm:$0xff]   ;;  %v7292_v28 = vld [vmem:[%s11148_s1 + $0x110] ss:$8 sps:$4 sm:$0xff]   ;;  %v7295_v30 = vld [vmem:[%s11148_s1] ss:$8 sps:$4 sm:$0xff]  }
   0xb   :  { %5120 = vmatpush1.bf16.msra.mxu0 %v7265_v9  ;;  %v7296_v29 = vld [vmem:[%s11148_s1 + $0x104] ss:$8 sps:$4 sm:$0xff]   ;;  %v7299_v31 = vld [vmem:[%s11148_s1 + $0xf4] ss:$8 sps:$4 sm:$0xff]   ;;  %v7298_v32 = vld [vmem:[%s11148_s1 + $0x100] ss:$8 sps:$4 sm:$0xff]  }
   0xc   :  { %5121 = vmatprep.subr.bf16.mxu0 %v7269_v11  ;;  %5161 = vmatpush1.bf16.msra.mxu1 %v7268_v12  ;;  %v7302_v33 = vld [vmem:[%s11148_s1 + $0x1f4] ss:$8 sps:$4 sm:$0xff]   ;;  %v7301_v34 = vld [vmem:[%s11148_s1 + $0xf0] ss:$8 sps:$4 sm:$0xff]   ;;  %v7305_v38 = vld [vmem:[%s11148_s1 + $0xe4] ss:$8 sps:$4 sm:$0xff]  }
   0xd   :  { %5162 = vmatprep.subr.bf16.mxu1 %v7272_v13  ;;  %v7304_v39 = vld [vmem:[%s11148_s1 + $0x1f0] ss:$8 sps:$4 sm:$0xff]   ;;  %v7308_v40 = vld [vmem:[%s11148_s1 + $0x1e4] ss:$8 sps:$4 sm:$0xff]   ;;  %v7307_v41 = vld [vmem:[%s11148_s1 + $0xe0] ss:$8 sps:$4 sm:$0xff]  }
   0xe   :  { %v8636_v42 = vshrl.u32 %v821_v35, 7  ;;  %v7311_v44 = vld [vmem:[%s11148_s1 + $0xd4] ss:$8 sps:$4 sm:$0xff]   ;;  %v7310_v45 = vld [vmem:[%s11148_s1 + $0x1e0] ss:$8 sps:$4 sm:$0xff]  }
   0xf   :  { %5122 = vmatpush1.bf16.msra.mxu0 %v7271_v14  ;;  %v7314_v46 = vld [vmem:[%s11148_s1 + $0x1d4] ss:$8 sps:$4 sm:$0xff]   ;;  %v7313_v47 = vld [vmem:[%s11148_s1 + $0xd0] ss:$8 sps:$4 sm:$0xff]   ;;  %v7317_v49 = vld [vmem:[%s11148_s1 + $0xc4] ss:$8 sps:$4 sm:$0xff]  }
  0x10   :  { %5123 = vmatprep.subr.bf16.mxu0 %v7275_v15  ;;  %5163 = vmatpush1.bf16.msra.mxu1 %v7274_v16  ;;  %v8651_v48 = vsub.s32 %v841_v43, %v8636_v42  ;;  %v7316_v50 = vld [vmem:[%s11148_s1 + $0x1d0] ss:$8 sps:$4 sm:$0xff]   ;;  %v7320_v51 = vld [vmem:[%s11148_s1 + $0x1c4] ss:$8 sps:$4 sm:$0xff]   ;;  %v7319_v53 = vld [vmem:[%s11148_s1 + $0xc0] ss:$8 sps:$4 sm:$0xff]  }
  0x11   :  { %5164 = vmatprep.subr.bf16.mxu1 %v7278_v17  ;;  %v28_v52 = vld [vmem:[%s11147_s0] sm:$0xff]  ;;  %v7323_v55 = vld [vmem:[%s11148_s1 + $0xb4] ss:$8 sps:$4 sm:$0xff]   ;;  %v7325_v59 = vld [vmem:[%s11148_s1 + $0xb0] ss:$8 sps:$4 sm:$0xff]  }
  0x12   :  { %v845_v54 = vrot.slane %v28_v52, %v8651_v48  ;;  %v7322_v56 = vld [vmem:[%s11148_s1 + $0x1c0] ss:$8 sps:$4 sm:$0xff]   ;;  %v7326_v58 = vld [vmem:[%s11148_s1 + $0x1b4] ss:$8 sps:$4 sm:$0xff]   ;;  %v7329_v61 = vld [vmem:[%s11148_s1 + $0xa4] ss:$8 sps:$4 sm:$0xff]   ;;  %v838_v63 = vcombine.high %v28_v52, %v28_v52 }
  0x13   :  { %5124 = vmatpush1.bf16.msra.mxu0 %v7277_v18  ;;  %v7328_v62 = vld [vmem:[%s11148_s1 + $0x1b0] ss:$8 sps:$4 sm:$0xff]   ;;  %v7332_v1 = vld [vmem:[%s11148_s1 + $0x1a4] ss:$8 sps:$4 sm:$0xff]   ;;  %v7331_v2 = vld [vmem:[%s11148_s1 + $0xa0] ss:$8 sps:$4 sm:$0xff]  }
  0x14   :  { %5125 = vmatprep.subr.bf16.mxu0 %v7281_v19  ;;  %5165 = vmatpush1.bf16.msra.mxu1 %v7280_v20  ;;  %v853_v57 = vcombine.high %v845_v54, %v845_v54  ;;  %v7335_v3 = vld [vmem:[%s11148_s1 + $0x94] ss:$8 sps:$4 sm:$0xff]   ;;  %v7334_v4 = vld [vmem:[%s11148_s1 + $0x1a0] ss:$8 sps:$4 sm:$0xff]   ;;  %v8701_v5 = vrot.slane %v838_v63, %v8651_v48  ;;  %v7337_v7 = vld [vmem:[%s11148_s1 + $0x90] ss:$8 sps:$4 sm:$0xff]   ;;  %v861_v13 = vrot.slane %v845_v54, %v8651_v48 }
  0x15   :  { %5166 = vmatprep.subr.bf16.mxu1 %v7284_v21  ;;  %v7338_v6 = vld [vmem:[%s11148_s1 + $0x194] ss:$8 sps:$4 sm:$0xff]   ;;  %v7341_v8 = vld [vmem:[%s11148_s1 + $0x84] ss:$8 sps:$4 sm:$0xff]   ;;  %v7340_v9 = vld [vmem:[%s11148_s1 + $0x190] ss:$8 sps:$4 sm:$0xff]  }
  0x16   :  { %v875_v60 = vrot.slane %v853_v57, %v8651_v48  ;;  %v854_v10 = vcombine.high %v8701_v5, %v8701_v5  ;;  %v7344_v11 = vld [vmem:[%s11148_s1 + $0x184] ss:$8 sps:$4 sm:$0xff]   ;;  %v7343_v12 = vld [vmem:[%s11148_s1 + $0x80] ss:$8 sps:$4 sm:$0xff]   ;;  %v7350_v14 = vld [vmem:[%s11148_s1 + $0x274] ss:$8 sps:$4 sm:$0xff]   ;;  %v883_v19 = vcombine.high %v861_v13, %v861_v13 }
  0x17   :  { %5126 = vmatpush1.bf16.msra.mxu0 %v7283_v22  ;;  %v7347_v15 = vld [vmem:[%s11148_s1 + $0x180] ss:$8 sps:$4 sm:$0xff]   ;;  %v7353_v17 = vld [vmem:[%s11148_s1 + $0x374] ss:$8 sps:$4 sm:$0xff]   ;;  %v7348_v18 = vld [vmem:[%s11148_s1 + $0x270] ss:$8 sps:$4 sm:$0xff]  }
  0x18   :  { %5127 = vmatprep.subr.bf16.mxu0 %v7287_v23  ;;  %5167 = vmatpush1.bf16.msra.mxu1 %v7286_v24  ;;  %v885_v0 = vcombine.high %v875_v60, %v875_v60  ;;  %v882_v16 = vrot.slane %v854_v10, %v8651_v48  ;;  %v7356_v20 = vld [vmem:[%s11148_s1 + $0x264] ss:$8 sps:$4 sm:$0xff]   ;;  %v7351_v21 = vld [vmem:[%s11148_s1 + $0x370] ss:$8 sps:$4 sm:$0xff]   ;;  %v7354_v24 = vld [vmem:[%s11148_s1 + $0x260] ss:$8 sps:$4 sm:$0xff]  }
  0x19   :  { %5168 = vmatprep.subr.bf16.mxu1 %v7290_v25  ;;  %5147 = vmatprep.mubr.bf16.mxu0 %v875_v60  ;;  %v7359_v23 = vld [vmem:[%s11148_s1 + $0x364] ss:$8 sps:$4 sm:$0xff]   ;;  %v7362_v25 = vld [vmem:[%s11148_s1 + $0x254] ss:$8 sps:$4 sm:$0xff]   ;;  %v7372_v36 = vld [vmem:[%s11148_s1 + $0x230] ss:$8 sps:$4 sm:$0xff]  }
  0x1a   :  { %5188 = vmatprep.mubr.bf16.mxu1 %v885_v0  ;;  %v886_v22 = vcombine.high %v882_v16, %v882_v16  ;;  %v7377_v35 = vld [vmem:[%s11148_s1 + $0x334] ss:$8 sps:$4 sm:$0xff]   ;;  %v7380_v37 = vld [vmem:[%s11148_s1 + $0x224] ss:$8 sps:$4 sm:$0xff]   ;;  %v7381_v43 = vld [vmem:[%s11148_s1 + $0x320] ss:$8 sps:$4 sm:$0xff]  }
  0x1b   :  { %5128 = vmatpush1.bf16.msra.mxu0 %v7289_v26  ;;  %v7357_v26 = vld [vmem:[%s11148_s1 + $0x360] ss:$8 sps:$4 sm:$0xff]   ;;  %v7396_v54 = vld [vmem:[%s11148_s1 + $0x2f0] ss:$8 sps:$4 sm:$0xff]   ;;  %v7407_v57 = vld [vmem:[%s11148_s1 + $0x3e4] ss:$8 sps:$4 sm:$0xff]  }
  0x1c   :  { %5129 = vmatprep.subr.bf16.mxu0 %v7293_v27  ;;  %5169 = vmatpush1.bf16.msra.mxu1 %v7292_v28  ;;  %v7365_v27 = vld [vmem:[%s11148_s1 + $0x354] ss:$8 sps:$4 sm:$0xff]   ;;  %v7360_v28 = vld [vmem:[%s11148_s1 + $0x250] ss:$8 sps:$4 sm:$0xff]   ;;  %v7393_v52 = vld [vmem:[%s11148_s1 + $0x300] ss:$8 sps:$4 sm:$0xff]  }
  0x1d   :  { %5170 = vmatprep.subr.bf16.mxu1 %v7296_v29  ;;  %v7368_v29 = vld [vmem:[%s11148_s1 + $0x244] ss:$8 sps:$4 sm:$0xff]   ;;  %v7405_v60 = vld [vmem:[%s11148_s1 + $0x3e0] ss:$8 sps:$4 sm:$0xff]   ;;  %v7411_v0 = vld [vmem:[%s11148_s1 + $0x3d0] ss:$8 sps:$4 sm:$0xff]  }
  0x1e   :  { %v7416_v63 = vld [vmem:[%s11148_s1 + $0x2c4] ss:$8 sps:$4 sm:$0xff]  }
  0x1f   :  { %5130 = vmatpush1.bf16.msra.mxu0 %v7295_v30  ;;  %v7363_v30 = vld [vmem:[%s11148_s1 + $0x350] ss:$8 sps:$4 sm:$0xff]   ;;  %v7431_v10 = vld [vmem:[%s11148_s1 + $0x3a4] ss:$8 sps:$4 sm:$0xff]  }
  0x20   :  { %5131 = vmatprep.subr.bf16.mxu0 %v7299_v31  ;;  %5171 = vmatpush1.bf16.msra.mxu1 %v7298_v32  ;;  %v7371_v31 = vld [vmem:[%s11148_s1 + $0x344] ss:$8 sps:$4 sm:$0xff]   ;;  %v7366_v32 = vld [vmem:[%s11148_s1 + $0x240] ss:$8 sps:$4 sm:$0xff]  }
  0x21   :  { %5172 = vmatprep.subr.bf16.mxu1 %v7302_v33  ;;  %v7374_v33 = vld [vmem:[%s11148_s1 + $0x234] ss:$8 sps:$4 sm:$0xff]  }
  0x23   :  { %5132 = vmatpush2.bf16.msra.mxu0 %v7301_v34  ;;  %v7369_v34 = vld [vmem:[%s11148_s1 + $0x340] ss:$8 sps:$4 sm:$0xff]  }
  0x24   :  { %5133 = vmatprep.subr.bf16.mxu0 %v7305_v38  ;;  %5173 = vmatpush2.bf16.msra.mxu1 %v7304_v39  ;;  %v7375_v38 = vld [vmem:[%s11148_s1 + $0x330] ss:$8 sps:$4 sm:$0xff]   ;;  %v7383_v39 = vld [vmem:[%s11148_s1 + $0x324] ss:$8 sps:$4 sm:$0xff]  }
  0x25   :  { %5174 = vmatprep.subr.bf16.mxu1 %v7308_v40  ;;  %v7378_v40 = vld [vmem:[%s11148_s1 + $0x220] ss:$8 sps:$4 sm:$0xff]  }
  0x27   :  { %5134 = vmatpush2.bf16.msra.mxu0 %v7307_v41  ;;  %v7386_v41 = vld [vmem:[%s11148_s1 + $0x214] ss:$8 sps:$4 sm:$0xff]  }
  0x28   :  { %5135 = vmatprep.subr.bf16.mxu0 %v7311_v44  ;;  %5175 = vmatpush2.bf16.msra.mxu1 %v7310_v45  ;;  %v7389_v44 = vld [vmem:[%s11148_s1 + $0x314] ss:$8 sps:$4 sm:$0xff]   ;;  %v7384_v45 = vld [vmem:[%s11148_s1 + $0x210] ss:$8 sps:$4 sm:$0xff]  }
  0x29   :  { %5176 = vmatprep.subr.bf16.mxu1 %v7314_v46  ;;  %v7392_v46 = vld [vmem:[%s11148_s1 + $0x204] ss:$8 sps:$4 sm:$0xff]  }
  0x2b   :  { %5136 = vmatpush2.bf16.msra.mxu0 %v7313_v47  ;;  %v7387_v47 = vld [vmem:[%s11148_s1 + $0x310] ss:$8 sps:$4 sm:$0xff]  }
  0x2c   :  { %5137 = vmatprep.subr.bf16.mxu0 %v7317_v49  ;;  %5177 = vmatpush2.bf16.msra.mxu1 %v7316_v50  ;;  %v7395_v49 = vld [vmem:[%s11148_s1 + $0x304] ss:$8 sps:$4 sm:$0xff]   ;;  %v7390_v50 = vld [vmem:[%s11148_s1 + $0x200] ss:$8 sps:$4 sm:$0xff]  }
  0x2d   :  { %5178 = vmatprep.subr.bf16.mxu1 %v7320_v51  ;;  %v7398_v51 = vld [vmem:[%s11148_s1 + $0x2f4] ss:$8 sps:$4 sm:$0xff]  }
  0x2f   :  { %5138 = vmatpush2.bf16.msra.mxu0 %v7319_v53  ;;  %v7401_v53 = vld [vmem:[%s11148_s1 + $0x3f4] ss:$8 sps:$4 sm:$0xff]  }
  0x30   :  { %5139 = vmatprep.subr.bf16.mxu0 %v7323_v55  ;;  %5179 = vmatpush2.bf16.msra.mxu1 %v7322_v56  ;;  %v7404_v55 = vld [vmem:[%s11148_s1 + $0x2e4] ss:$8 sps:$4 sm:$0xff]   ;;  %v7399_v56 = vld [vmem:[%s11148_s1 + $0x3f0] ss:$8 sps:$4 sm:$0xff]  }
  0x31   :  { %5180 = vmatprep.subr.bf16.mxu1 %v7326_v58  ;;  %v7402_v58 = vld [vmem:[%s11148_s1 + $0x2e0] ss:$8 sps:$4 sm:$0xff]  }
  0x33   :  { %5140 = vmatpush2.bf16.msra.mxu0 %v7325_v59  ;;  %v7410_v59 = vld [vmem:[%s11148_s1 + $0x2d4] ss:$8 sps:$4 sm:$0xff]  }
  0x34   :  { %5141 = vmatprep.subr.bf16.mxu0 %v7329_v61  ;;  %5181 = vmatpush2.bf16.msra.mxu1 %v7328_v62  ;;  %v7413_v61 = vld [vmem:[%s11148_s1 + $0x3d4] ss:$8 sps:$4 sm:$0xff]   ;;  %v7408_v62 = vld [vmem:[%s11148_s1 + $0x2d0] ss:$8 sps:$4 sm:$0xff]  }
  0x35   :  { %5182 = vmatprep.subr.bf16.mxu1 %v7332_v1  ;;  %v7419_v1 = vld [vmem:[%s11148_s1 + $0x3c4] ss:$8 sps:$4 sm:$0xff]  }
  0x37   :  { %5142 = vmatpush2.bf16.msra.mxu0 %v7331_v2  ;;  %v7414_v2 = vld [vmem:[%s11148_s1 + $0x2c0] ss:$8 sps:$4 sm:$0xff]  }
  0x38   :  { %5143 = vmatprep.subr.bf16.mxu0 %v7335_v3  ;;  %5183 = vmatpush2.bf16.msra.mxu1 %v7334_v4  ;;  %v7422_v3 = vld [vmem:[%s11148_s1 + $0x2b4] ss:$8 sps:$4 sm:$0xff]   ;;  %v7417_v4 = vld [vmem:[%s11148_s1 + $0x3c0] ss:$8 sps:$4 sm:$0xff]  }
  0x39   :  { %5184 = vmatprep.subr.bf16.mxu1 %v7338_v6  ;;  %v7425_v6 = vld [vmem:[%s11148_s1 + $0x3b4] ss:$8 sps:$4 sm:$0xff]  }
  0x3b   :  { %5144 = vmatpush2.bf16.msra.mxu0 %v7337_v7  ;;  %v7420_v7 = vld [vmem:[%s11148_s1 + $0x2b0] ss:$8 sps:$4 sm:$0xff]  }
  0x3c   :  { %5145 = vmatprep.subr.bf16.mxu0 %v7341_v8  ;;  %5185 = vmatpush2.bf16.msra.mxu1 %v7340_v9  ;;  %v7428_v8 = vld [vmem:[%s11148_s1 + $0x2a4] ss:$8 sps:$4 sm:$0xff]   ;;  %v7423_v9 = vld [vmem:[%s11148_s1 + $0x3b0] ss:$8 sps:$4 sm:$0xff]  }
  0x3d   :  { %5186 = vmatprep.subr.bf16.mxu1 %v7344_v11  ;;  %v7426_v11 = vld [vmem:[%s11148_s1 + $0x2a0] ss:$8 sps:$4 sm:$0xff]  }
  0x3f   :  { %5146 = vmatpush2.bf16.msra.mxu0 %v7343_v12  ;;  %v7434_v12 = vld [vmem:[%s11148_s1 + $0x294] ss:$8 sps:$4 sm:$0xff]  }
  0x40   :  { %5197 = vmatprep.subr.bf16.mxu0 %v7350_v14  ;;  %5187 = vmatpush2.bf16.msra.mxu1 %v7347_v15  ;;  %v7437_v14 = vld [vmem:[%s11148_s1 + $0x394] ss:$8 sps:$4 sm:$0xff]   ;;  %v7432_v15 = vld [vmem:[%s11148_s1 + $0x290] ss:$8 sps:$4 sm:$0xff]  }
  0x41   :  { %5238 = vmatprep.subr.bf16.mxu1 %v7353_v17  ;;  %v7435_v17 = vld [vmem:[%s11148_s1 + $0x390] ss:$8 sps:$4 sm:$0xff]  }
  0x42   :  { %5148 = vmatmul.mubr.bf16.vlgmr.msra.gmra.mxu0 %v861_v13  ;;  %v7429_v13 = vld [vmem:[%s11148_s1 + $0x3a0] ss:$8 sps:$4 sm:$0xff]  }
  0x43   :  { %5198 = vmatpush1.bf16.msra.mxu0 %v7348_v18  ;;  %5229 = vmatprep.mubr.bf16.mxu0 %v882_v16  ;;  %v7440_v16 = vld [vmem:[%s11148_s1 + $0x284] ss:$8 sps:$4 sm:$0xff]  }
  0x44   :  { %5189 = vmatmul.mubr.bf16.vlgmr.msra.gmra.mxu1 %v883_v19  ;;  %5199 = vmatprep.subr.bf16.mxu0 %v7356_v20  ;;  %v7443_v18 = vld [vmem:[%s11148_s1 + $0x384] ss:$8 sps:$4 sm:$0xff]   ;;  %v7438_v19 = vld [vmem:[%s11148_s1 + $0x280] ss:$8 sps:$4 sm:$0xff]   ;;  %v868_v20 = vrot.slane %v8701_v5, %v8651_v48 }
  0x45   :  { %5239 = vmatpush1.bf16.msra.mxu1 %v7351_v21  ;;  %5270 = vmatprep.mubr.bf16.mxu1 %v886_v22  ;;  %v7446_v21 = vld [vmem:[%s11148_s1 + $0x474] ss:$8 sps:$4 sm:$0xff]   ;;  %v7441_v22 = vld [vmem:[%s11148_s1 + $0x380] ss:$8 sps:$4 sm:$0xff]  }
  0x46   :  { %5240 = vmatprep.subr.bf16.mxu1 %v7359_v23  ;;  %v7449_v23 = vld [vmem:[%s11148_s1 + $0x574] ss:$8 sps:$4 sm:$0xff]   ;;  %v884_v5 = vcombine.high %v868_v20, %v868_v20 }
  0x47   :  { %5200 = vmatpush1.bf16.msra.mxu0 %v7354_v24  ;;  %v7444_v24 = vld [vmem:[%s11148_s1 + $0x470] ss:$8 sps:$4 sm:$0xff]  }
  0x48   :  { %5201 = vmatprep.subr.bf16.mxu0 %v7362_v25  ;;  %v7452_v25 = vld [vmem:[%s11148_s1 + $0x464] ss:$8 sps:$4 sm:$0xff]  }
  0x49   :  { %5241 = vmatpush1.bf16.msra.mxu1 %v7357_v26  ;;  %v8937_v26 = vld [vmem:[%s11147_s0 + $0x8] sm:$0xff] }
  0x4a   :  { %5242 = vmatprep.subr.bf16.mxu1 %v7365_v27  ;;  %v7447_v27 = vld [vmem:[%s11148_s1 + $0x570] ss:$8 sps:$4 sm:$0xff]  }
  0x4b   :  { %5202 = vmatpush1.bf16.msra.mxu0 %v7360_v28  ;;  %v8944_v28 = vrot.slane %v8937_v26, %v8651_v48 }
  0x4c   :  { %5203 = vmatprep.subr.bf16.mxu0 %v7368_v29  ;;  %v7455_v29 = vld [vmem:[%s11148_s1 + $0x564] ss:$8 sps:$4 sm:$0xff]  }
  0x4d   :  { %5243 = vmatpush1.bf16.msra.mxu1 %v7363_v30  ;;  %v7450_v30 = vld [vmem:[%s11148_s1 + $0x460] ss:$8 sps:$4 sm:$0xff]  }
  0x4e   :  { %5244 = vmatprep.subr.bf16.mxu1 %v7371_v31  ;;  %v902_v31 = vcombine.high %v8944_v28, %v8944_v28 }
  0x4f   :  { %5204 = vmatpush1.bf16.msra.mxu0 %v7366_v32  ;;  %v7458_v32 = vld [vmem:[%s11148_s1 + $0x454] ss:$8 sps:$4 sm:$0xff]  }
  0x50   :  { %5205 = vmatprep.subr.bf16.mxu0 %v7374_v33  ;;  %v7453_v33 = vld [vmem:[%s11148_s1 + $0x560] ss:$8 sps:$4 sm:$0xff]  }
  0x51   :  { %5245 = vmatpush1.bf16.msra.mxu1 %v7369_v34  ;;  %v924_v34 = vrot.slane %v902_v31, %v8651_v48  ;;  %v7534_v31 = vld [vmem:[%s11148_s1 + $0x480] ss:$8 sps:$4 sm:$0xff]  }
  0x52   :  { %5246 = vmatprep.subr.bf16.mxu1 %v7377_v35  ;;  %v7461_v35 = vld [vmem:[%s11148_s1 + $0x554] ss:$8 sps:$4 sm:$0xff]  }
  0x53   :  { %5206 = vmatpush1.bf16.msra.mxu0 %v7372_v36  ;;  %v7456_v36 = vld [vmem:[%s11148_s1 + $0x450] ss:$8 sps:$4 sm:$0xff]  }
  0x54   :  { %5207 = vmatprep.subr.bf16.mxu0 %v7380_v37  ;;  %v934_v37 = vcombine.high %v924_v34, %v924_v34 }
  0x55   :  { %5247 = vmatpush1.bf16.msra.mxu1 %v7375_v38  ;;  %v7464_v38 = vld [vmem:[%s11148_s1 + $0x444] ss:$8 sps:$4 sm:$0xff]  }
  0x56   :  { %5248 = vmatprep.subr.bf16.mxu1 %v7383_v39  ;;  %v7459_v39 = vld [vmem:[%s11148_s1 + $0x550] ss:$8 sps:$4 sm:$0xff]  }
  0x57   :  { %5208 = vmatpush1.bf16.msra.mxu0 %v7378_v40  ;;  %v7467_v40 = vld [vmem:[%s11148_s1 + $0x544] ss:$8 sps:$4 sm:$0xff]  }
  0x58   :  { %5209 = vmatprep.subr.bf16.mxu0 %v7386_v41  ;;  %v7462_v41 = vld [vmem:[%s11148_s1 + $0x440] ss:$8 sps:$4 sm:$0xff]  }
  0x59   :  { %5249 = vmatpush1.bf16.msra.mxu1 %v7381_v43  ;;  %v7470_v43 = vld [vmem:[%s11148_s1 + $0x434] ss:$8 sps:$4 sm:$0xff]  }
  0x5a   :  { %5250 = vmatprep.subr.bf16.mxu1 %v7389_v44  ;;  %v7465_v44 = vld [vmem:[%s11148_s1 + $0x540] ss:$8 sps:$4 sm:$0xff]  }
  0x5b   :  { %5210 = vmatpush1.bf16.msra.mxu0 %v7384_v45  ;;  %v7473_v45 = vld [vmem:[%s11148_s1 + $0x534] ss:$8 sps:$4 sm:$0xff]  }
  0x5c   :  { %5211 = vmatprep.subr.bf16.mxu0 %v7392_v46  ;;  %v7468_v46 = vld [vmem:[%s11148_s1 + $0x430] ss:$8 sps:$4 sm:$0xff]  }
  0x5d   :  { %5251 = vmatpush1.bf16.msra.mxu1 %v7387_v47  ;;  %v7476_v47 = vld [vmem:[%s11148_s1 + $0x424] ss:$8 sps:$4 sm:$0xff]  }
  0x5e   :  { %5252 = vmatprep.subr.bf16.mxu1 %v7395_v49  ;;  %v7471_v49 = vld [vmem:[%s11148_s1 + $0x530] ss:$8 sps:$4 sm:$0xff]  }
  0x5f   :  { %5212 = vmatpush1.bf16.msra.mxu0 %v7390_v50  ;;  %v7479_v50 = vld [vmem:[%s11148_s1 + $0x524] ss:$8 sps:$4 sm:$0xff]  }
  0x60   :  { %5213 = vmatprep.subr.bf16.mxu0 %v7398_v51  ;;  %v7474_v51 = vld [vmem:[%s11148_s1 + $0x420] ss:$8 sps:$4 sm:$0xff]  }
  0x61   :  { %5253 = vmatpush1.bf16.msra.mxu1 %v7393_v52  ;;  %v7482_v52 = vld [vmem:[%s11148_s1 + $0x414] ss:$8 sps:$4 sm:$0xff]  }
  0x62   :  { %5254 = vmatprep.subr.bf16.mxu1 %v7401_v53  ;;  %v7477_v53 = vld [vmem:[%s11148_s1 + $0x520] ss:$8 sps:$4 sm:$0xff]  }
  0x63   :  { %5214 = vmatpush2.bf16.msra.mxu0 %v7396_v54  ;;  %v7485_v54 = vld [vmem:[%s11148_s1 + $0x514] ss:$8 sps:$4 sm:$0xff]  }
  0x64   :  { %5215 = vmatprep.subr.bf16.mxu0 %v7404_v55  ;;  %v7480_v55 = vld [vmem:[%s11148_s1 + $0x410] ss:$8 sps:$4 sm:$0xff]  }
  0x65   :  { %5255 = vmatpush2.bf16.msra.mxu1 %v7399_v56  ;;  %v7488_v56 = vld [vmem:[%s11148_s1 + $0x404] ss:$8 sps:$4 sm:$0xff]  }
  0x66   :  { %5256 = vmatprep.subr.bf16.mxu1 %v7407_v57  ;;  %v7483_v57 = vld [vmem:[%s11148_s1 + $0x510] ss:$8 sps:$4 sm:$0xff]  }
  0x67   :  { %5216 = vmatpush2.bf16.msra.mxu0 %v7402_v58  ;;  %v7491_v58 = vld [vmem:[%s11148_s1 + $0x504] ss:$8 sps:$4 sm:$0xff]  }
  0x68   :  { %5217 = vmatprep.subr.bf16.mxu0 %v7410_v59  ;;  %v7486_v59 = vld [vmem:[%s11148_s1 + $0x400] ss:$8 sps:$4 sm:$0xff]  }
  0x69   :  { %5257 = vmatpush2.bf16.msra.mxu1 %v7405_v60  ;;  %v7494_v60 = vld [vmem:[%s11148_s1 + $0x4f4] ss:$8 sps:$4 sm:$0xff]  }
  0x6a   :  { %5258 = vmatprep.subr.bf16.mxu1 %v7413_v61  ;;  %v7489_v61 = vld [vmem:[%s11148_s1 + $0x500] ss:$8 sps:$4 sm:$0xff]  }
  0x6b   :  { %5218 = vmatpush2.bf16.msra.mxu0 %v7408_v62  ;;  %v7497_v62 = vld [vmem:[%s11148_s1 + $0x5f4] ss:$8 sps:$4 sm:$0xff]  }
  0x6c   :  { %5219 = vmatprep.subr.bf16.mxu0 %v7416_v63  ;;  %v7492_v63 = vld [vmem:[%s11148_s1 + $0x4f0] ss:$8 sps:$4 sm:$0xff]  }
  0x6d   :  { %5259 = vmatpush2.bf16.msra.mxu1 %v7411_v0  ;;  %v7500_v0 = vld [vmem:[%s11148_s1 + $0x4e4] ss:$8 sps:$4 sm:$0xff]  }
  0x6e   :  { %5260 = vmatprep.subr.bf16.mxu1 %v7419_v1  ;;  %v7495_v1 = vld [vmem:[%s11148_s1 + $0x5f0] ss:$8 sps:$4 sm:$0xff]  }
  0x6f   :  { %5220 = vmatpush2.bf16.msra.mxu0 %v7414_v2  ;;  %v7503_v2 = vld [vmem:[%s11148_s1 + $0x5e4] ss:$8 sps:$4 sm:$0xff]  }
  0x70   :  { %5221 = vmatprep.subr.bf16.mxu0 %v7422_v3  ;;  %v7498_v3 = vld [vmem:[%s11148_s1 + $0x4e0] ss:$8 sps:$4 sm:$0xff]  }
  0x71   :  { %5261 = vmatpush2.bf16.msra.mxu1 %v7417_v4  ;;  %v7506_v4 = vld [vmem:[%s11148_s1 + $0x4d4] ss:$8 sps:$4 sm:$0xff]  }
  0x72   :  { %5262 = vmatprep.subr.bf16.mxu1 %v7425_v6  ;;  %v7501_v6 = vld [vmem:[%s11148_s1 + $0x5e0] ss:$8 sps:$4 sm:$0xff]  }
  0x73   :  { %5222 = vmatpush2.bf16.msra.mxu0 %v7420_v7  ;;  %v7509_v7 = vld [vmem:[%s11148_s1 + $0x5d4] ss:$8 sps:$4 sm:$0xff]  }
  0x74   :  { %5223 = vmatprep.subr.bf16.mxu0 %v7428_v8  ;;  %v7504_v8 = vld [vmem:[%s11148_s1 + $0x4d0] ss:$8 sps:$4 sm:$0xff]  }
  0x75   :  { %5263 = vmatpush2.bf16.msra.mxu1 %v7423_v9  ;;  %v7512_v9 = vld [vmem:[%s11148_s1 + $0x4c4] ss:$8 sps:$4 sm:$0xff]  }
  0x76   :  { %5264 = vmatprep.subr.bf16.mxu1 %v7431_v10  ;;  %v7507_v10 = vld [vmem:[%s11148_s1 + $0x5d0] ss:$8 sps:$4 sm:$0xff]  }
  0x77   :  { %5224 = vmatpush2.bf16.msra.mxu0 %v7426_v11  ;;  %v7515_v11 = vld [vmem:[%s11148_s1 + $0x5c4] ss:$8 sps:$4 sm:$0xff]  }
  0x78   :  { %5225 = vmatprep.subr.bf16.mxu0 %v7434_v12  ;;  %v7510_v12 = vld [vmem:[%s11148_s1 + $0x4c0] ss:$8 sps:$4 sm:$0xff]  }
  0x79   :  { %5265 = vmatpush2.bf16.msra.mxu1 %v7429_v13  ;;  %v7518_v13 = vld [vmem:[%s11148_s1 + $0x4b4] ss:$8 sps:$4 sm:$0xff]  }
  0x7a   :  { %5266 = vmatprep.subr.bf16.mxu1 %v7437_v14  ;;  %v7513_v14 = vld [vmem:[%s11148_s1 + $0x5c0] ss:$8 sps:$4 sm:$0xff]  }
  0x7b   :  { %5226 = vmatpush2.bf16.msra.mxu0 %v7432_v15  ;;  %v7521_v15 = vld [vmem:[%s11148_s1 + $0x5b4] ss:$8 sps:$4 sm:$0xff]  }
  0x7c   :  { %5227 = vmatprep.subr.bf16.mxu0 %v7440_v16  ;;  %v7516_v16 = vld [vmem:[%s11148_s1 + $0x4b0] ss:$8 sps:$4 sm:$0xff]  }
  0x7d   :  { %5267 = vmatpush2.bf16.msra.mxu1 %v7435_v17  ;;  %v7524_v17 = vld [vmem:[%s11148_s1 + $0x4a4] ss:$8 sps:$4 sm:$0xff]  }
  0x7e   :  { %5268 = vmatprep.subr.bf16.mxu1 %v7443_v18  ;;  %v7519_v18 = vld [vmem:[%s11148_s1 + $0x5b0] ss:$8 sps:$4 sm:$0xff]  }
  0x7f   :  { %5228 = vmatpush2.bf16.msra.mxu0 %v7438_v19  ;;  %v887_v19 = vcombine.high %v8937_v26, %v8937_v26  ;;  %v7536_v26 = vld [vmem:[%s11148_s1 + $0x484] ss:$8 sps:$4 sm:$0xff]  }
  0x80   :  { %5279 = vmatprep.subr.bf16.mxu0 %v7446_v21  ;;  %v7522_v21 = vld [vmem:[%s11148_s1 + $0x4a0] ss:$8 sps:$4 sm:$0xff]  }
  0x81   :  { %5269 = vmatpush2.bf16.msra.mxu1 %v7441_v22  ;;  %v7530_v22 = vld [vmem:[%s11148_s1 + $0x494] ss:$8 sps:$4 sm:$0xff]  }
  0x82   :  { %5230 = vmatmul.mubr.bf16.vlgmr.msra.gmra.mxu0 %v868_v20  ;;  %5320 = vmatprep.subr.bf16.mxu1 %v7449_v23  ;;  %v7527_v20 = vld [vmem:[%s11148_s1 + $0x5a4] ss:$8 sps:$4 sm:$0xff]   ;;  %v7525_v23 = vld [vmem:[%s11148_s1 + $0x5a0] ss:$8 sps:$4 sm:$0xff]  }
  0x83   :  { %5280 = vmatpush1.bf16.msra.mxu0 %v7444_v24  ;;  %5311 = vmatprep.mubr.bf16.mxu0 %v924_v34  ;;  %v9108_v24 = vrot.slane %v887_v19, %v8651_v48  ;;  %v7537_v34 = vld [vmem:[%s11148_s1 + $0x580] ss:$8 sps:$4 sm:$0xff]   ;;  %v7603_v19 = vld [vmem:[%s11148_s1 + $0x7d0] ss:$8 sps:$4 sm:$0xff]  }
  0x84   :  { %5271 = vmatmul.mubr.bf16.vlgmr.msra.gmra.mxu1 %v884_v5  ;;  %5281 = vmatprep.subr.bf16.mxu0 %v7452_v25  ;;  %v7533_v5 = vld [vmem:[%s11148_s1 + $0x594] ss:$8 sps:$4 sm:$0xff]   ;;  %v7528_v25 = vld [vmem:[%s11148_s1 + $0x490] ss:$8 sps:$4 sm:$0xff]  }
  0x85   :  { %5321 = vmatpush1.bf16.msra.mxu1 %v7447_v27  ;;  %5352 = vmatprep.mubr.bf16.mxu1 %v934_v37  ;;  %v7531_v27 = vld [vmem:[%s11148_s1 + $0x590] ss:$8 sps:$4 sm:$0xff]  }
  0x86   :  { %5322 = vmatprep.subr.bf16.mxu1 %v7455_v29  ;;  %v903_v29 = vcombine.high %v9108_v24, %v9108_v24 }
  0x87   :  { %5282 = vmatpush1.bf16.msra.mxu0 %v7450_v30  ;;  %v7539_v30 = vld [vmem:[%s11148_s1 + $0x584] ss:$8 sps:$4 sm:$0xff]  }
  0x88   :  { %5283 = vmatprep.subr.bf16.mxu0 %v7458_v32  ;;  %v910_v32 = vrot.slane %v8944_v28, %v8651_v48  ;;  %v7540_v28 = vld [vmem:[%s11148_s1 + $0x670] ss:$8 sps:$4 sm:$0xff]  }
  0x89   :  { %5323 = vmatpush1.bf16.msra.mxu1 %v7453_v33  ;;  %v7542_v33 = vld [vmem:[%s11148_s1 + $0x674] ss:$8 sps:$4 sm:$0xff]  }
  0x8a   :  { %5324 = vmatprep.subr.bf16.mxu1 %v7461_v35  ;;  %v931_v35 = vrot.slane %v903_v29, %v8651_v48  ;;  %v932_v37 = vcombine.high %v910_v32, %v910_v32  ;;  %v7623_v29 = vld [vmem:[%s11148_s1 + $0x7a4] ss:$8 sps:$4 sm:$0xff]  }
  0x8b   :  { %5284 = vmatpush1.bf16.msra.mxu0 %v7456_v36  ;;  %v7545_v36 = vld [vmem:[%s11148_s1 + $0x774] ss:$8 sps:$4 sm:$0xff]  }
  0x8c   :  { %5285 = vmatprep.subr.bf16.mxu0 %v7464_v38  ;;  %v7548_v38 = vld [vmem:[%s11148_s1 + $0x664] ss:$8 sps:$4 sm:$0xff]  }
  0x8d   :  { %5325 = vmatpush1.bf16.msra.mxu1 %v7459_v39  ;;  %v7543_v39 = vld [vmem:[%s11148_s1 + $0x770] ss:$8 sps:$4 sm:$0xff]  }
  0x8e   :  { %5326 = vmatprep.subr.bf16.mxu1 %v7467_v40  ;;  %v935_v40 = vcombine.high %v931_v35, %v931_v35 }
  0x8f   :  { %5286 = vmatpush1.bf16.msra.mxu0 %v7462_v41  ;;  %v7551_v41 = vld [vmem:[%s11148_s1 + $0x764] ss:$8 sps:$4 sm:$0xff]  }
  0x90   :  { %5287 = vmatprep.subr.bf16.mxu0 %v7470_v43  ;;  %v7546_v43 = vld [vmem:[%s11148_s1 + $0x660] ss:$8 sps:$4 sm:$0xff]  }
  0x91   :  { %5327 = vmatpush1.bf16.msra.mxu1 %v7465_v44  ;;  %v7554_v44 = vld [vmem:[%s11148_s1 + $0x654] ss:$8 sps:$4 sm:$0xff]  }
  0x92   :  { %5328 = vmatprep.subr.bf16.mxu1 %v7473_v45  ;;  %v7549_v45 = vld [vmem:[%s11148_s1 + $0x760] ss:$8 sps:$4 sm:$0xff]  }
  0x93   :  { %5288 = vmatpush1.bf16.msra.mxu0 %v7468_v46  ;;  %v7557_v46 = vld [vmem:[%s11148_s1 + $0x754] ss:$8 sps:$4 sm:$0xff]  }
  0x94   :  { %5289 = vmatprep.subr.bf16.mxu0 %v7476_v47  ;;  %v7552_v47 = vld [vmem:[%s11148_s1 + $0x650] ss:$8 sps:$4 sm:$0xff]  }
  0x95   :  { %5329 = vmatpush1.bf16.msra.mxu1 %v7471_v49  ;;  %v7560_v49 = vld [vmem:[%s11148_s1 + $0x644] ss:$8 sps:$4 sm:$0xff]  }
  0x96   :  { %5330 = vmatprep.subr.bf16.mxu1 %v7479_v50  ;;  %v7555_v50 = vld [vmem:[%s11148_s1 + $0x750] ss:$8 sps:$4 sm:$0xff]  }
  0x97   :  { %5290 = vmatpush1.bf16.msra.mxu0 %v7474_v51  ;;  %v7563_v51 = vld [vmem:[%s11148_s1 + $0x744] ss:$8 sps:$4 sm:$0xff]  }
  0x98   :  { %5291 = vmatprep.subr.bf16.mxu0 %v7482_v52  ;;  %v7558_v52 = vld [vmem:[%s11148_s1 + $0x640] ss:$8 sps:$4 sm:$0xff]  }
  0x99   :  { %5331 = vmatpush1.bf16.msra.mxu1 %v7477_v53  ;;  %v7566_v53 = vld [vmem:[%s11148_s1 + $0x634] ss:$8 sps:$4 sm:$0xff]  }
  0x9a   :  { %5332 = vmatprep.subr.bf16.mxu1 %v7485_v54  ;;  %v7561_v54 = vld [vmem:[%s11148_s1 + $0x740] ss:$8 sps:$4 sm:$0xff]  }
  0x9b   :  { %5292 = vmatpush1.bf16.msra.mxu0 %v7480_v55  ;;  %v7569_v55 = vld [vmem:[%s11148_s1 + $0x734] ss:$8 sps:$4 sm:$0xff]  }
  0x9c   :  { %5293 = vmatprep.subr.bf16.mxu0 %v7488_v56  ;;  %v7564_v56 = vld [vmem:[%s11148_s1 + $0x630] ss:$8 sps:$4 sm:$0xff]  }
  0x9d   :  { %5333 = vmatpush1.bf16.msra.mxu1 %v7483_v57  ;;  %v7572_v57 = vld [vmem:[%s11148_s1 + $0x624] ss:$8 sps:$4 sm:$0xff]  }
  0x9e   :  { %5334 = vmatprep.subr.bf16.mxu1 %v7491_v58  ;;  %v7567_v58 = vld [vmem:[%s11148_s1 + $0x730] ss:$8 sps:$4 sm:$0xff]  }
  0x9f   :  { %5294 = vmatpush1.bf16.msra.mxu0 %v7486_v59  ;;  %v7575_v59 = vld [vmem:[%s11148_s1 + $0x724] ss:$8 sps:$4 sm:$0xff]  }
  0xa0   :  { %5295 = vmatprep.subr.bf16.mxu0 %v7494_v60  ;;  %v7570_v60 = vld [vmem:[%s11148_s1 + $0x620] ss:$8 sps:$4 sm:$0xff]  }
  0xa1   :  { %5335 = vmatpush1.bf16.msra.mxu1 %v7489_v61  ;;  %v7578_v61 = vld [vmem:[%s11148_s1 + $0x614] ss:$8 sps:$4 sm:$0xff]  }
  0xa2   :  { %5336 = vmatprep.subr.bf16.mxu1 %v7497_v62  ;;  %v7573_v62 = vld [vmem:[%s11148_s1 + $0x720] ss:$8 sps:$4 sm:$0xff]  }
  0xa3   :  { %5296 = vmatpush2.bf16.msra.mxu0 %v7492_v63  ;;  %v7581_v63 = vld [vmem:[%s11148_s1 + $0x714] ss:$8 sps:$4 sm:$0xff]  }
  0xa4   :  { %5297 = vmatprep.subr.bf16.mxu0 %v7500_v0  ;;  %v7576_v0 = vld [vmem:[%s11148_s1 + $0x610] ss:$8 sps:$4 sm:$0xff]  }
  0xa5   :  { %5337 = vmatpush2.bf16.msra.mxu1 %v7495_v1  ;;  %v7584_v1 = vld [vmem:[%s11148_s1 + $0x604] ss:$8 sps:$4 sm:$0xff]  }
  0xa6   :  { %5338 = vmatprep.subr.bf16.mxu1 %v7503_v2  ;;  %v7579_v2 = vld [vmem:[%s11148_s1 + $0x710] ss:$8 sps:$4 sm:$0xff]  }
  0xa7   :  { %5298 = vmatpush2.bf16.msra.mxu0 %v7498_v3  ;;  %v7587_v3 = vld [vmem:[%s11148_s1 + $0x704] ss:$8 sps:$4 sm:$0xff]  }
  0xa8   :  { %5299 = vmatprep.subr.bf16.mxu0 %v7506_v4  ;;  %v7582_v4 = vld [vmem:[%s11148_s1 + $0x600] ss:$8 sps:$4 sm:$0xff]  }
  0xa9   :  { %5339 = vmatpush2.bf16.msra.mxu1 %v7501_v6  ;;  %v7590_v6 = vld [vmem:[%s11148_s1 + $0x6f4] ss:$8 sps:$4 sm:$0xff]  }
  0xaa   :  { %5340 = vmatprep.subr.bf16.mxu1 %v7509_v7  ;;  %v7585_v7 = vld [vmem:[%s11148_s1 + $0x700] ss:$8 sps:$4 sm:$0xff]  }
  0xab   :  { %5300 = vmatpush2.bf16.msra.mxu0 %v7504_v8  ;;  %v7593_v8 = vld [vmem:[%s11148_s1 + $0x7f4] ss:$8 sps:$4 sm:$0xff]  }
  0xac   :  { %5301 = vmatprep.subr.bf16.mxu0 %v7512_v9  ;;  %v7588_v9 = vld [vmem:[%s11148_s1 + $0x6f0] ss:$8 sps:$4 sm:$0xff]  }
  0xad   :  { %5341 = vmatpush2.bf16.msra.mxu1 %v7507_v10  ;;  %v7596_v10 = vld [vmem:[%s11148_s1 + $0x6e4] ss:$8 sps:$4 sm:$0xff]  }
  0xae   :  { %5342 = vmatprep.subr.bf16.mxu1 %v7515_v11  ;;  %v7591_v11 = vld [vmem:[%s11148_s1 + $0x7f0] ss:$8 sps:$4 sm:$0xff]  }
  0xaf   :  { %5302 = vmatpush2.bf16.msra.mxu0 %v7510_v12  ;;  %v7599_v12 = vld [vmem:[%s11148_s1 + $0x7e4] ss:$8 sps:$4 sm:$0xff]  }
  0xb0   :  { %5303 = vmatprep.subr.bf16.mxu0 %v7518_v13  ;;  %v7594_v13 = vld [vmem:[%s11148_s1 + $0x6e0] ss:$8 sps:$4 sm:$0xff]  }
  0xb1   :  { %5343 = vmatpush2.bf16.msra.mxu1 %v7513_v14  ;;  %v7602_v14 = vld [vmem:[%s11148_s1 + $0x6d4] ss:$8 sps:$4 sm:$0xff]  }
  0xb2   :  { %5344 = vmatprep.subr.bf16.mxu1 %v7521_v15  ;;  %v7597_v15 = vld [vmem:[%s11148_s1 + $0x7e0] ss:$8 sps:$4 sm:$0xff]  }
  0xb3   :  { %5304 = vmatpush2.bf16.msra.mxu0 %v7516_v16  ;;  %v7605_v16 = vld [vmem:[%s11148_s1 + $0x7d4] ss:$8 sps:$4 sm:$0xff]  }
  0xb4   :  { %5305 = vmatprep.subr.bf16.mxu0 %v7524_v17  ;;  %v7600_v17 = vld [vmem:[%s11148_s1 + $0x6d0] ss:$8 sps:$4 sm:$0xff]  }
  0xb5   :  { %5345 = vmatpush2.bf16.msra.mxu1 %v7519_v18  ;;  %v7608_v18 = vld [vmem:[%s11148_s1 + $0x6c4] ss:$8 sps:$4 sm:$0xff]  }
  0xb6   :  { %5346 = vmatprep.subr.bf16.mxu1 %v7527_v20  ;;  %v7611_v20 = vld [vmem:[%s11148_s1 + $0x7c4] ss:$8 sps:$4 sm:$0xff]  }
  0xb7   :  { %5306 = vmatpush2.bf16.msra.mxu0 %v7522_v21  ;;  %v7606_v21 = vld [vmem:[%s11148_s1 + $0x6c0] ss:$8 sps:$4 sm:$0xff]  }
  0xb8   :  { %5307 = vmatprep.subr.bf16.mxu0 %v7530_v22  ;;  %v7614_v22 = vld [vmem:[%s11148_s1 + $0x6b4] ss:$8 sps:$4 sm:$0xff]  }
  0xb9   :  { %5347 = vmatpush2.bf16.msra.mxu1 %v7525_v23  ;;  %v7609_v23 = vld [vmem:[%s11148_s1 + $0x7c0] ss:$8 sps:$4 sm:$0xff]  }
  0xba   :  { %5348 = vmatprep.subr.bf16.mxu1 %v7533_v5  ;;  %v7617_v5 = vld [vmem:[%s11148_s1 + $0x7b4] ss:$8 sps:$4 sm:$0xff]  }
  0xbb   :  { %5308 = vmatpush2.bf16.msra.mxu0 %v7528_v25  ;;  %v7612_v25 = vld [vmem:[%s11148_s1 + $0x6b0] ss:$8 sps:$4 sm:$0xff]  }
  0xbc   :  { %5309 = vmatprep.subr.bf16.mxu0 %v7536_v26  ;;  %v7620_v26 = vld [vmem:[%s11148_s1 + $0x6a4] ss:$8 sps:$4 sm:$0xff]  }
  0xbd   :  { %5349 = vmatpush2.bf16.msra.mxu1 %v7531_v27  ;;  %v7615_v27 = vld [vmem:[%s11148_s1 + $0x7b0] ss:$8 sps:$4 sm:$0xff]  }
  0xbe   :  { %5350 = vmatprep.subr.bf16.mxu1 %v7539_v30  ;;  %v9301_v30 = vld [vmem:[%s11147_s0 + $0x10] sm:$0xff] }
  0xbf   :  { %5310 = vmatpush2.bf16.msra.mxu0 %v7534_v31  ;;  %v7618_v31 = vld [vmem:[%s11148_s1 + $0x6a0] ss:$8 sps:$4 sm:$0xff]  }
  0xc0   :  { %5361 = vmatprep.subr.bf16.mxu0 %v7542_v33  ;;  %v7621_v33 = vld [vmem:[%s11148_s1 + $0x7a0] ss:$8 sps:$4 sm:$0xff]  }
  0xc1   :  { %5351 = vmatpush2.bf16.msra.mxu1 %v7537_v34  ;;  %v9314_v34 = vrot.slane %v9301_v30, %v8651_v48 }
  0xc2   :  { %5312 = vmatmul.mubr.bf16.vlgmr.msra.gmra.mxu0 %v910_v32  ;;  %5402 = vmatprep.subr.bf16.mxu1 %v7545_v36  ;;  %v7626_v32 = vld [vmem:[%s11148_s1 + $0x694] ss:$8 sps:$4 sm:$0xff]   ;;  %v7624_v36 = vld [vmem:[%s11148_s1 + $0x690] ss:$8 sps:$4 sm:$0xff]  }
  0xc3   :  { %5362 = vmatpush1.bf16.msra.mxu0 %v7540_v28  ;;  %5393 = vmatprep.mubr.bf16.mxu0 %v931_v35  ;;  %v7629_v35 = vld [vmem:[%s11148_s1 + $0x794] ss:$8 sps:$4 sm:$0xff]   ;;  %v7632_v28 = vld [vmem:[%s11148_s1 + $0x684] ss:$8 sps:$4 sm:$0xff]  }
  0xc4   :  { %5353 = vmatmul.mubr.bf16.vlgmr.msra.gmra.mxu1 %v932_v37  ;;  %5363 = vmatprep.subr.bf16.mxu0 %v7548_v38  ;;  %v7627_v37 = vld [vmem:[%s11148_s1 + $0x790] ss:$8 sps:$4 sm:$0xff]   ;;  %v951_v38 = vcombine.high %v9314_v34, %v9314_v34 }
  0xc5   :  { %5403 = vmatpush1.bf16.msra.mxu1 %v7543_v39  ;;  %5434 = vmatprep.mubr.bf16.mxu1 %v935_v40  ;;  %v7635_v39 = vld [vmem:[%s11148_s1 + $0x784] ss:$8 sps:$4 sm:$0xff]   ;;  %v7630_v40 = vld [vmem:[%s11148_s1 + $0x680] ss:$8 sps:$4 sm:$0xff]  }
  0xc6   :  { %5404 = vmatprep.subr.bf16.mxu1 %v7551_v41  ;;  %v819_v41 = vld [vmem:[%s11149_s2] sm:$0x3] }
  0xc7   :  { %5364 = vmatpush1.bf16.msra.mxu0 %v7546_v43  ;;  %v823_v43 = vsub.s32 0, %v8636_v42 }
  0xc8   :  { %5365 = vmatprep.subr.bf16.mxu0 %v7554_v44  ;;  %v917_v44 = vrot.slane %v9108_v24, %v8651_v48 }
  0xc9   :  { %5405 = vmatpush1.bf16.msra.mxu1 %v7549_v45  ;;  %v7639_v45 = vld [vmem:[%s11148_s1 + $0x874] ss:$8 sps:$4 sm:$0xff]   ;;  %v824_v24 = vrot.slane %v819_v41, %v823_v43  ;;  %v7694_v43 = vld [vmem:[%s11148_s1 + $0x9e0] ss:$8 sps:$4 sm:$0xff]  }
  0xca   :  { %5406 = vmatprep.subr.bf16.mxu1 %v7557_v46  ;;  %v7633_v46 = vld [vmem:[%s11148_s1 + $0x780] ss:$8 sps:$4 sm:$0xff]  }
  0xcb   :  { %5366 = vmatpush1.bf16.msra.mxu0 %v7552_v47  ;;  %v827_v47 = vsub.s32 1, %v8636_v42 }
  0xcc   :  { %5367 = vmatprep.subr.bf16.mxu0 %v7560_v49  ;;  %v973_v49 = vrot.slane %v951_v38, %v8651_v48  ;;  %v7688_v38 = vld [vmem:[%s11148_s1 + $0x9f0] ss:$8 sps:$4 sm:$0xff]  }
  0xcd   :  { %5407 = vmatpush1.bf16.msra.mxu1 %v7555_v50  ;;  %v7642_v50 = vld [vmem:[%s11148_s1 + $0x974] ss:$8 sps:$4 sm:$0xff]   ;;  %v828_v42 = vrot.slane %v819_v41, %v827_v47  ;;  %v7700_v47 = vld [vmem:[%s11148_s1 + $0x9d0] ss:$8 sps:$4 sm:$0xff]  }
  0xce   :  { %5408 = vmatprep.subr.bf16.mxu1 %v7563_v51  ;;  %v7637_v51 = vld [vmem:[%s11148_s1 + $0x870] ss:$8 sps:$4 sm:$0xff]   ;;  %v7699_v41 = vld [vmem:[%s11148_s1 + $0x8d4] ss:$8 sps:$4 sm:$0xff]  }
  0xcf   :  { %5368 = vmatpush1.bf16.msra.mxu0 %v7558_v52  ;;  %v933_v52 = vcombine.high %v917_v44, %v917_v44 }
  0xd0   :  { %5369 = vmatprep.subr.bf16.mxu0 %v7566_v53  ;;  %v7645_v53 = vld [vmem:[%s11148_s1 + $0x864] ss:$8 sps:$4 sm:$0xff]  }
  0xd1   :  { %5409 = vmatpush1.bf16.msra.mxu1 %v7561_v54  ;;  %v7640_v54 = vld [vmem:[%s11148_s1 + $0x970] ss:$8 sps:$4 sm:$0xff]  }
  0xd2   :  { %5410 = vmatprep.subr.bf16.mxu1 %v7569_v55  ;;  %v983_v55 = vcombine.high %v973_v49, %v973_v49 }
  0xd3   :  { %5370 = vmatpush1.bf16.msra.mxu0 %v7564_v56 }
  0xd4   :  { %5371 = vmatprep.subr.bf16.mxu0 %v7572_v57  ;;  %v7648_v57 = vld [vmem:[%s11148_s1 + $0x964] ss:$8 sps:$4 sm:$0xff]  }
  0xd5   :  { %5411 = vmatpush1.bf16.msra.mxu1 %v7567_v58 }
  0xd6   :  { %5412 = vmatprep.subr.bf16.mxu1 %v7575_v59  ;;  %v7643_v59 = vld [vmem:[%s11148_s1 + $0x860] ss:$8 sps:$4 sm:$0xff]  }
  0xd7   :  { %5372 = vmatpush1.bf16.msra.mxu0 %v7570_v60 }
  0xd8   :  { %5373 = vmatprep.subr.bf16.mxu0 %v7578_v61 }
  0xd9   :  { %5413 = vmatpush1.bf16.msra.mxu1 %v7573_v62  ;;  %v7651_v62 = vld [vmem:[%s11148_s1 + $0x854] ss:$8 sps:$4 sm:$0xff]  }
  0xda   :  { %5414 = vmatprep.subr.bf16.mxu1 %v7581_v63 }
  0xdb   :  { %5374 = vmatpush1.bf16.msra.mxu0 %v7576_v0 }
  0xdc   :  { %5375 = vmatprep.subr.bf16.mxu0 %v7584_v1  ;;  %v7646_v1 = vld [vmem:[%s11148_s1 + $0x960] ss:$8 sps:$4 sm:$0xff]  }
  0xdd   :  { %5415 = vmatpush1.bf16.msra.mxu1 %v7579_v2 }
  0xde   :  { %5416 = vmatprep.subr.bf16.mxu1 %v7587_v3 }
  0xdf   :  { %5376 = vmatpush1.bf16.msra.mxu0 %v7582_v4  ;;  %v7654_v4 = vld [vmem:[%s11148_s1 + $0x954] ss:$8 sps:$4 sm:$0xff]  }
  0xe0   :  { %5377 = vmatprep.subr.bf16.mxu0 %v7590_v6 }
  0xe1   :  { %5417 = vmatpush1.bf16.msra.mxu1 %v7585_v7  ;;  %v7649_v7 = vld [vmem:[%s11148_s1 + $0x850] ss:$8 sps:$4 sm:$0xff]  }
  0xe2   :  { %5418 = vmatprep.subr.bf16.mxu1 %v7593_v8 }
  0xe3   :  { %5378 = vmatpush2.bf16.msra.mxu0 %v7588_v9  ;;  %v7657_v9 = vld [vmem:[%s11148_s1 + $0x844] ss:$8 sps:$4 sm:$0xff]  }
  0xe4   :  { %5379 = vmatprep.subr.bf16.mxu0 %v7596_v10 }
  0xe5   :  { %5419 = vmatpush2.bf16.msra.mxu1 %v7591_v11  ;;  %v7652_v11 = vld [vmem:[%s11148_s1 + $0x950] ss:$8 sps:$4 sm:$0xff]  }
  0xe6   :  { %5420 = vmatprep.subr.bf16.mxu1 %v7599_v12  ;;  %v7660_v12 = vld [vmem:[%s11148_s1 + $0x944] ss:$8 sps:$4 sm:$0xff]  }
  0xe7   :  { %5380 = vmatpush2.bf16.msra.mxu0 %v7594_v13 }
  0xe8   :  { %5381 = vmatprep.subr.bf16.mxu0 %v7602_v14  ;;  %v7655_v14 = vld [vmem:[%s11148_s1 + $0x840] ss:$8 sps:$4 sm:$0xff]  }
  0xe9   :  { %5421 = vmatpush2.bf16.msra.mxu1 %v7597_v15  ;;  %v7663_v15 = vld [vmem:[%s11148_s1 + $0x834] ss:$8 sps:$4 sm:$0xff]  }
  0xea   :  { %5422 = vmatprep.subr.bf16.mxu1 %v7605_v16  ;;  %v7658_v16 = vld [vmem:[%s11148_s1 + $0x940] ss:$8 sps:$4 sm:$0xff]  }
  0xeb   :  { %5382 = vmatpush2.bf16.msra.mxu0 %v7600_v17  ;;  %v7666_v17 = vld [vmem:[%s11148_s1 + $0x934] ss:$8 sps:$4 sm:$0xff]  }
  0xec   :  { %5383 = vmatprep.subr.bf16.mxu0 %v7608_v18  ;;  %v7661_v18 = vld [vmem:[%s11148_s1 + $0x830] ss:$8 sps:$4 sm:$0xff]  }
  0xed   :  { %5423 = vmatpush2.bf16.msra.mxu1 %v7603_v19  ;;  %v7669_v19 = vld [vmem:[%s11148_s1 + $0x824] ss:$8 sps:$4 sm:$0xff]  }
  0xee   :  { %5424 = vmatprep.subr.bf16.mxu1 %v7611_v20  ;;  %v7664_v20 = vld [vmem:[%s11148_s1 + $0x930] ss:$8 sps:$4 sm:$0xff]  }
  0xef   :  { %5384 = vmatpush2.bf16.msra.mxu0 %v7606_v21  ;;  %v7672_v21 = vld [vmem:[%s11148_s1 + $0x924] ss:$8 sps:$4 sm:$0xff]  }
  0xf0   :  { %5385 = vmatprep.subr.bf16.mxu0 %v7614_v22  ;;  %v7667_v22 = vld [vmem:[%s11148_s1 + $0x820] ss:$8 sps:$4 sm:$0xff]  }
  0xf1   :  { %5425 = vmatpush2.bf16.msra.mxu1 %v7609_v23  ;;  %v7675_v23 = vld [vmem:[%s11148_s1 + $0x814] ss:$8 sps:$4 sm:$0xff]  }
  0xf2   :  { %5426 = vmatprep.subr.bf16.mxu1 %v7617_v5  ;;  %v7670_v5 = vld [vmem:[%s11148_s1 + $0x920] ss:$8 sps:$4 sm:$0xff]  }
  0xf3   :  { %5386 = vmatpush2.bf16.msra.mxu0 %v7612_v25  ;;  %v7678_v25 = vld [vmem:[%s11148_s1 + $0x914] ss:$8 sps:$4 sm:$0xff]  }
  0xf4   :  { %5387 = vmatprep.subr.bf16.mxu0 %v7620_v26  ;;  %v7673_v26 = vld [vmem:[%s11148_s1 + $0x810] ss:$8 sps:$4 sm:$0xff]  }
  0xf5   :  { %5427 = vmatpush2.bf16.msra.mxu1 %v7615_v27  ;;  %v7681_v27 = vld [vmem:[%s11148_s1 + $0x804] ss:$8 sps:$4 sm:$0xff]  }
  0xf6   :  { %5428 = vmatprep.subr.bf16.mxu1 %v7623_v29  ;;  %v7676_v29 = vld [vmem:[%s11148_s1 + $0x910] ss:$8 sps:$4 sm:$0xff]  }
  0xf7   :  { %5388 = vmatpush2.bf16.msra.mxu0 %v7618_v31  ;;  %v7684_v31 = vld [vmem:[%s11148_s1 + $0x904] ss:$8 sps:$4 sm:$0xff]  }
  0xf8   :  { %5389 = vmatprep.subr.bf16.mxu0 %v7626_v32  ;;  %v7679_v32 = vld [vmem:[%s11148_s1 + $0x800] ss:$8 sps:$4 sm:$0xff]  }
  0xf9   :  { %5429 = vmatpush2.bf16.msra.mxu1 %v7621_v33  ;;  %v7687_v33 = vld [vmem:[%s11148_s1 + $0x8f4] ss:$8 sps:$4 sm:$0xff]  }
  0xfa   :  { %5430 = vmatprep.subr.bf16.mxu1 %v7629_v35  ;;  %v7682_v35 = vld [vmem:[%s11148_s1 + $0x900] ss:$8 sps:$4 sm:$0xff]  }
  0xfb   :  { %5390 = vmatpush2.bf16.msra.mxu0 %v7624_v36  ;;  %v7690_v36 = vld [vmem:[%s11148_s1 + $0x9f4] ss:$8 sps:$4 sm:$0xff]  }
  0xfc   :  { %5391 = vmatprep.subr.bf16.mxu0 %v7632_v28  ;;  %v7685_v28 = vld [vmem:[%s11148_s1 + $0x8f0] ss:$8 sps:$4 sm:$0xff]  }
  0xfd   :  { %5431 = vmatpush2.bf16.msra.mxu1 %v7627_v37  ;;  %v7693_v37 = vld [vmem:[%s11148_s1 + $0x8e4] ss:$8 sps:$4 sm:$0xff]  }
  0xfe   :  { %5432 = vmatprep.subr.bf16.mxu1 %v7635_v39  ;;  %v7696_v39 = vld [vmem:[%s11148_s1 + $0x9e4] ss:$8 sps:$4 sm:$0xff]  }
  0xff   :  { %5392 = vmatpush2.bf16.msra.mxu0 %v7630_v40  ;;  %v7691_v40 = vld [vmem:[%s11148_s1 + $0x8e0] ss:$8 sps:$4 sm:$0xff]  }
 0x100   :  { %5443 = vmatprep.subr.bf16.mxu0 %v7639_v45  ;;  %v7697_v45 = vld [vmem:[%s11148_s1 + $0x8d0] ss:$8 sps:$4 sm:$0xff]  }
 0x101   :  { %5433 = vmatpush2.bf16.msra.mxu1 %v7633_v46  ;;  %v7705_v46 = vld [vmem:[%s11148_s1 + $0x8c4] ss:$8 sps:$4 sm:$0xff]  }
 0x102   :  { %v5149_v56 = vpop.f32.mrf.mxu0  ;;  %5394 = vmatmul.mubr.bf16.vlgmr.msra.gmra.mxu0 %v917_v44  ;;  %5484 = vmatprep.subr.bf16.mxu1 %v7642_v50  ;;  %v7702_v44 = vld [vmem:[%s11148_s1 + $0x9d4] ss:$8 sps:$4 sm:$0xff]   ;;  %v7703_v50 = vld [vmem:[%s11148_s1 + $0x8c0] ss:$8 sps:$4 sm:$0xff]  }
 0x103   :  { %v5150_v58 = vadd.f32 %v5149_v56, %v824_v24  ;;  %5444 = vmatpush1.bf16.msra.mxu0 %v7637_v51  ;;  %5475 = vmatprep.mubr.bf16.mxu0 %v973_v49  ;;  %v7708_v49 = vld [vmem:[%s11148_s1 + $0x9c4] ss:$8 sps:$4 sm:$0xff]   ;;  %v7711_v24 = vld [vmem:[%s11148_s1 + $0x8b4] ss:$8 sps:$4 sm:$0xff]   ;;  %v7706_v51 = vld [vmem:[%s11148_s1 + $0x9c0] ss:$8 sps:$4 sm:$0xff]  }
 0x104   :  { %v5151_v60 = vpop.f32.mrf.mxu0  ;;  %v5190_v61 = vpop.f32.mrf.mxu1  ;;  %5435 = vmatmul.mubr.bf16.vlgmr.msra.gmra.mxu1 %v933_v52  ;;  %5445 = vmatprep.subr.bf16.mxu0 %v7645_v53  ;;  %v7714_v52 = vld [vmem:[%s11148_s1 + $0x9b4] ss:$8 sps:$4 sm:$0xff]   ;;  %v7709_v53 = vld [vmem:[%s11148_s1 + $0x8b0] ss:$8 sps:$4 sm:$0xff]   ;;  %v7720_v56 = vld [vmem:[%s11148_s1 + $0x9a4] ss:$8 sps:$4 sm:$0xff]  }
 0x105   :  { %v5152_v63 = vadd.f32 %v5151_v60, %v828_v42  ;;  %v9371_v0 = vadd.f32 %v5190_v61, %v5150_v58  ;;  %5485 = vmatpush1.bf16.msra.mxu1 %v7640_v54  ;;  %5516 = vmatprep.mubr.bf16.mxu1 %v983_v55  ;;  %v7717_v42 = vld [vmem:[%s11148_s1 + $0x8a4] ss:$8 sps:$4 sm:$0xff]   ;;  %v7712_v54 = vld [vmem:[%s11148_s1 + $0x9b0] ss:$8 sps:$4 sm:$0xff]   ;;  %v936_v55 = vcombine.high %v9301_v30, %v9301_v30  ;;  %v7723_v58 = vld [vmem:[%s11148_s1 + $0x894] ss:$8 sps:$4 sm:$0xff]  }
 0x106   :  { %v5153_v2 = vpop.f32.mrf.mxu0  ;;  %v5192_v3 = vpop.f32.mrf.mxu1  ;;  %5486 = vmatprep.subr.bf16.mxu1 %v7648_v57  ;;  %v7715_v57 = vld [vmem:[%s11148_s1 + $0x8a0] ss:$8 sps:$4 sm:$0xff]   ;;  %v7726_v60 = vld [vmem:[%s11148_s1 + $0x994] ss:$8 sps:$4 sm:$0xff]   ;;  %v7721_v61 = vld [vmem:[%s11148_s1 + $0x890] ss:$8 sps:$4 sm:$0xff]  }
 0x107   :  { %v9379_v6 = vadd.f32 %v5192_v3, %v5152_v63  ;;  %5446 = vmatpush1.bf16.msra.mxu0 %v7643_v59  ;;  %v7718_v30 = vld [vmem:[%s11148_s1 + $0x9a0] ss:$8 sps:$4 sm:$0xff]   ;;  %v9525_v59 = vrot.slane %v936_v55, %v8651_v48  ;;  %v7724_v63 = vld [vmem:[%s11148_s1 + $0x990] ss:$8 sps:$4 sm:$0xff]   ;;  %v7732_v3 = vld [vmem:[%s11148_s1 + $0x984] ss:$8 sps:$4 sm:$0xff]  }
 0x108   :  { %v5154_v8 = vpop.f32.mrf.mxu0  ;;  %5447 = vmatprep.subr.bf16.mxu0 %v7651_v62  ;;  %v5194_v10 = vpop.f32.mrf.mxu1  ;;  %v7729_v62 = vld [vmem:[%s11148_s1 + $0x884] ss:$8 sps:$4 sm:$0xff]   ;;  %v7727_v2 = vld [vmem:[%s11148_s1 + $0x880] ss:$8 sps:$4 sm:$0xff]   ;;  %v7781_v55 = vld [vmem:[%s11148_s1 + $0xaf0] ss:$8 sps:$4 sm:$0xff]  }
 0x109   :  { %5487 = vmatpush1.bf16.msra.mxu1 %v7646_v1  ;;  %v952_v1 = vcombine.high %v9525_v59, %v9525_v59  ;;  %v7735_v8 = vld [vmem:[%s11148_s1 + $0xa74] ss:$8 sps:$4 sm:$0xff]  }
 0x10a   :  { %5488 = vmatprep.subr.bf16.mxu1 %v7654_v4  ;;  %v5195_v13 = vpop.f32.mrf.mxu1  ;;  %v7730_v4 = vld [vmem:[%s11148_s1 + $0x980] ss:$8 sps:$4 sm:$0xff]  }
 0x10b   :  { %5448 = vmatpush1.bf16.msra.mxu0 %v7649_v7  ;;  %v959_v7 = vrot.slane %v9314_v34, %v8651_v48  ;;  %v980_v10 = vrot.slane %v952_v1, %v8651_v48  ;;  %v7736_v34 = vld [vmem:[%s11148_s1 + $0xb70] ss:$8 sps:$4 sm:$0xff]   ;;  %v7741_v13 = vld [vmem:[%s11148_s1 + $0xa64] ss:$8 sps:$4 sm:$0xff]   ;;  %v7798_v1 = vld [vmem:[%s11148_s1 + $0xbd4] ss:$8 sps:$4 sm:$0xff]  }
 0x10c   :  { %5449 = vmatprep.subr.bf16.mxu0 %v7657_v9  ;;  %v7733_v9 = vld [vmem:[%s11148_s1 + $0xa70] ss:$8 sps:$4 sm:$0xff]  }
 0x10d   :  { %5489 = vmatpush1.bf16.msra.mxu1 %v7652_v11  ;;  %v7738_v11 = vld [vmem:[%s11148_s1 + $0xb74] ss:$8 sps:$4 sm:$0xff]  }
 0x10e   :  { %5490 = vmatprep.subr.bf16.mxu1 %v7660_v12  ;;  %v981_v12 = vcombine.high %v959_v7, %v959_v7 }
 0x10f   :  { %5450 = vmatpush1.bf16.msra.mxu0 %v7655_v14  ;;  %v7739_v14 = vld [vmem:[%s11148_s1 + $0xa60] ss:$8 sps:$4 sm:$0xff]  }
 0x110   :  { %5451 = vmatprep.subr.bf16.mxu0 %v7663_v15  ;;  %v984_v15 = vcombine.high %v980_v10, %v980_v10 }
 0x111   :  { %5491 = vmatpush1.bf16.msra.mxu1 %v7658_v16 }
 0x112   :  { %5492 = vmatprep.subr.bf16.mxu1 %v7666_v17  ;;  %v7744_v17 = vld [vmem:[%s11148_s1 + $0xb64] ss:$8 sps:$4 sm:$0xff]  }
 0x113   :  { %5452 = vmatpush1.bf16.msra.mxu0 %v7661_v18 }
 0x114   :  { %5453 = vmatprep.subr.bf16.mxu0 %v7669_v19  ;;  %v7742_v19 = vld [vmem:[%s11148_s1 + $0xb60] ss:$8 sps:$4 sm:$0xff]  }
 0x115   :  { %5493 = vmatpush1.bf16.msra.mxu1 %v7664_v20 }
 0x116   :  { %5494 = vmatprep.subr.bf16.mxu1 %v7672_v21 }
 0x117   :  { %5454 = vmatpush1.bf16.msra.mxu0 %v7667_v22  ;;  %v7747_v22 = vld [vmem:[%s11148_s1 + $0xa54] ss:$8 sps:$4 sm:$0xff]  }
 0x118   :  { %5455 = vmatprep.subr.bf16.mxu0 %v7675_v23 }
 0x119   :  { %5495 = vmatpush1.bf16.msra.mxu1 %v7670_v5 }
 0x11a   :  { %5496 = vmatprep.subr.bf16.mxu1 %v7678_v25 }
 0x11b   :  { %5456 = vmatpush1.bf16.msra.mxu0 %v7673_v26 }
 0x11c   :  { %5457 = vmatprep.subr.bf16.mxu0 %v7681_v27  ;;  %v7750_v27 = vld [vmem:[%s11148_s1 + $0xb54] ss:$8 sps:$4 sm:$0xff]  }
 0x11d   :  { %5497 = vmatpush1.bf16.msra.mxu1 %v7676_v29 }
 0x11e   :  { %5498 = vmatprep.subr.bf16.mxu1 %v7684_v31 }
 0x11f   :  { %5458 = vmatpush1.bf16.msra.mxu0 %v7679_v32  ;;  %v7753_v32 = vld [vmem:[%s11148_s1 + $0xa44] ss:$8 sps:$4 sm:$0xff]  }
 0x120   :  { %5459 = vmatprep.subr.bf16.mxu0 %v7687_v33 }
 0x121   :  { %5499 = vmatpush1.bf16.msra.mxu1 %v7682_v35  ;;  %v7751_v35 = vld [vmem:[%s11148_s1 + $0xa40] ss:$8 sps:$4 sm:$0xff]  }
 0x122   :  { %5500 = vmatprep.subr.bf16.mxu1 %v7690_v36  ;;  %v7756_v36 = vld [vmem:[%s11148_s1 + $0xb44] ss:$8 sps:$4 sm:$0xff]  }
 0x123   :  { %5460 = vmatpush2.bf16.msra.mxu0 %v7685_v28 }
 0x124   :  { %5461 = vmatprep.subr.bf16.mxu0 %v7693_v37  ;;  %v7754_v37 = vld [vmem:[%s11148_s1 + $0xb40] ss:$8 sps:$4 sm:$0xff]  }
 0x125   :  { %5501 = vmatpush2.bf16.msra.mxu1 %v7688_v38  ;;  %v7759_v38 = vld [vmem:[%s11148_s1 + $0xa34] ss:$8 sps:$4 sm:$0xff]  }
 0x126   :  { %5502 = vmatprep.subr.bf16.mxu1 %v7696_v39  ;;  %v7757_v39 = vld [vmem:[%s11148_s1 + $0xa30] ss:$8 sps:$4 sm:$0xff]  }
 0x127   :  { %5462 = vmatpush2.bf16.msra.mxu0 %v7691_v40  ;;  %v7762_v40 = vld [vmem:[%s11148_s1 + $0xb34] ss:$8 sps:$4 sm:$0xff]  }
 0x128   :  { %5463 = vmatprep.subr.bf16.mxu0 %v7699_v41  ;;  %v7760_v41 = vld [vmem:[%s11148_s1 + $0xb30] ss:$8 sps:$4 sm:$0xff]  }
 0x129   :  { %5503 = vmatpush2.bf16.msra.mxu1 %v7694_v43  ;;  %v7765_v43 = vld [vmem:[%s11148_s1 + $0xa24] ss:$8 sps:$4 sm:$0xff]  }
 0x12a   :  { %5504 = vmatprep.subr.bf16.mxu1 %v7702_v44  ;;  %v7763_v44 = vld [vmem:[%s11148_s1 + $0xa20] ss:$8 sps:$4 sm:$0xff]  }
 0x12b   :  { %5464 = vmatpush2.bf16.msra.mxu0 %v7697_v45  ;;  %v7768_v45 = vld [vmem:[%s11148_s1 + $0xb24] ss:$8 sps:$4 sm:$0xff]  }
 0x12c   :  { %5465 = vmatprep.subr.bf16.mxu0 %v7705_v46  ;;  %v7766_v46 = vld [vmem:[%s11148_s1 + $0xb20] ss:$8 sps:$4 sm:$0xff]  }
 0x12d   :  { %5505 = vmatpush2.bf16.msra.mxu1 %v7700_v47  ;;  %v7771_v47 = vld [vmem:[%s11148_s1 + $0xa14] ss:$8 sps:$4 sm:$0xff]  }
 0x12e   :  { %5506 = vmatprep.subr.bf16.mxu1 %v7708_v49  ;;  %v7769_v49 = vld [vmem:[%s11148_s1 + $0xa10] ss:$8 sps:$4 sm:$0xff]  }
 0x12f   :  { %5466 = vmatpush2.bf16.msra.mxu0 %v7703_v50  ;;  %v7774_v50 = vld [vmem:[%s11148_s1 + $0xb14] ss:$8 sps:$4 sm:$0xff]  }
 0x130   :  { %5467 = vmatprep.subr.bf16.mxu0 %v7711_v24  ;;  %v7772_v24 = vld [vmem:[%s11148_s1 + $0xb10] ss:$8 sps:$4 sm:$0xff]  }
 0x131   :  { %5507 = vmatpush2.bf16.msra.mxu1 %v7706_v51  ;;  %v7777_v51 = vld [vmem:[%s11148_s1 + $0xa04] ss:$8 sps:$4 sm:$0xff]  }
 0x132   :  { %5508 = vmatprep.subr.bf16.mxu1 %v7714_v52  ;;  %v7775_v52 = vld [vmem:[%s11148_s1 + $0xa00] ss:$8 sps:$4 sm:$0xff]  }
 0x133   :  { %5468 = vmatpush2.bf16.msra.mxu0 %v7709_v53  ;;  %v7780_v53 = vld [vmem:[%s11148_s1 + $0xb04] ss:$8 sps:$4 sm:$0xff]  }
 0x134   :  { %5469 = vmatprep.subr.bf16.mxu0 %v7717_v42  ;;  %v7778_v42 = vld [vmem:[%s11148_s1 + $0xb00] ss:$8 sps:$4 sm:$0xff]  }
 0x135   :  { %5509 = vmatpush2.bf16.msra.mxu1 %v7712_v54  ;;  %v7783_v54 = vld [vmem:[%s11148_s1 + $0xaf4] ss:$8 sps:$4 sm:$0xff]  }
 0x136   :  { %5510 = vmatprep.subr.bf16.mxu1 %v7720_v56  ;;  %v7786_v56 = vld [vmem:[%s11148_s1 + $0xbf4] ss:$8 sps:$4 sm:$0xff]  }
 0x137   :  { %5470 = vmatpush2.bf16.msra.mxu0 %v7715_v57  ;;  %v7784_v57 = vld [vmem:[%s11148_s1 + $0xbf0] ss:$8 sps:$4 sm:$0xff]  }
 0x138   :  { %5471 = vmatprep.subr.bf16.mxu0 %v7723_v58  ;;  %v7789_v58 = vld [vmem:[%s11148_s1 + $0xae4] ss:$8 sps:$4 sm:$0xff]  }
 0x139   :  { %5511 = vmatpush2.bf16.msra.mxu1 %v7718_v30  ;;  %v7787_v30 = vld [vmem:[%s11148_s1 + $0xae0] ss:$8 sps:$4 sm:$0xff]  }
 0x13a   :  { %5512 = vmatprep.subr.bf16.mxu1 %v7726_v60  ;;  %v7792_v60 = vld [vmem:[%s11148_s1 + $0xbe4] ss:$8 sps:$4 sm:$0xff]  }
 0x13b   :  { %5472 = vmatpush2.bf16.msra.mxu0 %v7721_v61  ;;  %v7790_v61 = vld [vmem:[%s11148_s1 + $0xbe0] ss:$8 sps:$4 sm:$0xff]  }
 0x13c   :  { %5473 = vmatprep.subr.bf16.mxu0 %v7729_v62  ;;  %v7795_v62 = vld [vmem:[%s11148_s1 + $0xad4] ss:$8 sps:$4 sm:$0xff]  }
 0x13d   :  { %5513 = vmatpush2.bf16.msra.mxu1 %v7724_v63  ;;  %v7793_v63 = vld [vmem:[%s11148_s1 + $0xad0] ss:$8 sps:$4 sm:$0xff]  }
 0x13e   :  { %5514 = vmatprep.subr.bf16.mxu1 %v7732_v3  ;;  %v7801_v3 = vld [vmem:[%s11148_s1 + $0xac4] ss:$8 sps:$4 sm:$0xff]  }
 0x13f   :  { %5474 = vmatpush2.bf16.msra.mxu0 %v7727_v2  ;;  %v7796_v2 = vld [vmem:[%s11148_s1 + $0xbd0] ss:$8 sps:$4 sm:$0xff]  }
 0x140   :  { %5525 = vmatprep.subr.bf16.mxu0 %v7735_v8  ;;  %v7802_v8 = vld [vmem:[%s11148_s1 + $0xbc0] ss:$8 sps:$4 sm:$0xff]  }
 0x141   :  { %5515 = vmatpush2.bf16.msra.mxu1 %v7730_v4  ;;  %v7799_v4 = vld [vmem:[%s11148_s1 + $0xac0] ss:$8 sps:$4 sm:$0xff]  }
 0x142   :  { %v5231_v16 = vpop.f32.mrf.mxu0  ;;  %5476 = vmatmul.mubr.bf16.vlgmr.msra.gmra.mxu0 %v959_v7  ;;  %5566 = vmatprep.subr.bf16.mxu1 %v7738_v11  ;;  %v7804_v7 = vld [vmem:[%s11148_s1 + $0xbc4] ss:$8 sps:$4 sm:$0xff]   ;;  %v7810_v11 = vld [vmem:[%s11148_s1 + $0xbb4] ss:$8 sps:$4 sm:$0xff]  }
 0x143   :  { %v5232_v18 = vadd.f32 %v5231_v16, %v9371_v0  ;;  %5526 = vmatpush1.bf16.msra.mxu0 %v7733_v9  ;;  %5557 = vmatprep.mubr.bf16.mxu0 %v980_v10  ;;  %v7745_v0 = vld [vmem:[%s11148_s1 + $0xa50] ss:$8 sps:$4 sm:$0xff]   ;;  %v7807_v9 = vld [vmem:[%s11148_s1 + $0xab4] ss:$8 sps:$4 sm:$0xff]  }
 0x144   :  { %v5233_v20 = vpop.f32.mrf.mxu0  ;;  %v5272_v21 = vpop.f32.mrf.mxu1  ;;  %5517 = vmatmul.mubr.bf16.vlgmr.msra.gmra.mxu1 %v981_v12  ;;  %5527 = vmatprep.subr.bf16.mxu0 %v7741_v13  ;;  %v7805_v10 = vld [vmem:[%s11148_s1 + $0xab0] ss:$8 sps:$4 sm:$0xff]   ;;  %v7813_v12 = vld [vmem:[%s11148_s1 + $0xaa4] ss:$8 sps:$4 sm:$0xff]   ;;  %v7819_v16 = vld [vmem:[%s11148_s1 + $0xa94] ss:$8 sps:$4 sm:$0xff]  }
 0x145   :  { %v5234_v23 = vadd.f32 %v5233_v20, %v9379_v6  ;;  %v9582_v5 = vadd.f32 %v5272_v21, %v5232_v18  ;;  %5567 = vmatpush1.bf16.msra.mxu1 %v7736_v34  ;;  %5598 = vmatprep.mubr.bf16.mxu1 %v984_v15  ;;  %v7748_v6 = vld [vmem:[%s11148_s1 + $0xb50] ss:$8 sps:$4 sm:$0xff]   ;;  %v7816_v13 = vld [vmem:[%s11148_s1 + $0xba4] ss:$8 sps:$4 sm:$0xff]   ;;  %v7811_v15 = vld [vmem:[%s11148_s1 + $0xaa0] ss:$8 sps:$4 sm:$0xff]  }
 0x146   :  { %v5235_v25 = vpop.f32.mrf.mxu0  ;;  %v5274_v26 = vpop.f32.mrf.mxu1  ;;  %5568 = vmatprep.subr.bf16.mxu1 %v7744_v17  ;;  %v7808_v34 = vld [vmem:[%s11148_s1 + $0xbb0] ss:$8 sps:$4 sm:$0xff]   ;;  %v7814_v17 = vld [vmem:[%s11148_s1 + $0xba0] ss:$8 sps:$4 sm:$0xff]   ;;  %v7825_v21 = vld [vmem:[%s11148_s1 + $0xa84] ss:$8 sps:$4 sm:$0xff]  }
 0x147   :  { %v9590_v29 = vadd.f32 %v5274_v26, %v5234_v23  ;;  %5528 = vmatpush1.bf16.msra.mxu0 %v7739_v14  ;;  %v9724_v14 = vld [vmem:[%s11147_s0 + $0x18] sm:$0xff]  ;;  %v7823_v25 = vld [vmem:[%s11148_s1 + $0xa80] ss:$8 sps:$4 sm:$0xff]   ;;  %v966_v26 = vrot.slane %v9525_v59, %v8651_v48 }
 0x148   :  { %v5236_v31 = vpop.f32.mrf.mxu0  ;;  %5529 = vmatprep.subr.bf16.mxu0 %v7747_v22  ;;  %v5276_v33 = vpop.f32.mrf.mxu1  ;;  %v9737_v18 = vrot.slane %v9724_v14, %v8651_v48  ;;  %v7817_v20 = vld [vmem:[%s11148_s1 + $0xa90] ss:$8 sps:$4 sm:$0xff]  }
 0x149   :  { %5569 = vmatpush1.bf16.msra.mxu1 %v7742_v19  ;;  %v7822_v19 = vld [vmem:[%s11148_s1 + $0xb94] ss:$8 sps:$4 sm:$0xff]   ;;  %v7820_v22 = vld [vmem:[%s11148_s1 + $0xb90] ss:$8 sps:$4 sm:$0xff]   ;;  %v982_v33 = vcombine.high %v966_v26, %v966_v26 }
 0x14a   :  { %5570 = vmatprep.subr.bf16.mxu1 %v7750_v27  ;;  %v5277_v28 = vpop.f32.mrf.mxu1  ;;  %v1000_v23 = vcombine.high %v9737_v18, %v9737_v18  ;;  %v7832_v27 = vld [vmem:[%s11148_s1 + $0xc74] ss:$8 sps:$4 sm:$0xff]   ;;  %v7830_v59 = vld [vmem:[%s11148_s1 + $0xc70] ss:$8 sps:$4 sm:$0xff]  }
 0x14b   :  { %5530 = vmatpush1.bf16.msra.mxu0 %v7745_v0  ;;  %v7828_v0 = vld [vmem:[%s11148_s1 + $0xb84] ss:$8 sps:$4 sm:$0xff]  }
 0x14c   :  { %5531 = vmatprep.subr.bf16.mxu0 %v7753_v32  ;;  %v1022_v31 = vrot.slane %v1000_v23, %v8651_v48  ;;  %v7835_v32 = vld [vmem:[%s11148_s1 + $0xd74] ss:$8 sps:$4 sm:$0xff]  }
 0x14d   :  { %5571 = vmatpush1.bf16.msra.mxu1 %v7748_v6  ;;  %v7826_v6 = vld [vmem:[%s11148_s1 + $0xb80] ss:$8 sps:$4 sm:$0xff]   ;;  %v7895_v23 = vld [vmem:[%s11148_s1 + $0xdd4] ss:$8 sps:$4 sm:$0xff]  }
 0x14e   :  { %5572 = vmatprep.subr.bf16.mxu1 %v7756_v36  ;;  %v7833_v36 = vld [vmem:[%s11148_s1 + $0xd70] ss:$8 sps:$4 sm:$0xff]   ;;  %v1032_v28 = vcombine.high %v1022_v31, %v1022_v31 }
 0x14f   :  { %5532 = vmatpush1.bf16.msra.mxu0 %v7751_v35  ;;  %v7838_v35 = vld [vmem:[%s11148_s1 + $0xc64] ss:$8 sps:$4 sm:$0xff]  }
 0x150   :  { %5533 = vmatprep.subr.bf16.mxu0 %v7759_v38  ;;  %v7841_v38 = vld [vmem:[%s11148_s1 + $0xd64] ss:$8 sps:$4 sm:$0xff]  }
 0x151   :  { %5573 = vmatpush1.bf16.msra.mxu1 %v7754_v37 }
 0x152   :  { %5574 = vmatprep.subr.bf16.mxu1 %v7762_v40  ;;  %v7836_v40 = vld [vmem:[%s11148_s1 + $0xc60] ss:$8 sps:$4 sm:$0xff]  }
 0x153   :  { %5534 = vmatpush1.bf16.msra.mxu0 %v7757_v39 }
 0x154   :  { %5535 = vmatprep.subr.bf16.mxu0 %v7765_v43 }
 0x155   :  { %5575 = vmatpush1.bf16.msra.mxu1 %v7760_v41 }
 0x156   :  { %5576 = vmatprep.subr.bf16.mxu1 %v7768_v45 }
 0x157   :  { %5536 = vmatpush1.bf16.msra.mxu0 %v7763_v44  ;;  %v7844_v44 = vld [vmem:[%s11148_s1 + $0xc54] ss:$8 sps:$4 sm:$0xff]  }
 0x158   :  { %5537 = vmatprep.subr.bf16.mxu0 %v7771_v47 }
 0x159   :  { %5577 = vmatpush1.bf16.msra.mxu1 %v7766_v46 }
 0x15a   :  { %5578 = vmatprep.subr.bf16.mxu1 %v7774_v50  ;;  %v7847_v50 = vld [vmem:[%s11148_s1 + $0xd54] ss:$8 sps:$4 sm:$0xff]  }
 0x15b   :  { %5538 = vmatpush1.bf16.msra.mxu0 %v7769_v49 }
 0x15c   :  { %5539 = vmatprep.subr.bf16.mxu0 %v7777_v51 }
 0x15d   :  { %5579 = vmatpush1.bf16.msra.mxu1 %v7772_v24 }
 0x15e   :  { %5580 = vmatprep.subr.bf16.mxu1 %v7780_v53 }
 0x15f   :  { %5540 = vmatpush1.bf16.msra.mxu0 %v7775_v52  ;;  %v7850_v52 = vld [vmem:[%s11148_s1 + $0xc44] ss:$8 sps:$4 sm:$0xff]  }
 0x160   :  { %5541 = vmatprep.subr.bf16.mxu0 %v7783_v54  ;;  %v7853_v54 = vld [vmem:[%s11148_s1 + $0xd44] ss:$8 sps:$4 sm:$0xff]  }
 0x161   :  { %5581 = vmatpush1.bf16.msra.mxu1 %v7778_v42  ;;  %v7845_v42 = vld [vmem:[%s11148_s1 + $0xd50] ss:$8 sps:$4 sm:$0xff]  }
 0x162   :  { %5582 = vmatprep.subr.bf16.mxu1 %v7786_v56  ;;  %v7848_v56 = vld [vmem:[%s11148_s1 + $0xc40] ss:$8 sps:$4 sm:$0xff]  }
 0x163   :  { %5542 = vmatpush2.bf16.msra.mxu0 %v7781_v55 }
 0x164   :  { %5543 = vmatprep.subr.bf16.mxu0 %v7789_v58  ;;  %v7851_v58 = vld [vmem:[%s11148_s1 + $0xd40] ss:$8 sps:$4 sm:$0xff]  }
 0x165   :  { %5583 = vmatpush2.bf16.msra.mxu1 %v7784_v57  ;;  %v7856_v57 = vld [vmem:[%s11148_s1 + $0xc34] ss:$8 sps:$4 sm:$0xff]  }
 0x166   :  { %5584 = vmatprep.subr.bf16.mxu1 %v7792_v60  ;;  %v7854_v60 = vld [vmem:[%s11148_s1 + $0xc30] ss:$8 sps:$4 sm:$0xff]  }
 0x167   :  { %5544 = vmatpush2.bf16.msra.mxu0 %v7787_v30  ;;  %v7859_v30 = vld [vmem:[%s11148_s1 + $0xd34] ss:$8 sps:$4 sm:$0xff]  }
 0x168   :  { %5545 = vmatprep.subr.bf16.mxu0 %v7795_v62  ;;  %v7857_v62 = vld [vmem:[%s11148_s1 + $0xd30] ss:$8 sps:$4 sm:$0xff]  }
 0x169   :  { %5585 = vmatpush2.bf16.msra.mxu1 %v7790_v61  ;;  %v7862_v61 = vld [vmem:[%s11148_s1 + $0xc24] ss:$8 sps:$4 sm:$0xff]  }
 0x16a   :  { %5586 = vmatprep.subr.bf16.mxu1 %v7798_v1  ;;  %v7860_v1 = vld [vmem:[%s11148_s1 + $0xc20] ss:$8 sps:$4 sm:$0xff]  }
 0x16b   :  { %5546 = vmatpush2.bf16.msra.mxu0 %v7793_v63  ;;  %v7865_v63 = vld [vmem:[%s11148_s1 + $0xd24] ss:$8 sps:$4 sm:$0xff]  }
 0x16c   :  { %5547 = vmatprep.subr.bf16.mxu0 %v7801_v3  ;;  %v7863_v3 = vld [vmem:[%s11148_s1 + $0xd20] ss:$8 sps:$4 sm:$0xff]  }
 0x16d   :  { %5587 = vmatpush2.bf16.msra.mxu1 %v7796_v2  ;;  %v7868_v2 = vld [vmem:[%s11148_s1 + $0xc14] ss:$8 sps:$4 sm:$0xff]  }
 0x16e   :  { %5588 = vmatprep.subr.bf16.mxu1 %v7804_v7  ;;  %v7866_v7 = vld [vmem:[%s11148_s1 + $0xc10] ss:$8 sps:$4 sm:$0xff]  }
 0x16f   :  { %5548 = vmatpush2.bf16.msra.mxu0 %v7799_v4  ;;  %v7871_v4 = vld [vmem:[%s11148_s1 + $0xd14] ss:$8 sps:$4 sm:$0xff]  }
 0x170   :  { %5549 = vmatprep.subr.bf16.mxu0 %v7807_v9  ;;  %v7869_v9 = vld [vmem:[%s11148_s1 + $0xd10] ss:$8 sps:$4 sm:$0xff]  }
 0x171   :  { %5589 = vmatpush2.bf16.msra.mxu1 %v7802_v8  ;;  %v7874_v8 = vld [vmem:[%s11148_s1 + $0xc04] ss:$8 sps:$4 sm:$0xff]  }
 0x172   :  { %5590 = vmatprep.subr.bf16.mxu1 %v7810_v11  ;;  %v7872_v11 = vld [vmem:[%s11148_s1 + $0xc00] ss:$8 sps:$4 sm:$0xff]  }
 0x173   :  { %5550 = vmatpush2.bf16.msra.mxu0 %v7805_v10  ;;  %v7877_v10 = vld [vmem:[%s11148_s1 + $0xd04] ss:$8 sps:$4 sm:$0xff]  }
 0x174   :  { %5551 = vmatprep.subr.bf16.mxu0 %v7813_v12  ;;  %v7875_v12 = vld [vmem:[%s11148_s1 + $0xd00] ss:$8 sps:$4 sm:$0xff]  }
 0x175   :  { %5591 = vmatpush2.bf16.msra.mxu1 %v7808_v34  ;;  %v7880_v34 = vld [vmem:[%s11148_s1 + $0xcf4] ss:$8 sps:$4 sm:$0xff]  }
 0x176   :  { %5592 = vmatprep.subr.bf16.mxu1 %v7816_v13  ;;  %v7883_v13 = vld [vmem:[%s11148_s1 + $0xdf4] ss:$8 sps:$4 sm:$0xff]  }
 0x177   :  { %5552 = vmatpush2.bf16.msra.mxu0 %v7811_v15  ;;  %v7878_v15 = vld [vmem:[%s11148_s1 + $0xcf0] ss:$8 sps:$4 sm:$0xff]  }
 0x178   :  { %5553 = vmatprep.subr.bf16.mxu0 %v7819_v16  ;;  %v7886_v16 = vld [vmem:[%s11148_s1 + $0xce4] ss:$8 sps:$4 sm:$0xff]  }
 0x179   :  { %5593 = vmatpush2.bf16.msra.mxu1 %v7814_v17  ;;  %v7881_v17 = vld [vmem:[%s11148_s1 + $0xdf0] ss:$8 sps:$4 sm:$0xff]  }
 0x17a   :  { %5594 = vmatprep.subr.bf16.mxu1 %v7822_v19  ;;  %v7889_v19 = vld [vmem:[%s11148_s1 + $0xde4] ss:$8 sps:$4 sm:$0xff]  }
 0x17b   :  { %5554 = vmatpush2.bf16.msra.mxu0 %v7817_v20  ;;  %v7884_v20 = vld [vmem:[%s11148_s1 + $0xce0] ss:$8 sps:$4 sm:$0xff]  }
 0x17c   :  { %5555 = vmatprep.subr.bf16.mxu0 %v7825_v21  ;;  %v7892_v21 = vld [vmem:[%s11148_s1 + $0xcd4] ss:$8 sps:$4 sm:$0xff]  }
 0x17d   :  { %5595 = vmatpush2.bf16.msra.mxu1 %v7820_v22  ;;  %v7887_v22 = vld [vmem:[%s11148_s1 + $0xde0] ss:$8 sps:$4 sm:$0xff]  }
 0x17e   :  { %5596 = vmatprep.subr.bf16.mxu1 %v7828_v0  ;;  %v7890_v0 = vld [vmem:[%s11148_s1 + $0xcd0] ss:$8 sps:$4 sm:$0xff]  }
 0x17f   :  { %5556 = vmatpush2.bf16.msra.mxu0 %v7823_v25  ;;  %v7898_v25 = vld [vmem:[%s11148_s1 + $0xcc4] ss:$8 sps:$4 sm:$0xff]  }
 0x180   :  { %5607 = vmatprep.subr.bf16.mxu0 %v7832_v27  ;;  %v7901_v27 = vld [vmem:[%s11148_s1 + $0xdc4] ss:$8 sps:$4 sm:$0xff]  }
 0x181   :  { %5597 = vmatpush2.bf16.msra.mxu1 %v7826_v6  ;;  %v7896_v6 = vld [vmem:[%s11148_s1 + $0xcc0] ss:$8 sps:$4 sm:$0xff]  }
 0x182   :  { %v5313_v37 = vpop.f32.mrf.mxu0  ;;  %5558 = vmatmul.mubr.bf16.vlgmr.msra.gmra.mxu0 %v966_v26  ;;  %5648 = vmatprep.subr.bf16.mxu1 %v7835_v32  ;;  %v7893_v26 = vld [vmem:[%s11148_s1 + $0xdd0] ss:$8 sps:$4 sm:$0xff]   ;;  %v7899_v32 = vld [vmem:[%s11148_s1 + $0xdc0] ss:$8 sps:$4 sm:$0xff]  }
 0x183   :  { %v5314_v39 = vadd.f32 %v5313_v37, %v9582_v5  ;;  %5608 = vmatpush1.bf16.msra.mxu0 %v7830_v59  ;;  %5639 = vmatprep.mubr.bf16.mxu0 %v1022_v31  ;;  %v7839_v5 = vld [vmem:[%s11148_s1 + $0xd60] ss:$8 sps:$4 sm:$0xff]   ;;  %v7904_v31 = vld [vmem:[%s11148_s1 + $0xcb4] ss:$8 sps:$4 sm:$0xff]   ;;  %v7913_v37 = vld [vmem:[%s11148_s1 + $0xda4] ss:$8 sps:$4 sm:$0xff]  }
 0x184   :  { %v5315_v41 = vpop.f32.mrf.mxu0  ;;  %v5354_v43 = vpop.f32.mrf.mxu1  ;;  %5599 = vmatmul.mubr.bf16.vlgmr.msra.gmra.mxu1 %v982_v33  ;;  %5609 = vmatprep.subr.bf16.mxu0 %v7838_v35  ;;  %v7907_v59 = vld [vmem:[%s11148_s1 + $0xdb4] ss:$8 sps:$4 sm:$0xff]   ;;  %v7902_v33 = vld [vmem:[%s11148_s1 + $0xcb0] ss:$8 sps:$4 sm:$0xff]   ;;  %v7910_v35 = vld [vmem:[%s11148_s1 + $0xca4] ss:$8 sps:$4 sm:$0xff]  }
 0x185   :  { %v5316_v45 = vadd.f32 %v5315_v41, %v9590_v29  ;;  %v9791_v46 = vadd.f32 %v5354_v43, %v5314_v39  ;;  %5649 = vmatpush1.bf16.msra.mxu1 %v7833_v36  ;;  %5680 = vmatprep.mubr.bf16.mxu1 %v1032_v28  ;;  %v7842_v29 = vld [vmem:[%s11148_s1 + $0xc50] ss:$8 sps:$4 sm:$0xff]   ;;  %v985_v28 = vcombine.high %v9724_v14, %v9724_v14  ;;  %v7916_v39 = vld [vmem:[%s11148_s1 + $0xc94] ss:$8 sps:$4 sm:$0xff]   ;;  %v7911_v14 = vld [vmem:[%s11148_s1 + $0xda0] ss:$8 sps:$4 sm:$0xff]  }
 0x186   :  { %v5317_v47 = vpop.f32.mrf.mxu0  ;;  %v5356_v49 = vpop.f32.mrf.mxu1  ;;  %5650 = vmatprep.subr.bf16.mxu1 %v7841_v38  ;;  %v7905_v36 = vld [vmem:[%s11148_s1 + $0xdb0] ss:$8 sps:$4 sm:$0xff]   ;;  %v7908_v38 = vld [vmem:[%s11148_s1 + $0xca0] ss:$8 sps:$4 sm:$0xff]   ;;  %v7919_v41 = vld [vmem:[%s11148_s1 + $0xd94] ss:$8 sps:$4 sm:$0xff]  }
 0x187   :  { %v9799_v24 = vadd.f32 %v5356_v49, %v5316_v45  ;;  %5610 = vmatpush1.bf16.msra.mxu0 %v7836_v40  ;;  %v9945_v40 = vrot.slane %v985_v28, %v8651_v48  ;;  %v7914_v43 = vld [vmem:[%s11148_s1 + $0xc90] ss:$8 sps:$4 sm:$0xff]   ;;  %v7925_v47 = vld [vmem:[%s11148_s1 + $0xd84] ss:$8 sps:$4 sm:$0xff]   ;;  %v7920_v49 = vld [vmem:[%s11148_s1 + $0xc80] ss:$8 sps:$4 sm:$0xff]  }
 0x188   :  { %v5318_v51 = vpop.f32.mrf.mxu0  ;;  %5611 = vmatprep.subr.bf16.mxu0 %v7844_v44  ;;  %v5358_v53 = vpop.f32.mrf.mxu1  ;;  %v7922_v44 = vld [vmem:[%s11148_s1 + $0xc84] ss:$8 sps:$4 sm:$0xff]   ;;  %v7917_v45 = vld [vmem:[%s11148_s1 + $0xd90] ss:$8 sps:$4 sm:$0xff]  }
 0x189   :  { %5651 = vmatpush1.bf16.msra.mxu1 %v7839_v5  ;;  %v1001_v5 = vcombine.high %v9945_v40, %v9945_v40  ;;  %v7923_v51 = vld [vmem:[%s11148_s1 + $0xd80] ss:$8 sps:$4 sm:$0xff]   ;;  %v7931_v53 = vld [vmem:[%s11148_s1 + $0xf74] ss:$8 sps:$4 sm:$0xff]  }
 0x18a   :  { %5652 = vmatprep.subr.bf16.mxu1 %v7847_v50  ;;  %v5359_v55 = vpop.f32.mrf.mxu1  ;;  %v1008_v50 = vrot.slane %v9737_v18, %v8651_v48  ;;  %v7926_v18 = vld [vmem:[%s11148_s1 + $0xe70] ss:$8 sps:$4 sm:$0xff]  }
 0x18b   :  { %5612 = vmatpush1.bf16.msra.mxu0 %v7842_v29  ;;  %v7928_v29 = vld [vmem:[%s11148_s1 + $0xe74] ss:$8 sps:$4 sm:$0xff]   ;;  %v7929_v55 = vld [vmem:[%s11148_s1 + $0xf70] ss:$8 sps:$4 sm:$0xff]  }
 0x18c   :  { %5613 = vmatprep.subr.bf16.mxu0 %v7850_v52  ;;  %v1029_v52 = vrot.slane %v1001_v5, %v8651_v48 }
 0x18d   :  { %5653 = vmatpush1.bf16.msra.mxu1 %v7845_v42  ;;  %v1030_v42 = vcombine.high %v1008_v50, %v1008_v50 }
 0x18e   :  { %5654 = vmatprep.subr.bf16.mxu1 %v7853_v54  ;;  %v7934_v54 = vld [vmem:[%s11148_s1 + $0xe64] ss:$8 sps:$4 sm:$0xff]  }
 0x18f   :  { %5614 = vmatpush1.bf16.msra.mxu0 %v7848_v56  ;;  %v1033_v56 = vcombine.high %v1029_v52, %v1029_v52 }
 0x190   :  { %5615 = vmatprep.subr.bf16.mxu0 %v7856_v57 }
 0x191   :  { %5655 = vmatpush1.bf16.msra.mxu1 %v7851_v58  ;;  %v7937_v58 = vld [vmem:[%s11148_s1 + $0xf64] ss:$8 sps:$4 sm:$0xff]  }
 0x192   :  { %5656 = vmatprep.subr.bf16.mxu1 %v7859_v30 }
 0x193   :  { %5616 = vmatpush1.bf16.msra.mxu0 %v7854_v60  ;;  %v7932_v60 = vld [vmem:[%s11148_s1 + $0xe60] ss:$8 sps:$4 sm:$0xff]  }
 0x194   :  { %5617 = vmatprep.subr.bf16.mxu0 %v7862_v61 }
 0x195   :  { %5657 = vmatpush1.bf16.msra.mxu1 %v7857_v62 }
 0x196   :  { %5658 = vmatprep.subr.bf16.mxu1 %v7865_v63  ;;  %v7940_v63 = vld [vmem:[%s11148_s1 + $0xe54] ss:$8 sps:$4 sm:$0xff]  }
 0x197   :  { %5618 = vmatpush1.bf16.msra.mxu0 %v7860_v1 }
 0x198   :  { %5619 = vmatprep.subr.bf16.mxu0 %v7868_v2 }
 0x199   :  { %5659 = vmatpush1.bf16.msra.mxu1 %v7863_v3 }
 0x19a   :  { %5660 = vmatprep.subr.bf16.mxu1 %v7871_v4 }
 0x19b   :  { %5620 = vmatpush1.bf16.msra.mxu0 %v7866_v7  ;;  %v7943_v7 = vld [vmem:[%s11148_s1 + $0xf54] ss:$8 sps:$4 sm:$0xff]  }
 0x19c   :  { %5621 = vmatprep.subr.bf16.mxu0 %v7874_v8 }
 0x19d   :  { %5661 = vmatpush1.bf16.msra.mxu1 %v7869_v9 }
 0x19e   :  { %5662 = vmatprep.subr.bf16.mxu1 %v7877_v10  ;;  %v7946_v10 = vld [vmem:[%s11148_s1 + $0xe44] ss:$8 sps:$4 sm:$0xff]  }
 0x19f   :  { %5622 = vmatpush1.bf16.msra.mxu0 %v7872_v11 }
 0x1a0   :  { %5623 = vmatprep.subr.bf16.mxu0 %v7880_v34  ;;  %v7941_v34 = vld [vmem:[%s11148_s1 + $0xf50] ss:$8 sps:$4 sm:$0xff]  }
 0x1a1   :  { %5663 = vmatpush1.bf16.msra.mxu1 %v7875_v12  ;;  %v7949_v12 = vld [vmem:[%s11148_s1 + $0xf44] ss:$8 sps:$4 sm:$0xff]  }
 0x1a2   :  { %5664 = vmatprep.subr.bf16.mxu1 %v7883_v13 }
 0x1a3   :  { %5624 = vmatpush2.bf16.msra.mxu0 %v7878_v15  ;;  %v7944_v15 = vld [vmem:[%s11148_s1 + $0xe40] ss:$8 sps:$4 sm:$0xff]  }
 0x1a4   :  { %5625 = vmatprep.subr.bf16.mxu0 %v7886_v16  ;;  %v7952_v16 = vld [vmem:[%s11148_s1 + $0xe34] ss:$8 sps:$4 sm:$0xff]  }
 0x1a5   :  { %5665 = vmatpush2.bf16.msra.mxu1 %v7881_v17  ;;  %v7947_v17 = vld [vmem:[%s11148_s1 + $0xf40] ss:$8 sps:$4 sm:$0xff]  }
 0x1a6   :  { %5666 = vmatprep.subr.bf16.mxu1 %v7889_v19  ;;  %v7955_v19 = vld [vmem:[%s11148_s1 + $0xf34] ss:$8 sps:$4 sm:$0xff]  }
 0x1a7   :  { %5626 = vmatpush2.bf16.msra.mxu0 %v7884_v20  ;;  %v7950_v20 = vld [vmem:[%s11148_s1 + $0xe30] ss:$8 sps:$4 sm:$0xff]  }
 0x1a8   :  { %5627 = vmatprep.subr.bf16.mxu0 %v7892_v21  ;;  %v7958_v21 = vld [vmem:[%s11148_s1 + $0xe24] ss:$8 sps:$4 sm:$0xff]  }
 0x1a9   :  { %5667 = vmatpush2.bf16.msra.mxu1 %v7887_v22  ;;  %v7953_v22 = vld [vmem:[%s11148_s1 + $0xf30] ss:$8 sps:$4 sm:$0xff]  }
 0x1aa   :  { %5668 = vmatprep.subr.bf16.mxu1 %v7895_v23  ;;  %v7961_v23 = vld [vmem:[%s11148_s1 + $0xf24] ss:$8 sps:$4 sm:$0xff]  }
 0x1ab   :  { %5628 = vmatpush2.bf16.msra.mxu0 %v7890_v0  ;;  %v7956_v0 = vld [vmem:[%s11148_s1 + $0xe20] ss:$8 sps:$4 sm:$0xff]  }
 0x1ac   :  { %5629 = vmatprep.subr.bf16.mxu0 %v7898_v25  ;;  %v7964_v25 = vld [vmem:[%s11148_s1 + $0xe14] ss:$8 sps:$4 sm:$0xff]  }
 0x1ad   :  { %5669 = vmatpush2.bf16.msra.mxu1 %v7893_v26  ;;  %v7959_v26 = vld [vmem:[%s11148_s1 + $0xf20] ss:$8 sps:$4 sm:$0xff]  }
 0x1ae   :  { %5670 = vmatprep.subr.bf16.mxu1 %v7901_v27  ;;  %v7967_v27 = vld [vmem:[%s11148_s1 + $0xf14] ss:$8 sps:$4 sm:$0xff]  }
 0x1af   :  { %5630 = vmatpush2.bf16.msra.mxu0 %v7896_v6  ;;  %v7962_v6 = vld [vmem:[%s11148_s1 + $0xe10] ss:$8 sps:$4 sm:$0xff]  }
 0x1b0   :  { %5631 = vmatprep.subr.bf16.mxu0 %v7904_v31  ;;  %v7970_v31 = vld [vmem:[%s11148_s1 + $0xe04] ss:$8 sps:$4 sm:$0xff]  }
 0x1b1   :  { %5671 = vmatpush2.bf16.msra.mxu1 %v7899_v32  ;;  %v7965_v32 = vld [vmem:[%s11148_s1 + $0xf10] ss:$8 sps:$4 sm:$0xff]  }
 0x1b2   :  { %5672 = vmatprep.subr.bf16.mxu1 %v7907_v59  ;;  %v7973_v59 = vld [vmem:[%s11148_s1 + $0xf04] ss:$8 sps:$4 sm:$0xff]  }
 0x1b3   :  { %5632 = vmatpush2.bf16.msra.mxu0 %v7902_v33  ;;  %v7968_v33 = vld [vmem:[%s11148_s1 + $0xe00] ss:$8 sps:$4 sm:$0xff]  }
 0x1b4   :  { %5633 = vmatprep.subr.bf16.mxu0 %v7910_v35  ;;  %v7976_v35 = vld [vmem:[%s11148_s1 + $0xef4] ss:$8 sps:$4 sm:$0xff]  }
 0x1b5   :  { %5673 = vmatpush2.bf16.msra.mxu1 %v7905_v36  ;;  %v7971_v36 = vld [vmem:[%s11148_s1 + $0xf00] ss:$8 sps:$4 sm:$0xff]  }
 0x1b6   :  { %5674 = vmatprep.subr.bf16.mxu1 %v7913_v37 }
 0x1b7   :  { %5634 = vmatpush2.bf16.msra.mxu0 %v7908_v38 }
 0x1b8   :  { %5635 = vmatprep.subr.bf16.mxu0 %v7916_v39 }
 0x1b9   :  { %5675 = vmatpush2.bf16.msra.mxu1 %v7911_v14 }
 0x1ba   :  { %5676 = vmatprep.subr.bf16.mxu1 %v7919_v41 }
 0x1bb   :  { %5636 = vmatpush2.bf16.msra.mxu0 %v7914_v43 }
 0x1bc   :  { %5637 = vmatprep.subr.bf16.mxu0 %v7922_v44 }
 0x1bd   :  { %5677 = vmatpush2.bf16.msra.mxu1 %v7917_v45 }
 0x1be   :  { %5678 = vmatprep.subr.bf16.mxu1 %v7925_v47 }
 0x1bf   :  { %5638 = vmatpush2.bf16.msra.mxu0 %v7920_v49 }
 0x1c0   :  { %5689 = vmatprep.subr.bf16.mxu0 %v7928_v29 }
 0x1c1   :  { %5679 = vmatpush2.bf16.msra.mxu1 %v7923_v51 }
 0x1c2   :  { %v5395_v57 = vpop.f32.mrf.mxu0  ;;  %5640 = vmatmul.mubr.bf16.vlgmr.msra.gmra.mxu0 %v1008_v50  ;;  %5730 = vmatprep.subr.bf16.mxu1 %v7931_v53 }
 0x1c3   :  { %v5396_v30 = vadd.f32 %v5395_v57, %v9791_v46  ;;  %5690 = vmatpush1.bf16.msra.mxu0 %v7926_v18  ;;  %5721 = vmatprep.mubr.bf16.mxu0 %v1029_v52  ;;  %v7935_v46 = vld [vmem:[%s11148_s1 + $0xf60] ss:$8 sps:$4 sm:$0xff]  }
 0x1c4   :  { %v5397_v61 = vpop.f32.mrf.mxu0  ;;  %v5436_v62 = vpop.f32.mrf.mxu1  ;;  %5681 = vmatmul.mubr.bf16.vlgmr.msra.gmra.mxu1 %v1030_v42  ;;  %5691 = vmatprep.subr.bf16.mxu0 %v7934_v54 }
 0x1c5   :  { %v5398_v1 = vadd.f32 %v5397_v61, %v9799_v24  ;;  %v9999_v2 = vadd.f32 %v5436_v62, %v5396_v30  ;;  %5731 = vmatpush1.bf16.msra.mxu1 %v7929_v55  ;;  %5762 = vmatprep.mubr.bf16.mxu1 %v1033_v56  ;;  %v7938_v24 = vld [vmem:[%s11148_s1 + $0xe50] ss:$8 sps:$4 sm:$0xff]  }
 0x1c6   :  { %v5399_v3 = vpop.f32.mrf.mxu0  ;;  %v5438_v4 = vpop.f32.mrf.mxu1  ;;  %5732 = vmatprep.subr.bf16.mxu1 %v7937_v58 }
 0x1c7   :  { %v10007_v8 = vadd.f32 %v5438_v4, %v5398_v1  ;;  %5692 = vmatpush1.bf16.msra.mxu0 %v7932_v60 }
 0x1c8   :  { %v5400_v9 = vpop.f32.mrf.mxu0  ;;  %5693 = vmatprep.subr.bf16.mxu0 %v7940_v63  ;;  %v5440_v11 = vpop.f32.mrf.mxu1 }
 0x1c9   :  { %5733 = vmatpush1.bf16.msra.mxu1 %v7935_v46 }
 0x1ca   :  { %5734 = vmatprep.subr.bf16.mxu1 %v7943_v7  ;;  %v5441_v13 = vpop.f32.mrf.mxu1 }
 0x1cb   :  { %5694 = vmatpush1.bf16.msra.mxu0 %v7938_v24 }
 0x1cc   :  { %5695 = vmatprep.subr.bf16.mxu0 %v7946_v10 }
 0x1cd   :  { %5735 = vmatpush1.bf16.msra.mxu1 %v7941_v34 }
 0x1ce   :  { %5736 = vmatprep.subr.bf16.mxu1 %v7949_v12 }
 0x1cf   :  { %5696 = vmatpush1.bf16.msra.mxu0 %v7944_v15 }
 0x1d0   :  { %5697 = vmatprep.subr.bf16.mxu0 %v7952_v16 }
 0x1d1   :  { %5737 = vmatpush1.bf16.msra.mxu1 %v7947_v17 }
 0x1d2   :  { %5738 = vmatprep.subr.bf16.mxu1 %v7955_v19 }
 0x1d3   :  { %5698 = vmatpush1.bf16.msra.mxu0 %v7950_v20 }
 0x1d4   :  { %5699 = vmatprep.subr.bf16.mxu0 %v7958_v21 }
 0x1d5   :  { %5739 = vmatpush1.bf16.msra.mxu1 %v7953_v22 }
 0x1d6   :  { %5740 = vmatprep.subr.bf16.mxu1 %v7961_v23 }
 0x1d7   :  { %5700 = vmatpush1.bf16.msra.mxu0 %v7956_v0 }
 0x1d8   :  { %5701 = vmatprep.subr.bf16.mxu0 %v7964_v25 }
 0x1d9   :  { %5741 = vmatpush1.bf16.msra.mxu1 %v7959_v26 }
 0x1da   :  { %5742 = vmatprep.subr.bf16.mxu1 %v7967_v27 }
 0x1db   :  { %5702 = vmatpush1.bf16.msra.mxu0 %v7962_v6 }
 0x1dc   :  { %5703 = vmatprep.subr.bf16.mxu0 %v7970_v31 }
 0x1dd   :  { %5743 = vmatpush1.bf16.msra.mxu1 %v7965_v32 }
 0x1de   :  { %12 = vsyncpa [#allocation3], 0  ;;  %5744 = vmatprep.subr.bf16.mxu1 %v7973_v59  ;;  %v7979_v28 = vld [vmem:[%s11148_s1 + $0xff4] ss:$8 sps:$4 sm:$0xff]   ;;  %v7974_v37 = vld [vmem:[%s11148_s1 + $0xef0] ss:$8 sps:$4 sm:$0xff]   ;;  %v1015_v7 = vrot.slane %v9945_v40, %v8651_v48 }
 0x1df   :  { %5704 = vmatpush1.bf16.msra.mxu0 %v7968_v33  ;;  %v7982_v38 = vld [vmem:[%s11148_s1 + $0xee4] ss:$8 sps:$4 sm:$0xff]   ;;  %v7977_v39 = vld [vmem:[%s11148_s1 + $0xff0] ss:$8 sps:$4 sm:$0xff]   ;;  %v7980_v41 = vld [vmem:[%s11148_s1 + $0xee0] ss:$8 sps:$4 sm:$0xff]  }
 0x1e0   :  { %5705 = vmatprep.subr.bf16.mxu0 %v7976_v35  ;;  %v7985_v14 = vld [vmem:[%s11148_s1 + $0xfe4] ss:$8 sps:$4 sm:$0xff]   ;;  %v7988_v43 = vld [vmem:[%s11148_s1 + $0xed4] ss:$8 sps:$4 sm:$0xff]   ;;  %v7983_v44 = vld [vmem:[%s11148_s1 + $0xfe0] ss:$8 sps:$4 sm:$0xff]   ;;  %v1031_v34 = vcombine.high %v1015_v7, %v1015_v7 }
 0x1e1   :  { %5745 = vmatpush1.bf16.msra.mxu1 %v7971_v36  ;;  %v7991_v45 = vld [vmem:[%s11148_s1 + $0xfd4] ss:$8 sps:$4 sm:$0xff]   ;;  %v7986_v5 = vld [vmem:[%s11148_s1 + $0xed0] ss:$8 sps:$4 sm:$0xff]   ;;  %v7994_v47 = vld [vmem:[%s11148_s1 + $0xec4] ss:$8 sps:$4 sm:$0xff]  }
 0x1e2   :  { %5746 = vmatprep.subr.bf16.mxu1 %v7979_v28  ;;  %v7989_v49 = vld [vmem:[%s11148_s1 + $0xfd0] ss:$8 sps:$4 sm:$0xff]   ;;  %v7997_v50 = vld [vmem:[%s11148_s1 + $0xfc4] ss:$8 sps:$4 sm:$0xff]   ;;  %v7992_v29 = vld [vmem:[%s11148_s1 + $0xec0] ss:$8 sps:$4 sm:$0xff]  }
 0x1e3   :  { %5706 = vmatpush2.bf16.msra.mxu0 %v7974_v37  ;;  %v8000_v51 = vld [vmem:[%s11148_s1 + $0xeb4] ss:$8 sps:$4 sm:$0xff]   ;;  %v7995_v52 = vld [vmem:[%s11148_s1 + $0xfc0] ss:$8 sps:$4 sm:$0xff]   ;;  %v7998_v18 = vld [vmem:[%s11148_s1 + $0xeb0] ss:$8 sps:$4 sm:$0xff]  }
 0x1e4   :  { %5707 = vmatprep.subr.bf16.mxu0 %v7982_v38  ;;  %v8003_v53 = vld [vmem:[%s11148_s1 + $0xfb4] ss:$8 sps:$4 sm:$0xff]   ;;  %v8006_v42 = vld [vmem:[%s11148_s1 + $0xea4] ss:$8 sps:$4 sm:$0xff]   ;;  %v8001_v54 = vld [vmem:[%s11148_s1 + $0xfb0] ss:$8 sps:$4 sm:$0xff]  }
 0x1e5   :  { %5747 = vmatpush2.bf16.msra.mxu1 %v7977_v39  ;;  %v8009_v55 = vld [vmem:[%s11148_s1 + $0xfa4] ss:$8 sps:$4 sm:$0xff]   ;;  %v8004_v57 = vld [vmem:[%s11148_s1 + $0xea0] ss:$8 sps:$4 sm:$0xff]   ;;  %v8012_v58 = vld [vmem:[%s11148_s1 + $0xe94] ss:$8 sps:$4 sm:$0xff]  }
 0x1e6   :  { %5748 = vmatprep.subr.bf16.mxu1 %v7985_v14  ;;  %v10144_v56 = vld [vmem:[%s11147_s0 + $0x20] sm:$0xff]  ;;  %v8015_v61 = vld [vmem:[%s11148_s1 + $0xf94] ss:$8 sps:$4 sm:$0xff]   ;;  %v8010_v62 = vld [vmem:[%s11148_s1 + $0xe90] ss:$8 sps:$4 sm:$0xff]   ;;  %vm6255_vm0 = vcmask 1043456  }
 0x1e7   :  { %5708 = vmatpush2.bf16.msra.mxu0 %v7980_v41  ;;  %v8007_v30 = vld [vmem:[%s11148_s1 + $0xfa0] ss:$8 sps:$4 sm:$0xff]   ;;  %v10157_v60 = vrot.slane %v10144_v56, %v8651_v48  ;;  %v8018_v63 = vld [vmem:[%s11148_s1 + $0xe84] ss:$8 sps:$4 sm:$0xff]   ;;  %v8013_v1 = vld [vmem:[%s11148_s1 + $0xf90] ss:$8 sps:$4 sm:$0xff]  }
 0x1e8   :  { %5709 = vmatprep.subr.bf16.mxu0 %v7988_v43  ;;  %v8021_v3 = vld [vmem:[%s11148_s1 + $0xf84] ss:$8 sps:$4 sm:$0xff]   ;;  %v8016_v4 = vld [vmem:[%s11148_s1 + $0xe80] ss:$8 sps:$4 sm:$0xff]   ;;  %v8025_v24 = vld [vmem:[%s11148_s1 + $0x1074] ss:$8 sps:$4 sm:$0xff]  }
 0x1e9   :  { %5749 = vmatpush2.bf16.msra.mxu1 %v7983_v44  ;;  %v1049_v46 = vcombine.high %v10157_v60, %v10157_v60  ;;  %v8019_v9 = vld [vmem:[%s11148_s1 + $0xf80] ss:$8 sps:$4 sm:$0xff]   ;;  %v8028_v11 = vld [vmem:[%s11148_s1 + $0x1174] ss:$8 sps:$4 sm:$0xff]   ;;  %v8023_v40 = vld [vmem:[%s11148_s1 + $0x1070] ss:$8 sps:$4 sm:$0xff]  }
 0x1ea   :  { %5750 = vmatprep.subr.bf16.mxu1 %v7991_v45  ;;  %v8031_v12 = vld [vmem:[%s11148_s1 + $0x1064] ss:$8 sps:$4 sm:$0xff]   ;;  %v8026_v13 = vld [vmem:[%s11148_s1 + $0x1170] ss:$8 sps:$4 sm:$0xff]   ;;  %v8029_v20 = vld [vmem:[%s11148_s1 + $0x1060] ss:$8 sps:$4 sm:$0xff]  }
 0x1eb   :  { %5710 = vmatpush2.bf16.msra.mxu0 %v7986_v5  ;;  %v1071_v10 = vrot.slane %v1049_v46, %v8651_v48  ;;  %v8034_v17 = vld [vmem:[%s11148_s1 + $0x1164] ss:$8 sps:$4 sm:$0xff]   ;;  %v8037_v23 = vld [vmem:[%s11148_s1 + $0x1054] ss:$8 sps:$4 sm:$0xff]   ;;  %v8038_v35 = vld [vmem:[%s11148_s1 + $0x1150] ss:$8 sps:$4 sm:$0xff]  }
 0x1ec   :  { %5711 = vmatprep.subr.bf16.mxu0 %v7994_v47  ;;  %v8040_v6 = vld [vmem:[%s11148_s1 + $0x1154] ss:$8 sps:$4 sm:$0xff]   ;;  %v8043_v59 = vld [vmem:[%s11148_s1 + $0x1044] ss:$8 sps:$4 sm:$0xff]   ;;  %v8041_v37 = vld [vmem:[%s11148_s1 + $0x1040] ss:$8 sps:$4 sm:$0xff]  }
 0x1ed   :  { %5751 = vmatpush2.bf16.msra.mxu1 %v7989_v49  ;;  %v1081_v15 = vcombine.high %v1071_v10, %v1071_v10  ;;  %v8046_v36 = vld [vmem:[%s11148_s1 + $0x1144] ss:$8 sps:$4 sm:$0xff]   ;;  %v8049_v38 = vld [vmem:[%s11148_s1 + $0x1034] ss:$8 sps:$4 sm:$0xff]   ;;  %v8044_v39 = vld [vmem:[%s11148_s1 + $0x1140] ss:$8 sps:$4 sm:$0xff]  }
 0x1ee   :  { %5752 = vmatprep.subr.bf16.mxu1 %v7997_v50  ;;  %v8052_v14 = vld [vmem:[%s11148_s1 + $0x1134] ss:$8 sps:$4 sm:$0xff]   ;;  %v8047_v41 = vld [vmem:[%s11148_s1 + $0x1030] ss:$8 sps:$4 sm:$0xff]   ;;  %v8055_v43 = vld [vmem:[%s11148_s1 + $0x1024] ss:$8 sps:$4 sm:$0xff]  }
 0x1ef   :  { %5712 = vmatpush2.bf16.msra.mxu0 %v7992_v29  ;;  %v8050_v44 = vld [vmem:[%s11148_s1 + $0x1130] ss:$8 sps:$4 sm:$0xff]   ;;  %v8058_v45 = vld [vmem:[%s11148_s1 + $0x1124] ss:$8 sps:$4 sm:$0xff]   ;;  %v8053_v5 = vld [vmem:[%s11148_s1 + $0x1020] ss:$8 sps:$4 sm:$0xff]  }
 0x1f0   :  { %5713 = vmatprep.subr.bf16.mxu0 %v8000_v51  ;;  %v8061_v47 = vld [vmem:[%s11148_s1 + $0x1014] ss:$8 sps:$4 sm:$0xff]   ;;  %v8056_v49 = vld [vmem:[%s11148_s1 + $0x1120] ss:$8 sps:$4 sm:$0xff]   ;;  %v8059_v29 = vld [vmem:[%s11148_s1 + $0x1010] ss:$8 sps:$4 sm:$0xff]  }
 0x1f1   :  { %5753 = vmatpush2.bf16.msra.mxu1 %v7995_v52  ;;  %v8064_v50 = vld [vmem:[%s11148_s1 + $0x1114] ss:$8 sps:$4 sm:$0xff]   ;;  %v8067_v51 = vld [vmem:[%s11148_s1 + $0x1004] ss:$8 sps:$4 sm:$0xff]   ;;  %v8062_v52 = vld [vmem:[%s11148_s1 + $0x1110] ss:$8 sps:$4 sm:$0xff]  }
 0x1f2   :  { %5754 = vmatprep.subr.bf16.mxu1 %v8003_v53  ;;  %v8070_v53 = vld [vmem:[%s11148_s1 + $0x1104] ss:$8 sps:$4 sm:$0xff]   ;;  %v8088_v46 = vld [vmem:[%s11148_s1 + $0x11d4] ss:$8 sps:$4 sm:$0xff]   ;;  %vm6356_vm1 = vcmask 1041408   ;;  %vm6251_vm2 = vcmask 588800  }
 0x1f3   :  { %5714 = vmatpush2.bf16.msra.mxu0 %v7998_v18  ;;  %v8065_v18 = vld [vmem:[%s11148_s1 + $0x1000] ss:$8 sps:$4 sm:$0xff]   ;;  %vm8477_vm3 = vmmov 0   ;;  %vm6352_vm4 = vcmask 687104  }
 0x1f4   :  { %5715 = vmatprep.subr.bf16.mxu0 %v8006_v42  ;;  %v8073_v42 = vld [vmem:[%s11148_s1 + $0x10f4] ss:$8 sps:$4 sm:$0xff]  }
 0x1f5   :  { %5755 = vmatpush2.bf16.msra.mxu1 %v8001_v54  ;;  %v8068_v54 = vld [vmem:[%s11148_s1 + $0x1100] ss:$8 sps:$4 sm:$0xff]  }
 0x1f6   :  { %5756 = vmatprep.subr.bf16.mxu1 %v8009_v55  ;;  %v8076_v55 = vld [vmem:[%s11148_s1 + $0x11f4] ss:$8 sps:$4 sm:$0xff]  }
 0x1f7   :  { %5716 = vmatpush2.bf16.msra.mxu0 %v8004_v57  ;;  %v8071_v57 = vld [vmem:[%s11148_s1 + $0x10f0] ss:$8 sps:$4 sm:$0xff]  }
 0x1f8   :  { %5717 = vmatprep.subr.bf16.mxu0 %v8012_v58  ;;  %v8079_v58 = vld [vmem:[%s11148_s1 + $0x10e4] ss:$8 sps:$4 sm:$0xff]  }
 0x1f9   :  { %5757 = vmatpush2.bf16.msra.mxu1 %v8007_v30  ;;  %v8074_v30 = vld [vmem:[%s11148_s1 + $0x11f0] ss:$8 sps:$4 sm:$0xff]  }
 0x1fa   :  { %5758 = vmatprep.subr.bf16.mxu1 %v8015_v61  ;;  %v8082_v61 = vld [vmem:[%s11148_s1 + $0x11e4] ss:$8 sps:$4 sm:$0xff]  }
 0x1fb   :  { %5718 = vmatpush2.bf16.msra.mxu0 %v8010_v62  ;;  %v8077_v62 = vld [vmem:[%s11148_s1 + $0x10e0] ss:$8 sps:$4 sm:$0xff]  }
 0x1fc   :  { %5719 = vmatprep.subr.bf16.mxu0 %v8018_v63  ;;  %v8085_v63 = vld [vmem:[%s11148_s1 + $0x10d4] ss:$8 sps:$4 sm:$0xff]  }
 0x1fd   :  { %5759 = vmatpush2.bf16.msra.mxu1 %v8013_v1  ;;  %v8080_v1 = vld [vmem:[%s11148_s1 + $0x11e0] ss:$8 sps:$4 sm:$0xff]  }
 0x1fe   :  { %5760 = vmatprep.subr.bf16.mxu1 %v8021_v3  ;;  %v8083_v3 = vld [vmem:[%s11148_s1 + $0x10d0] ss:$8 sps:$4 sm:$0xff]  }
 0x1ff   :  { %5720 = vmatpush2.bf16.msra.mxu0 %v8016_v4  ;;  %v8091_v4 = vld [vmem:[%s11148_s1 + $0x10c4] ss:$8 sps:$4 sm:$0xff]  }
 0x200   :  { %5771 = vmatprep.subr.bf16.mxu0 %v8025_v24  ;;  %v8094_v24 = vld [vmem:[%s11148_s1 + $0x11c4] ss:$8 sps:$4 sm:$0xff]  }
 0x201   :  { %5761 = vmatpush2.bf16.msra.mxu1 %v8019_v9  ;;  %v8089_v9 = vld [vmem:[%s11148_s1 + $0x10c0] ss:$8 sps:$4 sm:$0xff]  }
 0x202   :  { %v5477_v16 = vpop.f32.mrf.mxu0  ;;  %5722 = vmatmul.mubr.bf16.vlgmr.msra.gmra.mxu0 %v1015_v7  ;;  %5812 = vmatprep.subr.bf16.mxu1 %v8028_v11  ;;  %v8086_v7 = vld [vmem:[%s11148_s1 + $0x11d0] ss:$8 sps:$4 sm:$0xff]   ;;  %v8092_v11 = vld [vmem:[%s11148_s1 + $0x11c0] ss:$8 sps:$4 sm:$0xff]  }
 0x203   :  { %v5478_v19 = vadd.f32 %v5477_v16, %v9999_v2  ;;  %5772 = vmatpush1.bf16.msra.mxu0 %v8023_v40  ;;  %5803 = vmatprep.mubr.bf16.mxu0 %v1071_v10  ;;  %v8032_v2 = vld [vmem:[%s11148_s1 + $0x1160] ss:$8 sps:$4 sm:$0xff]   ;;  %v8097_v10 = vld [vmem:[%s11148_s1 + $0x10b4] ss:$8 sps:$4 sm:$0xff]   ;;  %v8106_v16 = vld [vmem:[%s11148_s1 + $0x11a4] ss:$8 sps:$4 sm:$0xff]  }
 0x204   :  { %v5479_v21 = vpop.f32.mrf.mxu0  ;;  %v5518_v22 = vpop.f32.mrf.mxu1  ;;  %5763 = vmatmul.mubr.bf16.vlgmr.msra.gmra.mxu1 %v1031_v34  ;;  %5773 = vmatprep.subr.bf16.mxu0 %v8031_v12  ;;  %v8100_v40 = vld [vmem:[%s11148_s1 + $0x11b4] ss:$8 sps:$4 sm:$0xff]   ;;  %v8095_v34 = vld [vmem:[%s11148_s1 + $0x10b0] ss:$8 sps:$4 sm:$0xff]   ;;  %v8103_v12 = vld [vmem:[%s11148_s1 + $0x10a4] ss:$8 sps:$4 sm:$0xff]  }
 0x205   :  { %v5480_v0 = vadd.f32 %v5479_v21, %v10007_v8  ;;  %v10211_v25 = vadd.f32 %v5518_v22, %v5478_v19  ;;  %5813 = vmatpush1.bf16.msra.mxu1 %v8026_v13  ;;  %5844 = vmatprep.mubr.bf16.mxu1 %v1081_v15  ;;  %v8035_v8 = vld [vmem:[%s11148_s1 + $0x1050] ss:$8 sps:$4 sm:$0xff]   ;;  %v1034_v15 = vcombine.high %v10144_v56, %v10144_v56  ;;  %v8109_v19 = vld [vmem:[%s11148_s1 + $0x1094] ss:$8 sps:$4 sm:$0xff]   ;;  %v8104_v56 = vld [vmem:[%s11148_s1 + $0x11a0] ss:$8 sps:$4 sm:$0xff]  }
 0x206   :  { %v5481_v26 = vpop.f32.mrf.mxu0  ;;  %v5520_v27 = vpop.f32.mrf.mxu1  ;;  %5814 = vmatprep.subr.bf16.mxu1 %v8034_v17  ;;  %v8098_v13 = vld [vmem:[%s11148_s1 + $0x11b0] ss:$8 sps:$4 sm:$0xff]   ;;  %v8101_v17 = vld [vmem:[%s11148_s1 + $0x10a0] ss:$8 sps:$4 sm:$0xff]   ;;  %v8112_v21 = vld [vmem:[%s11148_s1 + $0x1194] ss:$8 sps:$4 sm:$0xff]  }
 0x207   :  { %v10219_v31 = vadd.f32 %v5520_v27, %v5480_v0  ;;  %5774 = vmatpush1.bf16.msra.mxu0 %v8029_v20  ;;  %v10365_v20 = vrot.slane %v1034_v15, %v8651_v48  ;;  %v8107_v22 = vld [vmem:[%s11148_s1 + $0x1090] ss:$8 sps:$4 sm:$0xff]   ;;  %v8118_v26 = vld [vmem:[%s11148_s1 + $0x1184] ss:$8 sps:$4 sm:$0xff]   ;;  %v8113_v27 = vld [vmem:[%s11148_s1 + $0x1080] ss:$8 sps:$4 sm:$0xff]  }
 0x208   :  { %v5482_v32 = vpop.f32.mrf.mxu0  ;;  %5775 = vmatprep.subr.bf16.mxu0 %v8037_v23  ;;  %v5522_v33 = vpop.f32.mrf.mxu1  ;;  %v8115_v23 = vld [vmem:[%s11148_s1 + $0x1084] ss:$8 sps:$4 sm:$0xff]   ;;  %v8110_v0 = vld [vmem:[%s11148_s1 + $0x1190] ss:$8 sps:$4 sm:$0xff]   ;;  %v8172_v15 = vld [vmem:[%s11148_s1 + $0x13f4] ss:$8 sps:$4 sm:$0xff]  }
 0x209   :  { %5815 = vmatpush1.bf16.msra.mxu1 %v8032_v2  ;;  %v1050_v2 = vcombine.high %v10365_v20, %v10365_v20  ;;  %v8116_v32 = vld [vmem:[%s11148_s1 + $0x1180] ss:$8 sps:$4 sm:$0xff]   ;;  %v8124_v33 = vld [vmem:[%s11148_s1 + $0x1374] ss:$8 sps:$4 sm:$0xff]  }
 0x20a   :  { %5816 = vmatprep.subr.bf16.mxu1 %v8040_v6  ;;  %v5523_v28 = vpop.f32.mrf.mxu1  ;;  %v1057_v6 = vrot.slane %v10157_v60, %v8651_v48  ;;  %v8119_v60 = vld [vmem:[%s11148_s1 + $0x1270] ss:$8 sps:$4 sm:$0xff]  }
 0x20b   :  { %5776 = vmatpush1.bf16.msra.mxu0 %v8035_v8  ;;  %v8121_v8 = vld [vmem:[%s11148_s1 + $0x1274] ss:$8 sps:$4 sm:$0xff]   ;;  %v8122_v28 = vld [vmem:[%s11148_s1 + $0x1370] ss:$8 sps:$4 sm:$0xff]  }
 0x20c   :  { %5777 = vmatprep.subr.bf16.mxu0 %v8043_v59  ;;  %v1078_v59 = vrot.slane %v1050_v2, %v8651_v48  ;;  %v8179_v2 = vld [vmem:[%s11148_s1 + $0x12d0] ss:$8 sps:$4 sm:$0xff]  }
 0x20d   :  { %5817 = vmatpush1.bf16.msra.mxu1 %v8038_v35  ;;  %v1079_v35 = vcombine.high %v1057_v6, %v1057_v6 }
 0x20e   :  { %5818 = vmatprep.subr.bf16.mxu1 %v8046_v36  ;;  %v8127_v36 = vld [vmem:[%s11148_s1 + $0x1264] ss:$8 sps:$4 sm:$0xff]  }
 0x20f   :  { %5778 = vmatpush1.bf16.msra.mxu0 %v8041_v37  ;;  %v1082_v37 = vcombine.high %v1078_v59, %v1078_v59 }
 0x210   :  { %5779 = vmatprep.subr.bf16.mxu0 %v8049_v38 }
 0x211   :  { %5819 = vmatpush1.bf16.msra.mxu1 %v8044_v39  ;;  %v8130_v39 = vld [vmem:[%s11148_s1 + $0x1364] ss:$8 sps:$4 sm:$0xff]  }
 0x212   :  { %5820 = vmatprep.subr.bf16.mxu1 %v8052_v14 }
 0x213   :  { %5780 = vmatpush1.bf16.msra.mxu0 %v8047_v41  ;;  %v8125_v41 = vld [vmem:[%s11148_s1 + $0x1260] ss:$8 sps:$4 sm:$0xff]  }
 0x214   :  { %5781 = vmatprep.subr.bf16.mxu0 %v8055_v43 }
 0x215   :  { %5821 = vmatpush1.bf16.msra.mxu1 %v8050_v44 }
 0x216   :  { %5822 = vmatprep.subr.bf16.mxu1 %v8058_v45  ;;  %v8133_v45 = vld [vmem:[%s11148_s1 + $0x1254] ss:$8 sps:$4 sm:$0xff]  }
 0x217   :  { %5782 = vmatpush1.bf16.msra.mxu0 %v8053_v5 }
 0x218   :  { %5783 = vmatprep.subr.bf16.mxu0 %v8061_v47 }
 0x219   :  { %5823 = vmatpush1.bf16.msra.mxu1 %v8056_v49 }
 0x21a   :  { %5824 = vmatprep.subr.bf16.mxu1 %v8064_v50 }
 0x21b   :  { %5784 = vmatpush1.bf16.msra.mxu0 %v8059_v29  ;;  %v8136_v29 = vld [vmem:[%s11148_s1 + $0x1354] ss:$8 sps:$4 sm:$0xff]  }
 0x21c   :  { %5785 = vmatprep.subr.bf16.mxu0 %v8067_v51 }
 0x21d   :  { %5825 = vmatpush1.bf16.msra.mxu1 %v8062_v52 }
 0x21e   :  { %5826 = vmatprep.subr.bf16.mxu1 %v8070_v53  ;;  %v8139_v53 = vld [vmem:[%s11148_s1 + $0x1244] ss:$8 sps:$4 sm:$0xff]  }
 0x21f   :  { %5786 = vmatpush1.bf16.msra.mxu0 %v8065_v18 }
 0x220   :  { %5787 = vmatprep.subr.bf16.mxu0 %v8073_v42  ;;  %v8134_v42 = vld [vmem:[%s11148_s1 + $0x1350] ss:$8 sps:$4 sm:$0xff]  }
 0x221   :  { %5827 = vmatpush1.bf16.msra.mxu1 %v8068_v54  ;;  %v8142_v54 = vld [vmem:[%s11148_s1 + $0x1344] ss:$8 sps:$4 sm:$0xff]  }
 0x222   :  { %5828 = vmatprep.subr.bf16.mxu1 %v8076_v55 }
 0x223   :  { %5788 = vmatpush2.bf16.msra.mxu0 %v8071_v57  ;;  %v8137_v57 = vld [vmem:[%s11148_s1 + $0x1240] ss:$8 sps:$4 sm:$0xff]  }
 0x224   :  { %5789 = vmatprep.subr.bf16.mxu0 %v8079_v58  ;;  %v8145_v58 = vld [vmem:[%s11148_s1 + $0x1234] ss:$8 sps:$4 sm:$0xff]  }
 0x225   :  { %5829 = vmatpush2.bf16.msra.mxu1 %v8074_v30  ;;  %v8140_v30 = vld [vmem:[%s11148_s1 + $0x1340] ss:$8 sps:$4 sm:$0xff]  }
 0x226   :  { %5830 = vmatprep.subr.bf16.mxu1 %v8082_v61  ;;  %v8148_v61 = vld [vmem:[%s11148_s1 + $0x1334] ss:$8 sps:$4 sm:$0xff]  }
 0x227   :  { %5790 = vmatpush2.bf16.msra.mxu0 %v8077_v62  ;;  %v8143_v62 = vld [vmem:[%s11148_s1 + $0x1230] ss:$8 sps:$4 sm:$0xff]  }
 0x228   :  { %5791 = vmatprep.subr.bf16.mxu0 %v8085_v63  ;;  %v8151_v63 = vld [vmem:[%s11148_s1 + $0x1224] ss:$8 sps:$4 sm:$0xff]  }
 0x229   :  { %5831 = vmatpush2.bf16.msra.mxu1 %v8080_v1  ;;  %v8146_v1 = vld [vmem:[%s11148_s1 + $0x1330] ss:$8 sps:$4 sm:$0xff]  }
 0x22a   :  { %5832 = vmatprep.subr.bf16.mxu1 %v8088_v46  ;;  %v8154_v46 = vld [vmem:[%s11148_s1 + $0x1324] ss:$8 sps:$4 sm:$0xff]  }
 0x22b   :  { %5792 = vmatpush2.bf16.msra.mxu0 %v8083_v3  ;;  %v8149_v3 = vld [vmem:[%s11148_s1 + $0x1220] ss:$8 sps:$4 sm:$0xff]  }
 0x22c   :  { %5793 = vmatprep.subr.bf16.mxu0 %v8091_v4  ;;  %v8157_v4 = vld [vmem:[%s11148_s1 + $0x1214] ss:$8 sps:$4 sm:$0xff]  }
 0x22d   :  { %5833 = vmatpush2.bf16.msra.mxu1 %v8086_v7  ;;  %v8152_v7 = vld [vmem:[%s11148_s1 + $0x1320] ss:$8 sps:$4 sm:$0xff]  }
 0x22e   :  { %5834 = vmatprep.subr.bf16.mxu1 %v8094_v24  ;;  %v8160_v24 = vld [vmem:[%s11148_s1 + $0x1314] ss:$8 sps:$4 sm:$0xff]  }
 0x22f   :  { %5794 = vmatpush2.bf16.msra.mxu0 %v8089_v9  ;;  %v8155_v9 = vld [vmem:[%s11148_s1 + $0x1210] ss:$8 sps:$4 sm:$0xff]  }
 0x230   :  { %5795 = vmatprep.subr.bf16.mxu0 %v8097_v10  ;;  %v8163_v10 = vld [vmem:[%s11148_s1 + $0x1204] ss:$8 sps:$4 sm:$0xff]  }
 0x231   :  { %5835 = vmatpush2.bf16.msra.mxu1 %v8092_v11  ;;  %v8158_v11 = vld [vmem:[%s11148_s1 + $0x1310] ss:$8 sps:$4 sm:$0xff]  }
 0x232   :  { %5836 = vmatprep.subr.bf16.mxu1 %v8100_v40  ;;  %v8166_v40 = vld [vmem:[%s11148_s1 + $0x1304] ss:$8 sps:$4 sm:$0xff]  }
 0x233   :  { %5796 = vmatpush2.bf16.msra.mxu0 %v8095_v34  ;;  %v8161_v34 = vld [vmem:[%s11148_s1 + $0x1200] ss:$8 sps:$4 sm:$0xff]  }
 0x234   :  { %5797 = vmatprep.subr.bf16.mxu0 %v8103_v12  ;;  %v8169_v12 = vld [vmem:[%s11148_s1 + $0x12f4] ss:$8 sps:$4 sm:$0xff]  }
 0x235   :  { %5837 = vmatpush2.bf16.msra.mxu1 %v8098_v13  ;;  %v8164_v13 = vld [vmem:[%s11148_s1 + $0x1300] ss:$8 sps:$4 sm:$0xff]  }
 0x236   :  { %5838 = vmatprep.subr.bf16.mxu1 %v8106_v16  ;;  %v8167_v16 = vld [vmem:[%s11148_s1 + $0x12f0] ss:$8 sps:$4 sm:$0xff]  }
 0x237   :  { %5798 = vmatpush2.bf16.msra.mxu0 %v8101_v17  ;;  %v8175_v17 = vld [vmem:[%s11148_s1 + $0x12e4] ss:$8 sps:$4 sm:$0xff]  }
 0x238   :  { %5799 = vmatprep.subr.bf16.mxu0 %v8109_v19  ;;  %v8170_v19 = vld [vmem:[%s11148_s1 + $0x13f0] ss:$8 sps:$4 sm:$0xff]  }
 0x239   :  { %5839 = vmatpush2.bf16.msra.mxu1 %v8104_v56  ;;  %v8178_v56 = vld [vmem:[%s11148_s1 + $0x13e4] ss:$8 sps:$4 sm:$0xff]  }
 0x23a   :  { %5840 = vmatprep.subr.bf16.mxu1 %v8112_v21  ;;  %v8173_v21 = vld [vmem:[%s11148_s1 + $0x12e0] ss:$8 sps:$4 sm:$0xff]  }
 0x23b   :  { %5800 = vmatpush2.bf16.msra.mxu0 %v8107_v22  ;;  %v8181_v22 = vld [vmem:[%s11148_s1 + $0x12d4] ss:$8 sps:$4 sm:$0xff]  }
 0x23c   :  { %5801 = vmatprep.subr.bf16.mxu0 %v8115_v23  ;;  %v8176_v23 = vld [vmem:[%s11148_s1 + $0x13e0] ss:$8 sps:$4 sm:$0xff]  }
 0x23d   :  { %5841 = vmatpush2.bf16.msra.mxu1 %v8110_v0  ;;  %v8184_v0 = vld [vmem:[%s11148_s1 + $0x13d4] ss:$8 sps:$4 sm:$0xff]  }
 0x23e   :  { %5842 = vmatprep.subr.bf16.mxu1 %v8118_v26  ;;  %v8187_v26 = vld [vmem:[%s11148_s1 + $0x12c4] ss:$8 sps:$4 sm:$0xff]  }
 0x23f   :  { %5802 = vmatpush2.bf16.msra.mxu0 %v8113_v27  ;;  %v8182_v27 = vld [vmem:[%s11148_s1 + $0x13d0] ss:$8 sps:$4 sm:$0xff]  }
 0x240   :  { %5853 = vmatprep.subr.bf16.mxu0 %v8121_v8  ;;  %v8185_v8 = vld [vmem:[%s11148_s1 + $0x12c0] ss:$8 sps:$4 sm:$0xff]  }
 0x241   :  { %5843 = vmatpush2.bf16.msra.mxu1 %v8116_v32  ;;  %v8193_v32 = vld [vmem:[%s11148_s1 + $0x12b4] ss:$8 sps:$4 sm:$0xff]  }
 0x242   :  { %v5559_v38 = vpop.f32.mrf.mxu0  ;;  %5804 = vmatmul.mubr.bf16.vlgmr.msra.gmra.mxu0 %v1057_v6  ;;  %5894 = vmatprep.subr.bf16.mxu1 %v8124_v33  ;;  %v8190_v6 = vld [vmem:[%s11148_s1 + $0x13c4] ss:$8 sps:$4 sm:$0xff]   ;;  %v8196_v33 = vld [vmem:[%s11148_s1 + $0x13b4] ss:$8 sps:$4 sm:$0xff]  }
 0x243   :  { %v5560_v14 = vadd.f32 %v5559_v38, %v10211_v25  ;;  %5854 = vmatpush1.bf16.msra.mxu0 %v8119_v60  ;;  %5885 = vmatprep.mubr.bf16.mxu0 %v1078_v59  ;;  %v8128_v25 = vld [vmem:[%s11148_s1 + $0x1360] ss:$8 sps:$4 sm:$0xff]   ;;  %v8191_v60 = vld [vmem:[%s11148_s1 + $0x12b0] ss:$8 sps:$4 sm:$0xff]  }
 0x244   :  { %v5561_v43 = vpop.f32.mrf.mxu0  ;;  %v5600_v44 = vpop.f32.mrf.mxu1  ;;  %5845 = vmatmul.mubr.bf16.vlgmr.msra.gmra.mxu1 %v1079_v35  ;;  %5855 = vmatprep.subr.bf16.mxu0 %v8127_v36  ;;  %v8188_v59 = vld [vmem:[%s11148_s1 + $0x13c0] ss:$8 sps:$4 sm:$0xff]   ;;  %v8199_v35 = vld [vmem:[%s11148_s1 + $0x12a4] ss:$8 sps:$4 sm:$0xff]   ;;  %v8194_v36 = vld [vmem:[%s11148_s1 + $0x13b0] ss:$8 sps:$4 sm:$0xff]  }
 0x245   :  { %v5562_v5 = vadd.f32 %v5561_v43, %v10219_v31  ;;  %v10419_v47 = vadd.f32 %v5600_v44, %v5560_v14  ;;  %5895 = vmatpush1.bf16.msra.mxu1 %v8122_v28  ;;  %5926 = vmatprep.mubr.bf16.mxu1 %v1082_v37  ;;  %v8131_v31 = vld [vmem:[%s11148_s1 + $0x1250] ss:$8 sps:$4 sm:$0xff]   ;;  %v8202_v28 = vld [vmem:[%s11148_s1 + $0x13a4] ss:$8 sps:$4 sm:$0xff]   ;;  %v8197_v38 = vld [vmem:[%s11148_s1 + $0x12a0] ss:$8 sps:$4 sm:$0xff]  }
 0x246   :  { %v5563_v49 = vpop.f32.mrf.mxu0  ;;  %v5602_v50 = vpop.f32.mrf.mxu1  ;;  %5896 = vmatprep.subr.bf16.mxu1 %v8130_v39  ;;  %v10564_v37 = vld [vmem:[%s11147_s0 + $0x28] sm:$0xff]  ;;  %v8205_v39 = vld [vmem:[%s11148_s1 + $0x1294] ss:$8 sps:$4 sm:$0xff]   ;;  %v8203_v44 = vld [vmem:[%s11148_s1 + $0x1290] ss:$8 sps:$4 sm:$0xff]  }
 0x247   :  { %v10427_v51 = vadd.f32 %v5602_v50, %v5562_v5  ;;  %5856 = vmatpush1.bf16.msra.mxu0 %v8125_v41  ;;  %v8200_v14 = vld [vmem:[%s11148_s1 + $0x13a0] ss:$8 sps:$4 sm:$0xff]   ;;  %v10577_v41 = vrot.slane %v10564_v37, %v8651_v48  ;;  %v8208_v43 = vld [vmem:[%s11148_s1 + $0x1394] ss:$8 sps:$4 sm:$0xff]   ;;  %v8206_v5 = vld [vmem:[%s11148_s1 + $0x1390] ss:$8 sps:$4 sm:$0xff]  }
 0x248   :  { %v5564_v52 = vpop.f32.mrf.mxu0  ;;  %5857 = vmatprep.subr.bf16.mxu0 %v8133_v45  ;;  %v5604_v18 = vpop.f32.mrf.mxu1  ;;  %v8211_v45 = vld [vmem:[%s11148_s1 + $0x1284] ss:$8 sps:$4 sm:$0xff]   ;;  %v8209_v50 = vld [vmem:[%s11148_s1 + $0x1280] ss:$8 sps:$4 sm:$0xff]  }
 0x249   :  { %5897 = vmatpush1.bf16.msra.mxu1 %v8128_v25  ;;  %v1098_v25 = vcombine.high %v10577_v41, %v10577_v41  ;;  %v8214_v49 = vld [vmem:[%s11148_s1 + $0x1384] ss:$8 sps:$4 sm:$0xff]   ;;  %v8212_v52 = vld [vmem:[%s11148_s1 + $0x1380] ss:$8 sps:$4 sm:$0xff]   ;;  %v8221_v18 = vld [vmem:[%s11148_s1 + $0x1574] ss:$8 sps:$4 sm:$0xff]  }
 0x24a   :  { %5898 = vmatprep.subr.bf16.mxu1 %v8136_v29  ;;  %v5605_v55 = vpop.f32.mrf.mxu1  ;;  %v1064_v29 = vrot.slane %v10365_v20, %v8651_v48  ;;  %v8216_v20 = vld [vmem:[%s11148_s1 + $0x1470] ss:$8 sps:$4 sm:$0xff]  }
 0x24b   :  { %5858 = vmatpush1.bf16.msra.mxu0 %v8131_v31  ;;  %v8218_v31 = vld [vmem:[%s11148_s1 + $0x1474] ss:$8 sps:$4 sm:$0xff]   ;;  %v8219_v55 = vld [vmem:[%s11148_s1 + $0x1570] ss:$8 sps:$4 sm:$0xff]  }
 0x24c   :  { %5859 = vmatprep.subr.bf16.mxu0 %v8139_v53  ;;  %v1120_v53 = vrot.slane %v1098_v25, %v8651_v48  ;;  %v8281_v25 = vld [vmem:[%s11148_s1 + $0x15d4] ss:$8 sps:$4 sm:$0xff]  }
 0x24d   :  { %5899 = vmatpush1.bf16.msra.mxu1 %v8134_v42  ;;  %v1080_v42 = vcombine.high %v1064_v29, %v1064_v29 }
 0x24e   :  { %5900 = vmatprep.subr.bf16.mxu1 %v8142_v54  ;;  %v8224_v54 = vld [vmem:[%s11148_s1 + $0x1464] ss:$8 sps:$4 sm:$0xff]  }
 0x24f   :  { %5860 = vmatpush1.bf16.msra.mxu0 %v8137_v57  ;;  %v1130_v57 = vcombine.high %v1120_v53, %v1120_v53 }
 0x250   :  { %5861 = vmatprep.subr.bf16.mxu0 %v8145_v58 }
 0x251   :  { %5901 = vmatpush1.bf16.msra.mxu1 %v8140_v30  ;;  %v8227_v30 = vld [vmem:[%s11148_s1 + $0x1564] ss:$8 sps:$4 sm:$0xff]  }
 0x252   :  { %5902 = vmatprep.subr.bf16.mxu1 %v8148_v61 }
 0x253   :  { %5862 = vmatpush1.bf16.msra.mxu0 %v8143_v62  ;;  %v8222_v62 = vld [vmem:[%s11148_s1 + $0x1460] ss:$8 sps:$4 sm:$0xff]  }
 0x254   :  { %5863 = vmatprep.subr.bf16.mxu0 %v8151_v63 }
 0x255   :  { %5903 = vmatpush1.bf16.msra.mxu1 %v8146_v1 }
 0x256   :  { %5904 = vmatprep.subr.bf16.mxu1 %v8154_v46  ;;  %v8230_v46 = vld [vmem:[%s11148_s1 + $0x1454] ss:$8 sps:$4 sm:$0xff]  }
 0x257   :  { %5864 = vmatpush1.bf16.msra.mxu0 %v8149_v3 }
 0x258   :  { %5865 = vmatprep.subr.bf16.mxu0 %v8157_v4 }
 0x259   :  { %5905 = vmatpush1.bf16.msra.mxu1 %v8152_v7 }
 0x25a   :  { %5906 = vmatprep.subr.bf16.mxu1 %v8160_v24 }
 0x25b   :  { %5866 = vmatpush1.bf16.msra.mxu0 %v8155_v9  ;;  %v8233_v9 = vld [vmem:[%s11148_s1 + $0x1554] ss:$8 sps:$4 sm:$0xff]  }
 0x25c   :  { %5867 = vmatprep.subr.bf16.mxu0 %v8163_v10 }
 0x25d   :  { %5907 = vmatpush1.bf16.msra.mxu1 %v8158_v11 }
 0x25e   :  { %5908 = vmatprep.subr.bf16.mxu1 %v8166_v40  ;;  %v8236_v40 = vld [vmem:[%s11148_s1 + $0x1444] ss:$8 sps:$4 sm:$0xff]  }
 0x25f   :  { %5868 = vmatpush1.bf16.msra.mxu0 %v8161_v34 }
 0x260   :  { %5869 = vmatprep.subr.bf16.mxu0 %v8169_v12  ;;  %v8231_v12 = vld [vmem:[%s11148_s1 + $0x1550] ss:$8 sps:$4 sm:$0xff]  }
 0x261   :  { %5909 = vmatpush1.bf16.msra.mxu1 %v8164_v13  ;;  %v8239_v13 = vld [vmem:[%s11148_s1 + $0x1544] ss:$8 sps:$4 sm:$0xff]  }
 0x262   :  { %5910 = vmatprep.subr.bf16.mxu1 %v8172_v15 }
 0x263   :  { %5870 = vmatpush2.bf16.msra.mxu0 %v8167_v16  ;;  %v8234_v16 = vld [vmem:[%s11148_s1 + $0x1440] ss:$8 sps:$4 sm:$0xff]  }
 0x264   :  { %5871 = vmatprep.subr.bf16.mxu0 %v8175_v17  ;;  %v8242_v17 = vld [vmem:[%s11148_s1 + $0x1434] ss:$8 sps:$4 sm:$0xff]  }
 0x265   :  { %5911 = vmatpush2.bf16.msra.mxu1 %v8170_v19  ;;  %v8237_v19 = vld [vmem:[%s11148_s1 + $0x1540] ss:$8 sps:$4 sm:$0xff]  }
 0x266   :  { %5912 = vmatprep.subr.bf16.mxu1 %v8178_v56  ;;  %v8245_v56 = vld [vmem:[%s11148_s1 + $0x1534] ss:$8 sps:$4 sm:$0xff]  }
 0x267   :  { %5872 = vmatpush2.bf16.msra.mxu0 %v8173_v21  ;;  %v8240_v21 = vld [vmem:[%s11148_s1 + $0x1430] ss:$8 sps:$4 sm:$0xff]  }
 0x268   :  { %5873 = vmatprep.subr.bf16.mxu0 %v8181_v22  ;;  %v8248_v22 = vld [vmem:[%s11148_s1 + $0x1424] ss:$8 sps:$4 sm:$0xff]  }
 0x269   :  { %5913 = vmatpush2.bf16.msra.mxu1 %v8176_v23  ;;  %v8243_v23 = vld [vmem:[%s11148_s1 + $0x1530] ss:$8 sps:$4 sm:$0xff]  }
 0x26a   :  { %5914 = vmatprep.subr.bf16.mxu1 %v8184_v0  ;;  %v8251_v0 = vld [vmem:[%s11148_s1 + $0x1524] ss:$8 sps:$4 sm:$0xff]  }
 0x26b   :  { %5874 = vmatpush2.bf16.msra.mxu0 %v8179_v2  ;;  %v8246_v2 = vld [vmem:[%s11148_s1 + $0x1420] ss:$8 sps:$4 sm:$0xff]  }
 0x26c   :  { %5875 = vmatprep.subr.bf16.mxu0 %v8187_v26  ;;  %v8254_v26 = vld [vmem:[%s11148_s1 + $0x1414] ss:$8 sps:$4 sm:$0xff]  }
 0x26d   :  { %5915 = vmatpush2.bf16.msra.mxu1 %v8182_v27  ;;  %v8249_v27 = vld [vmem:[%s11148_s1 + $0x1520] ss:$8 sps:$4 sm:$0xff]  }
 0x26e   :  { %5916 = vmatprep.subr.bf16.mxu1 %v8190_v6  ;;  %v8257_v6 = vld [vmem:[%s11148_s1 + $0x1514] ss:$8 sps:$4 sm:$0xff]  }
 0x26f   :  { %5876 = vmatpush2.bf16.msra.mxu0 %v8185_v8  ;;  %v8252_v8 = vld [vmem:[%s11148_s1 + $0x1410] ss:$8 sps:$4 sm:$0xff]  }
 0x270   :  { %5877 = vmatprep.subr.bf16.mxu0 %v8193_v32  ;;  %v8260_v32 = vld [vmem:[%s11148_s1 + $0x1404] ss:$8 sps:$4 sm:$0xff]  }
 0x271   :  { %5917 = vmatpush2.bf16.msra.mxu1 %v8188_v59  ;;  %v8255_v59 = vld [vmem:[%s11148_s1 + $0x1510] ss:$8 sps:$4 sm:$0xff]  }
 0x272   :  { %5918 = vmatprep.subr.bf16.mxu1 %v8196_v33  ;;  %v8263_v33 = vld [vmem:[%s11148_s1 + $0x1504] ss:$8 sps:$4 sm:$0xff]  }
 0x273   :  { %5878 = vmatpush2.bf16.msra.mxu0 %v8191_v60  ;;  %v8258_v60 = vld [vmem:[%s11148_s1 + $0x1400] ss:$8 sps:$4 sm:$0xff]  }
 0x274   :  { %5879 = vmatprep.subr.bf16.mxu0 %v8199_v35  ;;  %v8266_v35 = vld [vmem:[%s11148_s1 + $0x14f4] ss:$8 sps:$4 sm:$0xff]  }
 0x275   :  { %5919 = vmatpush2.bf16.msra.mxu1 %v8194_v36  ;;  %v8261_v36 = vld [vmem:[%s11148_s1 + $0x1500] ss:$8 sps:$4 sm:$0xff]  }
 0x276   :  { %5920 = vmatprep.subr.bf16.mxu1 %v8202_v28  ;;  %v8269_v28 = vld [vmem:[%s11148_s1 + $0x15f4] ss:$8 sps:$4 sm:$0xff]  }
 0x277   :  { %5880 = vmatpush2.bf16.msra.mxu0 %v8197_v38  ;;  %v8264_v38 = vld [vmem:[%s11148_s1 + $0x14f0] ss:$8 sps:$4 sm:$0xff]  }
 0x278   :  { %5881 = vmatprep.subr.bf16.mxu0 %v8205_v39  ;;  %v8272_v39 = vld [vmem:[%s11148_s1 + $0x14e4] ss:$8 sps:$4 sm:$0xff]  }
 0x279   :  { %5921 = vmatpush2.bf16.msra.mxu1 %v8200_v14  ;;  %v8267_v14 = vld [vmem:[%s11148_s1 + $0x15f0] ss:$8 sps:$4 sm:$0xff]  }
 0x27a   :  { %5922 = vmatprep.subr.bf16.mxu1 %v8208_v43  ;;  %v8275_v43 = vld [vmem:[%s11148_s1 + $0x15e4] ss:$8 sps:$4 sm:$0xff]  }
 0x27b   :  { %5882 = vmatpush2.bf16.msra.mxu0 %v8203_v44  ;;  %v8270_v44 = vld [vmem:[%s11148_s1 + $0x14e0] ss:$8 sps:$4 sm:$0xff]  }
 0x27c   :  { %5883 = vmatprep.subr.bf16.mxu0 %v8211_v45  ;;  %v8278_v45 = vld [vmem:[%s11148_s1 + $0x14d4] ss:$8 sps:$4 sm:$0xff]  }
 0x27d   :  { %5923 = vmatpush2.bf16.msra.mxu1 %v8206_v5  ;;  %v8273_v5 = vld [vmem:[%s11148_s1 + $0x15e0] ss:$8 sps:$4 sm:$0xff]  }
 0x27e   :  { %5924 = vmatprep.subr.bf16.mxu1 %v8214_v49  ;;  %v8276_v49 = vld [vmem:[%s11148_s1 + $0x14d0] ss:$8 sps:$4 sm:$0xff]  }
 0x27f   :  { %5884 = vmatpush2.bf16.msra.mxu0 %v8209_v50  ;;  %v8284_v50 = vld [vmem:[%s11148_s1 + $0x14c4] ss:$8 sps:$4 sm:$0xff]  }
 0x280   :  { %5935 = vmatprep.subr.bf16.mxu0 %v8218_v31  ;;  %v8287_v31 = vld [vmem:[%s11148_s1 + $0x15c4] ss:$8 sps:$4 sm:$0xff]  }
 0x281   :  { %5925 = vmatpush2.bf16.msra.mxu1 %v8212_v52  ;;  %v8282_v52 = vld [vmem:[%s11148_s1 + $0x14c0] ss:$8 sps:$4 sm:$0xff]  }
 0x282   :  { %v5641_v58 = vpop.f32.mrf.mxu0  ;;  %5886 = vmatmul.mubr.bf16.vlgmr.msra.gmra.mxu0 %v1064_v29  ;;  %5976 = vmatprep.subr.bf16.mxu1 %v8221_v18  ;;  %v8279_v29 = vld [vmem:[%s11148_s1 + $0x15d0] ss:$8 sps:$4 sm:$0xff]   ;;  %v8285_v18 = vld [vmem:[%s11148_s1 + $0x15c0] ss:$8 sps:$4 sm:$0xff]  }
 0x283   :  { %v5642_v61 = vadd.f32 %v5641_v58, %v10419_v47  ;;  %5936 = vmatpush1.bf16.msra.mxu0 %v8216_v20  ;;  %5967 = vmatprep.mubr.bf16.mxu0 %v1120_v53  ;;  %v8225_v47 = vld [vmem:[%s11148_s1 + $0x1560] ss:$8 sps:$4 sm:$0xff]   ;;  %v8290_v53 = vld [vmem:[%s11148_s1 + $0x14b4] ss:$8 sps:$4 sm:$0xff]   ;;  %v8299_v58 = vld [vmem:[%s11148_s1 + $0x15a4] ss:$8 sps:$4 sm:$0xff]  }
 0x284   :  { %v5643_v63 = vpop.f32.mrf.mxu0  ;;  %v5682_v1 = vpop.f32.mrf.mxu1  ;;  %5927 = vmatmul.mubr.bf16.vlgmr.msra.gmra.mxu1 %v1080_v42  ;;  %5937 = vmatprep.subr.bf16.mxu0 %v8224_v54  ;;  %v8293_v20 = vld [vmem:[%s11148_s1 + $0x15b4] ss:$8 sps:$4 sm:$0xff]   ;;  %v8288_v42 = vld [vmem:[%s11148_s1 + $0x14b0] ss:$8 sps:$4 sm:$0xff]   ;;  %v8296_v54 = vld [vmem:[%s11148_s1 + $0x14a4] ss:$8 sps:$4 sm:$0xff]  }
 0x285   :  { %v5644_v3 = vadd.f32 %v5643_v63, %v10427_v51  ;;  %v10631_v4 = vadd.f32 %v5682_v1, %v5642_v61  ;;  %5977 = vmatpush1.bf16.msra.mxu1 %v8219_v55  ;;  %6008 = vmatprep.mubr.bf16.mxu1 %v1130_v57  ;;  %v8228_v51 = vld [vmem:[%s11148_s1 + $0x1450] ss:$8 sps:$4 sm:$0xff]   ;;  %v1083_v57 = vcombine.high %v10564_v37, %v10564_v37  ;;  %v8302_v61 = vld [vmem:[%s11148_s1 + $0x1494] ss:$8 sps:$4 sm:$0xff]   ;;  %v8297_v37 = vld [vmem:[%s11148_s1 + $0x15a0] ss:$8 sps:$4 sm:$0xff]  }
 0x286   :  { %v5645_v7 = vpop.f32.mrf.mxu0  ;;  %v5684_v24 = vpop.f32.mrf.mxu1  ;;  %5978 = vmatprep.subr.bf16.mxu1 %v8227_v30  ;;  %v8291_v55 = vld [vmem:[%s11148_s1 + $0x15b0] ss:$8 sps:$4 sm:$0xff]   ;;  %v8294_v30 = vld [vmem:[%s11148_s1 + $0x14a0] ss:$8 sps:$4 sm:$0xff]   ;;  %v8305_v63 = vld [vmem:[%s11148_s1 + $0x1594] ss:$8 sps:$4 sm:$0xff]  }
 0x287   :  { %v10639_v10 = vadd.f32 %v5684_v24, %v5644_v3  ;;  %5938 = vmatpush1.bf16.msra.mxu0 %v8222_v62  ;;  %v10785_v62 = vrot.slane %v1083_v57, %v8651_v48  ;;  %v8300_v1 = vld [vmem:[%s11148_s1 + $0x1490] ss:$8 sps:$4 sm:$0xff]   ;;  %v8311_v7 = vld [vmem:[%s11148_s1 + $0x1584] ss:$8 sps:$4 sm:$0xff]   ;;  %v8306_v24 = vld [vmem:[%s11148_s1 + $0x1480] ss:$8 sps:$4 sm:$0xff]  }
 0x288   :  { %v5646_v11 = vpop.f32.mrf.mxu0  ;;  %5939 = vmatprep.subr.bf16.mxu0 %v8230_v46  ;;  %v5686_v34 = vpop.f32.mrf.mxu1  ;;  %v8308_v46 = vld [vmem:[%s11148_s1 + $0x1484] ss:$8 sps:$4 sm:$0xff]   ;;  %v8303_v3 = vld [vmem:[%s11148_s1 + $0x1590] ss:$8 sps:$4 sm:$0xff]   ;;  %v8365_v57 = vld [vmem:[%s11148_s1 + $0x17f4] ss:$8 sps:$4 sm:$0xff]  }
 0x289   :  { %5979 = vmatpush1.bf16.msra.mxu1 %v8225_v47  ;;  %v1099_v47 = vcombine.high %v10785_v62, %v10785_v62  ;;  %v8309_v11 = vld [vmem:[%s11148_s1 + $0x1580] ss:$8 sps:$4 sm:$0xff]   ;;  %v8317_v34 = vld [vmem:[%s11148_s1 + $0x1774] ss:$8 sps:$4 sm:$0xff]  }
 0x28a   :  { %5980 = vmatprep.subr.bf16.mxu1 %v8233_v9  ;;  %v5687_v15 = vpop.f32.mrf.mxu1  ;;  %v1106_v9 = vrot.slane %v10577_v41, %v8651_v48  ;;  %v8312_v41 = vld [vmem:[%s11148_s1 + $0x1670] ss:$8 sps:$4 sm:$0xff]  }
 0x28b   :  { %5940 = vmatpush1.bf16.msra.mxu0 %v8228_v51  ;;  %v8314_v51 = vld [vmem:[%s11148_s1 + $0x1674] ss:$8 sps:$4 sm:$0xff]   ;;  %v8315_v15 = vld [vmem:[%s11148_s1 + $0x1770] ss:$8 sps:$4 sm:$0xff]  }
 0x28c   :  { %5941 = vmatprep.subr.bf16.mxu0 %v8236_v40  ;;  %v1127_v40 = vrot.slane %v1099_v47, %v8651_v48  ;;  %v8372_v47 = vld [vmem:[%s11148_s1 + $0x16d0] ss:$8 sps:$4 sm:$0xff]  }
 0x28d   :  { %5981 = vmatpush1.bf16.msra.mxu1 %v8231_v12  ;;  %v1128_v12 = vcombine.high %v1106_v9, %v1106_v9 }
 0x28e   :  { %5982 = vmatprep.subr.bf16.mxu1 %v8239_v13  ;;  %v8320_v13 = vld [vmem:[%s11148_s1 + $0x1664] ss:$8 sps:$4 sm:$0xff]  }
 0x28f   :  { %5942 = vmatpush1.bf16.msra.mxu0 %v8234_v16  ;;  %v1131_v16 = vcombine.high %v1127_v40, %v1127_v40 }
 0x290   :  { %5943 = vmatprep.subr.bf16.mxu0 %v8242_v17 }
 0x291   :  { %5983 = vmatpush1.bf16.msra.mxu1 %v8237_v19  ;;  %v8323_v19 = vld [vmem:[%s11148_s1 + $0x1764] ss:$8 sps:$4 sm:$0xff]  }
 0x292   :  { %5984 = vmatprep.subr.bf16.mxu1 %v8245_v56 }
 0x293   :  { %5944 = vmatpush1.bf16.msra.mxu0 %v8240_v21  ;;  %v8318_v21 = vld [vmem:[%s11148_s1 + $0x1660] ss:$8 sps:$4 sm:$0xff]  }
 0x294   :  { %5945 = vmatprep.subr.bf16.mxu0 %v8248_v22 }
 0x295   :  { %5985 = vmatpush1.bf16.msra.mxu1 %v8243_v23 }
 0x296   :  { %5986 = vmatprep.subr.bf16.mxu1 %v8251_v0  ;;  %v8326_v0 = vld [vmem:[%s11148_s1 + $0x1654] ss:$8 sps:$4 sm:$0xff]  }
 0x297   :  { %5946 = vmatpush1.bf16.msra.mxu0 %v8246_v2 }
 0x298   :  { %5947 = vmatprep.subr.bf16.mxu0 %v8254_v26 }
 0x299   :  { %5987 = vmatpush1.bf16.msra.mxu1 %v8249_v27 }
 0x29a   :  { %5988 = vmatprep.subr.bf16.mxu1 %v8257_v6 }
 0x29b   :  { %5948 = vmatpush1.bf16.msra.mxu0 %v8252_v8  ;;  %v8329_v8 = vld [vmem:[%s11148_s1 + $0x1754] ss:$8 sps:$4 sm:$0xff]  }
 0x29c   :  { %5949 = vmatprep.subr.bf16.mxu0 %v8260_v32 }
 0x29d   :  { %5989 = vmatpush1.bf16.msra.mxu1 %v8255_v59 }
 0x29e   :  { %5990 = vmatprep.subr.bf16.mxu1 %v8263_v33  ;;  %v8332_v33 = vld [vmem:[%s11148_s1 + $0x1644] ss:$8 sps:$4 sm:$0xff]  }
 0x29f   :  { %5950 = vmatpush1.bf16.msra.mxu0 %v8258_v60 }
 0x2a0   :  { %5951 = vmatprep.subr.bf16.mxu0 %v8266_v35  ;;  %v8327_v35 = vld [vmem:[%s11148_s1 + $0x1750] ss:$8 sps:$4 sm:$0xff]  }
 0x2a1   :  { %5991 = vmatpush1.bf16.msra.mxu1 %v8261_v36  ;;  %v8335_v36 = vld [vmem:[%s11148_s1 + $0x1744] ss:$8 sps:$4 sm:$0xff]  }
 0x2a2   :  { %5992 = vmatprep.subr.bf16.mxu1 %v8269_v28 }
 0x2a3   :  { %5952 = vmatpush2.bf16.msra.mxu0 %v8264_v38  ;;  %v8330_v38 = vld [vmem:[%s11148_s1 + $0x1640] ss:$8 sps:$4 sm:$0xff]  }
 0x2a4   :  { %5953 = vmatprep.subr.bf16.mxu0 %v8272_v39  ;;  %v8338_v39 = vld [vmem:[%s11148_s1 + $0x1634] ss:$8 sps:$4 sm:$0xff]  }
 0x2a5   :  { %5993 = vmatpush2.bf16.msra.mxu1 %v8267_v14  ;;  %v8333_v14 = vld [vmem:[%s11148_s1 + $0x1740] ss:$8 sps:$4 sm:$0xff]  }
 0x2a6   :  { %5994 = vmatprep.subr.bf16.mxu1 %v8275_v43  ;;  %v8341_v43 = vld [vmem:[%s11148_s1 + $0x1734] ss:$8 sps:$4 sm:$0xff]  }
 0x2a7   :  { %5954 = vmatpush2.bf16.msra.mxu0 %v8270_v44  ;;  %v8336_v44 = vld [vmem:[%s11148_s1 + $0x1630] ss:$8 sps:$4 sm:$0xff]  }
 0x2a8   :  { %5955 = vmatprep.subr.bf16.mxu0 %v8278_v45  ;;  %v8344_v45 = vld [vmem:[%s11148_s1 + $0x1624] ss:$8 sps:$4 sm:$0xff]  }
 0x2a9   :  { %5995 = vmatpush2.bf16.msra.mxu1 %v8273_v5  ;;  %v8339_v5 = vld [vmem:[%s11148_s1 + $0x1730] ss:$8 sps:$4 sm:$0xff]  }
 0x2aa   :  { %5996 = vmatprep.subr.bf16.mxu1 %v8281_v25  ;;  %v8347_v25 = vld [vmem:[%s11148_s1 + $0x1724] ss:$8 sps:$4 sm:$0xff]  }
 0x2ab   :  { %5956 = vmatpush2.bf16.msra.mxu0 %v8276_v49  ;;  %v8342_v49 = vld [vmem:[%s11148_s1 + $0x1620] ss:$8 sps:$4 sm:$0xff]  }
 0x2ac   :  { %5957 = vmatprep.subr.bf16.mxu0 %v8284_v50  ;;  %v8350_v50 = vld [vmem:[%s11148_s1 + $0x1614] ss:$8 sps:$4 sm:$0xff]  }
 0x2ad   :  { %5997 = vmatpush2.bf16.msra.mxu1 %v8279_v29  ;;  %v8345_v29 = vld [vmem:[%s11148_s1 + $0x1720] ss:$8 sps:$4 sm:$0xff]  }
 0x2ae   :  { %5998 = vmatprep.subr.bf16.mxu1 %v8287_v31  ;;  %v8353_v31 = vld [vmem:[%s11148_s1 + $0x1714] ss:$8 sps:$4 sm:$0xff]  }
 0x2af   :  { %5958 = vmatpush2.bf16.msra.mxu0 %v8282_v52  ;;  %v8348_v52 = vld [vmem:[%s11148_s1 + $0x1610] ss:$8 sps:$4 sm:$0xff]  }
 0x2b0   :  { %5959 = vmatprep.subr.bf16.mxu0 %v8290_v53  ;;  %v8356_v53 = vld [vmem:[%s11148_s1 + $0x1604] ss:$8 sps:$4 sm:$0xff]  }
 0x2b1   :  { %5999 = vmatpush2.bf16.msra.mxu1 %v8285_v18  ;;  %v8351_v18 = vld [vmem:[%s11148_s1 + $0x1710] ss:$8 sps:$4 sm:$0xff]  }
 0x2b2   :  { %6000 = vmatprep.subr.bf16.mxu1 %v8293_v20  ;;  %v8359_v20 = vld [vmem:[%s11148_s1 + $0x1704] ss:$8 sps:$4 sm:$0xff]  }
 0x2b3   :  { %5960 = vmatpush2.bf16.msra.mxu0 %v8288_v42  ;;  %v8354_v42 = vld [vmem:[%s11148_s1 + $0x1600] ss:$8 sps:$4 sm:$0xff]  }
 0x2b4   :  { %5961 = vmatprep.subr.bf16.mxu0 %v8296_v54  ;;  %v8362_v54 = vld [vmem:[%s11148_s1 + $0x16f4] ss:$8 sps:$4 sm:$0xff]  }
 0x2b5   :  { %6001 = vmatpush2.bf16.msra.mxu1 %v8291_v55  ;;  %v8357_v55 = vld [vmem:[%s11148_s1 + $0x1700] ss:$8 sps:$4 sm:$0xff]  }
 0x2b6   :  { %6002 = vmatprep.subr.bf16.mxu1 %v8299_v58  ;;  %v8360_v58 = vld [vmem:[%s11148_s1 + $0x16f0] ss:$8 sps:$4 sm:$0xff]  }
 0x2b7   :  { %5962 = vmatpush2.bf16.msra.mxu0 %v8294_v30  ;;  %v8368_v30 = vld [vmem:[%s11148_s1 + $0x16e4] ss:$8 sps:$4 sm:$0xff]  }
 0x2b8   :  { %5963 = vmatprep.subr.bf16.mxu0 %v8302_v61  ;;  %v8363_v61 = vld [vmem:[%s11148_s1 + $0x17f0] ss:$8 sps:$4 sm:$0xff]  }
 0x2b9   :  { %6003 = vmatpush2.bf16.msra.mxu1 %v8297_v37  ;;  %v8371_v37 = vld [vmem:[%s11148_s1 + $0x17e4] ss:$8 sps:$4 sm:$0xff]  }
 0x2ba   :  { %6004 = vmatprep.subr.bf16.mxu1 %v8305_v63  ;;  %v8366_v63 = vld [vmem:[%s11148_s1 + $0x16e0] ss:$8 sps:$4 sm:$0xff]  }
 0x2bb   :  { %5964 = vmatpush2.bf16.msra.mxu0 %v8300_v1  ;;  %v8374_v1 = vld [vmem:[%s11148_s1 + $0x16d4] ss:$8 sps:$4 sm:$0xff]  }
 0x2bc   :  { %5965 = vmatprep.subr.bf16.mxu0 %v8308_v46  ;;  %v8369_v46 = vld [vmem:[%s11148_s1 + $0x17e0] ss:$8 sps:$4 sm:$0xff]  }
 0x2bd   :  { %6005 = vmatpush2.bf16.msra.mxu1 %v8303_v3  ;;  %v8377_v3 = vld [vmem:[%s11148_s1 + $0x17d4] ss:$8 sps:$4 sm:$0xff]  }
 0x2be   :  { %6006 = vmatprep.subr.bf16.mxu1 %v8311_v7  ;;  %v8380_v7 = vld [vmem:[%s11148_s1 + $0x16c4] ss:$8 sps:$4 sm:$0xff]  }
 0x2bf   :  { %5966 = vmatpush2.bf16.msra.mxu0 %v8306_v24  ;;  %v8375_v24 = vld [vmem:[%s11148_s1 + $0x17d0] ss:$8 sps:$4 sm:$0xff]  }
 0x2c0   :  { %6017 = vmatprep.subr.bf16.mxu0 %v8314_v51  ;;  %v8378_v51 = vld [vmem:[%s11148_s1 + $0x16c0] ss:$8 sps:$4 sm:$0xff]  }
 0x2c1   :  { %6007 = vmatpush2.bf16.msra.mxu1 %v8309_v11  ;;  %v8386_v11 = vld [vmem:[%s11148_s1 + $0x16b4] ss:$8 sps:$4 sm:$0xff]  }
 0x2c2   :  { %v5723_v17 = vpop.f32.mrf.mxu0  ;;  %5968 = vmatmul.mubr.bf16.vlgmr.msra.gmra.mxu0 %v1106_v9  ;;  %6058 = vmatprep.subr.bf16.mxu1 %v8317_v34  ;;  %v8383_v9 = vld [vmem:[%s11148_s1 + $0x17c4] ss:$8 sps:$4 sm:$0xff]   ;;  %v8389_v34 = vld [vmem:[%s11148_s1 + $0x17b4] ss:$8 sps:$4 sm:$0xff]  }
 0x2c3   :  { %v5724_v56 = vadd.f32 %v5723_v17, %v10631_v4  ;;  %6018 = vmatpush1.bf16.msra.mxu0 %v8312_v41  ;;  %6049 = vmatprep.mubr.bf16.mxu0 %v1127_v40  ;;  %v8321_v4 = vld [vmem:[%s11148_s1 + $0x1760] ss:$8 sps:$4 sm:$0xff]   ;;  %v8384_v41 = vld [vmem:[%s11148_s1 + $0x16b0] ss:$8 sps:$4 sm:$0xff]   ;;  %v8398_v17 = vld [vmem:[%s11148_s1 + $0x1694] ss:$8 sps:$4 sm:$0xff]  }
 0x2c4   :  { %v5725_v22 = vpop.f32.mrf.mxu0  ;;  %v5764_v23 = vpop.f32.mrf.mxu1  ;;  %6009 = vmatmul.mubr.bf16.vlgmr.msra.gmra.mxu1 %v1128_v12  ;;  %6019 = vmatprep.subr.bf16.mxu0 %v8320_v13  ;;  %v8381_v40 = vld [vmem:[%s11148_s1 + $0x17c0] ss:$8 sps:$4 sm:$0xff]   ;;  %v8392_v12 = vld [vmem:[%s11148_s1 + $0x16a4] ss:$8 sps:$4 sm:$0xff]   ;;  %v8387_v13 = vld [vmem:[%s11148_s1 + $0x17b0] ss:$8 sps:$4 sm:$0xff]  }
 0x2c5   :  { %v5726_v2 = vadd.f32 %v5725_v22, %v10639_v10  ;;  %v10839_v26 = vadd.f32 %v5764_v23, %v5724_v56  ;;  %6059 = vmatpush1.bf16.msra.mxu1 %v8315_v15  ;;  %6090 = vmatprep.mubr.bf16.mxu1 %v1131_v16  ;;  %v8324_v10 = vld [vmem:[%s11148_s1 + $0x1650] ss:$8 sps:$4 sm:$0xff]   ;;  %v8395_v15 = vld [vmem:[%s11148_s1 + $0x17a4] ss:$8 sps:$4 sm:$0xff]   ;;  %v8390_v16 = vld [vmem:[%s11148_s1 + $0x16a0] ss:$8 sps:$4 sm:$0xff]  }
 0x2c6   :  { %v5727_v27 = vpop.f32.mrf.mxu0  ;;  %v5766_v6 = vpop.f32.mrf.mxu1  ;;  %6060 = vmatprep.subr.bf16.mxu1 %v8323_v19  ;;  %v8393_v19 = vld [vmem:[%s11148_s1 + $0x17a0] ss:$8 sps:$4 sm:$0xff]   ;;  %v8401_v56 = vld [vmem:[%s11148_s1 + $0x1794] ss:$8 sps:$4 sm:$0xff]   ;;  %v8404_v22 = vld [vmem:[%s11148_s1 + $0x1684] ss:$8 sps:$4 sm:$0xff]  }
 0x2c7   :  { %v10847_v32 = vadd.f32 %v5766_v6, %v5726_v2  ;;  %6020 = vmatpush1.bf16.msra.mxu0 %v8318_v21  ;;  %v8396_v21 = vld [vmem:[%s11148_s1 + $0x1690] ss:$8 sps:$4 sm:$0xff]   ;;  %v8402_v2 = vld [vmem:[%s11148_s1 + $0x1680] ss:$8 sps:$4 sm:$0xff]   ;;  %v8411_v27 = vld [vmem:[%s11148_s1 + $0x1874] ss:$8 sps:$4 sm:$0xff]  }
 0x2c8   :  { %v5728_v59 = vpop.f32.mrf.mxu0  ;;  %6021 = vmatprep.subr.bf16.mxu0 %v8326_v0  ;;  %v5768_v60 = vpop.f32.mrf.mxu1  ;;  %v8399_v23 = vld [vmem:[%s11148_s1 + $0x1790] ss:$8 sps:$4 sm:$0xff]   ;;  %v8407_v0 = vld [vmem:[%s11148_s1 + $0x1784] ss:$8 sps:$4 sm:$0xff]   ;;  %v8405_v6 = vld [vmem:[%s11148_s1 + $0x1780] ss:$8 sps:$4 sm:$0xff]  }
 0x2c9   :  { %6061 = vmatpush1.bf16.msra.mxu1 %v8321_v4  ;;  %v1113_v4 = vrot.slane %v10785_v62, %v8651_v48  ;;  %v8414_v62 = vld [vmem:[%s11148_s1 + $0x1864] ss:$8 sps:$4 sm:$0xff]  }
 0x2ca   :  { %6062 = vmatprep.subr.bf16.mxu1 %v8329_v8  ;;  %v5769_v28 = vpop.f32.mrf.mxu1  ;;  %v8409_v8 = vld [vmem:[%s11148_s1 + $0x1870] ss:$8 sps:$4 sm:$0xff]  }
 0x2cb   :  { %6022 = vmatpush1.bf16.msra.mxu0 %v8324_v10  ;;  %v1129_v10 = vcombine.high %v1113_v4, %v1113_v4 }
 0x2cc   :  { %6023 = vmatprep.subr.bf16.mxu0 %v8332_v33  ;;  %v8475_v33 = vmov 0  }
 0x2cd   :  { %6063 = vmatpush1.bf16.msra.mxu1 %v8327_v35  ;;  %v8412_v35 = vld [vmem:[%s11148_s1 + $0x1860] ss:$8 sps:$4 sm:$0xff]  }
 0x2ce   :  { %6064 = vmatprep.subr.bf16.mxu1 %v8335_v36 }
 0x2cf   :  { %6024 = vmatpush1.bf16.msra.mxu0 %v8330_v38  ;;  %v8417_v38 = vld [vmem:[%s11148_s1 + $0x1854] ss:$8 sps:$4 sm:$0xff]  }
 0x2d0   :  { %6025 = vmatprep.subr.bf16.mxu0 %v8338_v39 }
 0x2d1   :  { %6065 = vmatpush1.bf16.msra.mxu1 %v8333_v14 }
 0x2d2   :  { %6066 = vmatprep.subr.bf16.mxu1 %v8341_v43 }
 0x2d3   :  { %6026 = vmatpush1.bf16.msra.mxu0 %v8336_v44 }
 0x2d4   :  { %6027 = vmatprep.subr.bf16.mxu0 %v8344_v45  ;;  %v8415_v45 = vld [vmem:[%s11148_s1 + $0x1850] ss:$8 sps:$4 sm:$0xff]  }
 0x2d5   :  { %6067 = vmatpush1.bf16.msra.mxu1 %v8339_v5 }
 0x2d6   :  { %6068 = vmatprep.subr.bf16.mxu1 %v8347_v25  ;;  %v8420_v25 = vld [vmem:[%s11148_s1 + $0x1844] ss:$8 sps:$4 sm:$0xff]  }
 0x2d7   :  { %6028 = vmatpush1.bf16.msra.mxu0 %v8342_v49 }
 0x2d8   :  { %6029 = vmatprep.subr.bf16.mxu0 %v8350_v50 }
 0x2d9   :  { %6069 = vmatpush1.bf16.msra.mxu1 %v8345_v29  ;;  %v8418_v29 = vld [vmem:[%s11148_s1 + $0x1840] ss:$8 sps:$4 sm:$0xff]  }
 0x2da   :  { %6070 = vmatprep.subr.bf16.mxu1 %v8353_v31  ;;  %v8423_v31 = vld [vmem:[%s11148_s1 + $0x1834] ss:$8 sps:$4 sm:$0xff]  }
 0x2db   :  { %6030 = vmatpush1.bf16.msra.mxu0 %v8348_v52  ;;  %v8434_v52 = vld [vmem:[%s11150_s3 + $0x30] sm:$0xff]  }
 0x2dc   :  { %6031 = vmatprep.subr.bf16.mxu0 %v8356_v53  ;;  %v8421_v53 = vld [vmem:[%s11148_s1 + $0x1830] ss:$8 sps:$4 sm:$0xff]  }
 0x2dd   :  { %6071 = vmatpush1.bf16.msra.mxu1 %v8351_v18  ;;  %v8426_v18 = vld [vmem:[%s11148_s1 + $0x1824] ss:$8 sps:$4 sm:$0xff]  }
 0x2de   :  { %6072 = vmatprep.subr.bf16.mxu1 %v8359_v20  ;;  %v8435_v20 = vld [vmem:[%s11150_s3 + $0x28] sm:$0xff]  }
 0x2df   :  { %6032 = vmatpush1.bf16.msra.mxu0 %v8354_v42  ;;  %v8424_v42 = vld [vmem:[%s11148_s1 + $0x1820] ss:$8 sps:$4 sm:$0xff]  }
 0x2e0   :  { %6033 = vmatprep.subr.bf16.mxu0 %v8362_v54  ;;  %v8429_v54 = vld [vmem:[%s11148_s1 + $0x1814] ss:$8 sps:$4 sm:$0xff]  }
 0x2e1   :  { %6073 = vmatpush1.bf16.msra.mxu1 %v8357_v55  ;;  %v8427_v55 = vld [vmem:[%s11148_s1 + $0x1810] ss:$8 sps:$4 sm:$0xff]  }
 0x2e2   :  { %6074 = vmatprep.subr.bf16.mxu1 %v8365_v57  ;;  %v8432_v57 = vld [vmem:[%s11148_s1 + $0x1804] ss:$8 sps:$4 sm:$0xff]  }
 0x2e3   :  { %6034 = vmatpush2.bf16.msra.mxu0 %v8360_v58  ;;  %v8430_v58 = vld [vmem:[%s11148_s1 + $0x1800] ss:$8 sps:$4 sm:$0xff]  }
 0x2e4   :  { %6035 = vmatprep.subr.bf16.mxu0 %v8368_v30  ;;  %v6415_v30 = vld.sshfl [vmem:[%s11147_s0 + $0x30] sm:$0x1 pattern:$0x75316420] }
 0x2e5   :  { %6075 = vmatpush2.bf16.msra.mxu1 %v8363_v61  ;;  %v1145_v61 = vrot.slane %v6415_v30, %v8651_v48  ;;  %v8437_v48 = vld [vmem:[%s11150_s3 + $0x18] sm:$0xff]  }
 0x2e6   :  { %6076 = vmatprep.subr.bf16.mxu1 %v8371_v37 }
 0x2e7   :  { %6036 = vmatpush2.bf16.msra.mxu0 %v8366_v63 }
 0x2e8   :  { %6037 = vmatprep.subr.bf16.mxu0 %v8374_v1  ;;  %v8436_v1 = vld [vmem:[%s11150_s3 + $0x20] sm:$0xff]  }
 0x2e9   :  { %6077 = vmatpush2.bf16.msra.mxu1 %v8369_v46 }
 0x2ea   :  { %6078 = vmatprep.subr.bf16.mxu1 %v8377_v3 }
 0x2eb   :  { %6038 = vmatpush2.bf16.msra.mxu0 %v8372_v47 }
 0x2ec   :  { %6039 = vmatprep.subr.bf16.mxu0 %v8380_v7 }
 0x2ed   :  { %6079 = vmatpush2.bf16.msra.mxu1 %v8375_v24 }
 0x2ee   :  { %6080 = vmatprep.subr.bf16.mxu1 %v8383_v9 }
 0x2ef   :  { %6040 = vmatpush2.bf16.msra.mxu0 %v8378_v51 }
 0x2f0   :  { %6041 = vmatprep.subr.bf16.mxu0 %v8386_v11 }
 0x2f1   :  { %6081 = vmatpush2.bf16.msra.mxu1 %v8381_v40 }
 0x2f2   :  { %6082 = vmatprep.subr.bf16.mxu1 %v8389_v34  ;;  %v8438_v34 = vld [vmem:[%s11150_s3 + $0x10] sm:$0xff]  }
 0x2f3   :  { %6042 = vmatpush2.bf16.msra.mxu0 %v8384_v41 }
 0x2f4   :  { %6043 = vmatprep.subr.bf16.mxu0 %v8392_v12  ;;  %v8439_v12 = vld [vmem:[%s11150_s3 + $0x8] sm:$0xff]  }
 0x2f5   :  { %6083 = vmatpush2.bf16.msra.mxu1 %v8387_v13  ;;  %v8440_v13 = vld [vmem:[%s11150_s3] sm:$0xff]  }
 0x2f6   :  { %6084 = vmatprep.subr.bf16.mxu1 %v8395_v15  ;;  %v8441_v15 = vld [vmem:[%s11150_s3 + $0x60] ss:$0 sps:$4 sm:$0xff]  }
 0x2f7   :  { %6044 = vmatpush2.bf16.msra.mxu0 %v8390_v16  ;;  %v6257_v16 = vsel %vm6255_vm0, %v8441_v15, 0 }
 0x2f8   :  { %6045 = vmatprep.subr.bf16.mxu0 %v8398_v17  ;;  %v8442_v17 = vld [vmem:[%s11150_s3 + $0x58] sm:$0xff]  }
 0x2f9   :  { %6085 = vmatpush2.bf16.msra.mxu1 %v8393_v19  ;;  %v8443_v19 = vld [vmem:[%s11150_s3 + $0x50] sm:$0xff]  }
 0x2fa   :  { %6086 = vmatprep.subr.bf16.mxu1 %v8401_v56  ;;  %v8444_v56 = vld [vmem:[%s11150_s3 + $0x48] sm:$0xff]  }
 0x2fb   :  { %6046 = vmatpush2.bf16.msra.mxu0 %v8396_v21  ;;  %v8445_v21 = vld [vmem:[%s11150_s3 + $0x40] sm:$0xff]  }
 0x2fc   :  { %6047 = vmatprep.subr.bf16.mxu0 %v8404_v22  ;;  %v8446_v22 = vld [vmem:[%s11152_s5 + $0x28] ss:$0 sps:$4 sm:$0x33]  }
 0x2fd   :  { %6087 = vmatpush2.bf16.msra.mxu1 %v8399_v23  ;;  %v8476_v23 = vmov 0.0  }
 0x2fe   :  { %6088 = vmatprep.subr.bf16.mxu1 %v8407_v0  ;;  %v6358_v0 = vsel %vm6356_vm1, %v8446_v22, 0 }
 0x2ff   :  { %6048 = vmatpush2.bf16.msra.mxu0 %v8402_v2  ;;  %v8447_v2 = vld [vmem:[%s11152_s5 + $0x20] sm:$0xff]  }
 0x300   :  { %6099 = vmatprep.subr.bf16.mxu0 %v8411_v27  ;;  %v8449_v27 = vld [vmem:[%s11152_s5 + $0x10] sm:$0xff]  }
 0x301   :  { %6089 = vmatpush2.bf16.msra.mxu1 %v8405_v6 }
 0x302   :  { %v5805_v59 = vpop.f32.mrf.mxu0  ;;  %6050 = vmatmul.mubr.bf16.vlgmr.msra.gmra.mxu0 %v1113_v4  ;;  %6259 = vmatprep.subr.bf16.mxu1 %v8475_v33  ;;  %v8448_v4 = vld [vmem:[%s11152_s5 + $0x18] sm:$0xff]  }
 0x303   :  { %v5806_v60 = vadd.f32 %v5805_v59, %v10839_v26  ;;  %6100 = vmatpush1.bf16.msra.mxu0 %v8409_v8  ;;  %6131 = vmatprep.mubr.bf16.mxu0 %v8475_v33 }
 0x304   :  { %v5807_v36 = vpop.f32.mrf.mxu0  ;;  %v5846_v28 = vpop.f32.mrf.mxu1  ;;  %6091 = vmatmul.mubr.bf16.vlgmr.msra.gmra.mxu1 %v1129_v10  ;;  %6101 = vmatprep.subr.bf16.mxu0 %v8414_v62 }
 0x305   :  { %v5808_v39 = vadd.f32 %v5807_v36, %v10847_v32  ;;  %v5847_v14 = vadd.f32 %v5846_v28, %v5806_v60  ;;  %v8433_v32 = vld [vmem:[%s11150_s3 + $0x38] sm:$0xff]  }
 0x306   :  { %v5809_v43 = vpop.f32.mrf.mxu0  ;;  %v5848_v26 = vpop.f32.mrf.mxu1  ;;  %6260 = vmatpush1.bf16.msra.mxu1 %v8433_v32 }
 0x307   :  { %v5849_v44 = vadd.f32 %v5848_v26, %v5808_v39  ;;  %6102 = vmatpush1.bf16.msra.mxu0 %v8412_v35  ;;  %6261 = vmatprep.subr.bf16.mxu1 %v8475_v33 }
 0x308   :  { %v5810_v5 = vpop.f32.mrf.mxu0  ;;  %6103 = vmatprep.subr.bf16.mxu0 %v8417_v38  ;;  %v5850_v49 = vpop.f32.mrf.mxu1 }
 0x30a   :  { %v5851_v50 = vpop.f32.mrf.mxu1  ;;  %6262 = vmatpush1.bf16.msra.mxu1 %v8434_v52 }
 0x30b   :  { %6104 = vmatpush1.bf16.msra.mxu0 %v8415_v45  ;;  %6263 = vmatprep.subr.bf16.mxu1 %v8475_v33 }
 0x30c   :  { %6105 = vmatprep.subr.bf16.mxu0 %v8420_v25 }
 0x30e   :  { %6264 = vmatpush1.bf16.msra.mxu1 %v8435_v20 }
 0x30f   :  { %6106 = vmatpush1.bf16.msra.mxu0 %v8418_v29  ;;  %6265 = vmatprep.subr.bf16.mxu1 %v8475_v33 }
 0x310   :  { %6107 = vmatprep.subr.bf16.mxu0 %v8423_v31 }
 0x312   :  { %6266 = vmatpush1.bf16.msra.mxu1 %v8436_v1 }
 0x313   :  { %6108 = vmatpush1.bf16.msra.mxu0 %v8421_v53  ;;  %6267 = vmatprep.subr.bf16.mxu1 %v8475_v33 }
 0x314   :  { %6109 = vmatprep.subr.bf16.mxu0 %v8426_v18 }
 0x316   :  { %6268 = vmatpush1.bf16.msra.mxu1 %v8437_v48 }
 0x317   :  { %6110 = vmatpush1.bf16.msra.mxu0 %v8424_v42  ;;  %6269 = vmatprep.subr.bf16.mxu1 %v8475_v33 }
 0x318   :  { %6111 = vmatprep.subr.bf16.mxu0 %v8429_v54 }
 0x31a   :  { %6270 = vmatpush1.bf16.msra.mxu1 %v8438_v34 }
 0x31b   :  { %6112 = vmatpush1.bf16.msra.mxu0 %v8427_v55  ;;  %6271 = vmatprep.subr.bf16.mxu1 %v8475_v33 }
 0x31c   :  { %6113 = vmatprep.subr.bf16.mxu0 %v8432_v57 }
 0x31e   :  { %6272 = vmatpush1.bf16.msra.mxu1 %v8439_v12 }
 0x31f   :  { %6114 = vmatpush1.bf16.msra.mxu0 %v8430_v58  ;;  %6273 = vmatprep.subr.bf16.mxu1 %v8475_v33 }
 0x320   :  { %7230 = vmatprep.subr.bf16.mxu0 %v8476_v23 }
 0x322   :  { %6132 = vmatmul.mubr.bf16.vlgmr.msra.gmra.mxu0 %v1145_v61  ;;  %6274 = vmatpush1.bf16.msra.mxu1 %v8440_v13  ;;  %v8450_v61 = vld [vmem:[%s11152_s5 + $0x8] sm:$0xff]  }
 0x323   :  { %6281 = vmatprep.subr.bf16.mxu1 %v8475_v33  ;;  %7231 = vmatpush3.bf16.msra.mxu0 %v6358_v0 }
 0x324   :  { %7232 = vmatprep.subr.bf16.mxu0 %v8476_v23  ;;  %7242 = vmatprep.mubr.msk.bf16.mxu0 %vm8477_vm3, %v8476_v23 }
 0x326   :  { %6282 = vmatpush2.bf16.msra.mxu1 %v6257_v16 }
 0x327   :  { %6283 = vmatprep.subr.bf16.mxu1 %v8475_v33  ;;  %7233 = vmatpush3.bf16.msra.mxu0 %v8447_v2 }
 0x328   :  { %7234 = vmatprep.subr.bf16.mxu0 %v8476_v23 }
 0x32a   :  { %6284 = vmatpush2.bf16.msra.mxu1 %v8442_v17 }
 0x32b   :  { %6285 = vmatprep.subr.bf16.mxu1 %v8475_v33  ;;  %7235 = vmatpush3.bf16.msra.mxu0 %v8448_v4 }
 0x32c   :  { %7236 = vmatprep.subr.bf16.mxu0 %v8476_v23 }
 0x32e   :  { %6286 = vmatpush2.bf16.msra.mxu1 %v8443_v19 }
 0x32f   :  { %6287 = vmatprep.subr.bf16.mxu1 %v8475_v33  ;;  %7237 = vmatpush3.bf16.msra.mxu0 %v8449_v27 }
 0x330   :  { %7238 = vmatprep.subr.bf16.mxu0 %v8476_v23 }
 0x332   :  { %6288 = vmatpush2.bf16.msra.mxu1 %v8444_v56 }
 0x333   :  { %6289 = vmatprep.subr.bf16.mxu1 %v8475_v33  ;;  %7239 = vmatpush3.bf16.msra.mxu0 %v8450_v61 }
 0x334   :  { %7240 = vmatprep.subr.bf16.mxu0 %v8476_v23 }
 0x336   :  { %6290 = vmatpush2.bf16.msra.mxu1 %v8445_v21 }
 0x342   :  { %v5887_v37 = vpop.f32.mrf.mxu0 }
 0x343   :  { %v5888_v63 = vadd.f32 %v5887_v37, %v5847_v14  ;;  %v8451_v37 = vld [vmem:[%s11152_s5] sm:$0xff]   ;;  %s8478_s5 = smov [#allocation2]  }
 0x344   :  { %v5889_v46 = vpop.f32.mrf.mxu0  ;;  %v5928_v3 = vpop.f32.mrf.mxu1  ;;  %7241 = vmatpush3.bf16.msra.mxu0 %v8451_v37  ;;  %s6407_s12 = sshll.u32 %s8478_s5, 4  ;;  %s6408_s12 = int_to_ptr.vmem [resolvable:$true] %s6407_s12 }
 0x345   :  { %v5890_v47 = vadd.f32 %v5889_v46, %v5849_v44  ;;  %v5929_v7 = vadd.f32 %v5928_v3, %v5888_v63  ;;  %v7200_v63 = vld [vmem:[%s11151_s4] ss:$0 sm:$0xff]  ;;  %s8452_s4 = scalar_lea.vmem %s6408_s12, 32  ;;  %p8457_p1 = scmp.lt.s32.totalorder %s6408_s12, %s6408_s12 }
 0x346   :  { %v5891_v24 = vpop.f32.mrf.mxu0  ;;  %v5930_v9 = vpop.f32.mrf.mxu1  ;;  %p8453_p0 = scmp.ne.s32.totalorder %s6408_s12, %s8452_s4  ;;  %p8458_p2 = scmp.lt.s32.totalorder %s8452_s4, %s8452_s4 }
 0x347   :  { %v5931_v51 = vadd.f32 %v5930_v9, %v5890_v47 }
 0x348   :  { %v5892_v11 = vpop.f32.mrf.mxu0  ;;  %v5932_v40 = vpop.f32.mrf.mxu1  ;;  %p8459_p3 = por %p8458_p2, %p8457_p1 }
 0x34a   :  { %v5933_v41 = vpop.f32.mrf.mxu1  ;;  %p8460_p4 = pnand %p8459_p3, %p8453_p0 }
 0x382   :  { %v5969_v6 = vpop.f32.mrf.mxu0 }
 0x383   :  { %v5970_v8 = vadd.f32 %v5969_v6, %v5929_v7 }
 0x384   :  { %v5971_v10 = vpop.f32.mrf.mxu0  ;;  %v6010_v62 = vpop.f32.mrf.mxu1 }
 0x385   :  { %v5972_v59 = vadd.f32 %v5971_v10, %v5931_v51  ;;  %v6011_v33 = vadd.f32 %v6010_v62, %v5970_v8  ;;  %v7215_v51 = vld [vmem:[%s11153_s6] ss:$0 sm:$0xff] }
 0x386   :  { %v5973_v60 = vpop.f32.mrf.mxu0  ;;  %v6012_v35 = vpop.f32.mrf.mxu1 }
 0x387   :  { %v6013_v36 = vadd.f32 %v6012_v35, %v5972_v59 }
 0x388   :  { %v5974_v28 = vpop.f32.mrf.mxu0  ;;  %v6014_v38 = vpop.f32.mrf.mxu1 }
 0x38a   :  { %v6015_v39 = vpop.f32.mrf.mxu1 }
 0x3c2   :  { %v6051_v14 = vpop.f32.mrf.mxu0 }
 0x3c3   :  { %v6052_v50 = vadd.f32 %v6051_v14, %v6011_v33 }
 0x3c4   :  { %v6053_v43 = vpop.f32.mrf.mxu0  ;;  %v6092_v26 = vpop.f32.mrf.mxu1 }
 0x3c5   :  { %v6054_v32 = vadd.f32 %v6053_v43, %v6013_v36  ;;  %v6093_v29 = vadd.f32 %v6092_v26, %v6052_v50 }
 0x3c6   :  { %v6055_v44 = vpop.f32.mrf.mxu0  ;;  %v6094_v45 = vpop.f32.mrf.mxu1 }
 0x3c7   :  { %v6095_v52 = vadd.f32 %v6094_v45, %v6054_v32 }
 0x3c8   :  { %v6056_v5 = vpop.f32.mrf.mxu0  ;;  %v6096_v25 = vpop.f32.mrf.mxu1 }
 0x3ca   :  { %v6097_v49 = vpop.f32.mrf.mxu1 }
 0x3e2   :  { %v6133_v31 = vpop.f32.mrf.mxu0 }
 0x3e3   :  { %v6134_v53 = vadd.f32 %v6133_v31, %v6093_v29 }
 0x3e4   :  { %v6135_v18 = vpop.f32.mrf.mxu0 }
 0x3e5   :  { %v6136_v20 = vadd.f32 %v6135_v18, %v6095_v52  ;;  %v6140_v42 = vmax.f32 %v6134_v53, 0.0 }
 0x3e6   :  { %v6137_v54 = vpop.f32.mrf.mxu0 }
 0x3e7   :  { %v6141_v55 = vmax.f32 %v6136_v20, 0.0  ;;  %v6142_v30 = vpack.c.bf16 %v6140_v42, %v6140_v42 }
 0x3e8   :  { %v6138_v57 = vpop.f32.mrf.mxu0 }
 0x3e9   :  { %v6143_v58 = vpack.c.bf16 %v6141_v55, %v6141_v55 }
 0x3eb   :  { %7214 = vmatprep.mubr.msk.bf16.mxu1 %vm6251_vm2, %v6143_v58 }
 0x3ec   :  { %6292 = vmatmul.mubr.bf16.vlgmr.msra.gmra.mxu1 %v6142_v30 }
 0x4ac   :  { %v6293_v1 = vpop.f32.mrf.mxu1 }
 0x4ad   :  { %v6294_v46 = vadd.f32 %v7200_v63, %v6293_v1 }
 0x4ae   :  { %v6295_v3 = vpop.f32.mrf.mxu1 }
 0x4af   :  { %v6299_v47 = vmax.f32 %v6294_v46, 0.0 }
 0x4b0   :  { %v6296_v7 = vpop.f32.mrf.mxu1 }
 0x4b1   :  { %v6300_v24 = vpack.c.bf16 %v6299_v47, %v6299_v47 }
 0x4b2   :  { %v6297_v9 = vpop.f32.mrf.mxu1 }
 0x4b3   :  { %7243 = vmatmul.mubr.msk.bf16.vlgmr.msra.gmra.mxu0 %vm6352_vm4, %v6300_v24 }
 0x573   :  { %v6394_v48 = vpop.f32.mrf.mxu0 }
 0x574   :  { %v6395_v11 = vadd.f32 %v7215_v51, %v6394_v48 }
 0x575   :  { %v7244_v40 = vpop.f32.mrf.mxu0 }
 0x576   :  { %6400 = vst [vmem:[#allocation2] sm:$0x3] %v6395_v11 }
 0x577   :  { %v6397_v34 = vpop.f32.mrf.mxu0 }
 0x578   :  { %8463 = shalt.err (!%p8460_p4)
}
 0x579   :  { %6410 = dma.vmem_to_hbm [thread:$0]  %s6408_s12, 32, %s11154_s7, [#allocation3]   ;;  %v7245_v41 = vpop.f32.mrf.mxu0 }
 0x57a   :  { %8472 = dma.done.wait [#allocation3], 32  }
 0x57b   :  { %8473 = vsyncadd [#allocation3], 4294967264 }
 0x57c   :  { %6414 = vsyncpa [#allocation3], 1 }

</bundles_post_ra>
